<compile_context>
chip_gen: v6e
topology: v6e:2x2x1
jax: 0.10.0
libtpu: 0.0.40
codegen_flags: <defaults>
</compile_context>

<pallas_src>
import functools

import jax
import jax.numpy as jnp
import numpy as np
from jax import lax
from jax.experimental import pallas as pl
from jax.experimental.pallas import tpu as pltpu


def _pick_row_chunk(hout, wout, target_m=512):
    """Largest divisor of hout with rh*wout close to target_m (MXU-friendly M)."""
    rh = max(1, min(hout, -(-target_m // wout)))   # ceil(target_m / wout), capped
    while hout % rh:
        rh -= 1
    return rh


def _vmem_limit_bytes():
    # ~3/4 of physical VMEM, capped at 100 MiB:
    #   v5e/v6e (128 MiB) -> 96 MiB, v7x (64 MiB) -> 48 MiB.
    try:
        cap = int(pltpu.get_tpu_info().vmem_capacity_bytes)
    except Exception:
        cap = 128 * 1024 * 1024
    if cap <= 0:
        cap = 128 * 1024 * 1024
    return min((cap * 3) // 4, 100 * 1024 * 1024)


# ----------------------------------------------------------------------------
# Fused Pallas kernel: in-kernel 2x upsample + concat + pad
#                      + 2x (3x3 conv + folded BN + ReLU)
# ----------------------------------------------------------------------------
def _make_decoder_kernel(Hin, Win, Cx, Cs, Cout, RH):
    Hout, Wout = 2 * Hin, 2 * Win
    Cin1 = Cx + Cs
    M = RH * Wout
    n_chunks = Hout // RH

    def _row_loop(body):
        # Static unroll for short trip counts (best LLO visibility), fori_loop
        # otherwise to bound live ranges / code size.
        if n_chunks <= 4:
            for i in range(n_chunks):
                body(i * RH)
        else:
            def fori_body(i, carry):
                body(pl.multiple_of(i * RH, RH))
                return carry
            lax.fori_loop(0, n_chunks, fori_body, 0)

    def kernel(x_ref, skip_ref, w1_ref, s1_ref, b1_ref,
               w2_ref, s2_ref, b2_ref, o_ref, pad1_ref, pad2_ref):
        # ---- Stage 0: zero ONLY the 1-pixel border (interior is fully
        #      rewritten every step) -- removes the full-buffer memsets.
        for ref, c in ((pad1_ref, Cin1), (pad2_ref, Cout)):
            zrow = jnp.zeros((1, Wout + 2, c), jnp.float32)
            ref[0:1, :, :] = zrow
            ref[Hout + 1:Hout + 2, :, :] = zrow
            zcol = jnp.zeros((Hout + 2, 1, c), jnp.float32)
            ref[:, 0:1, :] = zcol
            ref[:, Wout + 1:Wout + 2, :] = zcol

        # ---- Stage A: fused 2x nearest upsample of x + channel concat with
        #      skip, written straight into the padded VMEM input of conv1
        #      (neither x_up nor the concatenated tensor ever touches HBM).
        xb = x_ref[0].astype(jnp.float32)                    # (Hin, Win, Cx)
        for w in range(Win):
            colw = xb[:, w:w + 1, :]                          # (Hin, 1, Cx)
            # (Hin,1,1,Cx) -> broadcast (Hin,2,2,Cx) -> (Hout,2,Cx):
            # rows and the column pair duplicated (nearest upsample).
            blk = jnp.broadcast_to(colw[:, :, None, :],
                                   (Hin, 2, 2, Cx)).reshape(Hout, 2, Cx)
            pad1_ref[1:Hout + 1, 1 + 2 * w:3 + 2 * w, 0:Cx] = blk
        pad1_ref[1:Hout + 1, 1:Wout + 1, Cx:Cin1] = (
            skip_ref[0].astype(jnp.float32))

        # ---- 3x3 conv on an RH-row chunk as 3 accumulating MXU dots (one per
        #      kw, K = 3*cin): a single sublane-shifted slice per kw, the three
        #      kh taps are free leading-dim slices.
        def conv_chunk(src_ref, w_ref, scale_bc, bias_bc, cin, r0):
            rows = src_ref[pl.ds(r0, RH + 2), :, :]           # (RH+2, Wout+2, cin)
            acc = None
            for kw in range(3):
                shifted = rows[:, kw:kw + Wout, :]            # (RH+2, Wout, cin)
                taps = [shifted[kh:kh + RH].reshape(M, cin) for kh in range(3)]
                patch = jnp.concatenate(taps, axis=-1).astype(jnp.bfloat16)
                part = jnp.dot(patch, w_ref[kw],
                               preferred_element_type=jnp.float32)
                acc = part if acc is None else acc + part
            # Folded BatchNorm (eval) + ReLU epilogue, f32.
            return jnp.maximum(acc * scale_bc + bias_bc, 0.0)  # (M, Cout)

        # ---- Stage B: conv1 + BN1 + ReLU -> padded VMEM activation.
        scale1 = jnp.broadcast_to(s1_ref[...], (M, Cout))     # hoisted
        bias1 = jnp.broadcast_to(b1_ref[...], (M, Cout))

        def stage_b(r0):
            y = conv_chunk(pad1_ref, w1_ref, scale1, bias1, Cin1, r0)
            pad2_ref[pl.ds(r0 + 1, RH), 1:Wout + 1, :] = (
                y.reshape(RH, Wout, Cout))
        _row_loop(stage_b)

        # ---- Stage C: conv2 + BN2 + ReLU -> lane-dense HBM output.
        scale2 = jnp.broadcast_to(s2_ref[...], (M, Cout))
        bias2 = jnp.broadcast_to(b2_ref[...], (M, Cout))

        def stage_c(r0):
            y = conv_chunk(pad2_ref, w2_ref, scale2, bias2, Cout, r0)
            o_ref[0, pl.ds(r0, RH), :, :] = (
                y.reshape(RH, Wout, Cout).astype(o_ref.dtype))
        _row_loop(stage_c)

    return kernel


def decoder_block_apply(params, x_nhwc, skip_nhwc):
    """x_nhwc: (B, Hin, Win, Cx) bf16 (pre-upsample); skip: (B, 2Hin, 2Win, Cs) bf16."""
    B, Hin, Win, Cx = x_nhwc.shape
    _, Hout, Wout, Cs = skip_nhwc.shape
    assert Hout == 2 * Hin and Wout == 2 * Win
    Cin1 = Cx + Cs
    Cout = params["c1"]["scale"].shape[-1]
    RH = _pick_row_chunk(Hout, Wout)

    kernel = _make_decoder_kernel(Hin, Win, Cx, Cs, Cout, RH)
    c2 = lambda b: (0, 0)
    c3 = lambda b: (0, 0, 0)

    return pl.pallas_call(
        kernel,
        out_shape=jax.ShapeDtypeStruct((B, Hout, Wout, Cout), jnp.float32),
        grid_spec=pltpu.PrefetchScalarGridSpec(
            num_scalar_prefetch=0,
            grid=(B,),
            in_specs=[
                pl.BlockSpec((1, Hin, Win, Cx), lambda b: (b, 0, 0, 0)),
                pl.BlockSpec((1, Hout, Wout, Cs), lambda b: (b, 0, 0, 0)),
                pl.BlockSpec((3, 3 * Cin1, Cout), c3),
                pl.BlockSpec((1, Cout), c2),
                pl.BlockSpec((1, Cout), c2),
                pl.BlockSpec((3, 3 * Cout, Cout), c3),
                pl.BlockSpec((1, Cout), c2),
                pl.BlockSpec((1, Cout), c2),
            ],
            out_specs=pl.BlockSpec((1, Hout, Wout, Cout),
                                   lambda b: (b, 0, 0, 0)),
            scratch_shapes=[
                pltpu.VMEM((Hout + 2, Wout + 2, Cin1), jnp.float32),
                pltpu.VMEM((Hout + 2, Wout + 2, Cout), jnp.float32),
            ],
        ),
        compiler_params=pltpu.CompilerParams(
            dimension_semantics=("parallel",),      # batches across v7x cores
            vmem_limit_bytes=_vmem_limit_bytes(),
        ),
    )(x_nhwc, skip_nhwc,
      params["c1"]["w_packed"], params["c1"]["scale"], params["c1"]["bias"],
      params["c2"]["w_packed"], params["c2"]["scale"], params["c2"]["bias"])


# ----------------------------------------------------------------------------
# Parameter construction (deterministic, BN folded in eval mode)
# ----------------------------------------------------------------------------
def make_conv_bn_params(key, cin, cout, eps=1e-5):
    k_w, k_g, k_b, k_m, k_v = jax.random.split(key, 5)
    # PyTorch conv weight layout (Cout, Cin, kH, kW); bias=False under BN.
    w_oihw = 0.1 * jax.random.normal(k_w, (cout, cin, 3, 3), jnp.float32)
    gamma = 1.0 + 0.1 * jax.random.normal(k_g, (cout,), jnp.float32)
    beta = 0.1 * jax.random.normal(k_b, (cout,), jnp.float32)
    running_mean = 0.1 * jax.random.normal(k_m, (cout,), jnp.float32)
    running_var = 1.0 + 0.1 * jax.random.uniform(k_v, (cout,), jnp.float32)

    scale = gamma / jnp.sqrt(running_var + eps)              # (Cout,)
    bias = beta - running_mean * scale                       # (Cout,)
    # (Cout,Cin,kh,kw) -> (kw,kh,cin,cout) -> (3, 3*cin, cout): kw-major blocks
    # so the kernel issues one accumulating dot per kw with K = 3*cin.
    w_packed = jnp.transpose(w_oihw, (3, 2, 1, 0)).reshape(3, 3 * cin, cout)
    return {
        "w_oihw": w_oihw,
        "w_packed": w_packed.astype(jnp.bfloat16),
        "scale": scale.reshape(1, cout),
        "bias": bias.reshape(1, cout),
    }


# ----------------------------------------------------------------------------
# DecoderBlock forward (NCHW boundary; upsample + concat + both convs fused)
# ----------------------------------------------------------------------------
def decoder_block_forward(params, x_nchw, skip_nchw=None, i=None):
    assert skip_nchw is not None, "this block is built with skip_channels > 0"
    # NCHW -> NHWC; bf16 at the boundary halves input DMA (MXU operands are
    # bf16 anyway).  The 2x nearest upsample happens inside the kernel.
    x = jnp.transpose(x_nchw, (0, 2, 3, 1)).astype(jnp.bfloat16)
    skip = jnp.transpose(skip_nchw, (0, 2, 3, 1)).astype(jnp.bfloat16)
    # attention1 / attention2 are Identity for attention_type=None.
    # TODO(synk): i == 2 would apply MultiScaleAttention (external module).
    y = decoder_block_apply(params, x, skip)
    return jnp.transpose(y, (0, 3, 1, 2))                     # back to NCHW


# ----------------------------------------------------------------------------
# Pure-JAX reference (bf16 operand rounding mirrored, f32 accumulation)
# ----------------------------------------------------------------------------
def _ref_conv_bn_relu(x_nhwc, p):
    xb = x_nhwc.astype(jnp.bfloat16).astype(jnp.float32)
    wb = p["w_oihw"].astype(jnp.bfloat16).astype(jnp.float32)
    w_hwio = jnp.transpose(wb, (2, 3, 1, 0))                  # (kH,kW,Cin,Cout)
    y = lax.conv_general_dilated(
        xb, w_hwio, window_strides=(1, 1), padding="SAME",
        dimension_numbers=("NHWC", "HWIO", "NHWC"),
        precision=lax.Precision.HIGHEST)
    return jnp.maximum(y * p["scale"][0] + p["bias"][0], 0.0)


def decoder_block_reference(params, x_nchw, skip_nchw):
    x = jnp.transpose(x_nchw, (0, 2, 3, 1))
    x = jnp.repeat(jnp.repeat(x, 2, axis=1), 2, axis=2)
    x = jnp.concatenate([x, jnp.transpose(skip_nchw, (0, 2, 3, 1))], axis=-1)
    x = _ref_conv_bn_relu(x, params["c1"])
    x = _ref_conv_bn_relu(x, params["c2"])
    return jnp.transpose(x, (0, 3, 1, 2))


# ----------------------------------------------------------------------------
if __name__ == "__main__":
    # Realistic decoder-stage channel counts (multiples of 128 keep the lane
    # axis dense); spatial kept small: x is 8x8, skip/output are 16x16.
    in_channels, skip_channels, out_channels = 128, 128, 128
    B, H, W = 2, 8, 8

    root = jax.random.PRNGKey(0)
    kx, ks, k1, k2 = jax.random.split(root, 4)
    x_nchw = jax.random.normal(kx, (B, in_channels, H, W), jnp.float32)
    skip_nchw = jax.random.normal(ks, (B, skip_channels, 2 * H, 2 * W),
                                  jnp.float32)

    params = {
        "c1": make_conv_bn_params(k1, in_channels + skip_channels,
                                  out_channels),
        "c2": make_conv_bn_params(k2, out_channels, out_channels),
    }

    fwd = jax.jit(functools.partial(decoder_block_forward, params))
    out = jax.block_until_ready(fwd(x_nchw, skip_nchw))

    ref = jax.block_until_ready(
        decoder_block_reference(params, x_nchw, skip_nchw))
    assert out.shape == (B, out_channels, 2 * H, 2 * W)
    np.testing.assert_allclose(np.asarray(out), np.asarray(ref),
                               rtol=2e-3, atol=2e-3)
    print("KERNEL_OK")
</pallas_src>

<mosaic_0001>
module attributes {stable_mosaic.version = 11 : i64} {
  func.func @kernel(%arg0: i32, %arg1: memref<1x8x8x128xbf16, #tpu.memory_space<vmem>>, %arg2: memref<1x16x16x128xbf16, #tpu.memory_space<vmem>>, %arg3: memref<3x768x128xbf16, #tpu.memory_space<vmem>>, %arg4: memref<1x128xf32, #tpu.memory_space<vmem>>, %arg5: memref<1x128xf32, #tpu.memory_space<vmem>>, %arg6: memref<3x384x128xbf16, #tpu.memory_space<vmem>>, %arg7: memref<1x128xf32, #tpu.memory_space<vmem>>, %arg8: memref<1x128xf32, #tpu.memory_space<vmem>>, %arg9: memref<1x16x16x128xf32, #tpu.memory_space<vmem>>, %arg10: memref<18x18x256xf32, #tpu.memory_space<vmem>>, %arg11: memref<18x18x128xf32, #tpu.memory_space<vmem>>) attributes {dimension_semantics = [#tpu.dimension_semantics<parallel>], iteration_bounds = array<i64: 2>, scalar_prefetch = 0 : i64, scratch_operands = 2 : i64, tpu.core_type = #tpu.core_type<tc>, window_params = [{transform_indices = @transform_0, window_bounds = array<i64: 1, 8, 8, 128>}, {transform_indices = @transform_1, window_bounds = array<i64: 1, 16, 16, 128>}, {pipeline_mode = #tpu.pipeline_mode<synchronous>, transform_indices = @transform_2, window_bounds = array<i64: 3, 768, 128>}, {pipeline_mode = #tpu.pipeline_mode<synchronous>, transform_indices = @transform_3, window_bounds = array<i64: 1, 128>}, {pipeline_mode = #tpu.pipeline_mode<synchronous>, transform_indices = @transform_4, window_bounds = array<i64: 1, 128>}, {pipeline_mode = #tpu.pipeline_mode<synchronous>, transform_indices = @transform_5, window_bounds = array<i64: 3, 384, 128>}, {pipeline_mode = #tpu.pipeline_mode<synchronous>, transform_indices = @transform_6, window_bounds = array<i64: 1, 128>}, {pipeline_mode = #tpu.pipeline_mode<synchronous>, transform_indices = @transform_7, window_bounds = array<i64: 1, 128>}, {transform_indices = @transform_8, window_bounds = array<i64: 1, 16, 16, 128>}]} {
    %cst = arith.constant 0.000000e+00 : f32
    %0 = vector.broadcast %cst : f32 to vector<1x18x256xf32>
    %c0 = arith.constant 0 : index
    %c0_0 = arith.constant 0 : index
    %c0_1 = arith.constant 0 : index
    %1 = vector.load %arg10[%c0, %c0_0, %c0_1] : memref<18x18x256xf32, #tpu.memory_space<vmem>>, vector<1x18x256xf32>
    tpu.vector_store %arg10[%c0, %c0_0, %c0_1], %0 {strides = array<i32>} : memref<18x18x256xf32, #tpu.memory_space<vmem>>, vector<1x18x256xf32>,
    %c17 = arith.constant 17 : index
    %c0_2 = arith.constant 0 : index
    %c0_3 = arith.constant 0 : index
    %2 = vector.load %arg10[%c17, %c0_2, %c0_3] : memref<18x18x256xf32, #tpu.memory_space<vmem>>, vector<1x18x256xf32>
    tpu.vector_store %arg10[%c17, %c0_2, %c0_3], %0 {strides = array<i32>} : memref<18x18x256xf32, #tpu.memory_space<vmem>>, vector<1x18x256xf32>,
    %cst_4 = arith.constant 0.000000e+00 : f32
    %3 = vector.broadcast %cst_4 : f32 to vector<18x1x256xf32>
    %c0_5 = arith.constant 0 : index
    %c0_6 = arith.constant 0 : index
    %c0_7 = arith.constant 0 : index
    %4 = vector.load %arg10[%c0_5, %c0_6, %c0_7] : memref<18x18x256xf32, #tpu.memory_space<vmem>>, vector<18x1x256xf32>
    tpu.vector_store %arg10[%c0_5, %c0_6, %c0_7], %3 {strides = array<i32>} : memref<18x18x256xf32, #tpu.memory_space<vmem>>, vector<18x1x256xf32>,
    %c0_8 = arith.constant 0 : index
    %c17_9 = arith.constant 17 : index
    %c0_10 = arith.constant 0 : index
    %5 = vector.load %arg10[%c0_8, %c17_9, %c0_10] : memref<18x18x256xf32, #tpu.memory_space<vmem>>, vector<18x1x256xf32>
    tpu.vector_store %arg10[%c0_8, %c17_9, %c0_10], %3 {strides = array<i32>} : memref<18x18x256xf32, #tpu.memory_space<vmem>>, vector<18x1x256xf32>,
    %cst_11 = arith.constant 0.000000e+00 : f32
    %6 = vector.broadcast %cst_11 : f32 to vector<1x18x128xf32>
    %c0_12 = arith.constant 0 : index
    %c0_13 = arith.constant 0 : index
    %c0_14 = arith.constant 0 : index
    %7 = vector.load %arg11[%c0_12, %c0_13, %c0_14] : memref<18x18x128xf32, #tpu.memory_space<vmem>>, vector<1x18x128xf32>
    tpu.vector_store %arg11[%c0_12, %c0_13, %c0_14], %6 {strides = array<i32>} : memref<18x18x128xf32, #tpu.memory_space<vmem>>, vector<1x18x128xf32>,
    %c17_15 = arith.constant 17 : index
    %c0_16 = arith.constant 0 : index
    %c0_17 = arith.constant 0 : index
    %8 = vector.load %arg11[%c17_15, %c0_16, %c0_17] : memref<18x18x128xf32, #tpu.memory_space<vmem>>, vector<1x18x128xf32>
    tpu.vector_store %arg11[%c17_15, %c0_16, %c0_17], %6 {strides = array<i32>} : memref<18x18x128xf32, #tpu.memory_space<vmem>>, vector<1x18x128xf32>,
    %cst_18 = arith.constant 0.000000e+00 : f32
    %9 = vector.broadcast %cst_18 : f32 to vector<18x1x128xf32>
    %c0_19 = arith.constant 0 : index
    %c0_20 = arith.constant 0 : index
    %c0_21 = arith.constant 0 : index
    %10 = vector.load %arg11[%c0_19, %c0_20, %c0_21] : memref<18x18x128xf32, #tpu.memory_space<vmem>>, vector<18x1x128xf32>
    tpu.vector_store %arg11[%c0_19, %c0_20, %c0_21], %9 {strides = array<i32>} : memref<18x18x128xf32, #tpu.memory_space<vmem>>, vector<18x1x128xf32>,
    %c0_22 = arith.constant 0 : index
    %c17_23 = arith.constant 17 : index
    %c0_24 = arith.constant 0 : index
    %11 = vector.load %arg11[%c0_22, %c17_23, %c0_24] : memref<18x18x128xf32, #tpu.memory_space<vmem>>, vector<18x1x128xf32>
    tpu.vector_store %arg11[%c0_22, %c17_23, %c0_24], %9 {strides = array<i32>} : memref<18x18x128xf32, #tpu.memory_space<vmem>>, vector<18x1x128xf32>,
    %c0_25 = arith.constant 0 : index
    %c0_26 = arith.constant 0 : index
    %c0_27 = arith.constant 0 : index
    %c0_28 = arith.constant 0 : index
    %12 = vector.load %arg1[%c0_25, %c0_26, %c0_27, %c0_28] : memref<1x8x8x128xbf16, #tpu.memory_space<vmem>>, vector<1x8x8x128xbf16>
    %13 = vector.shape_cast %12 : vector<1x8x8x128xbf16> to vector<8x8x128xbf16>
    %14 = arith.extf %13 : vector<8x8x128xbf16> to vector<8x8x128xf32>
    %15 = vector.extract_strided_slice %14 {offsets = [0, 0, 0], sizes = [8, 1, 128], strides = [1, 1, 1]} : vector<8x8x128xf32> to vector<8x1x128xf32>
    %16 = vector.shape_cast %15 : vector<8x1x128xf32> to vector<8x1x1x128xf32>
    %17 = vector.shape_cast %16 : vector<8x1x1x128xf32> to vector<8x1x1x128xf32>
    %18 = vector.broadcast %17 : vector<8x1x1x128xf32> to vector<8x2x2x128xf32>
    %19 = vector.shape_cast %18 : vector<8x2x2x128xf32> to vector<16x2x128xf32>
    %c1 = arith.constant 1 : index
    %c1_29 = arith.constant 1 : index
    %c0_30 = arith.constant 0 : index
    %20 = vector.load %arg10[%c1, %c1_29, %c0_30] : memref<18x18x256xf32, #tpu.memory_space<vmem>>, vector<16x2x128xf32>
    tpu.vector_store %arg10[%c1, %c1_29, %c0_30], %19 {strides = array<i32>} : memref<18x18x256xf32, #tpu.memory_space<vmem>>, vector<16x2x128xf32>,
    %21 = vector.extract_strided_slice %14 {offsets = [0, 1, 0], sizes = [8, 1, 128], strides = [1, 1, 1]} : vector<8x8x128xf32> to vector<8x1x128xf32>
    %22 = vector.shape_cast %21 : vector<8x1x128xf32> to vector<8x1x1x128xf32>
    %23 = vector.shape_cast %22 : vector<8x1x1x128xf32> to vector<8x1x1x128xf32>
    %24 = vector.broadcast %23 : vector<8x1x1x128xf32> to vector<8x2x2x128xf32>
    %25 = vector.shape_cast %24 : vector<8x2x2x128xf32> to vector<16x2x128xf32>
    %c1_31 = arith.constant 1 : index
    %c3 = arith.constant 3 : index
    %c0_32 = arith.constant 0 : index
    %26 = vector.load %arg10[%c1_31, %c3, %c0_32] : memref<18x18x256xf32, #tpu.memory_space<vmem>>, vector<16x2x128xf32>
    tpu.vector_store %arg10[%c1_31, %c3, %c0_32], %25 {strides = array<i32>} : memref<18x18x256xf32, #tpu.memory_space<vmem>>, vector<16x2x128xf32>,
    %27 = vector.extract_strided_slice %14 {offsets = [0, 2, 0], sizes = [8, 1, 128], strides = [1, 1, 1]} : vector<8x8x128xf32> to vector<8x1x128xf32>
    %28 = vector.shape_cast %27 : vector<8x1x128xf32> to vector<8x1x1x128xf32>
    %29 = vector.shape_cast %28 : vector<8x1x1x128xf32> to vector<8x1x1x128xf32>
    %30 = vector.broadcast %29 : vector<8x1x1x128xf32> to vector<8x2x2x128xf32>
    %31 = vector.shape_cast %30 : vector<8x2x2x128xf32> to vector<16x2x128xf32>
    %c1_33 = arith.constant 1 : index
    %c5 = arith.constant 5 : index
    %c0_34 = arith.constant 0 : index
    %32 = vector.load %arg10[%c1_33, %c5, %c0_34] : memref<18x18x256xf32, #tpu.memory_space<vmem>>, vector<16x2x128xf32>
    tpu.vector_store %arg10[%c1_33, %c5, %c0_34], %31 {strides = array<i32>} : memref<18x18x256xf32, #tpu.memory_space<vmem>>, vector<16x2x128xf32>,
    %33 = vector.extract_strided_slice %14 {offsets = [0, 3, 0], sizes = [8, 1, 128], strides = [1, 1, 1]} : vector<8x8x128xf32> to vector<8x1x128xf32>
    %34 = vector.shape_cast %33 : vector<8x1x128xf32> to vector<8x1x1x128xf32>
    %35 = vector.shape_cast %34 : vector<8x1x1x128xf32> to vector<8x1x1x128xf32>
    %36 = vector.broadcast %35 : vector<8x1x1x128xf32> to vector<8x2x2x128xf32>
    %37 = vector.shape_cast %36 : vector<8x2x2x128xf32> to vector<16x2x128xf32>
    %c1_35 = arith.constant 1 : index
    %c7 = arith.constant 7 : index
    %c0_36 = arith.constant 0 : index
    %38 = vector.load %arg10[%c1_35, %c7, %c0_36] : memref<18x18x256xf32, #tpu.memory_space<vmem>>, vector<16x2x128xf32>
    tpu.vector_store %arg10[%c1_35, %c7, %c0_36], %37 {strides = array<i32>} : memref<18x18x256xf32, #tpu.memory_space<vmem>>, vector<16x2x128xf32>,
    %39 = vector.extract_strided_slice %14 {offsets = [0, 4, 0], sizes = [8, 1, 128], strides = [1, 1, 1]} : vector<8x8x128xf32> to vector<8x1x128xf32>
    %40 = vector.shape_cast %39 : vector<8x1x128xf32> to vector<8x1x1x128xf32>
    %41 = vector.shape_cast %40 : vector<8x1x1x128xf32> to vector<8x1x1x128xf32>
    %42 = vector.broadcast %41 : vector<8x1x1x128xf32> to vector<8x2x2x128xf32>
    %43 = vector.shape_cast %42 : vector<8x2x2x128xf32> to vector<16x2x128xf32>
    %c1_37 = arith.constant 1 : index
    %c9 = arith.constant 9 : index
    %c0_38 = arith.constant 0 : index
    %44 = vector.load %arg10[%c1_37, %c9, %c0_38] : memref<18x18x256xf32, #tpu.memory_space<vmem>>, vector<16x2x128xf32>
    tpu.vector_store %arg10[%c1_37, %c9, %c0_38], %43 {strides = array<i32>} : memref<18x18x256xf32, #tpu.memory_space<vmem>>, vector<16x2x128xf32>,
    %45 = vector.extract_strided_slice %14 {offsets = [0, 5, 0], sizes = [8, 1, 128], strides = [1, 1, 1]} : vector<8x8x128xf32> to vector<8x1x128xf32>
    %46 = vector.shape_cast %45 : vector<8x1x128xf32> to vector<8x1x1x128xf32>
    %47 = vector.shape_cast %46 : vector<8x1x1x128xf32> to vector<8x1x1x128xf32>
    %48 = vector.broadcast %47 : vector<8x1x1x128xf32> to vector<8x2x2x128xf32>
    %49 = vector.shape_cast %48 : vector<8x2x2x128xf32> to vector<16x2x128xf32>
    %c1_39 = arith.constant 1 : index
    %c11 = arith.constant 11 : index
    %c0_40 = arith.constant 0 : index
    %50 = vector.load %arg10[%c1_39, %c11, %c0_40] : memref<18x18x256xf32, #tpu.memory_space<vmem>>, vector<16x2x128xf32>
    tpu.vector_store %arg10[%c1_39, %c11, %c0_40], %49 {strides = array<i32>} : memref<18x18x256xf32, #tpu.memory_space<vmem>>, vector<16x2x128xf32>,
    %51 = vector.extract_strided_slice %14 {offsets = [0, 6, 0], sizes = [8, 1, 128], strides = [1, 1, 1]} : vector<8x8x128xf32> to vector<8x1x128xf32>
    %52 = vector.shape_cast %51 : vector<8x1x128xf32> to vector<8x1x1x128xf32>
    %53 = vector.shape_cast %52 : vector<8x1x1x128xf32> to vector<8x1x1x128xf32>
    %54 = vector.broadcast %53 : vector<8x1x1x128xf32> to vector<8x2x2x128xf32>
    %55 = vector.shape_cast %54 : vector<8x2x2x128xf32> to vector<16x2x128xf32>
    %c1_41 = arith.constant 1 : index
    %c13 = arith.constant 13 : index
    %c0_42 = arith.constant 0 : index
    %56 = vector.load %arg10[%c1_41, %c13, %c0_42] : memref<18x18x256xf32, #tpu.memory_space<vmem>>, vector<16x2x128xf32>
    tpu.vector_store %arg10[%c1_41, %c13, %c0_42], %55 {strides = array<i32>} : memref<18x18x256xf32, #tpu.memory_space<vmem>>, vector<16x2x128xf32>,
    %57 = vector.extract_strided_slice %14 {offsets = [0, 7, 0], sizes = [8, 1, 128], strides = [1, 1, 1]} : vector<8x8x128xf32> to vector<8x1x128xf32>
    %58 = vector.shape_cast %57 : vector<8x1x128xf32> to vector<8x1x1x128xf32>
    %59 = vector.shape_cast %58 : vector<8x1x1x128xf32> to vector<8x1x1x128xf32>
    %60 = vector.broadcast %59 : vector<8x1x1x128xf32> to vector<8x2x2x128xf32>
    %61 = vector.shape_cast %60 : vector<8x2x2x128xf32> to vector<16x2x128xf32>
    %c1_43 = arith.constant 1 : index
    %c15 = arith.constant 15 : index
    %c0_44 = arith.constant 0 : index
    %62 = vector.load %arg10[%c1_43, %c15, %c0_44] : memref<18x18x256xf32, #tpu.memory_space<vmem>>, vector<16x2x128xf32>
    tpu.vector_store %arg10[%c1_43, %c15, %c0_44], %61 {strides = array<i32>} : memref<18x18x256xf32, #tpu.memory_space<vmem>>, vector<16x2x128xf32>,
    %c0_45 = arith.constant 0 : index
    %c0_46 = arith.constant 0 : index
    %c0_47 = arith.constant 0 : index
    %c0_48 = arith.constant 0 : index
    %63 = vector.load %arg2[%c0_45, %c0_46, %c0_47, %c0_48] : memref<1x16x16x128xbf16, #tpu.memory_space<vmem>>, vector<1x16x16x128xbf16>
    %64 = vector.shape_cast %63 : vector<1x16x16x128xbf16> to vector<16x16x128xbf16>
    %65 = arith.extf %64 : vector<16x16x128xbf16> to vector<16x16x128xf32>
    %c1_49 = arith.constant 1 : index
    %c1_50 = arith.constant 1 : index
    %c128 = arith.constant 128 : index
    %66 = vector.load %arg10[%c1_49, %c1_50, %c128] : memref<18x18x256xf32, #tpu.memory_space<vmem>>, vector<16x16x128xf32>
    tpu.vector_store %arg10[%c1_49, %c1_50, %c128], %65 {strides = array<i32>} : memref<18x18x256xf32, #tpu.memory_space<vmem>>, vector<16x16x128xf32>,
    %c0_51 = arith.constant 0 : index
    %c0_52 = arith.constant 0 : index
    %67 = vector.load %arg4[%c0_51, %c0_52] : memref<1x128xf32, #tpu.memory_space<vmem>>, vector<1x128xf32>
    %68 = vector.shape_cast %67 : vector<1x128xf32> to vector<1x128xf32>
    %69 = vector.broadcast %68 : vector<1x128xf32> to vector<256x128xf32>
    %c0_53 = arith.constant 0 : index
    %c0_54 = arith.constant 0 : index
    %70 = vector.load %arg5[%c0_53, %c0_54] : memref<1x128xf32, #tpu.memory_space<vmem>>, vector<1x128xf32>
    %71 = vector.shape_cast %70 : vector<1x128xf32> to vector<1x128xf32>
    %72 = vector.broadcast %71 : vector<1x128xf32> to vector<256x128xf32>
    %c0_55 = arith.constant 0 : index
    %c0_56 = arith.constant 0 : index
    %c0_57 = arith.constant 0 : index
    %73 = vector.load %arg10[%c0_55, %c0_56, %c0_57] : memref<18x18x256xf32, #tpu.memory_space<vmem>>, vector<18x18x256xf32>
    %74 = vector.extract_strided_slice %73 {offsets = [0, 0, 0], sizes = [18, 16, 256], strides = [1, 1, 1]} : vector<18x18x256xf32> to vector<18x16x256xf32>
    %75 = vector.extract_strided_slice %74 {offsets = [0, 0, 0], sizes = [16, 16, 256], strides = [1, 1, 1]} : vector<18x16x256xf32> to vector<16x16x256xf32>
    %76 = vector.shape_cast %75 : vector<16x16x256xf32> to vector<256x256xf32>
    %77 = vector.extract_strided_slice %74 {offsets = [1, 0, 0], sizes = [16, 16, 256], strides = [1, 1, 1]} : vector<18x16x256xf32> to vector<16x16x256xf32>
    %78 = vector.shape_cast %77 : vector<16x16x256xf32> to vector<256x256xf32>
    %79 = vector.extract_strided_slice %74 {offsets = [2, 0, 0], sizes = [16, 16, 256], strides = [1, 1, 1]} : vector<18x16x256xf32> to vector<16x16x256xf32>
    %80 = vector.shape_cast %79 : vector<16x16x256xf32> to vector<256x256xf32>
    %81 = tpu.concatenate %76, %78, %80 in 1 : vector<256x256xf32>, vector<256x256xf32>, vector<256x256xf32> -> vector<256x768xf32>
    %82 = arith.truncf %81 : vector<256x768xf32> to vector<256x768xbf16>
    %c0_58 = arith.constant 0 : index
    %c0_59 = arith.constant 0 : index
    %c0_60 = arith.constant 0 : index
    %83 = vector.load %arg3[%c0_58, %c0_59, %c0_60] : memref<3x768x128xbf16, #tpu.memory_space<vmem>>, vector<1x768x128xbf16>
    %84 = vector.shape_cast %83 : vector<1x768x128xbf16> to vector<768x128xbf16>
    %cst_61 = arith.constant dense<0.000000e+00> : vector<256x128xf32>
    %85 = tpu.matmul %82, %84, %cst_61 {dimension_numbers = #tpu.dot_dimension_numbers<[1], [0], [0], [1], [0, 0, 1, 1], [], []>} : vector<256x768xbf16>, vector<768x128xbf16>, vector<256x128xf32> -> vector<256x128xf32>
    %86 = vector.extract_strided_slice %73 {offsets = [0, 1, 0], sizes = [18, 16, 256], strides = [1, 1, 1]} : vector<18x18x256xf32> to vector<18x16x256xf32>
    %87 = vector.extract_strided_slice %86 {offsets = [0, 0, 0], sizes = [16, 16, 256], strides = [1, 1, 1]} : vector<18x16x256xf32> to vector<16x16x256xf32>
    %88 = vector.shape_cast %87 : vector<16x16x256xf32> to vector<256x256xf32>
    %89 = vector.extract_strided_slice %86 {offsets = [1, 0, 0], sizes = [16, 16, 256], strides = [1, 1, 1]} : vector<18x16x256xf32> to vector<16x16x256xf32>
    %90 = vector.shape_cast %89 : vector<16x16x256xf32> to vector<256x256xf32>
    %91 = vector.extract_strided_slice %86 {offsets = [2, 0, 0], sizes = [16, 16, 256], strides = [1, 1, 1]} : vector<18x16x256xf32> to vector<16x16x256xf32>
    %92 = vector.shape_cast %91 : vector<16x16x256xf32> to vector<256x256xf32>
    %93 = tpu.concatenate %88, %90, %92 in 1 : vector<256x256xf32>, vector<256x256xf32>, vector<256x256xf32> -> vector<256x768xf32>
    %94 = arith.truncf %93 : vector<256x768xf32> to vector<256x768xbf16>
    %c1_62 = arith.constant 1 : index
    %c0_63 = arith.constant 0 : index
    %c0_64 = arith.constant 0 : index
    %95 = vector.load %arg3[%c1_62, %c0_63, %c0_64] : memref<3x768x128xbf16, #tpu.memory_space<vmem>>, vector<1x768x128xbf16>
    %96 = vector.shape_cast %95 : vector<1x768x128xbf16> to vector<768x128xbf16>
    %cst_65 = arith.constant dense<0.000000e+00> : vector<256x128xf32>
    %97 = tpu.matmul %94, %96, %cst_65 {dimension_numbers = #tpu.dot_dimension_numbers<[1], [0], [0], [1], [0, 0, 1, 1], [], []>} : vector<256x768xbf16>, vector<768x128xbf16>, vector<256x128xf32> -> vector<256x128xf32>
    %98 = arith.addf %85, %97 : vector<256x128xf32>
    %99 = vector.extract_strided_slice %73 {offsets = [0, 2, 0], sizes = [18, 16, 256], strides = [1, 1, 1]} : vector<18x18x256xf32> to vector<18x16x256xf32>
    %100 = vector.extract_strided_slice %99 {offsets = [0, 0, 0], sizes = [16, 16, 256], strides = [1, 1, 1]} : vector<18x16x256xf32> to vector<16x16x256xf32>
    %101 = vector.shape_cast %100 : vector<16x16x256xf32> to vector<256x256xf32>
    %102 = vector.extract_strided_slice %99 {offsets = [1, 0, 0], sizes = [16, 16, 256], strides = [1, 1, 1]} : vector<18x16x256xf32> to vector<16x16x256xf32>
    %103 = vector.shape_cast %102 : vector<16x16x256xf32> to vector<256x256xf32>
    %104 = vector.extract_strided_slice %99 {offsets = [2, 0, 0], sizes = [16, 16, 256], strides = [1, 1, 1]} : vector<18x16x256xf32> to vector<16x16x256xf32>
    %105 = vector.shape_cast %104 : vector<16x16x256xf32> to vector<256x256xf32>
    %106 = tpu.concatenate %101, %103, %105 in 1 : vector<256x256xf32>, vector<256x256xf32>, vector<256x256xf32> -> vector<256x768xf32>
    %107 = arith.truncf %106 : vector<256x768xf32> to vector<256x768xbf16>
    %c2 = arith.constant 2 : index
    %c0_66 = arith.constant 0 : index
    %c0_67 = arith.constant 0 : index
    %108 = vector.load %arg3[%c2, %c0_66, %c0_67] : memref<3x768x128xbf16, #tpu.memory_space<vmem>>, vector<1x768x128xbf16>
    %109 = vector.shape_cast %108 : vector<1x768x128xbf16> to vector<768x128xbf16>
    %cst_68 = arith.constant dense<0.000000e+00> : vector<256x128xf32>
    %110 = tpu.matmul %107, %109, %cst_68 {dimension_numbers = #tpu.dot_dimension_numbers<[1], [0], [0], [1], [0, 0, 1, 1], [], []>} : vector<256x768xbf16>, vector<768x128xbf16>, vector<256x128xf32> -> vector<256x128xf32>
    %111 = arith.addf %98, %110 : vector<256x128xf32>
    %112 = arith.mulf %111, %69 : vector<256x128xf32>
    %113 = arith.addf %112, %72 : vector<256x128xf32>
    %cst_69 = arith.constant 0.000000e+00 : f32
    %114 = vector.broadcast %cst_69 : f32 to vector<256x128xf32>
    %115 = arith.maximumf %113, %114 : vector<256x128xf32>
    %116 = vector.shape_cast %115 : vector<256x128xf32> to vector<16x16x128xf32>
    %c1_70 = arith.constant 1 : index
    %c1_71 = arith.constant 1 : index
    %c0_72 = arith.constant 0 : index
    %117 = vector.load %arg11[%c1_70, %c1_71, %c0_72] : memref<18x18x128xf32, #tpu.memory_space<vmem>>, vector<16x16x128xf32>
    tpu.vector_store %arg11[%c1_70, %c1_71, %c0_72], %116 {strides = array<i32>} : memref<18x18x128xf32, #tpu.memory_space<vmem>>, vector<16x16x128xf32>,
    %c0_73 = arith.constant 0 : index
    %c0_74 = arith.constant 0 : index
    %118 = vector.load %arg7[%c0_73, %c0_74] : memref<1x128xf32, #tpu.memory_space<vmem>>, vector<1x128xf32>
    %119 = vector.shape_cast %118 : vector<1x128xf32> to vector<1x128xf32>
    %120 = vector.broadcast %119 : vector<1x128xf32> to vector<256x128xf32>
    %c0_75 = arith.constant 0 : index
    %c0_76 = arith.constant 0 : index
    %121 = vector.load %arg8[%c0_75, %c0_76] : memref<1x128xf32, #tpu.memory_space<vmem>>, vector<1x128xf32>
    %122 = vector.shape_cast %121 : vector<1x128xf32> to vector<1x128xf32>
    %123 = vector.broadcast %122 : vector<1x128xf32> to vector<256x128xf32>
    %c0_77 = arith.constant 0 : index
    %c0_78 = arith.constant 0 : index
    %c0_79 = arith.constant 0 : index
    %124 = vector.load %arg11[%c0_77, %c0_78, %c0_79] : memref<18x18x128xf32, #tpu.memory_space<vmem>>, vector<18x18x128xf32>
    %125 = vector.extract_strided_slice %124 {offsets = [0, 0, 0], sizes = [18, 16, 128], strides = [1, 1, 1]} : vector<18x18x128xf32> to vector<18x16x128xf32>
    %126 = vector.extract_strided_slice %125 {offsets = [0, 0, 0], sizes = [16, 16, 128], strides = [1, 1, 1]} : vector<18x16x128xf32> to vector<16x16x128xf32>
    %127 = vector.shape_cast %126 : vector<16x16x128xf32> to vector<256x128xf32>
    %128 = vector.extract_strided_slice %125 {offsets = [1, 0, 0], sizes = [16, 16, 128], strides = [1, 1, 1]} : vector<18x16x128xf32> to vector<16x16x128xf32>
    %129 = vector.shape_cast %128 : vector<16x16x128xf32> to vector<256x128xf32>
    %130 = vector.extract_strided_slice %125 {offsets = [2, 0, 0], sizes = [16, 16, 128], strides = [1, 1, 1]} : vector<18x16x128xf32> to vector<16x16x128xf32>
    %131 = vector.shape_cast %130 : vector<16x16x128xf32> to vector<256x128xf32>
    %132 = tpu.concatenate %127, %129, %131 in 1 : vector<256x128xf32>, vector<256x128xf32>, vector<256x128xf32> -> vector<256x384xf32>
    %133 = arith.truncf %132 : vector<256x384xf32> to vector<256x384xbf16>
    %c0_80 = arith.constant 0 : index
    %c0_81 = arith.constant 0 : index
    %c0_82 = arith.constant 0 : index
    %134 = vector.load %arg6[%c0_80, %c0_81, %c0_82] : memref<3x384x128xbf16, #tpu.memory_space<vmem>>, vector<1x384x128xbf16>
    %135 = vector.shape_cast %134 : vector<1x384x128xbf16> to vector<384x128xbf16>
    %cst_83 = arith.constant dense<0.000000e+00> : vector<256x128xf32>
    %136 = tpu.matmul %133, %135, %cst_83 {dimension_numbers = #tpu.dot_dimension_numbers<[1], [0], [0], [1], [0, 0, 1, 1], [], []>} : vector<256x384xbf16>, vector<384x128xbf16>, vector<256x128xf32> -> vector<256x128xf32>
    %137 = vector.extract_strided_slice %124 {offsets = [0, 1, 0], sizes = [18, 16, 128], strides = [1, 1, 1]} : vector<18x18x128xf32> to vector<18x16x128xf32>
    %138 = vector.extract_strided_slice %137 {offsets = [0, 0, 0], sizes = [16, 16, 128], strides = [1, 1, 1]} : vector<18x16x128xf32> to vector<16x16x128xf32>
    %139 = vector.shape_cast %138 : vector<16x16x128xf32> to vector<256x128xf32>
    %140 = vector.extract_strided_slice %137 {offsets = [1, 0, 0], sizes = [16, 16, 128], strides = [1, 1, 1]} : vector<18x16x128xf32> to vector<16x16x128xf32>
    %141 = vector.shape_cast %140 : vector<16x16x128xf32> to vector<256x128xf32>
    %142 = vector.extract_strided_slice %137 {offsets = [2, 0, 0], sizes = [16, 16, 128], strides = [1, 1, 1]} : vector<18x16x128xf32> to vector<16x16x128xf32>
    %143 = vector.shape_cast %142 : vector<16x16x128xf32> to vector<256x128xf32>
    %144 = tpu.concatenate %139, %141, %143 in 1 : vector<256x128xf32>, vector<256x128xf32>, vector<256x128xf32> -> vector<256x384xf32>
    %145 = arith.truncf %144 : vector<256x384xf32> to vector<256x384xbf16>
    %c1_84 = arith.constant 1 : index
    %c0_85 = arith.constant 0 : index
    %c0_86 = arith.constant 0 : index
    %146 = vector.load %arg6[%c1_84, %c0_85, %c0_86] : memref<3x384x128xbf16, #tpu.memory_space<vmem>>, vector<1x384x128xbf16>
    %147 = vector.shape_cast %146 : vector<1x384x128xbf16> to vector<384x128xbf16>
    %cst_87 = arith.constant dense<0.000000e+00> : vector<256x128xf32>
    %148 = tpu.matmul %145, %147, %cst_87 {dimension_numbers = #tpu.dot_dimension_numbers<[1], [0], [0], [1], [0, 0, 1, 1], [], []>} : vector<256x384xbf16>, vector<384x128xbf16>, vector<256x128xf32> -> vector<256x128xf32>
    %149 = arith.addf %136, %148 : vector<256x128xf32>
    %150 = vector.extract_strided_slice %124 {offsets = [0, 2, 0], sizes = [18, 16, 128], strides = [1, 1, 1]} : vector<18x18x128xf32> to vector<18x16x128xf32>
    %151 = vector.extract_strided_slice %150 {offsets = [0, 0, 0], sizes = [16, 16, 128], strides = [1, 1, 1]} : vector<18x16x128xf32> to vector<16x16x128xf32>
    %152 = vector.shape_cast %151 : vector<16x16x128xf32> to vector<256x128xf32>
    %153 = vector.extract_strided_slice %150 {offsets = [1, 0, 0], sizes = [16, 16, 128], strides = [1, 1, 1]} : vector<18x16x128xf32> to vector<16x16x128xf32>
    %154 = vector.shape_cast %153 : vector<16x16x128xf32> to vector<256x128xf32>
    %155 = vector.extract_strided_slice %150 {offsets = [2, 0, 0], sizes = [16, 16, 128], strides = [1, 1, 1]} : vector<18x16x128xf32> to vector<16x16x128xf32>
    %156 = vector.shape_cast %155 : vector<16x16x128xf32> to vector<256x128xf32>
    %157 = tpu.concatenate %152, %154, %156 in 1 : vector<256x128xf32>, vector<256x128xf32>, vector<256x128xf32> -> vector<256x384xf32>
    %158 = arith.truncf %157 : vector<256x384xf32> to vector<256x384xbf16>
    %c2_88 = arith.constant 2 : index
    %c0_89 = arith.constant 0 : index
    %c0_90 = arith.constant 0 : index
    %159 = vector.load %arg6[%c2_88, %c0_89, %c0_90] : memref<3x384x128xbf16, #tpu.memory_space<vmem>>, vector<1x384x128xbf16>
    %160 = vector.shape_cast %159 : vector<1x384x128xbf16> to vector<384x128xbf16>
    %cst_91 = arith.constant dense<0.000000e+00> : vector<256x128xf32>
    %161 = tpu.matmul %158, %160, %cst_91 {dimension_numbers = #tpu.dot_dimension_numbers<[1], [0], [0], [1], [0, 0, 1, 1], [], []>} : vector<256x384xbf16>, vector<384x128xbf16>, vector<256x128xf32> -> vector<256x128xf32>
    %162 = arith.addf %149, %161 : vector<256x128xf32>
    %163 = arith.mulf %162, %120 : vector<256x128xf32>
    %164 = arith.addf %163, %123 : vector<256x128xf32>
    %cst_92 = arith.constant 0.000000e+00 : f32
    %165 = vector.broadcast %cst_92 : f32 to vector<256x128xf32>
    %166 = arith.maximumf %164, %165 : vector<256x128xf32>
    %167 = vector.shape_cast %166 : vector<256x128xf32> to vector<16x16x128xf32>
    %c0_93 = arith.constant 0 : index
    %c0_94 = arith.constant 0 : index
    %c0_95 = arith.constant 0 : index
    %c0_96 = arith.constant 0 : index
    %168 = vector.load %arg9[%c0_93, %c0_94, %c0_95, %c0_96] : memref<1x16x16x128xf32, #tpu.memory_space<vmem>>, vector<1x16x16x128xf32>
    %169 = vector.shape_cast %168 : vector<1x16x16x128xf32> to vector<16x16x128xf32>
    %170 = vector.shape_cast %167 : vector<16x16x128xf32> to vector<1x16x16x128xf32>
    tpu.vector_store %arg9[%c0_93, %c0_94, %c0_95, %c0_96], %170 {strides = array<i32>} : memref<1x16x16x128xf32, #tpu.memory_space<vmem>>, vector<1x16x16x128xf32>,
    return
  }
  func.func @transform_0(%arg0: i32) -> (i32, i32, i32, i32) {
    %c0_i32 = arith.constant 0 : i32
    %c0_i32_0 = arith.constant 0 : i32
    %c0_i32_1 = arith.constant 0 : i32
    %c0_i32_2 = arith.constant 0 : i32
    return %arg0, %c0_i32, %c0_i32_0, %c0_i32_1 : i32, i32, i32, i32
  }
  func.func @transform_1(%arg0: i32) -> (i32, i32, i32, i32) {
    %c0_i32 = arith.constant 0 : i32
    %c0_i32_0 = arith.constant 0 : i32
    %c0_i32_1 = arith.constant 0 : i32
    %c0_i32_2 = arith.constant 0 : i32
    return %arg0, %c0_i32, %c0_i32_0, %c0_i32_1 : i32, i32, i32, i32
  }
  func.func @transform_2(%arg0: i32) -> (i32, i32, i32) {
    %c0_i32 = arith.constant 0 : i32
    %c0_i32_0 = arith.constant 0 : i32
    %c0_i32_1 = arith.constant 0 : i32
    %c0_i32_2 = arith.constant 0 : i32
    return %c0_i32, %c0_i32_0, %c0_i32_1 : i32, i32, i32
  }
  func.func @transform_3(%arg0: i32) -> (i32, i32) {
    %c0_i32 = arith.constant 0 : i32
    %c0_i32_0 = arith.constant 0 : i32
    %c0_i32_1 = arith.constant 0 : i32
    return %c0_i32, %c0_i32_0 : i32, i32
  }
  func.func @transform_4(%arg0: i32) -> (i32, i32) {
    %c0_i32 = arith.constant 0 : i32
    %c0_i32_0 = arith.constant 0 : i32
    %c0_i32_1 = arith.constant 0 : i32
    return %c0_i32, %c0_i32_0 : i32, i32
  }
  func.func @transform_5(%arg0: i32) -> (i32, i32, i32) {
    %c0_i32 = arith.constant 0 : i32
    %c0_i32_0 = arith.constant 0 : i32
    %c0_i32_1 = arith.constant 0 : i32
    %c0_i32_2 = arith.constant 0 : i32
    return %c0_i32, %c0_i32_0, %c0_i32_1 : i32, i32, i32
  }
  func.func @transform_6(%arg0: i32) -> (i32, i32) {
    %c0_i32 = arith.constant 0 : i32
    %c0_i32_0 = arith.constant 0 : i32
    %c0_i32_1 = arith.constant 0 : i32
    return %c0_i32, %c0_i32_0 : i32, i32
  }
  func.func @transform_7(%arg0: i32) -> (i32, i32) {
    %c0_i32 = arith.constant 0 : i32
    %c0_i32_0 = arith.constant 0 : i32
    %c0_i32_1 = arith.constant 0 : i32
    return %c0_i32, %c0_i32_0 : i32, i32
  }
  func.func @transform_8(%arg0: i32) -> (i32, i32, i32, i32) {
    %c0_i32 = arith.constant 0 : i32
    %c0_i32_0 = arith.constant 0 : i32
    %c0_i32_1 = arith.constant 0 : i32
    %c0_i32_2 = arith.constant 0 : i32
    return %arg0, %c0_i32, %c0_i32_0, %c0_i32_1 : i32, i32, i32, i32
  }
}

</mosaic_0001>

<bundles_post_ra>
// kernel: decoder_block_forward.1
= control target key start
LH: loop header
LB: loop body
LE: loop exit
PB: predicated region body
PF: predicated region fallthrough
CT: control target
= control target key end

     0   :  { %13 = vsyncpa [#allocation5], 0  ;;  %s12849_s0 = inlined_call_operand.vmem [shape: bf16[2,8,8,128], index: 0, kind: input, shape index: {}]   ;;  %s12850_s1 = inlined_call_operand.vmem [shape: bf16[2,16,16,128], index: 1, kind: input, shape index: {}]   ;;  %s12851_s2 = inlined_call_operand.hbm [shape: bf16[3,768,128], index: 2, kind: input, shape index: {}]   ;;  %s12852_s3 = inlined_call_operand.vmem [shape: f32[1,128], index: 3, kind: input, shape index: {}]   ;;  %s12853_s4 = inlined_call_operand.vmem [shape: f32[1,128], index: 4, kind: input, shape index: {}]   ;;  %s12854_s5 = inlined_call_operand.vmem [shape: bf16[3,384,128], index: 5, kind: input, shape index: {}]   ;;  %s12855_s6 = inlined_call_operand.vmem [shape: f32[1,128], index: 6, kind: input, shape index: {}]   ;;  %s12856_s7 = inlined_call_operand.vmem [shape: f32[1,128], index: 7, kind: input, shape index: {}]   ;;  %s12857_s8 = inlined_call_operand.hbm [shape: f32[2,16,16,128], index: 8, kind: output, shape index: {}]  }
   0x1   :  { %14 = vsyncpa [#allocation6], 0 }
   0x2   :  { %16 = vsyncpa [#allocation6 + $0x1], 0  ;;  %s9626_s27 = smov 0   ;;  %s9628_s28 = smov 0  }
   0x3   :  { %s9630_s29 = smov 0   ;;  %s9632_s30 = smov 0  }
   0x4 LB: > { %s9647_s9 = sadd.s32 4294967295, %s9572_s30   ;;  %s7021_s10 = sadd.s32 4294967294, %s9572_s30   ;;  %s9572_s30 = sphi %s9632_s30, %s13101_s30   ;;  %s9568_s29 = sphi %s9630_s29, %s13100_s29   ;;  %s9564_s28 = sphi %s9628_s28, %s13099_s28   ;;  %s9560_s27 = sphi %s9626_s27, %s13098_s27  }
   0x5   : > { %s9651_s11 = sadd.s32 1, %s9572_s30   ;;  %s207_s12 = sadd.s32 1, %s9568_s29 }
   0x6   : > { %s204_s13 = ssub.s32 %s9572_s30, %s9651_s11  ;;  %p217_p0 = scmp.ne.s32.totalorder %s9568_s29, %s9564_s28 }
   0x7   : > { %p205_p1 = scmp.eq.s32.totalorder %s204_s13, 0  ;;  %p218_p2 = scmp.eq.s32.totalorder %s9647_s9, 1 }
   0x8   : > { %p223_p3 = scmp.ne.s32.totalorder %s9564_s28, %s9560_s27  ;;  %p224_p4 = scmp.eq.s32.totalorder %s7021_s10, 1 }
   0x9   : > { %s9662_s14 = scalar_select %p205_p1, %s9568_s29, %s207_s12  }
   0xa   : > { %p9664_p5 = por %p218_p2, %p217_p0  ;;  %p9668_p6 = por %p224_p4, %p223_p3 }
   0xb   : > { %p7022_p7 = scmp.ge.s32.totalorder %s9572_s30, 1  ;;  %p231_p8 = scmp.lt.s32.totalorder %s9572_s30, 3 }
   0xc   : > { %s12861_s16 = scalar_select %p9668_p6, 1, 0 }
   0xd   : > { %p9044_p9 = scmp.eq.s32.totalorder %s9647_s9, 0  ;;  %p9675_p10 = pnand %p7022_p7, %p231_p8 }
   0xe   : > { %s9574_s18 = smov [#allocation4]  }
   0xf   : > { %s243_s19 = sshll.u32 %s9574_s18, 4  ;;  %p9036_p11 = pneg %p9675_p10  ;;  %s244_s19 = int_to_ptr.vmem [resolvable:$true] %s243_s19 }
  0x10   : > { %s9493_s20 = scalar_lea.vmem %s244_s19, 18432  ;;  %p9501_p3 = scmp.lt.s32.totalorder %s244_s19, %s244_s19 }
  0x11   : > { %p9037_p12 = pnand %p9044_p9, %p9036_p11  ;;  %p9494_p0 = scmp.ne.s32.totalorder %s244_s19, %s9493_s20 }
  0x12   : > { %p9502_p4 = scmp.lt.s32.totalorder %s9493_s20, %s9493_s20 }
  0x13   : > { %p9484_p13 = pneg %p9037_p12 }
  0x14   : > { %p9503_p6 = por %p9502_p4, %p9501_p3 }
  0x15   : > { %p9496_p1 = pnand %p9494_p0, %p9484_p13 }
  0x17   : > { %p9497_p2 = pneg %p9496_p1 }
  0x19   : > { %p9504_p7 = pnand %p9503_p6, %p9497_p2 }
  0x1b   : > { %9507 = shalt.err (!%p9504_p7)
}
  0x1c   : > { %s9575_s21 = smov 64   ;;  %s9576_s22 = smov 4  }
  0x1d   : > { %9039 = dma.hbm_to_vmem [thread:$0]  (!%p9037_p12), %s12851_s2, 18432, %s244_s19, [#allocation5], %s9575_s21, %s9575_s21, %s9576_s22  }
  0x1e   : > { %290 = sbr.rel (%p9675_p10) target bundleno = 1373 (0x55d), region = 52 }
  0x23   : > { %9551 = dma.done.wait (%p9044_p9), [#allocation5], 18432  }
  0x24   : > { %9553 = vsyncadd (%p9044_p9), [#allocation5], 4294948864  ;;  %v353_v0 = vlaneseq  ;;  %v9577_v1 = vmov 0.0   ;;  %v9085_v3 = vld [vmem:[#allocation4 + $0x1f8] sm:$0xff]   ;;  %v9087_v5 = vld [vmem:[#allocation4 + $0x1f0] sm:$0xff]   ;;  %p329_p6 = scmp.lt.s32.totalorder %s9647_s9, 1 }
  0x25   : > { %340 = vst [vmem:[#allocation2] sm:$0xff] %v9577_v1  ;;  %341 = vst [vmem:[#allocation2 + $0x8] sm:$0xff] %v9577_v1  ;;  %v9086_v4 = vld [vmem:[#allocation4 + $0x1b8] sm:$0xff]   ;;  %7454 = vmatprep.subr.bf16.mxu0 %v9085_v3  ;;  %9014 = vmatprep.subr.bf16.mxu1 %v9085_v3  ;;  %v9088_v6 = vld [vmem:[#allocation4 + $0x1b0] sm:$0xff]   ;;  %vm1531_vm1 = vcmask 1046528   ;;  %vm1036_vm2 = vcmask 1040384  }
  0x26   : > { %343 = vst [vmem:[#allocation2 + $0x18] sm:$0xff] %v9577_v1  ;;  %344 = vst [vmem:[#allocation2 + $0x20] sm:$0x3] %v9577_v1  ;;  %vm9738_vm0 = vcmp.lt.s32.totalorder %v353_v0, 256  ;;  %7455 = vmatpush3.bf16.msra.mxu0 %v9086_v4  ;;  %9022 = vmatpush3.bf16.msra.mxu1 %v9086_v4  ;;  %v9089_v7 = vld [vmem:[#allocation4 + $0x1e8] sm:$0xff]   ;;  %s330_s25 = scalar_select %p329_p6, %s9647_s9, 1 }
  0x27   : > { %345 = vst [vmem:[#allocation2 + $0x28] sm:$0x3] %v9577_v1  ;;  %347 = vst [vmem:[#allocation2 + $0x330] sm:$0xff] %v9577_v1  ;;  %7456 = vmatprep.subr.bf16.mxu0 %v9087_v5  ;;  %9015 = vmatprep.subr.bf16.mxu1 %v9087_v5  ;;  %v9090_v8 = vld [vmem:[#allocation4 + $0x1a8] sm:$0xff]   ;;  %v9091_v9 = vld [vmem:[#allocation4 + $0x1e0] sm:$0xff]   ;;  %v524_v10 = vshrl.u32 %v353_v0, 7 }
  0x28   : > { %348 = vst [vmem:[#allocation2 + $0x338] sm:$0xff] %v9577_v1  ;;  %351 = vst [vmem:[#allocation2 + $0x350] sm:$0x3] %v9577_v1  ;;  %s7354_s26 = sshll.u32 %s330_s25, 7  ;;  %v9092_v11 = vld [vmem:[#allocation4 + $0x1a0] sm:$0xff]   ;;  %v9093_v12 = vld [vmem:[#allocation4 + $0x1d8] sm:$0xff]  }
  0x29   : > { %352 = vst [vmem:[#allocation2 + $0x358] sm:$0x3] %v9577_v1  ;;  %464 = vst [vmem:[#allocation3] sm:$0xff] %v9577_v1  ;;  %s7353_s10 = sshll.u32 %s330_s25, 5  ;;  %v9858_v13 = vrot.slane %v9577_v1, 1  ;;  %s9863_s17 = scalar_lea.vmem %s12850_s1, %s7354_s26  ;;  %v9865_v14 = vsub.s32 0, %v524_v10 }
  0x2a   : > { %466 = vst [vmem:[#allocation3 + $0x10] sm:$0x3] %v9577_v1  ;;  %468 = vst [vmem:[#allocation3 + $0x198] sm:$0xff] %v9577_v1  ;;  %7457 = vmatpush3.bf16.msra.mxu0 %v9088_v6  ;;  %9023 = vmatpush3.bf16.msra.mxu1 %v9088_v6  ;;  %v9094_v15 = vld [vmem:[#allocation4 + $0x198] sm:$0xff]   ;;  %v9867_v16 = vsub.s32 1, %v524_v10  ;;  %v9095_v17 = vld [vmem:[#allocation4 + $0x1d0] sm:$0xff]   ;;  %s9872_s20 = scalar_lea.vmem %s12849_s0, %s7353_s10 }
  0x2b   : > { %470 = vst [vmem:[#allocation3 + $0x1a8] sm:$0x3] %v9577_v1  ;;  %472 = vst [vmem:[#allocation3 + $0x18] sm:$0x1] %v9577_v1  ;;  %7458 = vmatprep.subr.bf16.mxu0 %v9089_v7  ;;  %9016 = vmatprep.subr.bf16.mxu1 %v9089_v7  ;;  %v9874_v18 = vsub.s32 2, %v524_v10  ;;  %v7449_v21 = vld [vmem:[%s9863_s17 + $0x58] sm:$0xff]  }
  0x2c   : > { %473 = vst [vmem:[#allocation3 + $0x30] sm:$0x1] %v9577_v1  ;;  %474 = vst [vmem:[#allocation3 + $0x48] sm:$0x1] %v9577_v1  ;;  %v9877_v22 = vsub.s32 3, %v524_v10  ;;  %v9879_v23 = vsub.s32 4, %v524_v10  ;;  %v7418_v26 = vunpack.c.l.bf16 %v7449_v21  ;;  %v7419_v29 = vunpack.c.h.bf16 %v7449_v21 }
  0x2d   : > { %475 = vst [vmem:[#allocation3 + $0x60] sm:$0x1] %v9577_v1  ;;  %476 = vst [vmem:[#allocation3 + $0x78] sm:$0x1] %v9577_v1  ;;  %v9881_v28 = vsub.s32 5, %v524_v10  ;;  %v7437_v31 = vld [vmem:[%s9872_s20 + $0x10] sm:$0xff]  }
  0x2e   : > { %477 = vst [vmem:[#allocation3 + $0x90] sm:$0x1] %v9577_v1  ;;  %478 = vst [vmem:[#allocation3 + $0xa8] sm:$0x1] %v9577_v1  ;;  %7459 = vmatpush3.bf16.msra.mxu0 %v9090_v8  ;;  %9024 = vmatpush3.bf16.msra.mxu1 %v9090_v8  ;;  %v9884_v32 = vsub.s32 6, %v524_v10  ;;  %v9886_v33 = vsub.s32 7, %v524_v10  ;;  %v7367_v42 = vunpack.c.h.bf16 %v7437_v31 }
  0x2f   : > { %479 = vst [vmem:[#allocation3 + $0xc0] sm:$0x1] %v9577_v1  ;;  %480 = vst [vmem:[#allocation3 + $0xd8] sm:$0x1] %v9577_v1  ;;  %7460 = vmatprep.subr.bf16.mxu0 %v9091_v9  ;;  %9017 = vmatprep.subr.bf16.mxu1 %v9091_v9  ;;  %v9096_v34 = vld [vmem:[#allocation4 + $0x190] sm:$0xff]   ;;  %v1070_v37 = vrot.slane %v7418_v26, 7 }
  0x30   : > { %481 = vst [vmem:[#allocation3 + $0xf0] sm:$0x1] %v9577_v1  ;;  %482 = vst [vmem:[#allocation3 + $0x108] sm:$0x1] %v9577_v1  ;;  %v9097_v39 = vld [vmem:[#allocation4 + $0x1c8] sm:$0xff]   ;;  %v1071_v41 = vrot.slane %v7419_v29, 7  ;;  %v546_v47 = vrot.slane %v7367_v42, %v9865_v14  ;;  %v595_v48 = vrot.slane %v7367_v42, %v9867_v16  ;;  %v643_v49 = vrot.slane %v7367_v42, %v9874_v18 }
  0x31   : > { %483 = vst [vmem:[#allocation3 + $0x120] sm:$0x1] %v9577_v1  ;;  %484 = vst [vmem:[#allocation3 + $0x138] sm:$0x1] %v9577_v1  ;;  %v9098_v45 = vld [vmem:[#allocation4 + $0x188] sm:$0xff]   ;;  %v9099_v50 = vld [vmem:[#allocation4 + $0x1c0] sm:$0xff]   ;;  %v691_v51 = vrot.slane %v7367_v42, %v9877_v22  ;;  %v755_v52 = vrot.slane %v7367_v42, %v9879_v23  ;;  %v803_v53 = vrot.slane %v7367_v42, %v9881_v28 }
  0x32   : > { %485 = vst [vmem:[#allocation3 + $0x150] sm:$0x1] %v9577_v1  ;;  %486 = vst [vmem:[#allocation3 + $0x168] sm:$0x1] %v9577_v1  ;;  %7461 = vmatpush3.bf16.msra.mxu0 %v9092_v11  ;;  %9025 = vmatpush3.bf16.msra.mxu1 %v9092_v11  ;;  %v9893_v43 = vsel %vm1036_vm2, %v1070_v37, %v1071_v41  ;;  %v7373_v54 = vld [vmem:[%s9863_s17] sm:$0xff]   ;;  %v9100_v55 = vld [vmem:[#allocation4 + $0x180] sm:$0xff]   ;;  %v851_v56 = vrot.slane %v7367_v42, %v9884_v32 }
  0x33   : > { %487 = vst [vmem:[#allocation3 + $0x180] sm:$0x1] %v9577_v1  ;;  %490 = vst [vmem:[#allocation3 + $0x29] sm:$0x1] %v9577_v1  ;;  %7462 = vmatprep.subr.bf16.mxu0 %v9093_v12  ;;  %9018 = vmatprep.subr.bf16.mxu1 %v9093_v12  ;;  %v899_v57 = vrot.slane %v7367_v42, %v9886_v33  ;;  %v7374_v58 = vunpack.c.l.bf16 %v7373_v54  ;;  %v7375_v59 = vunpack.c.h.bf16 %v7373_v54  ;;  %v7450_v60 = vld [vmem:[%s9863_s17 + $0x60] sm:$0xff]   ;;  %v9914_v62 = vld [vmem:[%s9872_s20 + $0x18] sm:$0xff]  }
  0x34   : > { %491 = vst [vmem:[#allocation3 + $0x41] sm:$0x1] %v9577_v1  ;;  %492 = vst [vmem:[#allocation3 + $0x59] sm:$0x1] %v9577_v1  ;;  %v9911_v61 = vld [vmem:[%s9872_s20] sm:$0xff]   ;;  %v1656_v63 = vrot.slane %v9893_v43, 1  ;;  %v7423_v2 = vunpack.c.h.bf16 %v7450_v60  ;;  %v9923_v7 = vunpack.c.l.bf16 %v9914_v62 }
  0x35   : > { %493 = vst [vmem:[#allocation3 + $0x71] sm:$0x1] %v9577_v1  ;;  %494 = vst [vmem:[#allocation3 + $0x89] sm:$0x1] %v9577_v1  ;;  %v9101_v0 = vld [vmem:[#allocation4 + $0x278] sm:$0xff]   ;;  %v7358_v3 = vunpack.c.l.bf16 %v9911_v61  ;;  %v1037_v5 = vrot.slane %v7374_v58, 7 }
  0x36   : > { %495 = vst [vmem:[#allocation3 + $0xa1] sm:$0x1] %v9577_v1  ;;  %496 = vst [vmem:[#allocation3 + $0xb9] sm:$0x1] %v9577_v1  ;;  %7463 = vmatpush3.bf16.msra.mxu0 %v9094_v15  ;;  %9026 = vmatpush3.bf16.msra.mxu1 %v9094_v15  ;;  %v1038_v6 = vrot.slane %v7375_v59, 7  ;;  %v9102_v9 = vld [vmem:[#allocation4 + $0x2f8] sm:$0xff]   ;;  %v599_v42 = vrot.slane %v9923_v7, %v9867_v16 }
  0x37   : > { %497 = vst [vmem:[#allocation3 + $0xd1] sm:$0x1] %v9577_v1  ;;  %498 = vst [vmem:[#allocation3 + $0xe9] sm:$0x1] %v9577_v1  ;;  %7464 = vmatprep.subr.bf16.mxu0 %v9095_v17  ;;  %9019 = vmatprep.subr.bf16.mxu1 %v9095_v17  ;;  %v1074_v11 = vrot.slane %v7423_v2, 7  ;;  %v526_v12 = vrot.slane %v7358_v3, %v9865_v14  ;;  %v671_v21 = vrot.slane %v7358_v3, %v9877_v22  ;;  %vm3471_vm3 = vcmask 1045504  }
  0x38   : > { %499 = vst [vmem:[#allocation3 + $0x101] sm:$0x1] %v9577_v1  ;;  %500 = vst [vmem:[#allocation3 + $0x119] sm:$0x1] %v9577_v1  ;;  %v783_v31 = vrot.slane %v7358_v3, %v9881_v28  ;;  %s7355_s24 = sshll.u32 %s9647_s9, 12  ;;  %s9578_s18 = smov [#allocation7]  }
  0x39   : > { %501 = vst [vmem:[#allocation3 + $0x131] sm:$0x1] %v9577_v1  ;;  %502 = vst [vmem:[#allocation3 + $0x149] sm:$0x1] %v9577_v1  ;;  %s12801_s12 = scalar_lea.hbm %s12857_s8, %s7355_s24  ;;  %s9512_s19 = sshll.u32 %s9578_s18, 4  ;;  %s9513_s19 = int_to_ptr.vmem [resolvable:$false] %s9512_s19 }
  0x3a   : > { %503 = vst [vmem:[#allocation3 + $0x161] sm:$0x1] %v9577_v1  ;;  %504 = vst [vmem:[#allocation3 + $0x179] sm:$0x1] %v9577_v1  ;;  %7465 = vmatpush3.bf16.msra.mxu0 %v9096_v34  ;;  %9027 = vmatpush3.bf16.msra.mxu1 %v9096_v34  ;;  %v831_v34 = vrot.slane %v7358_v3, %v9884_v32 }
  0x3b   : > { %505 = vst [vmem:[#allocation3 + $0x191] sm:$0x1] %v9577_v1  ;;  %471 = vst [vmem:[#allocation3] sm:$0x1] %v9577_v1  ;;  %7466 = vmatprep.subr.bf16.mxu0 %v9097_v39  ;;  %9020 = vmatprep.subr.bf16.mxu1 %v9097_v39  ;;  %v9110_v39 = vld [vmem:[#allocation4 + $0x2f0] sm:$0xff]  }
  0x3c   : > { %488 = vst [vmem:[#allocation3 + $0x198] sm:$0x1] %v9577_v1  ;;  %489 = vst [vmem:[#allocation3 + $0x11] sm:$0x1] %v9577_v1 }
  0x3d   : > { %506 = vst [vmem:[#allocation3 + $0x1a9] sm:$0x1] %v9577_v1  ;;  %357 = vst.msk [vmem:[#allocation2] ss:$8 sm:$0x3] %vm9738_vm0, %v9577_v1 }
  0x3e   : > { %411 = vst.msk [vmem:[#allocation2 + $0x21] ss:$8 sm:$0x3] %vm9738_vm0, %v9577_v1  ;;  %360 = vst.msk [vmem:[#allocation2 + $0x30] ss:$8 sm:$0x3] %vm9738_vm0, %v9577_v1  ;;  %7467 = vmatpush3.bf16.msra.mxu0 %v9098_v45  ;;  %9028 = vmatpush3.bf16.msra.mxu1 %v9098_v45 }
  0x3f   : > { %363 = vst.msk [vmem:[#allocation2 + $0x60] ss:$8 sm:$0x3] %vm9738_vm0, %v9577_v1  ;;  %366 = vst.msk [vmem:[#allocation2 + $0x90] ss:$8 sm:$0x3] %vm9738_vm0, %v9577_v1  ;;  %7468 = vmatprep.subr.bf16.mxu0 %v9099_v50  ;;  %9021 = vmatprep.subr.bf16.mxu1 %v9099_v50  ;;  %v807_v50 = vrot.slane %v9923_v7, %v9881_v28 }
  0x40   : > { %369 = vst.msk [vmem:[#allocation2 + $0xc0] ss:$8 sm:$0x3] %vm9738_vm0, %v9577_v1  ;;  %372 = vst.msk [vmem:[#allocation2 + $0xf0] ss:$8 sm:$0x3] %vm9738_vm0, %v9577_v1 }
  0x41   : > { %375 = vst.msk [vmem:[#allocation2 + $0x120] ss:$8 sm:$0x3] %vm9738_vm0, %v9577_v1  ;;  %378 = vst.msk [vmem:[#allocation2 + $0x150] ss:$8 sm:$0x3] %vm9738_vm0, %v9577_v1 }
  0x42   : > { %381 = vst.msk [vmem:[#allocation2 + $0x180] ss:$8 sm:$0x3] %vm9738_vm0, %v9577_v1  ;;  %384 = vst.msk [vmem:[#allocation2 + $0x1b0] ss:$8 sm:$0x3] %vm9738_vm0, %v9577_v1  ;;  %7469 = vmatpush3.bf16.msra.mxu0 %v9100_v55  ;;  %9029 = vmatpush3.bf16.msra.mxu1 %v9100_v55 }
  0x43   : > { %387 = vst.msk [vmem:[#allocation2 + $0x1e0] ss:$8 sm:$0x3] %vm9738_vm0, %v9577_v1  ;;  %390 = vst.msk [vmem:[#allocation2 + $0x210] ss:$8 sm:$0x3] %vm9738_vm0, %v9577_v1  ;;  %7566 = vmatprep.subr.bf16.mxu1 %v9101_v0  ;;  %7678 = vmatprep.subr.bf16.mxu0 %v9102_v9 }
  0x44   : > { %393 = vst.msk [vmem:[#allocation2 + $0x240] ss:$8 sm:$0x3] %vm9738_vm0, %v9577_v1  ;;  %396 = vst.msk [vmem:[#allocation2 + $0x270] ss:$8 sm:$0x3] %vm9738_vm0, %v9577_v1 }
  0x45   : > { %399 = vst.msk [vmem:[#allocation2 + $0x2a0] ss:$8 sm:$0x3] %vm9738_vm0, %v9577_v1  ;;  %402 = vst.msk [vmem:[#allocation2 + $0x2d0] ss:$8 sm:$0x3] %vm9738_vm0, %v9577_v1 }
  0x46   : > { %405 = vst.msk [vmem:[#allocation2 + $0x300] ss:$8 sm:$0x3] %vm9738_vm0, %v9577_v1  ;;  %414 = vst.msk [vmem:[#allocation2 + $0x51] ss:$8 sm:$0x3] %vm9738_vm0, %v9577_v1 }
  0x47   : > { %417 = vst.msk [vmem:[#allocation2 + $0x81] ss:$8 sm:$0x3] %vm9738_vm0, %v9577_v1  ;;  %420 = vst.msk [vmem:[#allocation2 + $0xb1] ss:$8 sm:$0x3] %vm9738_vm0, %v9577_v1 }
  0x48   : > { %423 = vst.msk [vmem:[#allocation2 + $0xe1] ss:$8 sm:$0x3] %vm9738_vm0, %v9577_v1  ;;  %426 = vst.msk [vmem:[#allocation2 + $0x111] ss:$8 sm:$0x3] %vm9738_vm0, %v9577_v1 }
  0x49   : > { %429 = vst.msk [vmem:[#allocation2 + $0x141] ss:$8 sm:$0x3] %vm9738_vm0, %v9577_v1  ;;  %432 = vst.msk [vmem:[#allocation2 + $0x171] ss:$8 sm:$0x3] %vm9738_vm0, %v9577_v1 }
  0x4a   : > { %435 = vst.msk [vmem:[#allocation2 + $0x1a1] ss:$8 sm:$0x3] %vm9738_vm0, %v9577_v1  ;;  %438 = vst.msk [vmem:[#allocation2 + $0x1d1] ss:$8 sm:$0x3] %vm9738_vm0, %v9577_v1 }
  0x4b   : > { %441 = vst.msk [vmem:[#allocation2 + $0x201] ss:$8 sm:$0x3] %vm9738_vm0, %v9577_v1  ;;  %444 = vst.msk [vmem:[#allocation2 + $0x231] ss:$8 sm:$0x3] %vm9738_vm0, %v9577_v1 }
  0x4c   : > { %447 = vst.msk [vmem:[#allocation2 + $0x261] ss:$8 sm:$0x3] %vm9738_vm0, %v9577_v1  ;;  %450 = vst.msk [vmem:[#allocation2 + $0x291] ss:$8 sm:$0x3] %vm9738_vm0, %v9577_v1 }
  0x4d   : > { %453 = vst.msk [vmem:[#allocation2 + $0x2c1] ss:$8 sm:$0x3] %vm9738_vm0, %v9577_v1  ;;  %456 = vst.msk [vmem:[#allocation2 + $0x2f1] ss:$8 sm:$0x3] %vm9738_vm0, %v9577_v1 }
  0x4e   : > { %459 = vst.msk [vmem:[#allocation2 + $0x321] ss:$8 sm:$0x3] %vm9738_vm0, %v9577_v1  ;;  %408 = vst.msk [vmem:[#allocation2 + $0x330] ss:$8 sm:$0x3] %vm9738_vm0, %v9577_v1 }
  0x4f   : > { %462 = vst.msk [vmem:[#allocation2 + $0x351] ss:$8 sm:$0x3] %vm9738_vm0, %v9577_v1  ;;  %v1196_v19 = vld [vmem:[#allocation2 + $0x8] sm:$0xff]  ;;  %v1195_v27 = vld [vmem:[#allocation2] sm:$0xff]  ;;  %1167 = vst [vmem:[#allocation2 + $0x258] sm:$0xff] %v9893_v43  ;;  %v7422_v1 = vunpack.c.l.bf16 %v7450_v60  ;;  %v647_v43 = vrot.slane %v9923_v7, %v9874_v18 }
  0x50   : > { %v1200_v20 = vld [vmem:[#allocation2 + $0x28] sm:$0x3]  ;;  %v1535_v24 = vrot.slane %v1196_v19, 1  ;;  %v1532_v30 = vrot.slane %v1195_v27, 1  ;;  %v1199_v38 = vld [vmem:[#allocation2 + $0x20] sm:$0x3]  ;;  %v9928_v19 = vsel %vm1036_vm2, %v1037_v5, %v1038_v6  ;;  %v735_v27 = vrot.slane %v7358_v3, %v9879_v23 }
  0x51   : > { %v1540_v25 = vrot.slane %v1200_v20, 1  ;;  %1166 = vst [vmem:[#allocation2 + $0x248] sm:$0xfe] %v1070_v37  ;;  %1168 = vst [vmem:[#allocation2 + $0x268] sm:$0x1] %v1071_v41  ;;  %v1538_v46 = vrot.slane %v1199_v38, 1  ;;  %v623_v20 = vrot.slane %v7358_v3, %v9874_v18  ;;  %v879_v37 = vrot.slane %v7358_v3, %v9886_v33 }
  0x52   : > { %v1537_v35 = vsel %vm1531_vm1, %v1535_v24, %v9858_v13  ;;  %v9897_v44 = vsel %vm1531_vm1, %v1532_v30, %v9858_v13  ;;  %567 = vst [vmem:[#allocation2 + $0x240] sm:$0x6] %v546_v47  ;;  %615 = vst [vmem:[#allocation2 + $0x240] sm:$0x18] %v595_v48  ;;  %v1073_v10 = vrot.slane %v7422_v1, 7  ;;  %v9104_v30 = vld [vmem:[#allocation4 + $0x2b8] sm:$0xff]   ;;  %v550_v38 = vrot.slane %v9923_v7, %v9865_v14 }
  0x53   : > { %v1541_v36 = vsel %vm1531_vm1, %v9858_v13, %v1540_v25  ;;  %663 = vst [vmem:[#allocation2 + $0x240] sm:$0x60] %v643_v49  ;;  %566 = vst [vmem:[#allocation2 + $0x210] sm:$0x6] %v546_v47  ;;  %v9920_v4 = vsel %vm1531_vm1, %v9858_v13, %v1538_v46  ;;  %v575_v13 = vrot.slane %v7358_v3, %v9867_v16  ;;  %v7439_v45 = vld [vmem:[%s9863_s17 + $0x8] sm:$0xff]  }
  0x54   : > { %v1797_v40 = vpack.c.bf16 %v1541_v36, %v1537_v35  ;;  %614 = vst [vmem:[#allocation2 + $0x210] sm:$0x18] %v595_v48  ;;  %662 = vst [vmem:[#allocation2 + $0x210] sm:$0x60] %v643_v49  ;;  %v1796_v25 = vpack.c.bf16 %v9920_v4, %v9897_v44  ;;  %v9936_v26 = vsel %vm1036_vm2, %v1073_v10, %v1074_v11  ;;  %v1546_v36 = vrot.slane %v9928_v19, 1  ;;  %v9103_v4 = vld [vmem:[#allocation4 + $0x238] sm:$0xff]  }
  0x55   : > { %722 = vst [vmem:[#allocation2 + $0x250] ss:$-12 sps:$4 sm:$0x81] %v691_v51   ;;  %775 = vst [vmem:[#allocation2 + $0x250] sm:$0x6] %v755_v52  ;;  %v695_v44 = vrot.slane %v9923_v7, %v9877_v22  ;;  %v759_v49 = vrot.slane %v9923_v7, %v9879_v23  ;;  %v1666_v55 = vrot.slane %v9936_v26, 1  ;;  %v7378_v60 = vunpack.c.l.bf16 %v7439_v45 }
  0x56   : > { %2249 = vmatprep.mubr.bf16.mxu0 %v1797_v40  ;;  %823 = vst [vmem:[#allocation2 + $0x250] sm:$0x18] %v803_v53  ;;  %720 = vst [vmem:[#allocation2 + $0x220] ss:$-12 sps:$4 sm:$0x81] %v691_v51   ;;  %v855_v51 = vrot.slane %v9923_v7, %v9884_v32 }
  0x57   : > { %774 = vst [vmem:[#allocation2 + $0x220] sm:$0x6] %v755_v52  ;;  %822 = vst [vmem:[#allocation2 + $0x220] sm:$0x18] %v803_v53  ;;  %2250 = vmatmul.mubr.bf16.vlgmr.msra.gmra.mxu0 %v1796_v25  ;;  %v7451_v52 = vld [vmem:[%s9863_s17 + $0x68] sm:$0xff]  }
  0x58   : > { %871 = vst [vmem:[#allocation2 + $0x250] sm:$0x60] %v851_v56  ;;  %930 = vst [vmem:[#allocation2 + $0x260] ss:$-12 sps:$4 sm:$0x81] %v899_v57   ;;  %v1268_v8 = vld [vmem:[#allocation2 + $0x248] sm:$0xff]  ;;  %7679 = vmatpush3.bf16.msra.mxu0 %v9104_v30  ;;  %v7426_v0 = vunpack.c.l.bf16 %v7451_v52  ;;  %v7427_v1 = vunpack.c.h.bf16 %v7451_v52 }
  0x59   : > { %870 = vst [vmem:[#allocation2 + $0x220] sm:$0x60] %v851_v56  ;;  %928 = vst [vmem:[#allocation2 + $0x230] ss:$-12 sps:$4 sm:$0x81] %v899_v57   ;;  %v1655_v17 = vrot.slane %v1268_v8, 1  ;;  %v903_v56 = vrot.slane %v9923_v7, %v9886_v33  ;;  %7680 = vmatprep.subr.bf16.mxu0 %v9110_v39 }
  0x5a   : > { %v1272_v15 = vld [vmem:[#allocation2 + $0x268] sm:$0x3]  ;;  %1133 = vst [vmem:[#allocation2 + $0x38] sm:$0xfe] %v1037_v5  ;;  %1135 = vst [vmem:[#allocation2 + $0x58] sm:$0x1] %v1038_v6 }
  0x5b   : > { %v1660_v24 = vrot.slane %v1272_v15, 1  ;;  %1134 = vst [vmem:[#allocation2 + $0x48] sm:$0xff] %v9928_v19  ;;  %1169 = vst [vmem:[#allocation2 + $0x278] sm:$0xfe] %v1073_v10  ;;  %v1657_v29 = vsel %vm1531_vm1, %v1655_v17, %v1656_v63  ;;  %v9112_v57 = vld [vmem:[#allocation4 + $0x2b0] sm:$0xff]   ;;  %v1040_v15 = vrot.slane %v7378_v60, 7 }
  0x5c   : > { %1171 = vst [vmem:[#allocation2 + $0x298] sm:$0x1] %v1074_v11  ;;  %556 = vst [vmem:[#allocation2 + $0x30] sm:$0x6] %v526_v12  ;;  %v1267_v41 = vld [vmem:[#allocation2 + $0x240] sm:$0xff]  ;;  %7681 = vmatpush3.bf16.msra.mxu0 %v9112_v57 }
  0x5d   : > { %604 = vst [vmem:[#allocation2 + $0x30] sm:$0x18] %v575_v13  ;;  %557 = vst [vmem:[#allocation2 + $0x60] sm:$0x6] %v526_v12  ;;  %v1661_v35 = vsel %vm1531_vm1, %v1656_v63, %v1660_v24  ;;  %v1652_v48 = vrot.slane %v1267_v41, 1  ;;  %v7379_v63 = vunpack.c.h.bf16 %v7439_v45  ;;  %v9105_v10 = vld [vmem:[#allocation4 + $0x270] sm:$0xff]  }
  0x5e   : > { %605 = vst [vmem:[#allocation2 + $0x60] sm:$0x18] %v575_v13  ;;  %1170 = vst [vmem:[#allocation2 + $0x288] sm:$0xff] %v9936_v26  ;;  %v9948_v40 = vpack.c.bf16 %v1661_v35, %v1657_v29  ;;  %v9106_v26 = vld [vmem:[#allocation4 + $0x230] sm:$0xff]  }
  0x5f   : > { %652 = vst [vmem:[#allocation2 + $0x30] sm:$0x60] %v623_v20  ;;  %700 = vst [vmem:[#allocation2 + $0x40] ss:$-12 sps:$4 sm:$0x81] %v671_v21   ;;  %v1269_v46 = vld [vmem:[#allocation2 + $0x250] sm:$0xff] }
  0x60   : > { %653 = vst [vmem:[#allocation2 + $0x60] sm:$0x60] %v623_v20  ;;  %702 = vst [vmem:[#allocation2 + $0x70] ss:$-12 sps:$4 sm:$0x81] %v671_v21   ;;  %2345 = vmatprep.mubr.bf16.mxu1 %v9948_v40  ;;  %v1653_v53 = vrot.slane %v1269_v46, 1 }
  0x61   : > { %764 = vst [vmem:[#allocation2 + $0x40] sm:$0x6] %v735_v27  ;;  %765 = vst [vmem:[#allocation2 + $0x70] sm:$0x6] %v735_v27  ;;  %v1271_v47 = vld [vmem:[#allocation2 + $0x260] sm:$0x3] }
  0x62   : > { %812 = vst [vmem:[#allocation2 + $0x40] sm:$0x18] %v783_v31  ;;  %860 = vst [vmem:[#allocation2 + $0x40] sm:$0x60] %v831_v34  ;;  %v1658_v54 = vrot.slane %v1271_v47, 1  ;;  %v1202_v58 = vld [vmem:[#allocation2 + $0x38] sm:$0xff]  ;;  %v1654_v2 = vsel %vm1531_vm1, %v1652_v48, %v1653_v53 }
  0x63   : > { %813 = vst [vmem:[#allocation2 + $0x70] sm:$0x18] %v783_v31  ;;  %861 = vst [vmem:[#allocation2 + $0x70] sm:$0x60] %v831_v34  ;;  %v1206_v59 = vld [vmem:[#allocation2 + $0x58] sm:$0x3] }
  0x64   : > { %908 = vst [vmem:[#allocation2 + $0x50] ss:$-12 sps:$4 sm:$0x81] %v879_v37   ;;  %910 = vst [vmem:[#allocation2 + $0x80] ss:$-12 sps:$4 sm:$0x81] %v879_v37   ;;  %v1659_v3 = vsel %vm1531_vm1, %v1653_v53, %v1658_v54 }
  0x65   : > { %568 = vst [vmem:[#allocation2 + $0x270] sm:$0x6] %v550_v38  ;;  %569 = vst [vmem:[#allocation2 + $0x2a0] sm:$0x6] %v550_v38  ;;  %v1545_v5 = vrot.slane %v1202_v58, 1  ;;  %v1550_v6 = vrot.slane %v1206_v59, 1  ;;  %v9970_v9 = vpack.c.bf16 %v1659_v3, %v1654_v2 }
  0x66   : > { %616 = vst [vmem:[#allocation2 + $0x270] sm:$0x18] %v599_v42  ;;  %664 = vst [vmem:[#allocation2 + $0x270] sm:$0x60] %v647_v43  ;;  %v1274_v7 = vld [vmem:[#allocation2 + $0x278] sm:$0xff]  ;;  %v1201_v13 = vld [vmem:[#allocation2 + $0x30] sm:$0xff] }
  0x67   : > { %724 = vst [vmem:[#allocation2 + $0x280] ss:$-12 sps:$4 sm:$0x81] %v695_v44   ;;  %617 = vst [vmem:[#allocation2 + $0x2a0] sm:$0x18] %v599_v42  ;;  %v1665_v11 = vrot.slane %v1274_v7, 1  ;;  %v1547_v20 = vsel %vm1531_vm1, %v1545_v5, %v1546_v36  ;;  %v1551_v21 = vsel %vm1531_vm1, %v1546_v36, %v1550_v6  ;;  %2346 = vmatmul.mubr.bf16.vlgmr.msra.gmra.mxu1 %v9970_v9  ;;  %v10005_v7 = vunpack.c.h.bf16 %v9911_v61 }
  0x68   : > { %665 = vst [vmem:[#allocation2 + $0x2a0] sm:$0x60] %v647_v43  ;;  %726 = vst [vmem:[#allocation2 + $0x2b0] ss:$-12 sps:$4 sm:$0x81] %v695_v44   ;;  %v1207_v17 = vld [vmem:[#allocation2 + $0x60] sm:$0xff]  ;;  %v9979_v27 = vpack.c.bf16 %v1551_v21, %v1547_v20  ;;  %7567 = vmatpush3.bf16.msra.mxu1 %v9103_v4 }
  0x69   : > { %776 = vst [vmem:[#allocation2 + $0x280] sm:$0x6] %v759_v49  ;;  %824 = vst [vmem:[#allocation2 + $0x280] sm:$0x18] %v807_v50  ;;  %v1278_v8 = vld [vmem:[#allocation2 + $0x298] sm:$0x3]  ;;  %v1667_v29 = vsel %vm1531_vm1, %v1665_v11, %v1666_v55  ;;  %7568 = vmatprep.subr.bf16.mxu1 %v9105_v10 }
  0x6a   : > { %872 = vst [vmem:[#allocation2 + $0x280] sm:$0x60] %v855_v51  ;;  %777 = vst [vmem:[#allocation2 + $0x2b0] sm:$0x6] %v759_v49  ;;  %v1670_v12 = vrot.slane %v1278_v8, 1  ;;  %v1542_v24 = vrot.slane %v1201_v13, 1  ;;  %2257 = vmatprep.mubr.bf16.mxu0 %v9979_v27  ;;  %v10011_v13 = vunpack.c.h.bf16 %v9914_v62 }
  0x6b   : > { %825 = vst [vmem:[#allocation2 + $0x2b0] sm:$0x18] %v807_v50  ;;  %873 = vst [vmem:[#allocation2 + $0x2b0] sm:$0x60] %v855_v51  ;;  %v1041_v25 = vrot.slane %v7379_v63, 7  ;;  %v1076_v31 = vrot.slane %v7426_v0, 7 }
  0x6c   : > { %932 = vst [vmem:[#allocation2 + $0x290] ss:$-12 sps:$4 sm:$0x81] %v903_v56   ;;  %934 = vst [vmem:[#allocation2 + $0x2c0] ss:$-12 sps:$4 sm:$0x81] %v903_v56   ;;  %v1671_v30 = vsel %vm1531_vm1, %v1666_v55, %v1670_v12  ;;  %7569 = vmatpush3.bf16.msra.mxu1 %v9106_v26 }
  0x6d   : > { %1136 = vst [vmem:[#allocation2 + $0x68] sm:$0xfe] %v1040_v15  ;;  %v9983_v34 = vpack.c.bf16 %v1671_v30, %v1667_v29  ;;  %v1203_v19 = vld [vmem:[#allocation2 + $0x40] sm:$0xff]  ;;  %v1205_v35 = vld [vmem:[#allocation2 + $0x50] sm:$0x3]  ;;  %v9986_v36 = vsel %vm1036_vm2, %v1040_v15, %v1041_v25  ;;  %v1077_v37 = vrot.slane %v7427_v1, 7 }
  0x6e   : > { %1138 = vst [vmem:[#allocation2 + $0x88] sm:$0x1] %v1041_v25  ;;  %v1209_v38 = vld [vmem:[#allocation2 + $0x70] sm:$0xff]  ;;  %v1543_v39 = vrot.slane %v1203_v19, 1  ;;  %v1548_v41 = vrot.slane %v1205_v35, 1  ;;  %v9107_v43 = vld [vmem:[#allocation4 + $0x268] sm:$0xff]  }
  0x6f   : > { %v1273_v42 = vld [vmem:[#allocation2 + $0x270] sm:$0xff]  ;;  %1137 = vst [vmem:[#allocation2 + $0x78] sm:$0xff] %v9986_v36  ;;  %1172 = vst [vmem:[#allocation2 + $0x2a8] sm:$0xfe] %v1076_v31  ;;  %v1552_v44 = vrot.slane %v1207_v17, 1  ;;  %v1279_v45 = vld [vmem:[#allocation2 + $0x2a0] sm:$0xff]  ;;  %2353 = vmatprep.mubr.bf16.mxu1 %v9983_v34  ;;  %v9992_v48 = vsel %vm1036_vm2, %v1076_v31, %v1077_v37  ;;  %7570 = vmatprep.subr.bf16.mxu1 %v9107_v43 }
  0x70   : > { %v1662_v46 = vrot.slane %v1273_v42, 1  ;;  %v9108_v47 = vld [vmem:[#allocation4 + $0x228] sm:$0xff]   ;;  %1174 = vst [vmem:[#allocation2 + $0x2c8] sm:$0x1] %v1077_v37  ;;  %v1211_v49 = vld [vmem:[#allocation2 + $0x80] sm:$0x3]  ;;  %v1544_v51 = vsel %vm1531_vm1, %v1542_v24, %v1543_v39  ;;  %v1549_v52 = vsel %vm1531_vm1, %v1543_v39, %v1548_v41 }
  0x71   : > { %v1553_v50 = vrot.slane %v1209_v38, 1  ;;  %v9109_v55 = vld [vmem:[#allocation4 + $0x260] sm:$0xff]   ;;  %v1556_v56 = vrot.slane %v9986_v36, 1  ;;  %1173 = vst [vmem:[#allocation2 + $0x2b8] sm:$0xff] %v9992_v48  ;;  %v1558_v57 = vrot.slane %v1211_v49, 1  ;;  %v9998_v59 = vpack.c.bf16 %v1549_v52, %v1544_v51  ;;  %v9118_v25 = vld [vmem:[#allocation4 + $0x2e8] sm:$0xff]   ;;  %7571 = vmatpush3.bf16.msra.mxu1 %v9108_v47 }
  0x72   : > { %v1672_v1 = vrot.slane %v1279_v45, 1  ;;  %v7440_v2 = vld [vmem:[%s9863_s17 + $0x10] sm:$0xff]   ;;  %v1676_v24 = vrot.slane %v9992_v48, 1  ;;  %7572 = vmatprep.subr.bf16.mxu1 %v9109_v55  ;;  %v9113_v38 = vld [vmem:[#allocation4 + $0x258] sm:$0xff]   ;;  %7682 = vmatprep.subr.bf16.mxu0 %v9118_v25  ;;  %v7442_v25 = vld [vmem:[%s9863_s17 + $0x20] sm:$0xff]  }
  0x73   : > { %v1275_v53 = vld [vmem:[#allocation2 + $0x280] sm:$0xff]  ;;  %v1277_v54 = vld [vmem:[#allocation2 + $0x290] sm:$0x3]  ;;  %v1554_v3 = vsel %vm1531_vm1, %v1552_v44, %v1553_v50  ;;  %v1559_v4 = vsel %vm1531_vm1, %v1553_v50, %v1558_v57  ;;  %2258 = vmatmul.mubr.bf16.gmra.mxu0 %v9998_v59  ;;  %v7382_v31 = vunpack.c.l.bf16 %v7440_v2  ;;  %v7383_v19 = vunpack.c.h.bf16 %v7440_v2  ;;  %v9114_v43 = vld [vmem:[#allocation4 + $0x218] sm:$0xff]  }
  0x74   : > { %v1281_v58 = vld [vmem:[#allocation2 + $0x2b0] sm:$0xff]  ;;  %v1663_v60 = vrot.slane %v1275_v53, 1  ;;  %v1668_v63 = vrot.slane %v1277_v54, 1  ;;  %v1283_v0 = vld [vmem:[#allocation2 + $0x2c0] sm:$0x3]  ;;  %v1208_v11 = vld [vmem:[#allocation2 + $0x68] sm:$0xff]  ;;  %v10016_v61 = vpack.c.bf16 %v1559_v4, %v1554_v3  ;;  %v530_v53 = vrot.slane %v10005_v7, %v9865_v14 }
  0x75   : > { %v1673_v5 = vrot.slane %v1281_v58, 1  ;;  %v7452_v6 = vld [vmem:[%s9863_s17 + $0x70] sm:$0xff]   ;;  %v1678_v12 = vrot.slane %v1283_v0, 1  ;;  %v1212_v20 = vld [vmem:[#allocation2 + $0x88] sm:$0x3]  ;;  %v1555_v21 = vrot.slane %v1208_v11, 1  ;;  %v579_v54 = vrot.slane %v10005_v7, %v9867_v16 }
  0x76   : > { %v1664_v8 = vsel %vm1531_vm1, %v1662_v46, %v1663_v60  ;;  %v1669_v10 = vsel %vm1531_vm1, %v1663_v60, %v1668_v63  ;;  %v9111_v17 = vld [vmem:[#allocation4 + $0x220] sm:$0xff]   ;;  %v1560_v26 = vrot.slane %v1212_v20, 1  ;;  %v1280_v29 = vld [vmem:[#allocation2 + $0x2a8] sm:$0xff]  ;;  %v7430_v39 = vunpack.c.l.bf16 %v7452_v6  ;;  %v9120_v50 = vld [vmem:[#allocation4 + $0x2a8] sm:$0xff]   ;;  %558 = vst [vmem:[#allocation2 + $0x90] sm:$0x6] %v530_v53 }
  0x77   : > { %v10013_v15 = vpack.c.bf16 %v1669_v10, %v1664_v8  ;;  %v1674_v30 = vsel %vm1531_vm1, %v1672_v1, %v1673_v5  ;;  %v1557_v62 = vsel %vm1531_vm1, %v1555_v21, %v1556_v56  ;;  %v1284_v35 = vld [vmem:[#allocation2 + $0x2c8] sm:$0x3]  ;;  %v1675_v36 = vrot.slane %v1280_v29, 1  ;;  %7573 = vmatpush3.bf16.msra.mxu1 %v9111_v17  ;;  %v9115_v57 = vld [vmem:[#allocation4 + $0x250] sm:$0xff]   ;;  %v10043_v63 = vld [vmem:[%s9863_s17 + $0x18] sm:$0xff]   ;;  %7683 = vmatpush3.bf16.msra.mxu0 %v9120_v50 }
  0x78   : > { %v1679_v37 = vsel %vm1531_vm1, %v1673_v5, %v1678_v12  ;;  %v1561_v41 = vsel %vm1531_vm1, %v1556_v56, %v1560_v26  ;;  %v1680_v42 = vrot.slane %v1284_v35, 1  ;;  %v1043_v44 = vrot.slane %v7382_v31, 7  ;;  %7574 = vmatprep.subr.bf16.mxu1 %v9113_v38  ;;  %v10046_v0 = vld [vmem:[#allocation4 + $0x210] sm:$0xff]   ;;  %606 = vst [vmem:[#allocation2 + $0x90] sm:$0x18] %v579_v54  ;;  %v9123_v5 = vld [vmem:[#allocation4 + $0x2e0] sm:$0xff]  }
  0x79   : > { %2354 = vmatmul.mubr.bf16.gmra.mxu1 %v10013_v15  ;;  %v1044_v45 = vrot.slane %v7383_v19, 7  ;;  %v10023_v46 = vpack.c.bf16 %v1561_v41, %v1557_v62  ;;  %v1677_v47 = vsel %vm1531_vm1, %v1675_v36, %v1676_v24  ;;  %v7431_v48 = vunpack.c.h.bf16 %v7452_v6  ;;  %559 = vst [vmem:[#allocation2 + $0xc0] sm:$0x6] %v530_v53  ;;  %607 = vst [vmem:[#allocation2 + $0xc0] sm:$0x18] %v579_v54  ;;  %v10066_v12 = vld [vmem:[#allocation4 + $0x248] sm:$0xff]  }
  0x7a   : > { %v1079_v49 = vrot.slane %v7430_v39, 7  ;;  %v1681_v51 = vsel %vm1531_vm1, %v1676_v24, %v1680_v42  ;;  %1139 = vst [vmem:[#allocation2 + $0x98] sm:$0xfe] %v1043_v44  ;;  %v10037_v56 = vpack.c.bf16 %v1679_v37, %v1674_v30  ;;  %v627_v60 = vrot.slane %v10005_v7, %v9874_v18  ;;  %v9124_v24 = vld [vmem:[#allocation4 + $0x2a0] sm:$0xff]   ;;  %v10078_v26 = vld [vmem:[%s9872_s20 + $0x8] sm:$0xff]   ;;  %v9119_v35 = vld [vmem:[#allocation4 + $0x208] sm:$0xff]   ;;  %7684 = vmatprep.subr.bf16.mxu0 %v9123_v5 }
  0x7b   : > { %v10028_v52 = vsel %vm1036_vm2, %v1043_v44, %v1044_v45  ;;  %1141 = vst [vmem:[#allocation2 + $0xb8] sm:$0x1] %v1044_v45  ;;  %2265 = vmatprep.mubr.bf16.mxu0 %v10023_v46  ;;  %v10035_v55 = vpack.c.bf16 %v1681_v51, %v1677_v47  ;;  %v1080_v58 = vrot.slane %v7431_v48, 7  ;;  %v675_v1 = vrot.slane %v10005_v7, %v9877_v22  ;;  %v9125_v62 = vld [vmem:[#allocation4 + $0x2d8] sm:$0xff]   ;;  %v9127_v53 = vld [vmem:[#allocation4 + $0x2d0] sm:$0xff]  }
  0x7c   : > { %1140 = vst [vmem:[#allocation2 + $0xa8] sm:$0xff] %v10028_v52  ;;  %1175 = vst [vmem:[#allocation2 + $0x2d8] sm:$0xfe] %v1079_v49  ;;  %2266 = vmatmul.mubr.bf16.gmra.mxu0 %v10016_v61  ;;  %v739_v2 = vrot.slane %v10005_v7, %v9879_v23  ;;  %v787_v3 = vrot.slane %v10005_v7, %v9881_v28  ;;  %v835_v4 = vrot.slane %v10005_v7, %v9884_v32  ;;  %v9126_v45 = vld [vmem:[#allocation4 + $0x298] sm:$0xff]  }
  0x7d   : > { %2361 = vmatprep.mubr.bf16.mxu1 %v10035_v55  ;;  %v10058_v6 = vsel %vm1036_vm2, %v1079_v49, %v1080_v58  ;;  %1177 = vst [vmem:[#allocation2 + $0x2f8] sm:$0x1] %v1080_v58  ;;  %654 = vst [vmem:[#allocation2 + $0x90] sm:$0x60] %v627_v60  ;;  %v883_v8 = vrot.slane %v10005_v7, %v9886_v33  ;;  %v554_v10 = vrot.slane %v10011_v13, %v9865_v14 }
  0x7e   : > { %655 = vst [vmem:[#allocation2 + $0xc0] sm:$0x60] %v627_v60  ;;  %v603_v11 = vrot.slane %v10011_v13, %v9867_v16  ;;  %7575 = vmatpush3.bf16.msra.mxu1 %v9114_v43  ;;  %v1566_v17 = vrot.slane %v10028_v52, 1  ;;  %1176 = vst [vmem:[#allocation2 + $0x2e8] sm:$0xff] %v10058_v6  ;;  %v651_v7 = vrot.slane %v10011_v13, %v9874_v18  ;;  %v7386_v19 = vunpack.c.l.bf16 %v10043_v63  ;;  %v9121_v43 = vld [vmem:[#allocation4 + $0x240] sm:$0xff]  }
  0x7f   : > { %704 = vst [vmem:[#allocation2 + $0xa0] ss:$-12 sps:$4 sm:$0x81] %v675_v1   ;;  %766 = vst [vmem:[#allocation2 + $0xa0] sm:$0x6] %v739_v2  ;;  %v699_v20 = vrot.slane %v10011_v13, %v9877_v22  ;;  %v763_v21 = vrot.slane %v10011_v13, %v9879_v23  ;;  %7576 = vmatprep.subr.bf16.mxu1 %v9115_v57  ;;  %v811_v29 = vrot.slane %v10011_v13, %v9881_v28 }
  0x80   : > { %814 = vst [vmem:[#allocation2 + $0xa0] sm:$0x18] %v787_v3  ;;  %862 = vst [vmem:[#allocation2 + $0xa0] sm:$0x60] %v835_v4  ;;  %v859_v30 = vrot.slane %v10011_v13, %v9884_v32  ;;  %v907_v31 = vrot.slane %v10011_v13, %v9886_v33  ;;  %v7387_v36 = vunpack.c.h.bf16 %v10043_v63  ;;  %v7390_v37 = vunpack.c.l.bf16 %v7442_v25  ;;  %7685 = vmatpush3.bf16.msra.mxu0 %v9124_v24 }
  0x81   : > { %706 = vst [vmem:[#allocation2 + $0xd0] ss:$-12 sps:$4 sm:$0x81] %v675_v1   ;;  %767 = vst [vmem:[#allocation2 + $0xd0] sm:$0x6] %v739_v2  ;;  %2362 = vmatmul.mubr.bf16.gmra.mxu1 %v10037_v56  ;;  %v7391_v38 = vunpack.c.h.bf16 %v7442_v25  ;;  %v10090_v39 = vunpack.c.l.bf16 %v10078_v26  ;;  %v1214_v13 = vld [vmem:[#allocation2 + $0x98] sm:$0xff]  ;;  %7686 = vmatprep.subr.bf16.mxu0 %v9125_v62 }
  0x82   : > { %815 = vst [vmem:[#allocation2 + $0xd0] sm:$0x18] %v787_v3  ;;  %863 = vst [vmem:[#allocation2 + $0xd0] sm:$0x60] %v835_v4  ;;  %v1218_v41 = vld [vmem:[#allocation2 + $0xb8] sm:$0x3]  ;;  %7577 = vmatpush3.bf16.msra.mxu1 %v10046_v0 }
  0x83   : > { %912 = vst [vmem:[#allocation2 + $0xb0] ss:$-12 sps:$4 sm:$0x81] %v883_v8   ;;  %914 = vst [vmem:[#allocation2 + $0xe0] ss:$-12 sps:$4 sm:$0x81] %v883_v8   ;;  %7578 = vmatprep.subr.bf16.mxu1 %v10066_v12  ;;  %v534_v58 = vrot.slane %v10090_v39, %v9865_v14  ;;  %v583_v60 = vrot.slane %v10090_v39, %v9867_v16  ;;  %v631_v4 = vrot.slane %v10090_v39, %v9874_v18 }
  0x84   : > { %570 = vst [vmem:[#allocation2 + $0x2d0] sm:$0x6] %v554_v10  ;;  %618 = vst [vmem:[#allocation2 + $0x2d0] sm:$0x18] %v603_v11  ;;  %v1686_v42 = vrot.slane %v10058_v6, 1  ;;  %v1046_v44 = vrot.slane %v7386_v19, 7  ;;  %7687 = vmatpush3.bf16.msra.mxu0 %v9126_v45 }
  0x85   : > { %571 = vst [vmem:[#allocation2 + $0x300] sm:$0x6] %v554_v10  ;;  %619 = vst [vmem:[#allocation2 + $0x300] sm:$0x18] %v603_v11  ;;  %v1565_v47 = vrot.slane %v1214_v13, 1  ;;  %v1570_v48 = vrot.slane %v1218_v41, 1  ;;  %7688 = vmatprep.subr.bf16.mxu0 %v9127_v53 }
  0x86   : > { %666 = vst [vmem:[#allocation2 + $0x2d0] sm:$0x60] %v651_v7  ;;  %728 = vst [vmem:[#allocation2 + $0x2e0] ss:$-12 sps:$4 sm:$0x81] %v699_v20   ;;  %v1286_v49 = vld [vmem:[#allocation2 + $0x2d8] sm:$0xff]  ;;  %7579 = vmatpush3.bf16.msra.mxu1 %v9119_v35 }
  0x87   : > { %778 = vst [vmem:[#allocation2 + $0x2e0] sm:$0x6] %v763_v21  ;;  %667 = vst [vmem:[#allocation2 + $0x300] sm:$0x60] %v651_v7  ;;  %v1047_v50 = vrot.slane %v7387_v36, 7  ;;  %v1049_v51 = vrot.slane %v7390_v37, 7  ;;  %v1567_v63 = vsel %vm1531_vm1, %v1565_v47, %v1566_v17  ;;  %v1571_v0 = vsel %vm1531_vm1, %v1566_v17, %v1570_v48  ;;  %7580 = vmatprep.subr.bf16.mxu1 %v9121_v43 }
  0x88   : > { %730 = vst [vmem:[#allocation2 + $0x310] ss:$-12 sps:$4 sm:$0x81] %v699_v20   ;;  %779 = vst [vmem:[#allocation2 + $0x310] sm:$0x6] %v763_v21  ;;  %v1685_v54 = vrot.slane %v1286_v49, 1  ;;  %v10110_v5 = vpack.c.bf16 %v1571_v0, %v1567_v63 }
  0x89   : > { %826 = vst [vmem:[#allocation2 + $0x2e0] sm:$0x18] %v811_v29  ;;  %874 = vst [vmem:[#allocation2 + $0x2e0] sm:$0x60] %v859_v30  ;;  %v1050_v57 = vrot.slane %v7391_v38, 7  ;;  %v9122_v2 = vld [vmem:[#allocation4 + $0x200] sm:$0xff]   ;;  %v10106_v3 = vsel %vm1036_vm2, %v1046_v44, %v1047_v50 }
  0x8a   : > { %936 = vst [vmem:[#allocation2 + $0x2f0] ss:$-12 sps:$4 sm:$0x81] %v907_v31   ;;  %827 = vst [vmem:[#allocation2 + $0x310] sm:$0x18] %v811_v29  ;;  %v1687_v6 = vsel %vm1531_vm1, %v1685_v54, %v1686_v42  ;;  %v1213_v10 = vld [vmem:[#allocation2 + $0x90] sm:$0xff]  ;;  %v679_v29 = vrot.slane %v10090_v39, %v9877_v22  ;;  %2273 = vmatprep.mubr.bf16.mxu0 %v10110_v5  ;;  %7581 = vmatpush3.bf16.msra.mxu1 %v9122_v2 }
  0x8b   : > { %875 = vst [vmem:[#allocation2 + $0x310] sm:$0x60] %v859_v30  ;;  %938 = vst [vmem:[#allocation2 + $0x320] ss:$-12 sps:$4 sm:$0x81] %v907_v31   ;;  %v1219_v52 = vld [vmem:[#allocation2 + $0xc0] sm:$0xff]  ;;  %v10119_v25 = vsel %vm1036_vm2, %v1049_v51, %v1050_v57 }
  0x8c   : > { %1142 = vst [vmem:[#allocation2 + $0xc8] sm:$0xfe] %v1046_v44  ;;  %v1290_v1 = vld [vmem:[#allocation2 + $0x2f8] sm:$0x3]  ;;  %1144 = vst [vmem:[#allocation2 + $0xe8] sm:$0x1] %v1047_v50 }
  0x8d   : > { %1145 = vst [vmem:[#allocation2 + $0xf8] sm:$0xfe] %v1049_v51  ;;  %v1690_v8 = vrot.slane %v1290_v1, 1  ;;  %1143 = vst [vmem:[#allocation2 + $0xd8] sm:$0xff] %v10106_v3  ;;  %v10115_v11 = vld [vmem:[%s9863_s17 + $0x28] sm:$0xff]   ;;  %v9128_v12 = vld [vmem:[#allocation4 + $0x290] sm:$0xff]  }
  0x8e   : > { %1147 = vst [vmem:[#allocation2 + $0x118] sm:$0x1] %v1050_v57  ;;  %560 = vst [vmem:[#allocation2 + $0xf0] sm:$0x6] %v534_v58  ;;  %v1215_v17 = vld [vmem:[#allocation2 + $0xa0] sm:$0xff]  ;;  %v1562_v20 = vrot.slane %v1213_v10, 1  ;;  %v7394_v51 = vunpack.c.l.bf16 %v10115_v11  ;;  %v7395_v54 = vunpack.c.h.bf16 %v10115_v11  ;;  %v10136_v57 = vunpack.c.h.bf16 %v10078_v26  ;;  %7689 = vmatpush3.bf16.msra.mxu0 %v9128_v12 }
  0x8f   : > { %608 = vst [vmem:[#allocation2 + $0xf0] sm:$0x18] %v583_v60  ;;  %561 = vst [vmem:[#allocation2 + $0x120] sm:$0x6] %v534_v58  ;;  %v1217_v7 = vld [vmem:[#allocation2 + $0xb0] sm:$0x3]  ;;  %v1691_v30 = vsel %vm1531_vm1, %v1686_v42, %v1690_v8 }
  0x90   : > { %609 = vst [vmem:[#allocation2 + $0x120] sm:$0x18] %v583_v60  ;;  %v1576_v21 = vrot.slane %v10106_v3, 1  ;;  %v1221_v24 = vld [vmem:[#allocation2 + $0xd0] sm:$0xff]  ;;  %656 = vst [vmem:[#allocation2 + $0xf0] sm:$0x60] %v631_v4  ;;  %v10126_v37 = vpack.c.bf16 %v1691_v30, %v1687_v6  ;;  %v839_v30 = vrot.slane %v10090_v39, %v9884_v32 }
  0x91   : > { %657 = vst [vmem:[#allocation2 + $0x120] sm:$0x60] %v631_v4  ;;  %v1563_v31 = vrot.slane %v1215_v17, 1  ;;  %v1568_v19 = vrot.slane %v1217_v7, 1  ;;  %v1285_v62 = vld [vmem:[#allocation2 + $0x2d0] sm:$0xff]  ;;  %v1572_v36 = vrot.slane %v1219_v52, 1  ;;  %v743_v7 = vrot.slane %v10090_v39, %v9879_v23 }
  0x92   : > { %v1223_v35 = vld [vmem:[#allocation2 + $0xe0] sm:$0x3]  ;;  %1146 = vst [vmem:[#allocation2 + $0x108] sm:$0xff] %v10119_v25  ;;  %v1289_v13 = vld [vmem:[#allocation2 + $0x2f0] sm:$0x3]  ;;  %v1682_v41 = vrot.slane %v1285_v62, 1  ;;  %2369 = vmatprep.mubr.bf16.mxu1 %v10126_v37 }
  0x93   : > { %v1287_v38 = vld [vmem:[#allocation2 + $0x2e0] sm:$0xff]  ;;  %v1573_v44 = vrot.slane %v1221_v24, 1  ;;  %v1578_v47 = vrot.slane %v1223_v35, 1  ;;  %708 = vst [vmem:[#allocation2 + $0x100] ss:$-12 sps:$4 sm:$0x81] %v679_v29   ;;  %v1564_v42 = vsel %vm1531_vm1, %v1562_v20, %v1563_v31  ;;  %v1569_v45 = vsel %vm1531_vm1, %v1563_v31, %v1568_v19 }
  0x94   : > { %710 = vst [vmem:[#allocation2 + $0x130] ss:$-12 sps:$4 sm:$0x81] %v679_v29   ;;  %v1683_v48 = vrot.slane %v1287_v38, 1  ;;  %v1688_v43 = vrot.slane %v1289_v13, 1  ;;  %v10131_v49 = vpack.c.bf16 %v1569_v45, %v1564_v42  ;;  %v1220_v50 = vld [vmem:[#allocation2 + $0xc8] sm:$0xff]  ;;  %v791_v29 = vrot.slane %v10090_v39, %v9881_v28 }
  0x95   : > { %v9129_v53 = vld [vmem:[#allocation4 + $0x2c8] sm:$0xff]   ;;  %v1224_v63 = vld [vmem:[#allocation2 + $0xe8] sm:$0x3]  ;;  %v1575_v0 = vrot.slane %v1220_v50, 1  ;;  %v1574_v1 = vsel %vm1531_vm1, %v1572_v36, %v1573_v44  ;;  %v1579_v26 = vsel %vm1531_vm1, %v1573_v44, %v1578_v47  ;;  %v1586_v11 = vrot.slane %v10119_v25, 1  ;;  %v7444_v12 = vld [vmem:[%s9863_s17 + $0x30] sm:$0xff]  }
  0x96   : > { %v1684_v58 = vsel %vm1531_vm1, %v1682_v41, %v1683_v48  ;;  %v1689_v60 = vsel %vm1531_vm1, %v1683_v48, %v1688_v43  ;;  %v1226_v3 = vld [vmem:[#allocation2 + $0xf8] sm:$0xff]  ;;  %2274 = vmatmul.mubr.bf16.gmra.mxu0 %v10131_v49  ;;  %v1580_v4 = vrot.slane %v1224_v63, 1  ;;  %7690 = vmatprep.subr.bf16.mxu0 %v9129_v53  ;;  %v9131_v20 = vld [vmem:[#allocation4 + $0x2c0] sm:$0xff]   ;;  %v887_v31 = vrot.slane %v10090_v39, %v9886_v33  ;;  %v7446_v43 = vld [vmem:[%s9863_s17 + $0x40] sm:$0xff]  }
  0x97   : > { %v10142_v2 = vpack.c.bf16 %v1689_v60, %v1684_v58  ;;  %v1230_v6 = vld [vmem:[#allocation2 + $0x118] sm:$0x3]  ;;  %v1585_v8 = vrot.slane %v1226_v3, 1  ;;  %v1577_v52 = vsel %vm1531_vm1, %v1575_v0, %v1576_v21  ;;  %768 = vst [vmem:[#allocation2 + $0x100] sm:$0x6] %v743_v7  ;;  %v10163_v35 = vpack.c.bf16 %v1579_v26, %v1574_v1  ;;  %v9301_v38 = vld [vmem:[%s9872_s20 + $0x10] sm:$0xff]  }
  0x98   : > { %v9130_v10 = vld [vmem:[#allocation4 + $0x288] sm:$0xff]   ;;  %v1590_v17 = vrot.slane %v1230_v6, 1  ;;  %v1581_v24 = vsel %vm1531_vm1, %v1576_v21, %v1580_v4  ;;  %769 = vst [vmem:[#allocation2 + $0x130] sm:$0x6] %v743_v7  ;;  %v1052_v21 = vrot.slane %v7394_v51, 7  ;;  %v10170_v13 = vunpack.c.l.bf16 %v9301_v38  ;;  %v9132_v41 = vld [vmem:[#allocation4 + $0x280] sm:$0xff]  }
  0x99   : > { %2370 = vmatmul.mubr.bf16.gmra.mxu1 %v10142_v2  ;;  %v10158_v25 = vpack.c.bf16 %v1581_v24, %v1577_v52  ;;  %v1587_v19 = vsel %vm1531_vm1, %v1585_v8, %v1586_v11  ;;  %7691 = vmatpush3.bf16.msra.mxu0 %v9130_v10  ;;  %816 = vst [vmem:[#allocation2 + $0x100] sm:$0x18] %v791_v29  ;;  %864 = vst [vmem:[#allocation2 + $0x100] sm:$0x60] %v839_v30  ;;  %v7398_v44 = vunpack.c.l.bf16 %v7444_v12  ;;  %v7445_v48 = vld [vmem:[%s9863_s17 + $0x38] sm:$0xff]   ;;  %v9133_v58 = vld [vmem:[#allocation4 + $0x78] sm:$0xff]  }
  0x9a   : > { %2410 = vmatprep.mubr.bf16.mxu1 %v9979_v27  ;;  %v1591_v62 = vsel %vm1531_vm1, %v1586_v11, %v1590_v17  ;;  %916 = vst [vmem:[#allocation2 + $0x110] ss:$-12 sps:$4 sm:$0x81] %v887_v31   ;;  %v10167_v39 = vld [vmem:[#allocation2 + $0xf0] sm:$0xff]  ;;  %817 = vst [vmem:[#allocation2 + $0x130] sm:$0x18] %v791_v29  ;;  %7692 = vmatprep.subr.bf16.mxu0 %v9131_v20  ;;  %v7399_v47 = vunpack.c.h.bf16 %v7444_v12  ;;  %v538_v42 = vrot.slane %v10136_v57, %v9865_v14 }
  0x9b   : > { %v10165_v36 = vpack.c.bf16 %v1591_v62, %v1587_v19  ;;  %865 = vst [vmem:[#allocation2 + $0x130] sm:$0x60] %v839_v30  ;;  %918 = vst [vmem:[#allocation2 + $0x140] ss:$-12 sps:$4 sm:$0x81] %v887_v31   ;;  %v1053_v27 = vrot.slane %v7395_v54, 7  ;;  %2281 = vmatprep.mubr.bf16.mxu0 %v10158_v25  ;;  %v587_v45 = vrot.slane %v10136_v57, %v9867_v16  ;;  %v7402_v6 = vunpack.c.l.bf16 %v7445_v48 }
  0x9c   : > { %1148 = vst [vmem:[#allocation2 + $0x128] sm:$0xfe] %v1052_v21  ;;  %v635_v51 = vrot.slane %v10136_v57, %v9874_v18  ;;  %v683_v54 = vrot.slane %v10136_v57, %v9877_v22  ;;  %v747_v53 = vrot.slane %v10136_v57, %v9879_v23  ;;  %v1582_v60 = vrot.slane %v10167_v39, 1  ;;  %562 = vst [vmem:[#allocation2 + $0x150] sm:$0x6] %v538_v42  ;;  %v9134_v3 = vld [vmem:[#allocation4 + $0x38] sm:$0xff]  }
  0x9d   : > { %v10180_v50 = vsel %vm1036_vm2, %v1052_v21, %v1053_v27  ;;  %1150 = vst [vmem:[#allocation2 + $0x148] sm:$0x1] %v1053_v27  ;;  %v1055_v63 = vrot.slane %v7398_v44, 7  ;;  %v1056_v0 = vrot.slane %v7399_v47, 7  ;;  %610 = vst [vmem:[#allocation2 + $0x150] sm:$0x18] %v587_v45  ;;  %v795_v1 = vrot.slane %v10136_v57, %v9881_v28  ;;  %7693 = vmatpush3.bf16.msra.mxu0 %v9132_v41 }
  0x9e   : > { %1149 = vst [vmem:[#allocation2 + $0x138] sm:$0xff] %v10180_v50  ;;  %563 = vst [vmem:[#allocation2 + $0x180] sm:$0x6] %v538_v42  ;;  %2282 = vmatmul.mubr.bf16.gmra.mxu0 %v10163_v35  ;;  %v843_v4 = vrot.slane %v10136_v57, %v9884_v32  ;;  %v891_v26 = vrot.slane %v10136_v57, %v9886_v33  ;;  %v7403_v8 = vunpack.c.h.bf16 %v7445_v48  ;;  %7790 = vmatprep.subr.bf16.mxu1 %v9133_v58  ;;  %v9135_v10 = vld [vmem:[#allocation4 + $0xf8] sm:$0xff]   ;;  %v10198_v52 = vld [vmem:[#allocation2 + $0x120] sm:$0xff]  ;;  %s9514_s20 = scalar_lea.vmem %s9513_s19, 8192 }
  0x9f   : > { %611 = vst [vmem:[#allocation2 + $0x180] sm:$0x18] %v587_v45  ;;  %658 = vst [vmem:[#allocation2 + $0x150] sm:$0x60] %v635_v51  ;;  %2289 = vmatprep.mubr.bf16.mxu0 %v10165_v36  ;;  %v10201_v11 = vsel %vm1036_vm2, %v1055_v63, %v1056_v0  ;;  %v7406_v17 = vunpack.c.l.bf16 %v7446_v43  ;;  %v7407_v57 = vunpack.c.h.bf16 %v7446_v43  ;;  %v542_v7 = vrot.slane %v10170_v13, %v9865_v14  ;;  %v9137_v30 = vld [vmem:[#allocation4 + $0x70] sm:$0xff]  }
  0xa0   : > { %712 = vst [vmem:[#allocation2 + $0x160] ss:$-12 sps:$4 sm:$0x81] %v683_v54   ;;  %770 = vst [vmem:[#allocation2 + $0x160] sm:$0x6] %v747_v53  ;;  %v1596_v12 = vrot.slane %v10180_v50, 1  ;;  %v591_v29 = vrot.slane %v10170_v13, %v9867_v16  ;;  %7902 = vmatprep.subr.bf16.mxu0 %v9135_v10  ;;  %v639_v21 = vrot.slane %v10170_v13, %v9874_v18 }
  0xa1   : > { %659 = vst [vmem:[#allocation2 + $0x180] sm:$0x60] %v635_v51  ;;  %714 = vst [vmem:[#allocation2 + $0x190] ss:$-12 sps:$4 sm:$0x81] %v683_v54   ;;  %2411 = vmatmul.mubr.bf16.vlgmr.msra.gmra.mxu1 %v9998_v59  ;;  %v1058_v20 = vrot.slane %v7402_v6, 7  ;;  %v687_v27 = vrot.slane %v10170_v13, %v9877_v22 }
  0xa2   : > { %771 = vst [vmem:[#allocation2 + $0x190] sm:$0x6] %v747_v53  ;;  %1151 = vst [vmem:[#allocation2 + $0x158] sm:$0xfe] %v1055_v63  ;;  %v1059_v24 = vrot.slane %v7403_v8, 7  ;;  %2418 = vmatprep.mubr.bf16.mxu1 %v10023_v46  ;;  %v1227_v14 = vld [vmem:[#allocation2 + $0x100] sm:$0xff]  ;;  %7791 = vmatpush3.bf16.msra.mxu1 %v9134_v3 }
  0xa3   : > { %1153 = vst [vmem:[#allocation2 + $0x178] sm:$0x1] %v1056_v0  ;;  %818 = vst [vmem:[#allocation2 + $0x160] sm:$0x18] %v795_v1  ;;  %v1229_v31 = vld [vmem:[#allocation2 + $0x110] sm:$0x3]  ;;  %7792 = vmatprep.subr.bf16.mxu1 %v9137_v30 }
  0xa4   : > { %819 = vst [vmem:[#allocation2 + $0x190] sm:$0x18] %v795_v1  ;;  %1152 = vst [vmem:[#allocation2 + $0x168] sm:$0xff] %v10201_v11  ;;  %v1233_v59 = vld [vmem:[#allocation2 + $0x130] sm:$0xff]  ;;  %v1061_v19 = vrot.slane %v7406_v17, 7  ;;  %v1062_v62 = vrot.slane %v7407_v57, 7  ;;  %v10216_v47 = vsel %vm1036_vm2, %v1058_v20, %v1059_v24 }
  0xa5   : > { %866 = vst [vmem:[#allocation2 + $0x160] sm:$0x60] %v843_v4  ;;  %920 = vst [vmem:[#allocation2 + $0x170] ss:$-12 sps:$4 sm:$0x81] %v891_v26   ;;  %v1583_v38 = vrot.slane %v1227_v14, 1 }
  0xa6   : > { %867 = vst [vmem:[#allocation2 + $0x190] sm:$0x60] %v843_v4  ;;  %922 = vst [vmem:[#allocation2 + $0x1a0] ss:$-12 sps:$4 sm:$0x81] %v891_v26   ;;  %v1588_v16 = vrot.slane %v1229_v31, 1  ;;  %v10233_v6 = vsel %vm1036_vm2, %v1061_v19, %v1062_v62 }
  0xa7   : > { %564 = vst [vmem:[#allocation2 + $0x1b0] sm:$0x6] %v542_v7  ;;  %565 = vst [vmem:[#allocation2 + $0x1e0] sm:$0x6] %v542_v7  ;;  %v1232_v41 = vld [vmem:[#allocation2 + $0x128] sm:$0xff]  ;;  %v1592_v18 = vrot.slane %v10198_v52, 1  ;;  %v1584_v22 = vsel %vm1531_vm1, %v1582_v60, %v1583_v38 }
  0xa8   : > { %v1235_v44 = vld [vmem:[#allocation2 + $0x140] sm:$0x3]  ;;  %1154 = vst [vmem:[#allocation2 + $0x188] sm:$0xfe] %v1058_v20  ;;  %1156 = vst [vmem:[#allocation2 + $0x1a8] sm:$0x1] %v1059_v24  ;;  %v1589_v43 = vsel %vm1531_vm1, %v1583_v38, %v1588_v16 }
  0xa9   : > { %612 = vst [vmem:[#allocation2 + $0x1b0] sm:$0x18] %v591_v29  ;;  %613 = vst [vmem:[#allocation2 + $0x1e0] sm:$0x18] %v591_v29  ;;  %v1236_v42 = vld [vmem:[#allocation2 + $0x148] sm:$0x3]  ;;  %v10224_v54 = vpack.c.bf16 %v1589_v43, %v1584_v22  ;;  %2419 = vmatmul.mubr.bf16.gmra.mxu1 %v10016_v61 }
  0xaa   : > { %v1595_v45 = vrot.slane %v1232_v41, 1  ;;  %v1593_v48 = vrot.slane %v1233_v59, 1  ;;  %1155 = vst [vmem:[#allocation2 + $0x198] sm:$0xff] %v10216_v47  ;;  %1157 = vst [vmem:[#allocation2 + $0x1b8] sm:$0xfe] %v1061_v19  ;;  %v1600_v50 = vrot.slane %v1236_v42, 1  ;;  %2426 = vmatprep.mubr.bf16.mxu1 %v10110_v5 }
  0xab   : > { %1159 = vst [vmem:[#allocation2 + $0x1d8] sm:$0x1] %v1062_v62  ;;  %660 = vst [vmem:[#allocation2 + $0x1b0] sm:$0x60] %v639_v21  ;;  %v1598_v51 = vrot.slane %v1235_v44, 1  ;;  %v1606_v58 = vrot.slane %v10201_v11, 1  ;;  %2290 = vmatmul.mubr.bf16.gmra.mxu0 %v10224_v54  ;;  %v751_v44 = vrot.slane %v10170_v13, %v9879_v23 }
  0xac   : > { %716 = vst [vmem:[#allocation2 + $0x1c0] ss:$-12 sps:$4 sm:$0x81] %v687_v27   ;;  %661 = vst [vmem:[#allocation2 + $0x1e0] sm:$0x60] %v639_v21  ;;  %v1597_v53 = vsel %vm1531_vm1, %v1595_v45, %v1596_v12  ;;  %v1601_v63 = vsel %vm1531_vm1, %v1596_v12, %v1600_v50  ;;  %v1238_v0 = vld [vmem:[#allocation2 + $0x158] sm:$0xff]  ;;  %v1594_v8 = vsel %vm1531_vm1, %v1592_v18, %v1593_v48 }
  0xad   : > { %718 = vst [vmem:[#allocation2 + $0x1f0] ss:$-12 sps:$4 sm:$0x81] %v687_v27   ;;  %v1242_v1 = vld [vmem:[#allocation2 + $0x178] sm:$0x3]  ;;  %v9138_v3 = vld [vmem:[#allocation4 + $0x30] sm:$0xff]   ;;  %v10230_v39 = vpack.c.bf16 %v1601_v63, %v1597_v53  ;;  %v1599_v10 = vsel %vm1531_vm1, %v1593_v48, %v1598_v51  ;;  %v847_v45 = vrot.slane %v10170_v13, %v9884_v32  ;;  %v895_v18 = vrot.slane %v10170_v13, %v9886_v33 }
  0xae   : > { %v1605_v60 = vrot.slane %v1238_v0, 1  ;;  %v1610_v4 = vrot.slane %v1242_v1, 1  ;;  %v1237_v26 = vld [vmem:[#allocation2 + $0x150] sm:$0xff]  ;;  %v1239_v52 = vld [vmem:[#allocation2 + $0x160] sm:$0xff]  ;;  %1158 = vst [vmem:[#allocation2 + $0x1c8] sm:$0xff] %v10233_v6  ;;  %v1616_v24 = vrot.slane %v10216_v47, 1  ;;  %7793 = vmatpush3.bf16.msra.mxu1 %v9138_v3  ;;  %v10247_v14 = vpack.c.bf16 %v1599_v10, %v1594_v8 }
  0xaf   : > { %2297 = vmatprep.mubr.bf16.mxu0 %v10230_v39  ;;  %v1241_v57 = vld [vmem:[#allocation2 + $0x170] sm:$0x3]  ;;  %v1244_v7 = vld [vmem:[#allocation2 + $0x188] sm:$0xff]  ;;  %v1602_v12 = vrot.slane %v1237_v26, 1  ;;  %v10244_v29 = vld [vmem:[#allocation2 + $0x180] sm:$0xff]  ;;  %v1603_v31 = vrot.slane %v1239_v52, 1  ;;  %v799_v47 = vrot.slane %v10170_v13, %v9881_v28 }
  0xb0   : > { %v1607_v11 = vsel %vm1531_vm1, %v1605_v60, %v1606_v58  ;;  %v1611_v17 = vsel %vm1531_vm1, %v1606_v58, %v1610_v4  ;;  %v1248_v20 = vld [vmem:[#allocation2 + $0x1a8] sm:$0x3]  ;;  %v10249_v59 = vld [vmem:[#allocation2 + $0x190] sm:$0xff]  ;;  %v1608_v21 = vrot.slane %v1241_v57, 1  ;;  %v1615_v27 = vrot.slane %v1244_v7, 1  ;;  %v9141_v48 = vld [vmem:[#allocation4 + $0x68] sm:$0xff]  }
  0xb1   : > { %v7447_v30 = vld [vmem:[%s9863_s17 + $0x48] sm:$0xff]   ;;  %v7448_v19 = vld [vmem:[%s9863_s17 + $0x50] sm:$0xff]   ;;  %v10252_v62 = vpack.c.bf16 %v1611_v17, %v1607_v11  ;;  %v1620_v38 = vrot.slane %v1248_v20, 1  ;;  %v10254_v16 = vld [vmem:[#allocation2 + $0x1a0] sm:$0x3]  ;;  %v1612_v42 = vrot.slane %v10244_v29, 1  ;;  %2427 = vmatmul.mubr.bf16.gmra.mxu1 %v10131_v49  ;;  %v1604_v32 = vsel %vm1531_vm1, %v1602_v12, %v1603_v31  ;;  %7794 = vmatprep.subr.bf16.mxu1 %v9141_v48 }
  0xb2   : > { %v10256_v41 = vld [vmem:[#allocation2 + $0x1b8] sm:$0xff]  ;;  %v1613_v22 = vrot.slane %v10249_v59, 1  ;;  %772 = vst [vmem:[#allocation2 + $0x1c0] sm:$0x6] %v751_v44  ;;  %820 = vst [vmem:[#allocation2 + $0x1c0] sm:$0x18] %v799_v47  ;;  %v7410_v23 = vunpack.c.l.bf16 %v7447_v30  ;;  %v7411_v43 = vunpack.c.h.bf16 %v7447_v30  ;;  %v1609_v33 = vsel %vm1531_vm1, %v1603_v31, %v1608_v21  ;;  %2434 = vmatprep.mubr.bf16.mxu1 %v10158_v25 }
  0xb3   : > { %2298 = vmatmul.mubr.bf16.gmra.mxu0 %v10247_v14  ;;  %773 = vst [vmem:[#allocation2 + $0x1f0] sm:$0x6] %v751_v44  ;;  %821 = vst [vmem:[#allocation2 + $0x1f0] sm:$0x18] %v799_v47  ;;  %v9142_v28 = vld [vmem:[#allocation4 + $0x28] sm:$0xff]   ;;  %v7414_v13 = vunpack.c.l.bf16 %v7448_v19  ;;  %v7415_v50 = vunpack.c.h.bf16 %v7448_v19  ;;  %v1617_v51 = vsel %vm1531_vm1, %v1615_v27, %v1616_v24  ;;  %v1621_v53 = vsel %vm1531_vm1, %v1616_v24, %v1620_v38  ;;  %v9145_v1 = vld [vmem:[#allocation4 + $0x60] sm:$0xff]  }
  0xb4   : > { %2305 = vmatprep.mubr.bf16.mxu0 %v10252_v62  ;;  %868 = vst [vmem:[#allocation2 + $0x1c0] sm:$0x60] %v847_v45  ;;  %924 = vst [vmem:[#allocation2 + $0x1d0] ss:$-12 sps:$4 sm:$0x81] %v895_v18   ;;  %v1064_v63 = vrot.slane %v7410_v23, 7  ;;  %7795 = vmatpush3.bf16.msra.mxu1 %v9142_v28  ;;  %v10278_v8 = vpack.c.bf16 %v1609_v33, %v1604_v32  ;;  %v10281_v52 = vpack.c.bf16 %v1621_v53, %v1617_v51 }
  0xb5   : > { %869 = vst [vmem:[#allocation2 + $0x1f0] sm:$0x60] %v847_v45  ;;  %926 = vst [vmem:[#allocation2 + $0x200] ss:$-12 sps:$4 sm:$0x81] %v895_v18   ;;  %v1065_v0 = vrot.slane %v7411_v43, 7  ;;  %7796 = vmatprep.subr.bf16.mxu1 %v9145_v1 }
  0xb6   : > { %v1254_v58 = vld [vmem:[#allocation2 + $0x1d8] sm:$0x3]  ;;  %v1618_v3 = vrot.slane %v10254_v16, 1  ;;  %v1625_v60 = vrot.slane %v10256_v41, 1  ;;  %v1067_v4 = vrot.slane %v7414_v13, 7  ;;  %v1068_v26 = vrot.slane %v7415_v50, 7 }
  0xb7   : > { %v1066_v10 = vsel %vm1036_vm2, %v1064_v63, %v1065_v0  ;;  %1160 = vst [vmem:[#allocation2 + $0x1e8] sm:$0xfe] %v1064_v63  ;;  %1162 = vst [vmem:[#allocation2 + $0x208] sm:$0x1] %v1065_v0  ;;  %v1626_v11 = vrot.slane %v10233_v6, 1  ;;  %v9146_v57 = vld [vmem:[#allocation4 + $0x20] sm:$0xff]   ;;  %v1614_v6 = vsel %vm1531_vm1, %v1612_v42, %v1613_v22 }
  0xb8   : > { %1161 = vst [vmem:[#allocation2 + $0x1f8] sm:$0xff] %v1066_v10  ;;  %v10285_v17 = vsel %vm1036_vm2, %v1067_v4, %v1068_v26  ;;  %1163 = vst [vmem:[#allocation2 + $0x218] sm:$0xfe] %v1067_v4  ;;  %v1630_v7 = vrot.slane %v1254_v58, 1  ;;  %v9147_v12 = vld [vmem:[#allocation4 + $0x58] sm:$0xff]   ;;  %7797 = vmatpush3.bf16.msra.mxu1 %v9146_v57  ;;  %v1619_v20 = vsel %vm1531_vm1, %v1613_v22, %v1618_v3  ;;  %v1249_v24 = vld [vmem:[#allocation2 + $0x1b0] sm:$0xff] }
  0xb9   : > { %1165 = vst [vmem:[#allocation2 + $0x238] sm:$0x1] %v1068_v26  ;;  %1164 = vst [vmem:[#allocation2 + $0x228] sm:$0xff] %v10285_v17  ;;  %7798 = vmatprep.subr.bf16.mxu1 %v9147_v12  ;;  %2435 = vmatmul.mubr.bf16.gmra.mxu1 %v10163_v35  ;;  %v1627_v30 = vsel %vm1531_vm1, %v1625_v60, %v1626_v11  ;;  %v9149_v19 = vld [vmem:[#allocation4 + $0x18] sm:$0xff]   ;;  %v10296_v38 = vpack.c.bf16 %v1619_v20, %v1614_v6  ;;  %v1622_v16 = vrot.slane %v1249_v24, 1  ;;  %v9151_v47 = vld [vmem:[#allocation4 + $0x50] sm:$0xff]  }
  0xba   : > { %2442 = vmatprep.mubr.bf16.mxu1 %v10165_v36  ;;  %v1631_v31 = vsel %vm1531_vm1, %v1626_v11, %v1630_v7  ;;  %v1636_v44 = vrot.slane %v1066_v10, 1  ;;  %v9152_v22 = vld [vmem:[#allocation4 + $0x10] sm:$0xff]   ;;  %v7453_v43 = vld [vmem:[%s9863_s17 + $0x78] sm:$0xff]   ;;  %v9155_v10 = vld [vmem:[#allocation4 + $0x40] sm:$0xff]   ;;  %v1646_v57 = vrot.slane %v10285_v17, 1  ;;  %s326_s17 = sand.u32 1, %s9564_s28  }
  0xbb   : > { %2306 = vmatmul.mubr.bf16.gmra.mxu0 %v10278_v8  ;;  %v1251_v29 = vld [vmem:[#allocation2 + $0x1c0] sm:$0xff]  ;;  %v1253_v59 = vld [vmem:[#allocation2 + $0x1d0] sm:$0x3]  ;;  %v10298_v42 = vpack.c.bf16 %v1631_v31, %v1627_v30  ;;  %v7434_v33 = vunpack.c.l.bf16 %v7453_v43  ;;  %v7435_v13 = vunpack.c.h.bf16 %v7453_v43  ;;  %v9153_v50 = vld [vmem:[#allocation4 + $0x48] sm:$0xff]   ;;  %s7027_s22 = sshll.u32 %s326_s17, 8  ;;  %s12809_s9 = scalar_lea.sflag [#allocation6], %s326_s17 }
  0xbc   : > { %2313 = vmatprep.mubr.bf16.mxu0 %v10281_v52  ;;  %v1623_v41 = vrot.slane %v1251_v29, 1  ;;  %7799 = vmatpush3.bf16.msra.mxu1 %v9149_v19  ;;  %v1628_v45 = vrot.slane %v1253_v59, 1  ;;  %v1255_v23 = vld [vmem:[#allocation2 + $0x1e0] sm:$0xff]  ;;  %v1257_v28 = vld [vmem:[#allocation2 + $0x1f0] sm:$0xff]  ;;  %v9154_v0 = vld [vmem:[#allocation4 + $0x8] sm:$0xff]   ;;  %s12611_s23 = scalar_lea.vmem [#allocation7], %s7027_s22 }
  0xbd   : > { %7800 = vmatprep.subr.bf16.mxu1 %v9151_v47  ;;  %v1259_v32 = vld [vmem:[#allocation2 + $0x200] sm:$0x3]  ;;  %v1082_v60 = vrot.slane %v7434_v33, 7  ;;  %v1083_v4 = vrot.slane %v7435_v13, 7  ;;  %v1632_v26 = vrot.slane %v1255_v23, 1  ;;  %v9156_v12 = vld [vmem:[#allocation4] sm:$0xff]  }
  0xbe   : > { %v1256_v21 = vld [vmem:[#allocation2 + $0x1e8] sm:$0xff]  ;;  %v1624_v51 = vsel %vm1531_vm1, %v1622_v16, %v1623_v41  ;;  %v1629_v53 = vsel %vm1531_vm1, %v1623_v41, %v1628_v45  ;;  %v1633_v20 = vrot.slane %v1257_v28, 1  ;;  %v1638_v24 = vrot.slane %v1259_v32, 1  ;;  %v1261_v31 = vld [vmem:[#allocation2 + $0x210] sm:$0xff]  ;;  %v1263_v17 = vld [vmem:[#allocation2 + $0x220] sm:$0xff]  ;;  %s6935_s25 = sshll.u32 %s12611_s23, 4  ;;  %s12803_s25 = int_to_ptr.vmem [resolvable:$true] %s6935_s25 }
  0xbf   : > { %v1260_v27 = vld [vmem:[#allocation2 + $0x208] sm:$0x3]  ;;  %v1635_v18 = vrot.slane %v1256_v21, 1  ;;  %v1262_v58 = vld [vmem:[#allocation2 + $0x218] sm:$0xff]  ;;  %v10309_v11 = vpack.c.bf16 %v1629_v53, %v1624_v51  ;;  %v10313_v7 = vsel %vm1036_vm2, %v1082_v60, %v1083_v4  ;;  %1178 = vst [vmem:[#allocation2 + $0x308] sm:$0xfe] %v1082_v60  ;;  %p9515_p11 = scmp.lt.s32.totalorder %s12803_s25, %s9513_s19 }
  0xc0   : > { %v1640_v48 = vrot.slane %v1260_v27, 1  ;;  %7801 = vmatpush3.bf16.msra.mxu1 %v9152_v22  ;;  %v1266_v63 = vld [vmem:[#allocation2 + $0x238] sm:$0x3]  ;;  %1180 = vst [vmem:[#allocation2 + $0x328] sm:$0x1] %v1083_v4  ;;  %1179 = vst [vmem:[#allocation2 + $0x318] sm:$0xff] %v10313_v7  ;;  %v1634_v59 = vsel %vm1531_vm1, %v1632_v26, %v1633_v20  ;;  %v1639_v19 = vsel %vm1531_vm1, %v1633_v20, %v1638_v24 }
  0xc1   : > { %2443 = vmatmul.mubr.bf16.gmra.mxu1 %v10224_v54  ;;  %v1637_v1 = vsel %vm1531_vm1, %v1635_v18, %v1636_v44  ;;  %7802 = vmatprep.subr.bf16.mxu1 %v9153_v50  ;;  %v1645_v29 = vrot.slane %v1262_v58, 1  ;;  %v1650_v30 = vrot.slane %v1266_v63, 1  ;;  %v1265_v21 = vld [vmem:[#allocation2 + $0x230] sm:$0x3]  ;;  %v1642_v41 = vrot.slane %v1261_v31, 1  ;;  %v9136_v43 = vld [vmem:[#allocation4 + $0xb8] sm:$0xff]  }
  0xc2   : > { %2450 = vmatprep.mubr.bf16.mxu1 %v10230_v39  ;;  %v1641_v3 = vsel %vm1531_vm1, %v1636_v44, %v1640_v48  ;;  %v10326_v44 = vpack.c.bf16 %v1639_v19, %v1634_v59  ;;  %v1643_v47 = vrot.slane %v1263_v17, 1  ;;  %v1648_v45 = vrot.slane %v1265_v21, 1  ;;  %v9139_v28 = vld [vmem:[#allocation4 + $0xf0] sm:$0xff]   ;;  %v9165_v32 = vld [vmem:[#allocation4 + $0x178] sm:$0xff]   ;;  %v9143_v13 = vld [vmem:[#allocation4 + $0xe8] sm:$0xff]   ;;  %s9508_s13 = scalar_lea.vmem %s12803_s25, 4096 }
  0xc3   : > { %2314 = vmatmul.mubr.bf16.gmra.mxu0 %v10296_v38  ;;  %v10315_v6 = vpack.c.bf16 %v1641_v3, %v1637_v1  ;;  %v1647_v27 = vsel %vm1531_vm1, %v1645_v29, %v1646_v57  ;;  %v1651_v16 = vsel %vm1531_vm1, %v1646_v57, %v1650_v30  ;;  %v9140_v33 = vld [vmem:[#allocation4 + $0xb0] sm:$0xff]   ;;  %v9144_v50 = vld [vmem:[#allocation4 + $0xa8] sm:$0xff]   ;;  %v9150_v51 = vld [vmem:[#allocation4 + $0xa0] sm:$0xff]   ;;  %p9509_p8 = scmp.ne.s32.totalorder %s12803_s25, %s9508_s13  ;;  %p9516_p12 = scmp.lt.s32.totalorder %s9514_s20, %s9508_s13 }
  0xc4   : > { %2321 = vmatprep.mubr.bf16.mxu0 %v10298_v42  ;;  %7803 = vmatpush3.bf16.msra.mxu1 %v9154_v0  ;;  %v10328_v18 = vpack.c.bf16 %v1651_v16, %v1647_v27  ;;  %v1644_v48 = vsel %vm1531_vm1, %v1642_v41, %v1643_v47  ;;  %v1649_v22 = vsel %vm1531_vm1, %v1643_v47, %v1648_v45  ;;  %v9158_v53 = vld [vmem:[#allocation4 + $0x98] sm:$0xff]   ;;  %v9162_v58 = vld [vmem:[#allocation4 + $0x88] sm:$0xff]   ;;  %v9163_v63 = vld [vmem:[#allocation4 + $0xc0] sm:$0xff]  }
  0xc5   : > { %7804 = vmatprep.subr.bf16.mxu1 %v9155_v10  ;;  %v10336_v23 = vpack.c.bf16 %v1649_v22, %v1644_v48  ;;  %v9164_v0 = vld [vmem:[#allocation4 + $0x80] sm:$0xff]   ;;  %v1291_v60 = vld [vmem:[#allocation2 + $0x300] sm:$0xff]  ;;  %v10379_v24 = vld [vmem:[#allocation2 + $0x18] sm:$0xff]  ;;  %p9510_p9 = pnand %p9509_p8, %p9664_p5  ;;  %p9517_p13 = por %p9516_p12, %p9515_p11 }
  0xc6   : > { %v1293_v4 = vld [vmem:[#allocation2 + $0x310] sm:$0xff]  ;;  %v1295_v26 = vld [vmem:[#allocation2 + $0x320] sm:$0x3]  ;;  %v1762_v10 = vrot.slane %v1291_v60, 1  ;;  %v9303_v29 = vld [vmem:[#allocation2 + $0x8] sm:$0xff] }
  0xc7   : > { %v1296_v1 = vld [vmem:[#allocation2 + $0x328] sm:$0x3]  ;;  %v1763_v57 = vrot.slane %v1293_v4, 1  ;;  %v1304_v30 = vpack.c.bf16 %v10379_v24, %v9303_v29  ;;  %v9169_v17 = vld [vmem:[#allocation4 + $0x170] sm:$0xff]   ;;  %v9306_v19 = vld [vmem:[#allocation2 + $0x38] sm:$0xff]  ;;  %p9511_p10 = pneg %p9510_p9 }
  0xc8   : > { %7805 = vmatpush3.bf16.msra.mxu1 %v9156_v12  ;;  %v1770_v3 = vrot.slane %v1296_v1, 1  ;;  %v9305_v59 = vld [vmem:[#allocation2 + $0x48] sm:$0xff]  ;;  %v9174_v27 = vld [vmem:[#allocation4 + $0x128] sm:$0xff]   ;;  %v9307_v16 = vld [vmem:[#allocation2 + $0x30] sm:$0xff] }
  0xc9   : > { %2451 = vmatmul.mubr.bf16.gmra.mxu1 %v10247_v14  ;;  %8014 = vmatprep.subr.bf16.mxu1 %v9165_v32  ;;  %v10386_v21 = vpack.c.bf16 %v9305_v59, %v9306_v19  ;;  %v9308_v41 = vld [vmem:[#allocation2 + $0x40] sm:$0xff]  ;;  %v9177_v45 = vld [vmem:[#allocation4 + $0x160] sm:$0xff]   ;;  %v9309_v48 = vld [vmem:[#allocation2 + $0x78] sm:$0xff]  ;;  %p9518_p0 = pnand %p9517_p13, %p9511_p10 }
  0xca   : > { %2458 = vmatprep.mubr.bf16.mxu1 %v10252_v62  ;;  %v10391_v47 = vpack.c.bf16 %v9308_v41, %v9307_v16  ;;  %v9310_v22 = vld [vmem:[#allocation2 + $0x68] sm:$0xff]  ;;  %v9311_v32 = vld [vmem:[#allocation2 + $0x60] sm:$0xff]  ;;  %v9187_v1 = vld [vmem:[#allocation4 + $0x140] sm:$0xff]  }
  0xcb   : > { %2322 = vmatmul.mubr.bf16.gmra.mxu0 %v10309_v11  ;;  %v9188_v4 = vld [vmem:[#allocation4 + $0x100] sm:$0xff]   ;;  %v1302_v59 = vld [vmem:[#allocation2 + $0x358] sm:$0x3] }
  0xcc   : > { %2329 = vmatprep.mubr.bf16.mxu0 %v10315_v6  ;;  %v9325_v41 = vld [vmem:[#allocation2 + $0x138] sm:$0xff] }
  0xd1   : > { %2459 = vmatmul.mubr.bf16.gmra.mxu1 %v10278_v8 }
  0xd2   : > { %2466 = vmatprep.mubr.bf16.mxu1 %v10281_v52 }
  0xd3   : > { %2330 = vmatmul.mubr.bf16.gmra.mxu0 %v10326_v44 }
  0xd4   : > { %2337 = vmatprep.mubr.bf16.mxu0 %v10328_v18 }
  0xd9   : > { %2467 = vmatmul.mubr.bf16.gmra.mxu1 %v10296_v38 }
  0xda   : > { %2474 = vmatprep.mubr.bf16.mxu1 %v10298_v42 }
  0xdb   : > { %2338 = vmatmul.mubr.bf16.gmra.mxu0 %v10336_v23 }
  0xdc   : > { %2571 = vmatprep.mubr.bf16.mxu0 %v10023_v46  ;;  %v9148_v46 = vld [vmem:[#allocation4 + $0xe0] sm:$0xff]  }
  0xe1   : > { %2475 = vmatmul.mubr.bf16.gmra.mxu1 %v10309_v11 }
  0xe2   : > { %2482 = vmatprep.mubr.bf16.mxu1 %v10315_v6 }
  0xe3   : > { %2572 = vmatmul.mubr.bf16.vlgmr.msra.gmra.mxu0 %v10016_v61  ;;  %v9157_v61 = vld [vmem:[#allocation4 + $0xd8] sm:$0xff]  }
  0xe4   : > { %7903 = vmatpush3.bf16.msra.mxu0 %v9136_v43  ;;  %2579 = vmatprep.mubr.bf16.mxu0 %v10110_v5  ;;  %v9159_v5 = vld [vmem:[#allocation4 + $0xd0] sm:$0xff]   ;;  %v10393_v43 = vpack.c.bf16 %v9309_v48, %v9310_v22 }
  0xe5   : > { %7904 = vmatprep.subr.bf16.mxu0 %v9139_v28  ;;  %v9181_v28 = vld [vmem:[#allocation4 + $0x118] sm:$0xff]  }
  0xe8   : > { %7905 = vmatpush3.bf16.msra.mxu0 %v9140_v33  ;;  %v9312_v33 = vld [vmem:[#allocation2 + $0x70] sm:$0xff] }
  0xe9   : > { %7906 = vmatprep.subr.bf16.mxu0 %v9143_v13  ;;  %2483 = vmatmul.mubr.bf16.gmra.mxu1 %v10326_v44  ;;  %v10399_v13 = vpack.c.bf16 %v9312_v33, %v9311_v32 }
  0xea   : > { %2490 = vmatprep.mubr.bf16.mxu1 %v10328_v18 }
  0xeb   : > { %2580 = vmatmul.mubr.bf16.gmra.mxu0 %v10131_v49  ;;  %v9160_v49 = vld [vmem:[#allocation4 + $0x90] sm:$0xff]  }
  0xec   : > { %2587 = vmatprep.mubr.bf16.mxu0 %v10158_v25  ;;  %7907 = vmatpush3.bf16.msra.mxu0 %v9144_v50  ;;  %v9161_v25 = vld [vmem:[#allocation4 + $0xc8] sm:$0xff]   ;;  %v9183_v50 = vld [vmem:[#allocation4 + $0x150] sm:$0xff]  }
  0xed   : > { %7908 = vmatprep.subr.bf16.mxu0 %v9148_v46  ;;  %v9313_v46 = vld [vmem:[#allocation2 + $0xa8] sm:$0xff] }
  0xf0   : > { %7909 = vmatpush3.bf16.msra.mxu0 %v9150_v51  ;;  %v9314_v51 = vld [vmem:[#allocation2 + $0x98] sm:$0xff] }
  0xf1   : > { %7910 = vmatprep.subr.bf16.mxu0 %v9157_v61  ;;  %2491 = vmatmul.mubr.bf16.gmra.mxu1 %v10336_v23  ;;  %v10401_v61 = vpack.c.bf16 %v9313_v46, %v9314_v51 }
  0xf2   : > { %2498 = vmatprep.mubr.bf16.mxu1 %v9948_v40 }
  0xf3   : > { %2588 = vmatmul.mubr.bf16.gmra.mxu0 %v10163_v35  ;;  %v9167_v35 = vld [vmem:[#allocation4 + $0x378] sm:$0xff]  }
  0xf4   : > { %2595 = vmatprep.mubr.bf16.mxu0 %v10165_v36  ;;  %7911 = vmatpush3.bf16.msra.mxu0 %v9158_v53  ;;  %v1292_v36 = vld [vmem:[#allocation2 + $0x308] sm:$0xff]  ;;  %v9185_v53 = vld [vmem:[#allocation4 + $0x148] sm:$0xff]  }
  0xf5   : > { %7912 = vmatprep.subr.bf16.mxu0 %v9159_v5 }
  0xf8   : > { %7913 = vmatpush3.bf16.msra.mxu0 %v9160_v49  ;;  %v9315_v49 = vld [vmem:[#allocation2 + $0x90] sm:$0xff] }
  0xf9   : > { %7914 = vmatprep.subr.bf16.mxu0 %v9161_v25  ;;  %2499 = vmatmul.mubr.bf16.gmra.mxu1 %v9970_v9  ;;  %v9316_v25 = vld [vmem:[#allocation2 + $0xa0] sm:$0xff] }
  0xfa   : > { %2506 = vmatprep.mubr.bf16.mxu1 %v9983_v34 }
  0xfb   : > { %2596 = vmatmul.mubr.bf16.gmra.mxu0 %v10224_v54  ;;  %v1766_v54 = vrot.slane %v10313_v7, 1  ;;  %v1768_v7 = vrot.slane %v1295_v26, 1 }
  0xfc   : > { %2603 = vmatprep.mubr.bf16.mxu0 %v10230_v39  ;;  %7915 = vmatpush3.bf16.msra.mxu0 %v9162_v58  ;;  %v1765_v39 = vrot.slane %v1292_v36, 1  ;;  %v10407_v58 = vpack.c.bf16 %v9316_v25, %v9315_v49  ;;  %v9327_v49 = vld [vmem:[#allocation2 + $0x120] sm:$0xff]  ;;  %v9328_v25 = vld [vmem:[#allocation2 + $0x130] sm:$0xff] }
  0xfd   : > { %7916 = vmatprep.subr.bf16.mxu0 %v9163_v63 }
 0x100   : > { %7917 = vmatpush3.bf16.msra.mxu0 %v9164_v0  ;;  %v9317_v0 = vld [vmem:[#allocation2 + $0xd8] sm:$0xff] }
 0x101   : > { %8126 = vmatprep.subr.bf16.mxu0 %v9167_v35  ;;  %2507 = vmatmul.mubr.bf16.gmra.mxu1 %v10013_v15 }
 0x102   : > { %2514 = vmatprep.mubr.bf16.mxu1 %v10035_v55 }
 0x103   : > { %2604 = vmatmul.mubr.bf16.gmra.mxu0 %v10247_v14  ;;  %v1767_v14 = vsel %vm1531_vm1, %v1765_v39, %v1766_v54 }
 0x104   : > { %2611 = vmatprep.mubr.bf16.mxu0 %v10252_v62  ;;  %v1771_v62 = vsel %vm1531_vm1, %v1766_v54, %v1770_v3 }
 0x105   : > { %v10369_v12 = vpack.c.bf16 %v1771_v62, %v1767_v14  ;;  %v9319_v62 = vld [vmem:[#allocation2 + $0xc0] sm:$0xff] }
 0x109   : > { %2515 = vmatmul.mubr.bf16.gmra.mxu1 %v10037_v56 }
 0x10a   : > { %2522 = vmatprep.mubr.bf16.mxu1 %v10126_v37 }
 0x10b   : > { %2612 = vmatmul.mubr.bf16.gmra.mxu0 %v10278_v8  ;;  %v1764_v8 = vsel %vm1531_vm1, %v1762_v10, %v1763_v57  ;;  %v9320_v10 = vld [vmem:[#allocation2 + $0xd0] sm:$0xff] }
 0x10c   : > { %2619 = vmatprep.mubr.bf16.mxu0 %v10281_v52  ;;  %v1769_v52 = vsel %vm1531_vm1, %v1763_v57, %v1768_v7  ;;  %v9321_v7 = vld [vmem:[#allocation2 + $0x108] sm:$0xff] }
 0x10d   : > { %v10377_v20 = vpack.c.bf16 %v1769_v52, %v1764_v8  ;;  %v9322_v8 = vld [vmem:[#allocation2 + $0xf8] sm:$0xff] }
 0x10e   : > { %v10423_v52 = vpack.c.bf16 %v9321_v7, %v9322_v8 }
 0x111   : > { %2523 = vmatmul.mubr.bf16.gmra.mxu1 %v10142_v2 }
 0x112   : > { %2530 = vmatprep.mubr.bf16.mxu1 %v10369_v12 }
 0x113   : > { %2620 = vmatmul.mubr.bf16.gmra.mxu0 %v10296_v38  ;;  %v9166_v38 = vld [vmem:[#allocation4 + $0x138] sm:$0xff]  }
 0x114   : > { %2627 = vmatprep.mubr.bf16.mxu0 %v10298_v42  ;;  %v9304_v42 = vld [vmem:[#allocation2] sm:$0xff] }
 0x115   : > { %v1303_v31 = vpack.c.bf16 %v10379_v24, %v9304_v42 }
 0x119   : > { %2531 = vmatmul.mubr.bf16.gmra.mxu1 %v10377_v20 }
 0x11a   : > { %3020 = vmatprep.mubr.bf16.mxu1 %v1304_v30 }
 0x11b   : > { %2628 = vmatmul.mubr.bf16.gmra.mxu0 %v10309_v11  ;;  %v9170_v11 = vld [vmem:[#allocation4 + $0x130] sm:$0xff]  }
 0x11c   : > { %2635 = vmatprep.mubr.bf16.mxu0 %v10315_v6  ;;  %v9173_v6 = vld [vmem:[#allocation4 + $0x168] sm:$0xff]  }
 0x121   : > { %3021 = vmatmul.mubr.bf16.vlgmr.msra.gmra.mxu1 %v1303_v31 }
 0x122   : > { %3028 = vmatprep.mubr.bf16.mxu1 %v10386_v21  ;;  %8015 = vmatpush3.bf16.msra.mxu1 %v9166_v38 }
 0x123   : > { %2636 = vmatmul.mubr.bf16.gmra.mxu0 %v10326_v44  ;;  %8016 = vmatprep.subr.bf16.mxu1 %v9169_v17  ;;  %v9178_v44 = vld [vmem:[#allocation4 + $0x120] sm:$0xff]   ;;  %v1298_v17 = vld [vmem:[#allocation2 + $0x338] sm:$0xff] }
 0x124   : > { %2643 = vmatprep.mubr.bf16.mxu0 %v10328_v18  ;;  %v9179_v18 = vld [vmem:[#allocation4 + $0x158] sm:$0xff]  }
 0x126   : > { %8017 = vmatpush3.bf16.msra.mxu1 %v9170_v11  ;;  %v9323_v11 = vld [vmem:[#allocation2 + $0xf0] sm:$0xff] }
 0x127   : > { %8018 = vmatprep.subr.bf16.mxu1 %v9173_v6  ;;  %v7542_v54 = vpop.f32.mrf.mxu1  ;;  %v9324_v6 = vld [vmem:[#allocation2 + $0x100] sm:$0xff] }
 0x129   : > { %3029 = vmatmul.mubr.bf16.gmra.mxu1 %v10391_v47  ;;  %v7543_v60 = vpop.f32.mrf.mxu1 }
 0x12a   : > { %3036 = vmatprep.mubr.bf16.mxu1 %v10393_v43  ;;  %8019 = vmatpush3.bf16.msra.mxu1 %v9174_v27  ;;  %v10419_v26 = vadd.f32 %v7543_v60, %v7542_v54  ;;  %v10433_v27 = vpack.c.bf16 %v9324_v6, %v9323_v11 }
 0x12b   : > { %2644 = vmatmul.mubr.bf16.gmra.mxu0 %v10336_v23  ;;  %8020 = vmatprep.subr.bf16.mxu1 %v9177_v45  ;;  %v9184_v23 = vld [vmem:[#allocation4 + $0x110] sm:$0xff]   ;;  %v7545_v14 = vpop.f32.mrf.mxu1  ;;  %v9326_v45 = vld [vmem:[#allocation2 + $0x128] sm:$0xff] }
 0x12c   : > { %2651 = vmatprep.mubr.bf16.mxu0 %v9948_v40  ;;  %v7470_v40 = vpop.f32.mrf.mxu0 }
 0x12d   : > { %v7546_v57 = vpop.f32.mrf.mxu1 }
 0x12e   : > { %8021 = vmatpush3.bf16.msra.mxu1 %v9178_v44  ;;  %v7471_v5 = vpop.f32.mrf.mxu0  ;;  %v1785_v44 = vrot.slane %v1298_v17, 1  ;;  %v9333_v17 = vld [vmem:[#allocation2 + $0x198] sm:$0xff] }
 0x12f   : > { %8022 = vmatprep.subr.bf16.mxu1 %v9179_v18  ;;  %v10409_v63 = vadd.f32 %v7471_v5, %v7470_v40  ;;  %v1786_v18 = vrot.slane %v10379_v24, 1  ;;  %v1301_v5 = vld [vmem:[#allocation2 + $0x350] sm:$0x3] }
 0x130   : > { %v7473_v36 = vpop.f32.mrf.mxu0  ;;  %v1788_v54 = vrot.slane %v1301_v5, 1 }
 0x131   : > { %3037 = vmatmul.mubr.bf16.gmra.mxu1 %v10399_v13 }
 0x132   : > { %3044 = vmatprep.mubr.bf16.mxu1 %v10401_v61  ;;  %8023 = vmatpush3.bf16.msra.mxu1 %v9181_v28  ;;  %v7474_v39 = vpop.f32.mrf.mxu0  ;;  %v1790_v28 = vrot.slane %v1302_v59, 1  ;;  %v1789_v8 = vsel %vm1531_vm1, %v1786_v18, %v1788_v54  ;;  %v9334_v59 = vld [vmem:[#allocation2 + $0x188] sm:$0xff] }
 0x133   : > { %2652 = vmatmul.mubr.bf16.gmra.mxu0 %v9970_v9  ;;  %8024 = vmatprep.subr.bf16.mxu1 %v9183_v50  ;;  %v9318_v9 = vld [vmem:[#allocation2 + $0xc8] sm:$0xff]  ;;  %v10416_v3 = vadd.f32 %v7474_v39, %v7473_v36 }
 0x134   : > { %2659 = vmatprep.mubr.bf16.mxu0 %v9983_v34  ;;  %v10411_v35 = vpack.c.bf16 %v9317_v0, %v9318_v9  ;;  %v9186_v34 = vld [vmem:[#allocation4 + $0x108] sm:$0xff]   ;;  %v7476_v29 = vpop.f32.mrf.mxu0  ;;  %v1791_v24 = vsel %vm1531_vm1, %v1786_v18, %v1790_v28  ;;  %v10452_v0 = vpack.c.bf16 %v9328_v25, %v9327_v49  ;;  %v9335_v28 = vld [vmem:[#allocation2 + $0x180] sm:$0xff]  ;;  %v9197_v54 = vld [vmem:[#allocation4 + $0x3f8] sm:$0xff]  }
 0x136   : > { %8025 = vmatpush3.bf16.msra.mxu1 %v9184_v23  ;;  %v7477_v30 = vpop.f32.mrf.mxu0  ;;  %v1787_v23 = vsel %vm1531_vm1, %v1785_v44, %v1786_v18 }
 0x137   : > { %8026 = vmatprep.subr.bf16.mxu1 %v9185_v53  ;;  %v10431_v42 = vadd.f32 %v7477_v30, %v7476_v29  ;;  %v1297_v53 = vld [vmem:[#allocation2 + $0x330] sm:$0xff] }
 0x138   : > { %v7479_v31 = vpop.f32.mrf.mxu0  ;;  %v9331_v30 = vld [vmem:[#allocation2 + $0x150] sm:$0xff] }
 0x139   : > { %3045 = vmatmul.mubr.bf16.gmra.mxu1 %v10407_v58  ;;  %v7548_v38 = vpop.f32.mrf.mxu1 }
 0x13a   : > { %3052 = vmatprep.mubr.bf16.mxu1 %v10411_v35  ;;  %8027 = vmatpush3.bf16.msra.mxu1 %v9186_v34  ;;  %v1831_v34 = vpack.c.bf16 %v1791_v24, %v1787_v23  ;;  %v9337_v23 = vld [vmem:[#allocation2 + $0x1c8] sm:$0xff]  ;;  %v9338_v24 = vld [vmem:[#allocation2 + $0x1b8] sm:$0xff] }
 0x13b   : > { %2660 = vmatmul.mubr.bf16.gmra.mxu0 %v10013_v15  ;;  %8028 = vmatprep.subr.bf16.mxu1 %v9187_v1  ;;  %v10421_v15 = vpack.c.bf16 %v9320_v10, %v9319_v62  ;;  %v7549_v19 = vpop.f32.mrf.mxu1  ;;  %v1782_v1 = vrot.slane %v1297_v53, 1 }
 0x13c   : > { %2667 = vmatprep.mubr.bf16.mxu0 %v10035_v55  ;;  %v10425_v55 = vadd.f32 %v7546_v57, %v7545_v14  ;;  %v10435_v16 = vadd.f32 %v7549_v19, %v7548_v38  ;;  %v9330_v14 = vld [vmem:[#allocation2 + $0x158] sm:$0xff]  ;;  %v9332_v38 = vld [vmem:[#allocation2 + $0x160] sm:$0xff] }
 0x13d   : > { %v7551_v48 = vpop.f32.mrf.mxu1  ;;  %v1784_v7 = vsel %vm1531_vm1, %v1782_v1, %v1786_v18  ;;  %v9175_v1 = vld [vmem:[#allocation4 + $0x368] sm:$0xff]  }
 0x13e   : > { %8029 = vmatpush3.bf16.msra.mxu1 %v9188_v4  ;;  %12865 = vst [vmem:[#allocation10_spill] sm:$0xff] %v10435_v16  ;;  %v9329_v4 = vld [vmem:[#allocation2 + $0x168] sm:$0xff]  ;;  %v1830_v29 = vpack.c.bf16 %v1789_v8, %v1784_v7  ;;  %v9339_v7 = vld [vmem:[#allocation2 + $0x1b0] sm:$0xff]  ;;  %v9340_v8 = vld [vmem:[#allocation2 + $0x1c0] sm:$0xff] }
 0x13f   : > { %v7552_v33 = vpop.f32.mrf.mxu1  ;;  %v10458_v62 = vpack.c.bf16 %v9329_v4, %v9330_v14  ;;  %8238 = vmatprep.subr.bf16.mxu1 %v9197_v54  ;;  %v9345_v54 = vld [vmem:[#allocation2 + $0x228] sm:$0xff] }
 0x140   : > { %v10444_v50 = vadd.f32 %v7552_v33, %v7551_v48 }
 0x141   : > { %3053 = vmatmul.mubr.bf16.gmra.mxu1 %v10421_v15  ;;  %v7554_v51 = vpop.f32.mrf.mxu1 }
 0x142   : > { %3060 = vmatprep.mubr.bf16.mxu1 %v10423_v52  ;;  %12866 = vst [vmem:[#allocation11_spill] sm:$0xff] %v10444_v50 }
 0x143   : > { %2668 = vmatmul.mubr.bf16.gmra.mxu0 %v10037_v56  ;;  %v7480_v56 = vpop.f32.mrf.mxu0  ;;  %v7555_v9 = vpop.f32.mrf.mxu1 }
 0x144   : > { %2675 = vmatprep.mubr.bf16.mxu0 %v10126_v37  ;;  %v10437_v37 = vpack.c.bf16 %v9325_v41, %v9326_v45  ;;  %v10439_v22 = vadd.f32 %v7480_v56, %v7479_v31  ;;  %v10454_v36 = vadd.f32 %v7555_v9, %v7554_v51  ;;  %v10467_v31 = vpack.c.bf16 %v9332_v38, %v9331_v30 }
 0x145   : > { %v7482_v32 = vpop.f32.mrf.mxu0  ;;  %v7557_v39 = vpop.f32.mrf.mxu1 }
 0x146   : > { %12867 = vst [vmem:[#allocation12_spill] sm:$0xff] %v10454_v36 }
 0x147   : > { %v7483_v46 = vpop.f32.mrf.mxu0  ;;  %v7558_v10 = vpop.f32.mrf.mxu1 }
 0x148   : > { %v10448_v40 = vadd.f32 %v7483_v46, %v7482_v32  ;;  %v10462_v57 = vadd.f32 %v7558_v10, %v7557_v39  ;;  %v9336_v32 = vld [vmem:[#allocation2 + $0x190] sm:$0xff]  ;;  %v9168_v46 = vld [vmem:[#allocation4 + $0x338] sm:$0xff]  }
 0x149   : > { %3061 = vmatmul.mubr.bf16.gmra.mxu1 %v10433_v27  ;;  %v10478_v33 = vpack.c.bf16 %v9336_v32, %v9335_v28  ;;  %v9182_v32 = vld [vmem:[#allocation4 + $0x320] sm:$0xff]  }
 0x14a   : > { %3068 = vmatprep.mubr.bf16.mxu1 %v10437_v37  ;;  %12868 = vst [vmem:[#allocation13_spill] sm:$0xff] %v10462_v57  ;;  %v9361_v57 = vld [vmem:[#allocation2 + $0x2e8] sm:$0xff] }
 0x14b   : > { %2676 = vmatmul.mubr.bf16.gmra.mxu0 %v10142_v2  ;;  %v7485_v2 = vpop.f32.mrf.mxu0 }
 0x14c   : > { %2683 = vmatprep.mubr.bf16.mxu0 %v10369_v12 }
 0x14d   : > { %v7486_v12 = vpop.f32.mrf.mxu0 }
 0x14e   : > { %v10456_v60 = vadd.f32 %v7486_v12, %v7485_v2  ;;  %v9171_v2 = vld [vmem:[#allocation4 + $0x370] sm:$0xff]  }
 0x14f   : > { %v9172_v12 = vld [vmem:[#allocation4 + $0x330] sm:$0xff]  }
 0x151   : > { %3069 = vmatmul.mubr.bf16.gmra.mxu1 %v10452_v0 }
 0x152   : > { %3076 = vmatprep.mubr.bf16.mxu1 %v10458_v62 }
 0x153   : > { %2684 = vmatmul.mubr.bf16.gmra.mxu0 %v10377_v20  ;;  %v10469_v20 = vpack.c.bf16 %v9333_v17, %v9334_v59  ;;  %v9341_v17 = vld [vmem:[#allocation2 + $0x1f8] sm:$0xff]  ;;  %v9342_v59 = vld [vmem:[#allocation2 + $0x1e8] sm:$0xff] }
 0x154   : > { %2691 = vmatprep.mubr.bf16.mxu0 %v1831_v34 }
 0x156   : > { %v7488_v19 = vpop.f32.mrf.mxu0 }
 0x158   : > { %v7489_v6 = vpop.f32.mrf.mxu0 }
 0x159   : > { %v7560_v11 = vpop.f32.mrf.mxu1  ;;  %3077 = vmatmul.mubr.bf16.gmra.mxu1 %v10467_v31  ;;  %v10473_v56 = vadd.f32 %v7489_v6, %v7488_v19  ;;  %v10499_v19 = vpack.c.bf16 %v9341_v17, %v9342_v59 }
 0x15a   : > { %3084 = vmatprep.mubr.bf16.mxu1 %v10469_v20  ;;  %v7491_v45 = vpop.f32.mrf.mxu0 }
 0x15b   : > { %2692 = vmatmul.mubr.bf16.gmra.mxu0 %v1830_v29  ;;  %v7561_v41 = vpop.f32.mrf.mxu1  ;;  %v10492_v29 = vpack.c.bf16 %v9340_v8, %v9339_v7  ;;  %v9191_v7 = vld [vmem:[#allocation4 + $0x350] sm:$0xff]  }
 0x15c   : > { %3181 = vmatprep.mubr.bf16.mxu0 %v10386_v21  ;;  %v10476_v48 = vadd.f32 %v7561_v41, %v7560_v11  ;;  %v7492_v18 = vpop.f32.mrf.mxu0  ;;  %v10482_v21 = vpack.c.bf16 %v9337_v23, %v9338_v24  ;;  %v9176_v11 = vld [vmem:[#allocation4 + $0x328] sm:$0xff]   ;;  %v9180_v41 = vld [vmem:[#allocation4 + $0x360] sm:$0xff]   ;;  %v9189_v24 = vld [vmem:[#allocation4 + $0x358] sm:$0xff]  }
 0x15d   : > { %v7563_v44 = vpop.f32.mrf.mxu1  ;;  %v10480_v51 = vadd.f32 %v7492_v18, %v7491_v45 }
 0x15e   : > { %12869 = vst [vmem:[#allocation14_spill] sm:$0xff] %v10476_v48  ;;  %12870 = vst [vmem:[#allocation15_spill] sm:$0xff] %v10482_v21  ;;  %v7494_v5 = vpop.f32.mrf.mxu0 }
 0x15f   : > { %v7564_v53 = vpop.f32.mrf.mxu1 }
 0x160   : > { %v10484_v49 = vadd.f32 %v7564_v53, %v7563_v44  ;;  %v7495_v9 = vpop.f32.mrf.mxu0 }
 0x161   : > { %v7582_v25 = vpop.f32.mrf.mxu1  ;;  %3085 = vmatmul.mubr.bf16.gmra.mxu1 %v10478_v33  ;;  %v10488_v34 = vadd.f32 %v7495_v9, %v7494_v5  ;;  %v9344_v9 = vld [vmem:[#allocation2 + $0x1f0] sm:$0xff] }
 0x162   : > { %12871 = vst [vmem:[#allocation16_spill] sm:$0xff] %v10484_v49  ;;  %3092 = vmatprep.mubr.bf16.mxu1 %v10482_v21  ;;  %v7497_v4 = vpop.f32.mrf.mxu0 }
 0x163   : > { %3182 = vmatmul.mubr.bf16.vlgmr.msra.gmra.mxu0 %v10391_v47  ;;  %v7583_v39 = vpop.f32.mrf.mxu1 }
 0x164   : > { %8127 = vmatpush3.bf16.msra.mxu0 %v9168_v46  ;;  %3189 = vmatprep.mubr.bf16.mxu0 %v10393_v43  ;;  %v7584_v14 = vadd.f32 %v7583_v39, %v7582_v25  ;;  %v7498_v10 = vpop.f32.mrf.mxu0  ;;  %v9343_v25 = vld [vmem:[#allocation2 + $0x1e0] sm:$0xff]  ;;  %v9346_v39 = vld [vmem:[#allocation2 + $0x218] sm:$0xff] }
 0x165   : > { %8128 = vmatprep.subr.bf16.mxu0 %v9171_v2  ;;  %v7585_v47 = vpop.f32.mrf.mxu1  ;;  %v10497_v38 = vadd.f32 %v7498_v10, %v7497_v4  ;;  %v10515_v4 = vpack.c.bf16 %v9345_v54, %v9346_v39 }
 0x166   : > { %v10495_v30 = vadd.f32 %v7584_v14, %v10409_v63  ;;  %v9190_v14 = vld [vmem:[#allocation4 + $0x318] sm:$0xff]  }
 0x167   : > { %v7586_v6 = vpop.f32.mrf.mxu1 }
 0x168   : > { %8129 = vmatpush3.bf16.msra.mxu0 %v9172_v12  ;;  %v7587_v45 = vadd.f32 %v7586_v6, %v7585_v47  ;;  %v10510_v12 = vpack.c.bf16 %v9344_v9, %v9343_v25  ;;  %v9192_v6 = vld [vmem:[#allocation4 + $0x310] sm:$0xff]   ;;  %v9350_v25 = vld [vmem:[#allocation2 + $0x248] sm:$0xff] }
 0x169   : > { %8130 = vmatprep.subr.bf16.mxu0 %v9175_v1  ;;  %v7588_v18 = vpop.f32.mrf.mxu1  ;;  %3093 = vmatmul.mubr.bf16.gmra.mxu1 %v10492_v29 }
 0x16a   : > { %v10505_v63 = vadd.f32 %v7587_v45, %v10416_v3  ;;  %3100 = vmatprep.mubr.bf16.mxu1 %v10499_v19 }
 0x16b   : > { %v7500_v44 = vpop.f32.mrf.mxu0  ;;  %3190 = vmatmul.mubr.bf16.gmra.mxu0 %v10399_v13  ;;  %v7589_v23 = vpop.f32.mrf.mxu1 }
 0x16c   : > { %3197 = vmatprep.mubr.bf16.mxu0 %v10401_v61  ;;  %8131 = vmatpush3.bf16.msra.mxu0 %v9176_v11  ;;  %v7590_v53 = vadd.f32 %v7589_v23, %v7588_v18  ;;  %v9347_v23 = vld [vmem:[#allocation2 + $0x210] sm:$0xff] }
 0x16d   : > { %v7501_v28 = vpop.f32.mrf.mxu0  ;;  %8132 = vmatprep.subr.bf16.mxu0 %v9180_v41  ;;  %v7591_v2 = vpop.f32.mrf.mxu1 }
 0x16e   : > { %v10508_v46 = vadd.f32 %v7501_v28, %v7500_v44  ;;  %v10513_v3 = vadd.f32 %v7590_v53, %v10431_v42  ;;  %v9193_v44 = vld [vmem:[#allocation4 + $0x348] sm:$0xff]  }
 0x16f   : > { %v7503_v5 = vpop.f32.mrf.mxu0  ;;  %v7592_v10 = vpop.f32.mrf.mxu1 }
 0x170   : > { %8133 = vmatpush3.bf16.msra.mxu0 %v9182_v32  ;;  %v7593_v8 = vadd.f32 %v7592_v10, %v7591_v2  ;;  %v9349_v2 = vld [vmem:[#allocation2 + $0x258] sm:$0xff] }
 0x171   : > { %v7504_v1 = vpop.f32.mrf.mxu0  ;;  %8134 = vmatprep.subr.bf16.mxu0 %v9189_v24  ;;  %v7594_v59 = vpop.f32.mrf.mxu1  ;;  %3101 = vmatmul.mubr.bf16.gmra.mxu1 %v10510_v12  ;;  %v9348_v24 = vld [vmem:[#allocation2 + $0x220] sm:$0xff]  ;;  %v10533_v9 = vpack.c.bf16 %v9349_v2, %v9350_v25  ;;  %v9353_v2 = vld [vmem:[#allocation2 + $0x288] sm:$0xff]  ;;  %v9354_v25 = vld [vmem:[#allocation2 + $0x278] sm:$0xff] }
 0x172   : > { %v10517_v47 = vadd.f32 %v7504_v1, %v7503_v5  ;;  %v10523_v42 = vadd.f32 %v7593_v8, %v10439_v22  ;;  %3108 = vmatprep.mubr.bf16.mxu1 %v10515_v4  ;;  %v10528_v53 = vpack.c.bf16 %v9348_v24, %v9347_v23  ;;  %v9194_v1 = vld [vmem:[#allocation4 + $0x308] sm:$0xff]   ;;  %v9352_v23 = vld [vmem:[#allocation2 + $0x250] sm:$0xff] }
 0x173   : > { %v7506_v17 = vpop.f32.mrf.mxu0  ;;  %3198 = vmatmul.mubr.bf16.gmra.mxu0 %v10407_v58  ;;  %v7595_v45 = vpop.f32.mrf.mxu1 }
 0x174   : > { %3205 = vmatprep.mubr.bf16.mxu0 %v10411_v35  ;;  %8135 = vmatpush3.bf16.msra.mxu0 %v9190_v14  ;;  %v7596_v18 = vadd.f32 %v7595_v45, %v7594_v59  ;;  %v9195_v14 = vld [vmem:[#allocation4 + $0x340] sm:$0xff]   ;;  %v9199_v45 = vld [vmem:[#allocation4 + $0x478] sm:$0xff]  }
 0x175   : > { %v7507_v11 = vpop.f32.mrf.mxu0  ;;  %8136 = vmatprep.subr.bf16.mxu0 %v9191_v7  ;;  %v7597_v32 = vpop.f32.mrf.mxu1  ;;  %v9196_v59 = vld [vmem:[#allocation4 + $0x300] sm:$0xff]  }
 0x176   : > { %v10526_v41 = vadd.f32 %v7507_v11, %v7506_v17  ;;  %v10531_v22 = vadd.f32 %v7596_v18, %v10448_v40 }
 0x177   : > { %v7509_v28 = vpop.f32.mrf.mxu0  ;;  %v7598_v39 = vpop.f32.mrf.mxu1 }
 0x178   : > { %8137 = vmatpush3.bf16.msra.mxu0 %v9192_v6  ;;  %v7599_v10 = vadd.f32 %v7598_v39, %v7597_v32  ;;  %v9351_v32 = vld [vmem:[#allocation2 + $0x240] sm:$0xff] }
 0x179   : > { %v7510_v5 = vpop.f32.mrf.mxu0  ;;  %8138 = vmatprep.subr.bf16.mxu0 %v9193_v44  ;;  %v7600_v8 = vpop.f32.mrf.mxu1  ;;  %3109 = vmatmul.mubr.bf16.gmra.mxu1 %v10528_v53  ;;  %v10546_v24 = vpack.c.bf16 %v9352_v23, %v9351_v32  ;;  %v9356_v32 = vld [vmem:[#allocation2 + $0x280] sm:$0xff] }
 0x17a   : > { %v10535_v54 = vadd.f32 %v7510_v5, %v7509_v28  ;;  %v10541_v40 = vadd.f32 %v7599_v10, %v10456_v60  ;;  %3116 = vmatprep.mubr.bf16.mxu1 %v10533_v9 }
 0x17b   : > { %v7512_v7 = vpop.f32.mrf.mxu0  ;;  %3206 = vmatmul.mubr.bf16.gmra.mxu0 %v10421_v15  ;;  %v7601_v6 = vpop.f32.mrf.mxu1 }
 0x17c   : > { %3213 = vmatprep.mubr.bf16.mxu0 %v10423_v52  ;;  %8139 = vmatpush3.bf16.msra.mxu0 %v9194_v1  ;;  %v7602_v44 = vadd.f32 %v7601_v6, %v7600_v8  ;;  %v10551_v1 = vpack.c.bf16 %v9353_v2, %v9354_v25  ;;  %v9357_v25 = vld [vmem:[#allocation2 + $0x2b8] sm:$0xff] }
 0x17d   : > { %v7513_v17 = vpop.f32.mrf.mxu0  ;;  %8140 = vmatprep.subr.bf16.mxu0 %v9195_v14  ;;  %v7603_v28 = vpop.f32.mrf.mxu1 }
 0x17e   : > { %v10544_v11 = vadd.f32 %v7513_v17, %v7512_v7  ;;  %v10549_v60 = vadd.f32 %v7602_v44, %v10473_v56 }
 0x17f   : > { %v7515_v18 = vpop.f32.mrf.mxu0  ;;  %v7604_v14 = vpop.f32.mrf.mxu1 }
 0x180   : > { %8141 = vmatpush3.bf16.msra.mxu0 %v9196_v59  ;;  %v7605_v10 = vadd.f32 %v7604_v14, %v7603_v28  ;;  %v9355_v28 = vld [vmem:[#allocation2 + $0x270] sm:$0xff] }
 0x181   : > { %v7516_v5 = vpop.f32.mrf.mxu0  ;;  %8350 = vmatprep.subr.bf16.mxu0 %v9199_v45  ;;  %v7606_v8 = vpop.f32.mrf.mxu1  ;;  %3117 = vmatmul.mubr.bf16.gmra.mxu1 %v10546_v24  ;;  %v10564_v23 = vpack.c.bf16 %v9356_v32, %v9355_v28 }
 0x182   : > { %v10553_v39 = vadd.f32 %v7516_v5, %v7515_v18  ;;  %v10559_v56 = vadd.f32 %v7605_v10, %v10480_v51  ;;  %3124 = vmatprep.mubr.bf16.mxu1 %v10551_v1  ;;  %v9358_v51 = vld [vmem:[#allocation2 + $0x2a8] sm:$0xff] }
 0x183   : > { %v7518_v7 = vpop.f32.mrf.mxu0  ;;  %3214 = vmatmul.mubr.bf16.gmra.mxu0 %v10433_v27  ;;  %v7607_v6 = vpop.f32.mrf.mxu1  ;;  %v10569_v14 = vpack.c.bf16 %v9357_v25, %v9358_v51  ;;  %v9360_v25 = vld [vmem:[#allocation2 + $0x2b0] sm:$0xff] }
 0x184   : > { %3221 = vmatprep.mubr.bf16.mxu0 %v10437_v37  ;;  %v7608_v44 = vadd.f32 %v7607_v6, %v7606_v8 }
 0x185   : > { %v7519_v17 = vpop.f32.mrf.mxu0  ;;  %v7609_v18 = vpop.f32.mrf.mxu1 }
 0x186   : > { %v10562_v59 = vadd.f32 %v7519_v17, %v7518_v7  ;;  %v10567_v5 = vadd.f32 %v7608_v44, %v10488_v34 }
 0x187   : > { %v7521_v45 = vpop.f32.mrf.mxu0  ;;  %v7610_v7 = vpop.f32.mrf.mxu1 }
 0x188   : > { %v7611_v17 = vadd.f32 %v7610_v7, %v7609_v18 }
 0x189   : > { %v7522_v2 = vpop.f32.mrf.mxu0  ;;  %v7612_v8 = vpop.f32.mrf.mxu1  ;;  %3125 = vmatmul.mubr.bf16.gmra.mxu1 %v10564_v23 }
 0x18a   : > { %v10571_v10 = vadd.f32 %v7522_v2, %v7521_v45  ;;  %v10577_v34 = vadd.f32 %v7611_v17, %v10497_v38  ;;  %3132 = vmatprep.mubr.bf16.mxu1 %v10569_v14  ;;  %v9359_v2 = vld [vmem:[#allocation2 + $0x2a0] sm:$0xff]  ;;  %v9362_v38 = vld [vmem:[#allocation2 + $0x2d8] sm:$0xff] }
 0x18b   : > { %v7524_v49 = vpop.f32.mrf.mxu0  ;;  %3222 = vmatmul.mubr.bf16.gmra.mxu0 %v10452_v0  ;;  %v7613_v45 = vpop.f32.mrf.mxu1  ;;  %v10582_v51 = vpack.c.bf16 %v9360_v25, %v9359_v2  ;;  %v10587_v17 = vpack.c.bf16 %v9361_v57, %v9362_v38  ;;  %v9363_v2 = vld [vmem:[#allocation2 + $0x2d0] sm:$0xff]  ;;  %v9364_v25 = vld [vmem:[#allocation2 + $0x2e0] sm:$0xff] }
 0x18c   : > { %3229 = vmatprep.mubr.bf16.mxu0 %v10458_v62  ;;  %v7614_v28 = vadd.f32 %v7613_v45, %v7612_v8  ;;  %v10600_v38 = vpack.c.bf16 %v9364_v25, %v9363_v2  ;;  %v9198_v25 = vld [vmem:[#allocation4 + $0x3b8] sm:$0xff]  }
 0x18d   : > { %v7525_v6 = vpop.f32.mrf.mxu0  ;;  %v7615_v18 = vpop.f32.mrf.mxu1 }
 0x18e   : > { %v10580_v44 = vadd.f32 %v7525_v6, %v7524_v49  ;;  %v10585_v7 = vadd.f32 %v7614_v28, %v10508_v46 }
 0x18f   : > { %v7527_v32 = vpop.f32.mrf.mxu0  ;;  %v7616_v49 = vpop.f32.mrf.mxu1 }
 0x190   : > { %12872 = vst [vmem:[#allocation17_spill] sm:$0xff] %v10585_v7  ;;  %v7617_v6 = vadd.f32 %v7616_v49, %v7615_v18 }
 0x191   : > { %v7528_v48 = vpop.f32.mrf.mxu0  ;;  %v7618_v8 = vpop.f32.mrf.mxu1  ;;  %3133 = vmatmul.mubr.bf16.gmra.mxu1 %v10582_v51 }
 0x192   : > { %v10589_v36 = vadd.f32 %v7528_v48, %v7527_v32  ;;  %v10595_v46 = vadd.f32 %v7617_v6, %v10517_v47  ;;  %3140 = vmatprep.mubr.bf16.mxu1 %v10587_v17 }
 0x193   : > { %v7530_v50 = vpop.f32.mrf.mxu0  ;;  %3230 = vmatmul.mubr.bf16.gmra.mxu0 %v10467_v31  ;;  %v7619_v48 = vpop.f32.mrf.mxu1 }
 0x194   : > { %3237 = vmatprep.mubr.bf16.mxu0 %v10469_v20  ;;  %12873 = vst [vmem:[#allocation18_spill] sm:$0xff] %v10595_v46  ;;  %v7620_v28 = vadd.f32 %v7619_v48, %v7618_v8 }
 0x195   : > { %v7531_v45 = vpop.f32.mrf.mxu0  ;;  %v7621_v18 = vpop.f32.mrf.mxu1 }
 0x196   : > { %v10598_v57 = vadd.f32 %v7531_v45, %v7530_v50  ;;  %v10603_v49 = vadd.f32 %v7620_v28, %v10526_v41 }
 0x197   : > { %v7533_v32 = vpop.f32.mrf.mxu0  ;;  %v7622_v47 = vpop.f32.mrf.mxu1 }
 0x198   : > { %12874 = vst [vmem:[#allocation19_spill] sm:$0xff] %v10603_v49  ;;  %v7623_v6 = vadd.f32 %v7622_v47, %v7621_v18 }
 0x199   : > { %v7534_v16 = vpop.f32.mrf.mxu0  ;;  %v7624_v50 = vpop.f32.mrf.mxu1  ;;  %3141 = vmatmul.mubr.bf16.gmra.mxu1 %v10600_v38 }
 0x19a   : > { %v10605_v7 = vadd.f32 %v7534_v16, %v7533_v32  ;;  %v10611_v8 = vadd.f32 %v7623_v6, %v10535_v54  ;;  %3342 = vmatprep.mubr.bf16.mxu1 %v10393_v43 }
 0x19b   : > { %v7536_v46 = vpop.f32.mrf.mxu0  ;;  %3238 = vmatmul.mubr.bf16.gmra.mxu0 %v10478_v33  ;;  %v7625_v16 = vpop.f32.mrf.mxu1 }
 0x19c   : > { %3245 = vmatprep.mubr.bf16.mxu0 %v10482_v21  ;;  %v7626_v48 = vadd.f32 %v7625_v16, %v7624_v50  ;;  %v9201_v21 = vld [vmem:[#allocation4 + $0x3f0] sm:$0xff]  }
 0x19d   : > { %v7537_v45 = vpop.f32.mrf.mxu0  ;;  %v7627_v32 = vpop.f32.mrf.mxu1  ;;  %v9202_v50 = vld [vmem:[#allocation4 + $0x3b0] sm:$0xff]  }
 0x19e   : > { %v10614_v41 = vadd.f32 %v7537_v45, %v7536_v46  ;;  %v10617_v18 = vadd.f32 %v7626_v48, %v10544_v11 }
 0x19f   : > { %v7539_v28 = vpop.f32.mrf.mxu0  ;;  %v7628_v49 = vpop.f32.mrf.mxu1 }
 0x1a0   : > { %12875 = vst [vmem:[#allocation20_spill] sm:$0xff] %v10617_v18  ;;  %v7629_v54 = vadd.f32 %v7628_v49, %v7627_v32  ;;  %v9205_v49 = vld [vmem:[#allocation4 + $0x3e8] sm:$0xff]  }
 0x1a1   : > { %v7540_v2 = vpop.f32.mrf.mxu0  ;;  %v7630_v43 = vpop.f32.mrf.mxu1  ;;  %3343 = vmatmul.mubr.bf16.vlgmr.msra.gmra.mxu1 %v10399_v13 }
 0x1a2   : > { %v10619_v47 = vadd.f32 %v7540_v2, %v7539_v28  ;;  %v10625_v46 = vadd.f32 %v7629_v54, %v10553_v39  ;;  %3350 = vmatprep.mubr.bf16.mxu1 %v10401_v61  ;;  %8239 = vmatpush3.bf16.msra.mxu1 %v9198_v25  ;;  %v9206_v54 = vld [vmem:[#allocation4 + $0x3a8] sm:$0xff]   ;;  %v9209_v25 = vld [vmem:[#allocation4 + $0x3e0] sm:$0xff]  }
 0x1a3   : > { %v7694_v6 = vpop.f32.mrf.mxu0  ;;  %3246 = vmatmul.mubr.bf16.gmra.mxu0 %v10492_v29  ;;  %v7631_v45 = vpop.f32.mrf.mxu1  ;;  %8240 = vmatprep.subr.bf16.mxu1 %v9201_v21 }
 0x1a4   : > { %3253 = vmatprep.mubr.bf16.mxu0 %v10499_v19  ;;  %12876 = vst [vmem:[#allocation21_spill] sm:$0xff] %v10625_v46  ;;  %v7632_v48 = vadd.f32 %v7631_v45, %v7630_v43  ;;  %v9211_v45 = vld [vmem:[#allocation4 + $0x3d8] sm:$0xff]  }
 0x1a5   : > { %v7695_v11 = vpop.f32.mrf.mxu0  ;;  %v7633_v13 = vpop.f32.mrf.mxu1 }
 0x1a6   : > { %v7696_v16 = vadd.f32 %v7695_v11, %v7694_v6  ;;  %v10632_v2 = vadd.f32 %v7632_v48, %v10562_v59  ;;  %8241 = vmatpush3.bf16.msra.mxu1 %v9202_v50  ;;  %v9210_v11 = vld [vmem:[#allocation4 + $0x3a0] sm:$0xff]  }
 0x1a7   : > { %v7697_v28 = vpop.f32.mrf.mxu0  ;;  %v7634_v46 = vpop.f32.mrf.mxu1  ;;  %8242 = vmatprep.subr.bf16.mxu1 %v9205_v49 }
 0x1a8   : > { %v10629_v32 = vadd.f32 %v7696_v16, %v10495_v30  ;;  %v7635_v18 = vadd.f32 %v7634_v46, %v7633_v13  ;;  %v9215_v13 = vld [vmem:[#allocation4 + $0x3d0] sm:$0xff]  }
 0x1a9   : > { %v7698_v39 = vpop.f32.mrf.mxu0  ;;  %v7636_v30 = vpop.f32.mrf.mxu1  ;;  %3351 = vmatmul.mubr.bf16.gmra.mxu1 %v10407_v58 }
 0x1aa   : > { %v7699_v61 = vadd.f32 %v7698_v39, %v7697_v28  ;;  %v10641_v59 = vadd.f32 %v7635_v18, %v10571_v10  ;;  %3358 = vmatprep.mubr.bf16.mxu1 %v10411_v35  ;;  %8243 = vmatpush3.bf16.msra.mxu1 %v9206_v54  ;;  %v9213_v18 = vld [vmem:[#allocation4 + $0x398] sm:$0xff]  }
 0x1ab   : > { %v7700_v6 = vpop.f32.mrf.mxu0  ;;  %3254 = vmatmul.mubr.bf16.gmra.mxu0 %v10510_v12  ;;  %v7637_v46 = vpop.f32.mrf.mxu1  ;;  %8244 = vmatprep.subr.bf16.mxu1 %v9209_v25 }
 0x1ac   : > { %v10636_v21 = vadd.f32 %v7699_v61, %v10505_v63  ;;  %3261 = vmatprep.mubr.bf16.mxu0 %v10515_v4  ;;  %v7638_v16 = vadd.f32 %v7637_v46, %v7636_v30 }
 0x1ad   : > { %v7701_v43 = vpop.f32.mrf.mxu0  ;;  %v7639_v58 = vpop.f32.mrf.mxu1 }
 0x1ae   : > { %v7702_v50 = vadd.f32 %v7701_v43, %v7700_v6  ;;  %v10648_v48 = vadd.f32 %v7638_v16, %v10580_v44  ;;  %8245 = vmatpush3.bf16.msra.mxu1 %v9210_v11  ;;  %v9216_v6 = vld [vmem:[#allocation4 + $0x390] sm:$0xff]   ;;  %v9217_v11 = vld [vmem:[#allocation4 + $0x3c8] sm:$0xff]  }
 0x1af   : > { %v7703_v63 = vpop.f32.mrf.mxu0  ;;  %v7640_v28 = vpop.f32.mrf.mxu1  ;;  %8246 = vmatprep.subr.bf16.mxu1 %v9211_v45  ;;  %v9218_v16 = vld [vmem:[#allocation4 + $0x388] sm:$0xff]  }
 0x1b0   : > { %v10645_v49 = vadd.f32 %v7702_v50, %v10513_v3  ;;  %v7641_v39 = vadd.f32 %v7640_v28, %v7639_v58  ;;  %v9219_v58 = vld [vmem:[#allocation4 + $0x3c0] sm:$0xff]  }
 0x1b1   : > { %v7704_v10 = vpop.f32.mrf.mxu0  ;;  %v7642_v3 = vpop.f32.mrf.mxu1  ;;  %3359 = vmatmul.mubr.bf16.gmra.mxu1 %v10421_v15 }
 0x1b2   : > { %v7705_v35 = vadd.f32 %v7704_v10, %v7703_v63  ;;  %v10657_v44 = vadd.f32 %v7641_v39, %v10589_v36  ;;  %3366 = vmatprep.mubr.bf16.mxu1 %v10423_v52  ;;  %8247 = vmatpush3.bf16.msra.mxu1 %v9213_v18 }
 0x1b3   : > { %v7706_v54 = vpop.f32.mrf.mxu0  ;;  %3262 = vmatmul.mubr.bf16.gmra.mxu0 %v10528_v53  ;;  %v7643_v30 = vpop.f32.mrf.mxu1  ;;  %8248 = vmatprep.subr.bf16.mxu1 %v9215_v13  ;;  %v9220_v13 = vld [vmem:[#allocation4 + $0x380] sm:$0xff]  }
 0x1b4   : > { %v10652_v61 = vadd.f32 %v7705_v35, %v10523_v42  ;;  %3269 = vmatprep.mubr.bf16.mxu0 %v10533_v9  ;;  %v7644_v46 = vadd.f32 %v7643_v30, %v7642_v3 }
 0x1b5   : > { %v7707_v25 = vpop.f32.mrf.mxu0  ;;  %v7645_v15 = vpop.f32.mrf.mxu1 }
 0x1b6   : > { %v7708_v43 = vadd.f32 %v7707_v25, %v7706_v54  ;;  %v10664_v45 = vadd.f32 %v7644_v46, %v10598_v57  ;;  %8249 = vmatpush3.bf16.msra.mxu1 %v9216_v6 }
 0x1b7   : > { %v7709_v42 = vpop.f32.mrf.mxu0  ;;  %v7646_v63 = vpop.f32.mrf.mxu1  ;;  %8250 = vmatprep.subr.bf16.mxu1 %v9217_v11 }
 0x1b8   : > { %v10661_v50 = vadd.f32 %v7708_v43, %v10531_v22  ;;  %v7647_v10 = vadd.f32 %v7646_v63, %v7645_v15 }
 0x1b9   : > { %v7710_v36 = vpop.f32.mrf.mxu0  ;;  %v7648_v22 = vpop.f32.mrf.mxu1  ;;  %3367 = vmatmul.mubr.bf16.gmra.mxu1 %v10433_v27 }
 0x1ba   : > { %v7711_v52 = vadd.f32 %v7710_v36, %v7709_v42  ;;  %v10673_v57 = vadd.f32 %v7647_v10, %v10605_v7  ;;  %3374 = vmatprep.mubr.bf16.mxu1 %v10437_v37  ;;  %8251 = vmatpush3.bf16.msra.mxu1 %v9218_v16 }
 0x1bb   : > { %v7712_v18 = vpop.f32.mrf.mxu0  ;;  %3270 = vmatmul.mubr.bf16.gmra.mxu0 %v10546_v24  ;;  %v7649_v39 = vpop.f32.mrf.mxu1  ;;  %8252 = vmatprep.subr.bf16.mxu1 %v9219_v58 }
 0x1bc   : > { %v10668_v28 = vadd.f32 %v7711_v52, %v10541_v40  ;;  %3277 = vmatprep.mubr.bf16.mxu0 %v10551_v1  ;;  %v7650_v3 = vadd.f32 %v7649_v39, %v7648_v22 }
 0x1bd   : > { %v7713_v35 = vpop.f32.mrf.mxu0  ;;  %v7651_v6 = vpop.f32.mrf.mxu1 }
 0x1be   : > { %v7714_v54 = vadd.f32 %v7713_v35, %v7712_v18  ;;  %v10680_v27 = vadd.f32 %v7650_v3, %v10614_v41  ;;  %8253 = vmatpush3.bf16.msra.mxu1 %v9220_v13 }
 0x1bf   : > { %v7715_v25 = vpop.f32.mrf.mxu0  ;;  %v7652_v7 = vpop.f32.mrf.mxu1 }
 0x1c0   : > { %v10677_v40 = vadd.f32 %v7714_v54, %v10549_v60  ;;  %v7653_v11 = vadd.f32 %v7652_v7, %v7651_v6  ;;  %v9366_v7 = vld [vmem:[#allocation2 + $0x308] sm:$0xff] }
 0x1c1   : > { %v7716_v30 = vpop.f32.mrf.mxu0  ;;  %v7654_v42 = vpop.f32.mrf.mxu1  ;;  %3375 = vmatmul.mubr.bf16.gmra.mxu1 %v10452_v0 }
 0x1c2   : > { %v7717_v43 = vadd.f32 %v7716_v30, %v7715_v25  ;;  %v10689_v60 = vadd.f32 %v7653_v11, %v10619_v47  ;;  %3382 = vmatprep.mubr.bf16.mxu1 %v10458_v62  ;;  %v12877_v25 = vld [vmem:[#allocation17_spill] sm:$0xff]  ;;  %v9365_v30 = vld [vmem:[#allocation2 + $0x318] sm:$0xff] }
 0x1c3   : > { %v7718_v37 = vpop.f32.mrf.mxu0  ;;  %3278 = vmatmul.mubr.bf16.gmra.mxu0 %v10564_v23  ;;  %v7655_v15 = vpop.f32.mrf.mxu1 }
 0x1c4   : > { %v10684_v46 = vadd.f32 %v7717_v43, %v10559_v56  ;;  %3285 = vmatprep.mubr.bf16.mxu0 %v10569_v14  ;;  %v7656_v16 = vadd.f32 %v7655_v15, %v7654_v42  ;;  %v10711_v43 = vpack.c.bf16 %v9365_v30, %v9366_v7  ;;  %v10716_v15 = vld [vmem:[#allocation2 + $0x18] sm:$0xff]  ;;  %v9370_v7 = vld [vmem:[#allocation2 + $0x300] sm:$0xff] }
 0x1c5   : > { %v7719_v41 = vpop.f32.mrf.mxu0  ;;  %v7657_v56 = vpop.f32.mrf.mxu1 }
 0x1c6   : > { %v7720_v36 = vadd.f32 %v7719_v41, %v7718_v37  ;;  %v10696_v58 = vadd.f32 %v7656_v16, %v10419_v26  ;;  %v12879_v37 = vld [vmem:[#allocation10_spill] sm:$0xff]  ;;  %v9368_v41 = vld [vmem:[#allocation2 + $0x8] sm:$0xff] }
 0x1c7   : > { %v7721_v63 = vpop.f32.mrf.mxu0  ;;  %v7658_v10 = vpop.f32.mrf.mxu1 }
 0x1c8   : > { %v10693_v52 = vadd.f32 %v7720_v36, %v10567_v5  ;;  %v7659_v22 = vadd.f32 %v7658_v10, %v7657_v56  ;;  %v3476_v36 = vrot.slane %v10716_v15, 2  ;;  %v12880_v10 = vld [vmem:[#allocation18_spill] sm:$0xff] }
 0x1c9   : > { %v7722_v0 = vpop.f32.mrf.mxu0  ;;  %v7660_v35 = vpop.f32.mrf.mxu1  ;;  %3383 = vmatmul.mubr.bf16.gmra.mxu1 %v10467_v31  ;;  %v9367_v31 = vld [vmem:[#allocation2 + $0x28] sm:$0x3] }
 0x1ca   : > { %v7723_v18 = vadd.f32 %v7722_v0, %v7721_v63  ;;  %v10705_v5 = vadd.f32 %v7659_v22, %v10425_v55  ;;  %3390 = vmatprep.mubr.bf16.mxu1 %v10469_v20  ;;  %v3480_v11 = vrot.slane %v9367_v31, 2  ;;  %v3475_v20 = vrot.slane %v9368_v41, 2  ;;  %v9371_v31 = vld [vmem:[#allocation2 + $0x310] sm:$0xff]  ;;  %v9373_v41 = vld [vmem:[#allocation2 + $0x20] sm:$0x3] }
 0x1cb   : > { %v7724_v47 = vpop.f32.mrf.mxu0  ;;  %3286 = vmatmul.mubr.bf16.gmra.mxu0 %v10582_v51  ;;  %v7661_v13 = vpop.f32.mrf.mxu1 }
 0x1cc   : > { %v10700_v62 = vadd.f32 %v7723_v18, %v10577_v34  ;;  %3293 = vmatprep.mubr.bf16.mxu0 %v10587_v17  ;;  %v7662_v54 = vadd.f32 %v7661_v13, %v7660_v35  ;;  %v12884_v13 = vld [vmem:[#allocation15_spill] sm:$0xff] }
 0x1cd   : > { %v7725_v26 = vpop.f32.mrf.mxu0  ;;  %v7663_v34 = vpop.f32.mrf.mxu1 }
 0x1ce   : > { %v7726_v39 = vadd.f32 %v7725_v26, %v7724_v47  ;;  %v10714_v55 = vadd.f32 %v7662_v54, %v12879_v37  ;;  %v12882_v47 = vld [vmem:[#allocation11_spill] sm:$0xff]  ;;  %v3481_v54 = vsel %vm3471_vm3, %v3476_v36, %v3480_v11  ;;  %v10731_v37 = vpack.c.bf16 %v9371_v31, %v9370_v7 }
 0x1cf   : > { %v7727_v3 = vpop.f32.mrf.mxu0  ;;  %v7664_v16 = vpop.f32.mrf.mxu1 }
 0x1d0   : > { %v10709_v6 = vadd.f32 %v7726_v39, %v12877_v25  ;;  %v7665_v56 = vadd.f32 %v7664_v16, %v7663_v34  ;;  %v3477_v39 = vsel %vm3471_vm3, %v3475_v20, %v3476_v36  ;;  %v3478_v16 = vrot.slane %v9373_v41, 2  ;;  %v12886_v20 = vld [vmem:[#allocation12_spill] sm:$0xff]  ;;  %v12888_v41 = vld [vmem:[#allocation13_spill] sm:$0xff] }
 0x1d1   : > { %v7728_v42 = vpop.f32.mrf.mxu0  ;;  %v7666_v22 = vpop.f32.mrf.mxu1  ;;  %3391 = vmatmul.mubr.bf16.gmra.mxu1 %v10478_v33  ;;  %v9372_v33 = vld [vmem:[#allocation2] sm:$0xff] }
 0x1d2   : > { %12878 = vst [vmem:[#allocation17_spill] sm:$0xff] %v10709_v6  ;;  %v7729_v63 = vadd.f32 %v7728_v42, %v7727_v3  ;;  %v10726_v35 = vadd.f32 %v7665_v56, %v12882_v47  ;;  %3398 = vmatprep.mubr.bf16.mxu1 %v12884_v13  ;;  %v3472_v42 = vrot.slane %v9372_v33, 2  ;;  %v3725_v47 = vpack.c.bf16 %v3481_v54, %v3477_v39 }
 0x1d3   : > { %v7730_v0 = vpop.f32.mrf.mxu0  ;;  %3294 = vmatmul.mubr.bf16.gmra.mxu0 %v10600_v38  ;;  %v7667_v3 = vpop.f32.mrf.mxu1  ;;  %v3479_v39 = vsel %vm3471_vm3, %v3476_v36, %v3478_v16  ;;  %v9377_v16 = vld [vmem:[#allocation2 + $0x50] sm:$0x3] }
 0x1d4   : > { %v10721_v18 = vadd.f32 %v7729_v63, %v12880_v10  ;;  %3301 = vmatprep.mubr.bf16.mxu0 %v10711_v43  ;;  %12883 = vst [vmem:[#allocation18_spill] sm:$0xff] %v10726_v35  ;;  %v7668_v34 = vadd.f32 %v7667_v3, %v7666_v22  ;;  %v12885_v63 = vld [vmem:[#allocation19_spill] sm:$0xff] }
 0x1d5   : > { %v7731_v26 = vpop.f32.mrf.mxu0  ;;  %v7669_v10 = vpop.f32.mrf.mxu1 }
 0x1d6   : > { %12881 = vst [vmem:[#allocation10_spill] sm:$0xff] %v10721_v18  ;;  %v7732_v25 = vadd.f32 %v7731_v26, %v7730_v0  ;;  %v10737_v13 = vadd.f32 %v7668_v34, %v12886_v20  ;;  %v9374_v0 = vld [vmem:[#allocation2 + $0x38] sm:$0xff]  ;;  %v9375_v26 = vld [vmem:[#allocation2 + $0x48] sm:$0xff] }
 0x1d7   : > { %v7733_v30 = vpop.f32.mrf.mxu0  ;;  %v3485_v22 = vrot.slane %v9374_v0, 2  ;;  %v3486_v3 = vrot.slane %v9375_v26, 2  ;;  %v9376_v18 = vld [vmem:[#allocation2 + $0x58] sm:$0x3]  ;;  %v7670_v31 = vpop.f32.mrf.mxu1  ;;  %v12889_v0 = vld [vmem:[#allocation20_spill] sm:$0xff]  ;;  %v9200_v26 = vld [vmem:[#allocation4 + $0x438] sm:$0xff]  }
 0x1d8   : > { %v10734_v56 = vadd.f32 %v7732_v25, %v12885_v63  ;;  %v3490_v7 = vrot.slane %v9376_v18, 2  ;;  %v7671_v33 = vadd.f32 %v7670_v31, %v7669_v10  ;;  %v3474_v25 = vsel %vm3471_vm3, %v3472_v42, %v3476_v36 }
 0x1d9   : > { %v7734_v11 = vpop.f32.mrf.mxu0  ;;  %v7672_v34 = vpop.f32.mrf.mxu1  ;;  %3399 = vmatmul.mubr.bf16.gmra.mxu1 %v10492_v29  ;;  %v3724_v36 = vpack.c.bf16 %v3479_v39, %v3474_v25  ;;  %v9381_v39 = vld [vmem:[#allocation2 + $0x78] sm:$0xff] }
 0x1da   : > { %v7735_v35 = vadd.f32 %v7734_v11, %v7733_v30  ;;  %v10747_v63 = vadd.f32 %v7671_v33, %v12888_v41  ;;  %3406 = vmatprep.mubr.bf16.mxu1 %v10499_v19  ;;  %v3487_v30 = vsel %vm3471_vm3, %v3485_v22, %v3486_v3  ;;  %v3491_v10 = vsel %vm3471_vm3, %v3486_v3, %v3490_v7  ;;  %v9378_v33 = vld [vmem:[#allocation2 + $0x30] sm:$0xff]  ;;  %v9379_v41 = vld [vmem:[#allocation2 + $0x40] sm:$0xff]  ;;  %v9380_v7 = vld [vmem:[#allocation2 + $0x68] sm:$0xff] }
 0x1db   : > { %v7736_v6 = vpop.f32.mrf.mxu0  ;;  %3302 = vmatmul.mubr.bf16.gmra.mxu0 %v10731_v37  ;;  %v7673_v42 = vpop.f32.mrf.mxu1  ;;  %v10755_v31 = vpack.c.bf16 %v3491_v10, %v3487_v30  ;;  %v3482_v19 = vrot.slane %v9378_v33, 2  ;;  %v3483_v22 = vrot.slane %v9379_v41, 2  ;;  %v3495_v25 = vrot.slane %v9380_v7, 2  ;;  %v12892_v10 = vld [vmem:[#allocation21_spill] sm:$0xff]  ;;  %v9204_v7 = vld [vmem:[#allocation4 + $0x430] sm:$0xff]  }
 0x1dc   : > { %v10743_v54 = vadd.f32 %v7735_v35, %v10611_v8  ;;  %4177 = vmatprep.mubr.bf16.mxu0 %v3725_v47  ;;  %v3488_v8 = vrot.slane %v9377_v16, 2  ;;  %v7674_v35 = vadd.f32 %v7673_v42, %v7672_v34  ;;  %v3496_v34 = vrot.slane %v9381_v39, 2  ;;  %v12894_v39 = vld [vmem:[#allocation16_spill] sm:$0xff] }
 0x1dd   : > { %v7737_v18 = vpop.f32.mrf.mxu0  ;;  %v7675_v47 = vpop.f32.mrf.mxu1 }
 0x1de   : > { %12887 = vst [vmem:[#allocation11_spill] sm:$0xff] %v10743_v54  ;;  %v7738_v20 = vadd.f32 %v7737_v18, %v7736_v6  ;;  %v12891_v54 = vld [vmem:[#allocation14_spill] sm:$0xff]  ;;  %v9382_v18 = vld [vmem:[#allocation2 + $0x88] sm:$0x3] }
 0x1df   : > { %v7739_v11 = vpop.f32.mrf.mxu0  ;;  %v10758_v3 = vadd.f32 %v7674_v35, %v12891_v54  ;;  %v3500_v42 = vrot.slane %v9382_v18, 2  ;;  %v3484_v54 = vsel %vm3471_vm3, %v3482_v19, %v3483_v22  ;;  %v3489_v35 = vsel %vm3471_vm3, %v3483_v22, %v3488_v8  ;;  %v9383_v19 = vld [vmem:[#allocation2 + $0x80] sm:$0x3] }
 0x1e0   : > { %v10753_v29 = vadd.f32 %v7738_v20, %v12889_v0  ;;  %v7676_v20 = vpop.f32.mrf.mxu1  ;;  %v9203_v0 = vld [vmem:[#allocation4 + $0x470] sm:$0xff]  }
 0x1e1   : > { %v7740_v6 = vpop.f32.mrf.mxu0  ;;  %3407 = vmatmul.mubr.bf16.gmra.mxu1 %v10510_v12 }
 0x1e2   : > { %12890 = vst [vmem:[#allocation15_spill] sm:$0xff] %v10753_v29  ;;  %v7741_v16 = vadd.f32 %v7740_v6, %v7739_v11  ;;  %v7677_v29 = vadd.f32 %v7676_v20, %v7675_v47  ;;  %v7806_v41 = vpop.f32.mrf.mxu1  ;;  %3414 = vmatprep.mubr.bf16.mxu1 %v10515_v4  ;;  %v3501_v47 = vsel %vm3471_vm3, %v3496_v34, %v3500_v42  ;;  %v9207_v6 = vld [vmem:[#allocation4 + $0x468] sm:$0xff]   ;;  %v3498_v20 = vrot.slane %v9383_v19, 2 }
 0x1e3   : > { %v7742_v30 = vpop.f32.mrf.mxu0  ;;  %4178 = vmatmul.mubr.bf16.vlgmr.msra.gmra.mxu0 %v3724_v36  ;;  %v3497_v36 = vsel %vm3471_vm3, %v3495_v25, %v3496_v34 }
 0x1e4   : > { %v10761_v33 = vadd.f32 %v7741_v16, %v12892_v10  ;;  %8351 = vmatpush3.bf16.msra.mxu0 %v9200_v26  ;;  %v10767_v18 = vadd.f32 %v7677_v29, %v12894_v39  ;;  %4185 = vmatprep.mubr.bf16.mxu0 %v10755_v31  ;;  %v7807_v26 = vpop.f32.mrf.mxu1  ;;  %v10773_v16 = vpack.c.bf16 %v3489_v35, %v3484_v54  ;;  %v9384_v39 = vld [vmem:[#allocation2 + $0x60] sm:$0xff]  ;;  %v9388_v35 = vld [vmem:[#allocation2 + $0xb8] sm:$0x3] }
 0x1e5   : > { %v7743_v11 = vpop.f32.mrf.mxu0  ;;  %8352 = vmatprep.subr.bf16.mxu0 %v9203_v0  ;;  %v7808_v8 = vadd.f32 %v7807_v26, %v7806_v41  ;;  %v10778_v10 = vpack.c.bf16 %v3501_v47, %v3497_v36  ;;  %v3492_v25 = vrot.slane %v9384_v39, 2  ;;  %v3510_v26 = vrot.slane %v9388_v35, 2  ;;  %v9212_v47 = vld [vmem:[#allocation4 + $0x460] sm:$0xff]  }
 0x1e6   : > { %12893 = vst [vmem:[#allocation19_spill] sm:$0xff] %v10761_v33  ;;  %v7744_v12 = vadd.f32 %v7743_v11, %v7742_v30  ;;  %v7809_v4 = vpop.f32.mrf.mxu1  ;;  %v9385_v33 = vld [vmem:[#allocation2 + $0x70] sm:$0xff]  ;;  %v9386_v30 = vld [vmem:[#allocation2 + $0x98] sm:$0xff]  ;;  %v9387_v11 = vld [vmem:[#allocation2 + $0xa8] sm:$0xff] }
 0x1e7   : > { %v7745_v22 = vpop.f32.mrf.mxu0  ;;  %v3493_v34 = vrot.slane %v9385_v33, 2  ;;  %v10781_v42 = vadd.f32 %v7808_v8, %v10629_v32  ;;  %v3505_v41 = vrot.slane %v9386_v30, 2  ;;  %v3506_v54 = vrot.slane %v9387_v11, 2  ;;  %v9221_v11 = vld [vmem:[#allocation4 + $0x458] sm:$0xff]   ;;  %v9389_v35 = vld [vmem:[#allocation2 + $0xb0] sm:$0x3] }
 0x1e8   : > { %v10776_v29 = vadd.f32 %v7744_v12, %v10632_v2  ;;  %8353 = vmatpush3.bf16.msra.mxu0 %v9204_v7  ;;  %v9208_v2 = vld [vmem:[#allocation4 + $0x428] sm:$0xff]   ;;  %v7810_v36 = vpop.f32.mrf.mxu1 }
 0x1e9   : > { %v7746_v0 = vpop.f32.mrf.mxu0  ;;  %8354 = vmatprep.subr.bf16.mxu0 %v9207_v6  ;;  %v7811_v19 = vadd.f32 %v7810_v36, %v7809_v4  ;;  %3415 = vmatmul.mubr.bf16.gmra.mxu1 %v10528_v53  ;;  %v3494_v7 = vsel %vm3471_vm3, %v3492_v25, %v3493_v34  ;;  %v3499_v6 = vsel %vm3471_vm3, %v3493_v34, %v3498_v20  ;;  %v3508_v25 = vrot.slane %v9389_v35, 2 }
 0x1ea   : > { %v7747_v12 = vadd.f32 %v7746_v0, %v7745_v22  ;;  %v7812_v32 = vpop.f32.mrf.mxu1  ;;  %3422 = vmatprep.mubr.bf16.mxu1 %v10533_v9  ;;  %v3507_v4 = vsel %vm3471_vm3, %v3505_v41, %v3506_v54  ;;  %v9214_v0 = vld [vmem:[#allocation4 + $0x420] sm:$0xff]   ;;  %v10797_v34 = vpack.c.bf16 %v3499_v6, %v3494_v7  ;;  %v9394_v7 = vld [vmem:[#allocation2 + $0xe8] sm:$0x3] }
 0x1eb   : > { %v7748_v39 = vpop.f32.mrf.mxu0  ;;  %4186 = vmatmul.mubr.bf16.gmra.mxu0 %v10773_v16  ;;  %v10792_v8 = vadd.f32 %v7811_v19, %v10636_v21  ;;  %v9390_v41 = vld [vmem:[#allocation2 + $0x90] sm:$0xff]  ;;  %v3520_v6 = vrot.slane %v9394_v7, 2  ;;  %v9395_v7 = vld [vmem:[#allocation2 + $0xe0] sm:$0x3] }
 0x1ec   : > { %v10785_v33 = vadd.f32 %v7747_v12, %v10641_v59  ;;  %4193 = vmatprep.mubr.bf16.mxu0 %v10778_v10  ;;  %v3511_v59 = vsel %vm3471_vm3, %v3506_v54, %v3510_v26  ;;  %8355 = vmatpush3.bf16.msra.mxu0 %v9208_v2  ;;  %v7813_v53 = vpop.f32.mrf.mxu1  ;;  %v3502_v54 = vrot.slane %v9390_v41, 2  ;;  %v9391_v26 = vld [vmem:[#allocation2 + $0xa0] sm:$0xff] }
 0x1ed   : > { %v7749_v22 = vpop.f32.mrf.mxu0  ;;  %8356 = vmatprep.subr.bf16.mxu0 %v9212_v47  ;;  %v7814_v12 = vadd.f32 %v7813_v53, %v7812_v32  ;;  %v10802_v36 = vpack.c.bf16 %v3511_v59, %v3507_v4  ;;  %v3503_v2 = vrot.slane %v9391_v26, 2  ;;  %v9393_v32 = vld [vmem:[#allocation2 + $0xd8] sm:$0xff]  ;;  %v9223_v4 = vld [vmem:[#allocation4 + $0x450] sm:$0xff]  }
 0x1ee   : > { %v7750_v30 = vadd.f32 %v7749_v22, %v7748_v39  ;;  %v7815_v9 = vpop.f32.mrf.mxu1  ;;  %v9392_v39 = vld [vmem:[#allocation2 + $0xc8] sm:$0xff]  ;;  %v3516_v53 = vrot.slane %v9393_v32, 2  ;;  %v9225_v32 = vld [vmem:[#allocation4 + $0x448] sm:$0xff]  }
 0x1ef   : > { %v7751_v20 = vpop.f32.mrf.mxu0  ;;  %v10805_v19 = vadd.f32 %v7814_v12, %v10645_v49  ;;  %v3515_v22 = vrot.slane %v9392_v39, 2  ;;  %v3504_v26 = vsel %vm3471_vm3, %v3502_v54, %v3503_v2  ;;  %v3518_v54 = vrot.slane %v9395_v7, 2 }
 0x1f0   : > { %v10800_v21 = vadd.f32 %v7750_v30, %v10648_v48  ;;  %8357 = vmatpush3.bf16.msra.mxu0 %v9214_v0  ;;  %v9222_v48 = vld [vmem:[#allocation4 + $0x418] sm:$0xff]   ;;  %v7816_v35 = vpop.f32.mrf.mxu1  ;;  %v3509_v0 = vsel %vm3471_vm3, %v3503_v2, %v3508_v25 }
 0x1f1   : > { %v7752_v47 = vpop.f32.mrf.mxu0  ;;  %8358 = vmatprep.subr.bf16.mxu0 %v9221_v11  ;;  %v7817_v59 = vadd.f32 %v7816_v35, %v7815_v9  ;;  %3423 = vmatmul.mubr.bf16.gmra.mxu1 %v10546_v24  ;;  %v3517_v9 = vsel %vm3471_vm3, %v3515_v22, %v3516_v53  ;;  %v10821_v2 = vpack.c.bf16 %v3509_v0, %v3504_v26  ;;  %v9396_v22 = vld [vmem:[#allocation2 + $0xc0] sm:$0xff]  ;;  %v9400_v26 = vld [vmem:[#allocation2 + $0x118] sm:$0x3] }
 0x1f2   : > { %v7753_v30 = vadd.f32 %v7752_v47, %v7751_v20  ;;  %v7818_v12 = vpop.f32.mrf.mxu1  ;;  %3430 = vmatprep.mubr.bf16.mxu1 %v10551_v1  ;;  %v9224_v47 = vld [vmem:[#allocation4 + $0x410] sm:$0xff]   ;;  %v3530_v0 = vrot.slane %v9400_v26, 2 }
 0x1f3   : > { %v7754_v41 = vpop.f32.mrf.mxu0  ;;  %4194 = vmatmul.mubr.bf16.gmra.mxu0 %v10797_v34  ;;  %v10816_v20 = vadd.f32 %v7817_v59, %v10652_v61 }
 0x1f4   : > { %v10809_v49 = vadd.f32 %v7753_v30, %v10657_v44  ;;  %4201 = vmatprep.mubr.bf16.mxu0 %v10802_v36  ;;  %v3521_v44 = vsel %vm3471_vm3, %v3516_v53, %v3520_v6  ;;  %8359 = vmatpush3.bf16.msra.mxu0 %v9222_v48  ;;  %v7819_v24 = vpop.f32.mrf.mxu1  ;;  %v3512_v53 = vrot.slane %v9396_v22, 2  ;;  %v9397_v6 = vld [vmem:[#allocation2 + $0xd0] sm:$0xff] }
 0x1f5   : > { %v7755_v11 = vpop.f32.mrf.mxu0  ;;  %8360 = vmatprep.subr.bf16.mxu0 %v9223_v4  ;;  %v7820_v30 = vadd.f32 %v7819_v24, %v7818_v12  ;;  %v10826_v35 = vpack.c.bf16 %v3521_v44, %v3517_v9  ;;  %v3513_v48 = vrot.slane %v9397_v6, 2  ;;  %v9399_v12 = vld [vmem:[#allocation2 + $0x108] sm:$0xff]  ;;  %v9227_v9 = vld [vmem:[#allocation4 + $0x440] sm:$0xff]  }
 0x1f6   : > { %v7756_v39 = vadd.f32 %v7755_v11, %v7754_v41  ;;  %v7821_v1 = vpop.f32.mrf.mxu1  ;;  %v9398_v41 = vld [vmem:[#allocation2 + $0xf8] sm:$0xff]  ;;  %v3526_v24 = vrot.slane %v9399_v12, 2  ;;  %v9401_v12 = vld [vmem:[#allocation2 + $0x110] sm:$0x3] }
 0x1f7   : > { %v7757_v25 = vpop.f32.mrf.mxu0  ;;  %v10829_v59 = vadd.f32 %v7820_v30, %v10661_v50  ;;  %v3525_v11 = vrot.slane %v9398_v41, 2  ;;  %v3514_v6 = vsel %vm3471_vm3, %v3512_v53, %v3513_v48  ;;  %v3528_v26 = vrot.slane %v9401_v12, 2 }
 0x1f8   : > { %v10824_v61 = vadd.f32 %v7756_v39, %v10664_v45  ;;  %8361 = vmatpush3.bf16.msra.mxu0 %v9224_v47  ;;  %v9226_v45 = vld [vmem:[#allocation4 + $0x408] sm:$0xff]   ;;  %v7822_v7 = vpop.f32.mrf.mxu1  ;;  %v3519_v47 = vsel %vm3471_vm3, %v3513_v48, %v3518_v54 }
 0x1f9   : > { %v7758_v4 = vpop.f32.mrf.mxu0  ;;  %8362 = vmatprep.subr.bf16.mxu0 %v9225_v32  ;;  %v7823_v44 = vadd.f32 %v7822_v7, %v7821_v1  ;;  %3431 = vmatmul.mubr.bf16.gmra.mxu1 %v10564_v23  ;;  %v3527_v1 = vsel %vm3471_vm3, %v3525_v11, %v3526_v24  ;;  %v10845_v54 = vpack.c.bf16 %v3519_v47, %v3514_v6  ;;  %v9402_v11 = vld [vmem:[#allocation2 + $0xf0] sm:$0xff]  ;;  %v9406_v6 = vld [vmem:[#allocation2 + $0x148] sm:$0x3] }
 0x1fa   : > { %v7759_v39 = vadd.f32 %v7758_v4, %v7757_v25  ;;  %v7824_v30 = vpop.f32.mrf.mxu1  ;;  %3438 = vmatprep.mubr.bf16.mxu1 %v10569_v14  ;;  %v9228_v4 = vld [vmem:[#allocation4 + $0x400] sm:$0xff]   ;;  %v3522_v7 = vrot.slane %v9402_v11, 2  ;;  %v3540_v47 = vrot.slane %v9406_v6, 2 }
 0x1fb   : > { %v7760_v22 = vpop.f32.mrf.mxu0  ;;  %4202 = vmatmul.mubr.bf16.gmra.mxu0 %v10821_v2  ;;  %v10840_v25 = vadd.f32 %v7823_v44, %v10668_v28  ;;  %v9404_v44 = vld [vmem:[#allocation2 + $0x128] sm:$0xff] }
 0x1fc   : > { %v10833_v50 = vadd.f32 %v7759_v39, %v10673_v57  ;;  %4209 = vmatprep.mubr.bf16.mxu0 %v10826_v35  ;;  %v3531_v57 = vsel %vm3471_vm3, %v3526_v24, %v3530_v0  ;;  %8363 = vmatpush3.bf16.msra.mxu0 %v9226_v45  ;;  %v7825_v23 = vpop.f32.mrf.mxu1  ;;  %v9403_v24 = vld [vmem:[#allocation2 + $0x100] sm:$0xff] }
 0x1fd   : > { %v7761_v32 = vpop.f32.mrf.mxu0  ;;  %8364 = vmatprep.subr.bf16.mxu0 %v9227_v9  ;;  %v7826_v53 = vadd.f32 %v7825_v23, %v7824_v30  ;;  %v10850_v14 = vpack.c.bf16 %v3531_v57, %v3527_v1  ;;  %v3523_v0 = vrot.slane %v9403_v24, 2  ;;  %v9405_v30 = vld [vmem:[#allocation2 + $0x138] sm:$0xff] }
 0x1fe   : > { %v7762_v41 = vadd.f32 %v7761_v32, %v7760_v22  ;;  %v7827_v48 = vpop.f32.mrf.mxu1  ;;  %v3535_v22 = vrot.slane %v9404_v44, 2  ;;  %v3536_v32 = vrot.slane %v9405_v30, 2 }
 0x1ff   : > { %v7763_v39 = vpop.f32.mrf.mxu0  ;;  %v10853_v45 = vadd.f32 %v7826_v53, %v10677_v40  ;;  %v3524_v40 = vsel %vm3471_vm3, %v3522_v7, %v3523_v0  ;;  %v3529_v53 = vsel %vm3471_vm3, %v3523_v0, %v3528_v26  ;;  %v9408_v0 = vld [vmem:[#allocation2 + $0x120] sm:$0xff] }
 0x200   : > { %v10848_v28 = vadd.f32 %v7762_v41, %v10680_v27  ;;  %8365 = vmatpush3.bf16.msra.mxu0 %v9228_v4  ;;  %v7828_v41 = vpop.f32.mrf.mxu1  ;;  %v10869_v6 = vpack.c.bf16 %v3529_v53, %v3524_v40  ;;  %v9412_v40 = vld [vmem:[#allocation2 + $0x178] sm:$0x3] }
 0x201   : > { %v7764_v9 = vpop.f32.mrf.mxu0  ;;  %v7829_v23 = vadd.f32 %v7828_v41, %v7827_v48  ;;  %3439 = vmatmul.mubr.bf16.gmra.mxu1 %v10582_v51  ;;  %v3537_v48 = vsel %vm3471_vm3, %v3535_v22, %v3536_v32  ;;  %v9410_v41 = vld [vmem:[#allocation2 + $0x158] sm:$0xff]  ;;  %v3550_v53 = vrot.slane %v9412_v40, 2 }
 0x202   : > { %v7765_v27 = vadd.f32 %v7764_v9, %v7763_v39  ;;  %v7830_v12 = vpop.f32.mrf.mxu1  ;;  %3446 = vmatprep.mubr.bf16.mxu1 %v10587_v17  ;;  %v9407_v9 = vld [vmem:[#allocation2 + $0x140] sm:$0x3]  ;;  %v3532_v17 = vrot.slane %v9408_v0, 2 }
 0x203   : > { %v7766_v1 = vpop.f32.mrf.mxu0  ;;  %4210 = vmatmul.mubr.bf16.gmra.mxu0 %v10845_v54  ;;  %v10864_v4 = vadd.f32 %v7829_v23, %v10684_v46  ;;  %v3538_v51 = vrot.slane %v9407_v9, 2  ;;  %v3545_v23 = vrot.slane %v9410_v41, 2 }
 0x204   : > { %v10857_v57 = vadd.f32 %v7765_v27, %v10689_v60  ;;  %4217 = vmatprep.mubr.bf16.mxu0 %v10850_v14  ;;  %v3541_v60 = vsel %vm3471_vm3, %v3536_v32, %v3540_v47  ;;  %v7831_v24 = vpop.f32.mrf.mxu1  ;;  %v9409_v27 = vld [vmem:[#allocation2 + $0x130] sm:$0xff] }
 0x205   : > { %v7767_v39 = vpop.f32.mrf.mxu0  ;;  %v7832_v44 = vadd.f32 %v7831_v24, %v7830_v12  ;;  %v10874_v7 = vpack.c.bf16 %v3541_v60, %v3537_v48  ;;  %v3533_v22 = vrot.slane %v9409_v27, 2 }
 0x206   : > { %v7768_v11 = vadd.f32 %v7767_v39, %v7766_v1  ;;  %v7833_v46 = vpop.f32.mrf.mxu1  ;;  %v9411_v1 = vld [vmem:[#allocation2 + $0x168] sm:$0xff] }
 0x207   : > { %v7769_v30 = vpop.f32.mrf.mxu0  ;;  %v10877_v32 = vadd.f32 %v7832_v44, %v10693_v52  ;;  %v3546_v12 = vrot.slane %v9411_v1, 2  ;;  %v3534_v52 = vsel %vm3471_vm3, %v3532_v17, %v3533_v22  ;;  %v3539_v9 = vsel %vm3471_vm3, %v3533_v22, %v3538_v51  ;;  %v9414_v17 = vld [vmem:[#allocation2 + $0x150] sm:$0xff] }
 0x208   : > { %v10872_v26 = vadd.f32 %v7768_v11, %v10696_v58  ;;  %v7834_v58 = vpop.f32.mrf.mxu1  ;;  %v10893_v40 = vpack.c.bf16 %v3539_v9, %v3534_v52  ;;  %v3542_v51 = vrot.slane %v9414_v17, 2  ;;  %v9418_v9 = vld [vmem:[#allocation2 + $0x198] sm:$0xff] }
 0x209   : > { %v7770_v47 = vpop.f32.mrf.mxu0  ;;  %v7835_v11 = vadd.f32 %v7834_v58, %v7833_v46  ;;  %3447 = vmatmul.mubr.bf16.gmra.mxu1 %v10600_v38  ;;  %v3547_v46 = vsel %vm3471_vm3, %v3545_v23, %v3546_v12  ;;  %v12896_v58 = vld [vmem:[#allocation17_spill] sm:$0xff] }
 0x20a   : > { %v7771_v39 = vadd.f32 %v7770_v47, %v7769_v30  ;;  %v7836_v60 = vpop.f32.mrf.mxu1  ;;  %3454 = vmatprep.mubr.bf16.mxu1 %v10711_v43  ;;  %v9413_v47 = vld [vmem:[#allocation2 + $0x170] sm:$0x3] }
 0x20b   : > { %v7772_v24 = vpop.f32.mrf.mxu0  ;;  %4218 = vmatmul.mubr.bf16.gmra.mxu0 %v10869_v6  ;;  %v10888_v44 = vadd.f32 %v7835_v11, %v10700_v62  ;;  %v3548_v38 = vrot.slane %v9413_v47, 2 }
 0x20c   : > { %v10881_v48 = vadd.f32 %v7771_v39, %v10705_v5  ;;  %4225 = vmatprep.mubr.bf16.mxu0 %v10874_v7  ;;  %v3551_v5 = vsel %vm3471_vm3, %v3546_v12, %v3550_v53  ;;  %v7837_v27 = vpop.f32.mrf.mxu1  ;;  %v9415_v39 = vld [vmem:[#allocation2 + $0x338] sm:$0xff]  ;;  %v9416_v12 = vld [vmem:[#allocation2 + $0x160] sm:$0xff] }
 0x20d   : > { %v7773_v30 = vpop.f32.mrf.mxu0  ;;  %v7838_v41 = vadd.f32 %v7837_v27, %v7836_v60  ;;  %v1338_v43 = vpack.c.bf16 %v10716_v15, %v9415_v39  ;;  %v10899_v23 = vpack.c.bf16 %v3551_v5, %v3547_v46  ;;  %v3543_v53 = vrot.slane %v9416_v12, 2  ;;  %v9417_v60 = vld [vmem:[#allocation2 + $0x188] sm:$0xff]  ;;  %v12898_v46 = vld [vmem:[#allocation18_spill] sm:$0xff] }
 0x20e   : > { %v7774_v0 = vadd.f32 %v7773_v30, %v7772_v24  ;;  %v7839_v22 = vpop.f32.mrf.mxu1  ;;  %v3555_v52 = vrot.slane %v9417_v60, 2  ;;  %v3556_v30 = vrot.slane %v9418_v9, 2  ;;  %v9419_v27 = vld [vmem:[#allocation2 + $0x1a8] sm:$0x3] }
 0x20f   : > { %v7775_v1 = vpop.f32.mrf.mxu0  ;;  %v10902_v11 = vadd.f32 %v7838_v41, %v12896_v58  ;;  %v3560_v47 = vrot.slane %v9419_v27, 2  ;;  %v3544_v41 = vsel %vm3471_vm3, %v3542_v51, %v3543_v53  ;;  %v3549_v12 = vsel %vm3471_vm3, %v3543_v53, %v3548_v38  ;;  %v12900_v58 = vld [vmem:[#allocation10_spill] sm:$0xff] }
 0x210   : > { %v10896_v62 = vadd.f32 %v7774_v0, %v10714_v55  ;;  %v7840_v0 = vpop.f32.mrf.mxu1 }
 0x211   : > { %12897 = vst [vmem:[#allocation13_spill] sm:$0xff] %v10902_v11  ;;  %v7776_v24 = vpop.f32.mrf.mxu0  ;;  %v7841_v17 = vadd.f32 %v7840_v0, %v7839_v22  ;;  %3455 = vmatmul.mubr.bf16.gmra.mxu1 %v10731_v37  ;;  %v3557_v22 = vsel %vm3471_vm3, %v3555_v52, %v3556_v30  ;;  %v10918_v11 = vpack.c.bf16 %v3549_v12, %v3544_v41  ;;  %v9422_v52 = vld [vmem:[#allocation2 + $0x180] sm:$0xff] }
 0x212   : > { %12895 = vst [vmem:[#allocation12_spill] sm:$0xff] %v10896_v62  ;;  %v7777_v55 = vadd.f32 %v7776_v24, %v7775_v1  ;;  %v7842_v39 = vpop.f32.mrf.mxu1  ;;  %3462 = vmatprep.mubr.bf16.mxu1 %v1338_v43  ;;  %v3561_v24 = vsel %vm3471_vm3, %v3556_v30, %v3560_v47  ;;  %v9423_v30 = vld [vmem:[#allocation2 + $0x190] sm:$0xff] }
 0x213   : > { %v7778_v62 = vpop.f32.mrf.mxu0  ;;  %4226 = vmatmul.mubr.bf16.gmra.mxu0 %v10893_v40  ;;  %v10913_v60 = vadd.f32 %v7841_v17, %v12900_v58  ;;  %v10923_v43 = vpack.c.bf16 %v3561_v24, %v3557_v22  ;;  %v3552_v17 = vrot.slane %v9422_v52, 2  ;;  %v9424_v58 = vld [vmem:[#allocation2 + $0x1b8] sm:$0xff] }
 0x214   : > { %v10906_v5 = vadd.f32 %v7777_v55, %v12898_v46  ;;  %4233 = vmatprep.mubr.bf16.mxu0 %v10899_v23  ;;  %v7843_v27 = vpop.f32.mrf.mxu1  ;;  %v9420_v55 = vld [vmem:[#allocation2 + $0x1a0] sm:$0x3]  ;;  %v12902_v52 = vld [vmem:[#allocation11_spill] sm:$0xff] }
 0x215   : > { %v7779_v1 = vpop.f32.mrf.mxu0  ;;  %v3558_v0 = vrot.slane %v9420_v55, 2  ;;  %v7844_v37 = vadd.f32 %v7843_v27, %v7842_v39  ;;  %v9425_v27 = vld [vmem:[#allocation2 + $0x1c8] sm:$0xff] }
 0x216   : > { %12899 = vst [vmem:[#allocation20_spill] sm:$0xff] %v10906_v5  ;;  %v7780_v9 = vadd.f32 %v7779_v1, %v7778_v62  ;;  %v9421_v5 = vld [vmem:[#allocation2 + $0x330] sm:$0xff]  ;;  %v7845_v53 = vpop.f32.mrf.mxu1  ;;  %v3553_v62 = vrot.slane %v9423_v30, 2  ;;  %v3565_v1 = vrot.slane %v9424_v58, 2 }
 0x217   : > { %v7781_v46 = vpop.f32.mrf.mxu0  ;;  %v1337_v51 = vpack.c.bf16 %v10716_v15, %v9421_v5  ;;  %v10926_v47 = vadd.f32 %v7844_v37, %v10734_v56  ;;  %v3566_v15 = vrot.slane %v9425_v27, 2  ;;  %v9426_v5 = vld [vmem:[#allocation2 + $0x1d8] sm:$0x3]  ;;  %v9427_v27 = vld [vmem:[#allocation2 + $0x1d0] sm:$0x3] }
 0x218   : > { %v10921_v38 = vadd.f32 %v7780_v9, %v10737_v13  ;;  %v3570_v41 = vrot.slane %v9426_v5, 2  ;;  %v7846_v13 = vpop.f32.mrf.mxu1  ;;  %v3554_v56 = vsel %vm3471_vm3, %v3552_v17, %v3553_v62  ;;  %v3559_v37 = vsel %vm3471_vm3, %v3553_v62, %v3558_v0 }
 0x219   : > { %v7782_v39 = vpop.f32.mrf.mxu0  ;;  %v7847_v9 = vadd.f32 %v7846_v13, %v7845_v53  ;;  %3463 = vmatmul.mubr.bf16.gmra.mxu1 %v1337_v51  ;;  %v3567_v53 = vsel %vm3471_vm3, %v3565_v1, %v3566_v15  ;;  %v3568_v51 = vrot.slane %v9427_v27, 2  ;;  %v10941_v13 = vpack.c.bf16 %v3559_v37, %v3554_v56  ;;  %v9432_v56 = vld [vmem:[#allocation2 + $0x208] sm:$0x3] }
 0x21a   : > { %v7783_v12 = vadd.f32 %v7782_v39, %v7781_v46  ;;  %v7848_v24 = vpop.f32.mrf.mxu1  ;;  %4338 = vmatprep.mubr.bf16.mxu1 %v10755_v31  ;;  %v3571_v39 = vsel %vm3471_vm3, %v3566_v15, %v3570_v41  ;;  %v3580_v37 = vrot.slane %v9432_v56, 2 }
 0x21b   : > { %v7784_v55 = vpop.f32.mrf.mxu0  ;;  %4234 = vmatmul.mubr.bf16.gmra.mxu0 %v10918_v11  ;;  %v10936_v30 = vadd.f32 %v7847_v9, %v12902_v52  ;;  %v10946_v62 = vpack.c.bf16 %v3571_v39, %v3567_v53  ;;  %v9428_v9 = vld [vmem:[#allocation2 + $0x1b0] sm:$0xff]  ;;  %v9429_v52 = vld [vmem:[#allocation2 + $0x1c0] sm:$0xff] }
 0x21c   : > { %v10930_v22 = vadd.f32 %v7783_v12, %v10747_v63  ;;  %4241 = vmatprep.mubr.bf16.mxu0 %v10923_v43  ;;  %v7849_v58 = vpop.f32.mrf.mxu1  ;;  %v3562_v31 = vrot.slane %v9428_v9, 2  ;;  %v3563_v1 = vrot.slane %v9429_v52, 2  ;;  %v12906_v9 = vld [vmem:[#allocation19_spill] sm:$0xff] }
 0x21d   : > { %v7785_v46 = vpop.f32.mrf.mxu0  ;;  %v7850_v5 = vadd.f32 %v7849_v58, %v7848_v24  ;;  %v9431_v24 = vld [vmem:[#allocation2 + $0x1f8] sm:$0xff] }
 0x21e   : > { %12901 = vst [vmem:[#allocation14_spill] sm:$0xff] %v10930_v22  ;;  %v7786_v63 = vadd.f32 %v7785_v46, %v7784_v55  ;;  %v7851_v17 = vpop.f32.mrf.mxu1  ;;  %v12904_v22 = vld [vmem:[#allocation15_spill] sm:$0xff]  ;;  %v9430_v55 = vld [vmem:[#allocation2 + $0x1e8] sm:$0xff]  ;;  %v3576_v58 = vrot.slane %v9431_v24, 2  ;;  %v9433_v24 = vld [vmem:[#allocation2 + $0x200] sm:$0x3] }
 0x21f   : > { %v7787_v12 = vpop.f32.mrf.mxu0  ;;  %v10949_v15 = vadd.f32 %v7850_v5, %v12904_v22  ;;  %v3575_v46 = vrot.slane %v9430_v55, 2  ;;  %v3564_v22 = vsel %vm3471_vm3, %v3562_v31, %v3563_v1  ;;  %v3569_v5 = vsel %vm3471_vm3, %v3563_v1, %v3568_v51 }
 0x220   : > { %v10944_v0 = vadd.f32 %v7786_v63, %v10758_v3  ;;  %v7852_v3 = vpop.f32.mrf.mxu1 }
 0x221   : > { %v7788_v41 = vpop.f32.mrf.mxu0  ;;  %v7853_v63 = vadd.f32 %v7852_v3, %v7851_v17  ;;  %4339 = vmatmul.mubr.bf16.vlgmr.msra.gmra.mxu1 %v10773_v16  ;;  %v3577_v17 = vsel %vm3471_vm3, %v3575_v46, %v3576_v58  ;;  %v3578_v16 = vrot.slane %v9433_v24, 2  ;;  %v10965_v3 = vpack.c.bf16 %v3569_v5, %v3564_v22  ;;  %v9438_v22 = vld [vmem:[#allocation2 + $0x238] sm:$0x3] }
 0x222   : > { %12903 = vst [vmem:[#allocation21_spill] sm:$0xff] %v10944_v0  ;;  %v7789_v27 = vadd.f32 %v7788_v41, %v7787_v12  ;;  %v7854_v39 = vpop.f32.mrf.mxu1  ;;  %4346 = vmatprep.mubr.bf16.mxu1 %v10778_v10  ;;  %v3590_v5 = vrot.slane %v9438_v22, 2 }
 0x223   : > { %v7918_v0 = vpop.f32.mrf.mxu0  ;;  %4242 = vmatmul.mubr.bf16.gmra.mxu0 %v10941_v13  ;;  %v10960_v52 = vadd.f32 %v7853_v63, %v12906_v9  ;;  %v9434_v63 = vld [vmem:[#allocation2 + $0x1e0] sm:$0xff] }
 0x224   : > { %v10953_v53 = vadd.f32 %v7789_v27, %v10767_v18  ;;  %4249 = vmatprep.mubr.bf16.mxu0 %v10946_v62  ;;  %v3581_v18 = vsel %vm3471_vm3, %v3576_v58, %v3580_v37  ;;  %v7855_v41 = vpop.f32.mrf.mxu1  ;;  %v3572_v9 = vrot.slane %v9434_v63, 2  ;;  %v9436_v37 = vld [vmem:[#allocation2 + $0x218] sm:$0xff] }
 0x225   : > { %v7919_v12 = vpop.f32.mrf.mxu0  ;;  %v7856_v56 = vadd.f32 %v7855_v41, %v7854_v39  ;;  %v10970_v1 = vpack.c.bf16 %v3581_v18, %v3577_v17  ;;  %v9437_v39 = vld [vmem:[#allocation2 + $0x228] sm:$0xff] }
 0x226   : > { %12905 = vst [vmem:[#allocation16_spill] sm:$0xff] %v10953_v53  ;;  %v7920_v55 = vadd.f32 %v7919_v12, %v7918_v0  ;;  %v7857_v31 = vpop.f32.mrf.mxu1  ;;  %v9435_v53 = vld [vmem:[#allocation2 + $0x1f0] sm:$0xff]  ;;  %v3585_v12 = vrot.slane %v9436_v37, 2  ;;  %v3586_v41 = vrot.slane %v9437_v39, 2 }
 0x227   : > { %v7921_v27 = vpop.f32.mrf.mxu0  ;;  %v3573_v46 = vrot.slane %v9435_v53, 2  ;;  %v10973_v58 = vadd.f32 %v7856_v56, %v10776_v29  ;;  %v9439_v37 = vld [vmem:[#allocation2 + $0x230] sm:$0x3] }
 0x228   : > { %v10968_v51 = vadd.f32 %v7920_v55, %v10781_v42  ;;  %v7858_v24 = vpop.f32.mrf.mxu1  ;;  %v3588_v39 = vrot.slane %v9439_v37, 2 }
 0x229   : > { %v7922_v0 = vpop.f32.mrf.mxu0  ;;  %v7859_v55 = vadd.f32 %v7858_v24, %v7857_v31  ;;  %4347 = vmatmul.mubr.bf16.gmra.mxu1 %v10797_v34  ;;  %v3574_v29 = vsel %vm3471_vm3, %v3572_v9, %v3573_v46  ;;  %v3579_v18 = vsel %vm3471_vm3, %v3573_v46, %v3578_v16  ;;  %v3587_v31 = vsel %vm3471_vm3, %v3585_v12, %v3586_v41  ;;  %v9440_v46 = vld [vmem:[#allocation2 + $0x210] sm:$0xff] }
 0x22a   : > { %12907 = vst [vmem:[#allocation17_spill] sm:$0xff] %v10968_v51  ;;  %v7923_v42 = vadd.f32 %v7922_v0, %v7921_v27  ;;  %v7860_v53 = vpop.f32.mrf.mxu1  ;;  %4354 = vmatprep.mubr.bf16.mxu1 %v10802_v36 }
 0x22b   : > { %v7924_v51 = vpop.f32.mrf.mxu0  ;;  %4250 = vmatmul.mubr.bf16.gmra.mxu0 %v10965_v3  ;;  %v10984_v56 = vadd.f32 %v7859_v55, %v10785_v33  ;;  %v3582_v55 = vrot.slane %v9440_v46, 2 }
 0x22c   : > { %v10977_v17 = vadd.f32 %v7923_v42, %v10792_v8  ;;  %4257 = vmatprep.mubr.bf16.mxu0 %v10970_v1  ;;  %v3591_v8 = vsel %vm3471_vm3, %v3586_v41, %v3590_v5  ;;  %v7861_v63 = vpop.f32.mrf.mxu1  ;;  %v10989_v42 = vpack.c.bf16 %v3579_v18, %v3574_v29  ;;  %v9442_v5 = vld [vmem:[#allocation2 + $0x248] sm:$0xff] }
 0x22d   : > { %v7925_v27 = vpop.f32.mrf.mxu0  ;;  %v7862_v22 = vadd.f32 %v7861_v63, %v7860_v53  ;;  %v10994_v9 = vpack.c.bf16 %v3591_v8, %v3587_v31  ;;  %v9443_v53 = vld [vmem:[#allocation2 + $0x258] sm:$0xff]  ;;  %v9444_v29 = vld [vmem:[#allocation2 + $0x268] sm:$0x3] }
 0x22e   : > { %12908 = vst [vmem:[#allocation18_spill] sm:$0xff] %v10977_v17  ;;  %v7926_v0 = vadd.f32 %v7925_v27, %v7924_v51  ;;  %v7863_v33 = vpop.f32.mrf.mxu1  ;;  %v9441_v17 = vld [vmem:[#allocation2 + $0x220] sm:$0xff]  ;;  %v3595_v27 = vrot.slane %v9442_v5, 2  ;;  %v3596_v63 = vrot.slane %v9443_v53, 2  ;;  %v3600_v18 = vrot.slane %v9444_v29, 2 }
 0x22f   : > { %v7927_v24 = vpop.f32.mrf.mxu0  ;;  %v3583_v12 = vrot.slane %v9441_v17, 2  ;;  %v10997_v41 = vadd.f32 %v7862_v22, %v10800_v21  ;;  %v9445_v5 = vld [vmem:[#allocation2 + $0x260] sm:$0x3] }
 0x230   : > { %v10992_v16 = vadd.f32 %v7926_v0, %v10805_v19  ;;  %v7864_v37 = vpop.f32.mrf.mxu1  ;;  %v3598_v53 = vrot.slane %v9445_v5, 2 }
 0x231   : > { %v7928_v51 = vpop.f32.mrf.mxu0  ;;  %v7865_v0 = vadd.f32 %v7864_v37, %v7863_v33  ;;  %4355 = vmatmul.mubr.bf16.gmra.mxu1 %v10821_v2  ;;  %v3584_v21 = vsel %vm3471_vm3, %v3582_v55, %v3583_v12  ;;  %v3589_v8 = vsel %vm3471_vm3, %v3583_v12, %v3588_v39  ;;  %v3597_v33 = vsel %vm3471_vm3, %v3595_v27, %v3596_v63  ;;  %v9446_v12 = vld [vmem:[#allocation2 + $0x240] sm:$0xff] }
 0x232   : > { %12909 = vst [vmem:[#allocation10_spill] sm:$0xff] %v10992_v16  ;;  %v7929_v19 = vadd.f32 %v7928_v51, %v7927_v24  ;;  %v7866_v17 = vpop.f32.mrf.mxu1  ;;  %4362 = vmatprep.mubr.bf16.mxu1 %v10826_v35 }
 0x233   : > { %v7930_v16 = vpop.f32.mrf.mxu0  ;;  %4258 = vmatmul.mubr.bf16.gmra.mxu0 %v10989_v42  ;;  %v11008_v22 = vadd.f32 %v7865_v0, %v10809_v49  ;;  %v3592_v0 = vrot.slane %v9446_v12, 2 }
 0x234   : > { %v11001_v31 = vadd.f32 %v7929_v19, %v10816_v20  ;;  %4265 = vmatprep.mubr.bf16.mxu0 %v10994_v9  ;;  %v3601_v20 = vsel %vm3471_vm3, %v3596_v63, %v3600_v18  ;;  %v7867_v46 = vpop.f32.mrf.mxu1  ;;  %v11013_v19 = vpack.c.bf16 %v3589_v8, %v3584_v21  ;;  %v9448_v18 = vld [vmem:[#allocation2 + $0x278] sm:$0xff] }
 0x235   : > { %v7931_v24 = vpop.f32.mrf.mxu0  ;;  %v7868_v29 = vadd.f32 %v7867_v46, %v7866_v17  ;;  %v11018_v55 = vpack.c.bf16 %v3601_v20, %v3597_v33  ;;  %v9449_v17 = vld [vmem:[#allocation2 + $0x288] sm:$0xff]  ;;  %v9450_v21 = vld [vmem:[#allocation2 + $0x298] sm:$0x3] }
 0x236   : > { %12910 = vst [vmem:[#allocation11_spill] sm:$0xff] %v11001_v31  ;;  %v7932_v51 = vadd.f32 %v7931_v24, %v7930_v16  ;;  %v7869_v49 = vpop.f32.mrf.mxu1  ;;  %v9447_v31 = vld [vmem:[#allocation2 + $0x250] sm:$0xff]  ;;  %v3605_v24 = vrot.slane %v9448_v18, 2  ;;  %v3606_v46 = vrot.slane %v9449_v17, 2  ;;  %v3610_v8 = vrot.slane %v9450_v21, 2 }
 0x237   : > { %v7933_v37 = vpop.f32.mrf.mxu0  ;;  %v3593_v27 = vrot.slane %v9447_v31, 2  ;;  %v11021_v63 = vadd.f32 %v7868_v29, %v10824_v61  ;;  %v9451_v18 = vld [vmem:[#allocation2 + $0x290] sm:$0x3] }
 0x238   : > { %v11016_v39 = vadd.f32 %v7932_v51, %v10829_v59  ;;  %v7870_v5 = vpop.f32.mrf.mxu1  ;;  %v3608_v17 = vrot.slane %v9451_v18, 2 }
 0x239   : > { %v7934_v16 = vpop.f32.mrf.mxu0  ;;  %v7871_v51 = vadd.f32 %v7870_v5, %v7869_v49  ;;  %4363 = vmatmul.mubr.bf16.gmra.mxu1 %v10845_v54  ;;  %v3594_v61 = vsel %vm3471_vm3, %v3592_v0, %v3593_v27  ;;  %v3599_v20 = vsel %vm3471_vm3, %v3593_v27, %v3598_v53  ;;  %v3607_v49 = vsel %vm3471_vm3, %v3605_v24, %v3606_v46  ;;  %v9452_v27 = vld [vmem:[#allocation2 + $0x270] sm:$0xff] }
 0x23a   : > { %12911 = vst [vmem:[#allocation15_spill] sm:$0xff] %v11016_v39  ;;  %v7935_v59 = vadd.f32 %v7934_v16, %v7933_v37  ;;  %v7872_v31 = vpop.f32.mrf.mxu1  ;;  %4370 = vmatprep.mubr.bf16.mxu1 %v10850_v14 }
 0x23b   : > { %v7936_v39 = vpop.f32.mrf.mxu0  ;;  %4266 = vmatmul.mubr.bf16.gmra.mxu0 %v11013_v19  ;;  %v11032_v29 = vadd.f32 %v7871_v51, %v10833_v50  ;;  %v3602_v51 = vrot.slane %v9452_v27, 2 }
 0x23c   : > { %v11025_v33 = vadd.f32 %v7935_v59, %v10840_v25  ;;  %4273 = vmatprep.mubr.bf16.mxu0 %v11018_v55  ;;  %v3611_v25 = vsel %vm3471_vm3, %v3606_v46, %v3610_v8  ;;  %v7873_v12 = vpop.f32.mrf.mxu1  ;;  %v11037_v59 = vpack.c.bf16 %v3599_v20, %v3594_v61  ;;  %v9454_v8 = vld [vmem:[#allocation2 + $0x2a8] sm:$0xff] }
 0x23d   : > { %v7937_v37 = vpop.f32.mrf.mxu0  ;;  %v7874_v21 = vadd.f32 %v7873_v12, %v7872_v31  ;;  %v11042_v0 = vpack.c.bf16 %v3611_v25, %v3607_v49  ;;  %v9455_v31 = vld [vmem:[#allocation2 + $0x2b8] sm:$0xff]  ;;  %v9456_v61 = vld [vmem:[#allocation2 + $0x2c8] sm:$0x3] }
 0x23e   : > { %12912 = vst [vmem:[#allocation19_spill] sm:$0xff] %v11025_v33  ;;  %v7938_v16 = vadd.f32 %v7937_v37, %v7936_v39  ;;  %v7875_v50 = vpop.f32.mrf.mxu1  ;;  %v9453_v33 = vld [vmem:[#allocation2 + $0x280] sm:$0xff]  ;;  %v3615_v37 = vrot.slane %v9454_v8, 2  ;;  %v3616_v12 = vrot.slane %v9455_v31, 2  ;;  %v3620_v20 = vrot.slane %v9456_v61, 2 }
 0x23f   : > { %v7939_v5 = vpop.f32.mrf.mxu0  ;;  %v3603_v24 = vrot.slane %v9453_v33, 2  ;;  %v11045_v46 = vadd.f32 %v7874_v21, %v10848_v28  ;;  %v9457_v8 = vld [vmem:[#allocation2 + $0x2c0] sm:$0x3] }
 0x240   : > { %v11040_v53 = vadd.f32 %v7938_v16, %v10853_v45  ;;  %v7876_v18 = vpop.f32.mrf.mxu1  ;;  %v3618_v31 = vrot.slane %v9457_v8, 2 }
 0x241   : > { %v7940_v39 = vpop.f32.mrf.mxu0  ;;  %v7877_v16 = vadd.f32 %v7876_v18, %v7875_v50  ;;  %4371 = vmatmul.mubr.bf16.gmra.mxu1 %v10869_v6  ;;  %v3604_v28 = vsel %vm3471_vm3, %v3602_v51, %v3603_v24  ;;  %v3609_v25 = vsel %vm3471_vm3, %v3603_v24, %v3608_v17  ;;  %v3617_v50 = vsel %vm3471_vm3, %v3615_v37, %v3616_v12  ;;  %v9458_v24 = vld [vmem:[#allocation2 + $0x2a0] sm:$0xff] }
 0x242   : > { %12913 = vst [vmem:[#allocation22_spill] sm:$0xff] %v11040_v53  ;;  %v7941_v45 = vadd.f32 %v7940_v39, %v7939_v5  ;;  %v7878_v33 = vpop.f32.mrf.mxu1  ;;  %4378 = vmatprep.mubr.bf16.mxu1 %v10874_v7 }
 0x243   : > { %v7942_v53 = vpop.f32.mrf.mxu0  ;;  %4274 = vmatmul.mubr.bf16.gmra.mxu0 %v11037_v59  ;;  %v11056_v21 = vadd.f32 %v7877_v16, %v10857_v57  ;;  %v3612_v16 = vrot.slane %v9458_v24, 2 }
 0x244   : > { %v11049_v49 = vadd.f32 %v7941_v45, %v10864_v4  ;;  %4281 = vmatprep.mubr.bf16.mxu0 %v11042_v0  ;;  %v3621_v4 = vsel %vm3471_vm3, %v3616_v12, %v3620_v20  ;;  %v7879_v27 = vpop.f32.mrf.mxu1  ;;  %v11061_v45 = vpack.c.bf16 %v3609_v25, %v3604_v28  ;;  %v9460_v20 = vld [vmem:[#allocation2 + $0x2d8] sm:$0xff] }
 0x245   : > { %v7943_v5 = vpop.f32.mrf.mxu0  ;;  %v7880_v61 = vadd.f32 %v7879_v27, %v7878_v33  ;;  %v11066_v51 = vpack.c.bf16 %v3621_v4, %v3617_v50  ;;  %v9461_v33 = vld [vmem:[#allocation2 + $0x2e8] sm:$0xff]  ;;  %v9462_v28 = vld [vmem:[#allocation2 + $0x2f8] sm:$0x3] }
 0x246   : > { %12914 = vst [vmem:[#allocation23_spill] sm:$0xff] %v11049_v49  ;;  %v7944_v39 = vadd.f32 %v7943_v5, %v7942_v53  ;;  %v7881_v57 = vpop.f32.mrf.mxu1  ;;  %v9459_v49 = vld [vmem:[#allocation2 + $0x2b0] sm:$0xff]  ;;  %v3625_v5 = vrot.slane %v9460_v20, 2  ;;  %v3626_v27 = vrot.slane %v9461_v33, 2  ;;  %v3630_v25 = vrot.slane %v9462_v28, 2  ;;  %v9230_v50 = vld [vmem:[%s12854_s5 + $0xf8] sm:$0xff]  }
 0x247   : > { %v7945_v18 = vpop.f32.mrf.mxu0  ;;  %v3613_v37 = vrot.slane %v9459_v49, 2  ;;  %v11069_v12 = vadd.f32 %v7880_v61, %v10872_v26 }
 0x248   : > { %v11064_v17 = vadd.f32 %v7944_v39, %v10877_v32  ;;  %v9229_v32 = vld [vmem:[%s12854_s5 + $0x138] sm:$0xff]   ;;  %v7882_v4 = vpop.f32.mrf.mxu1 }
 0x249   : > { %12916 = vst [vmem:[#allocation25_spill] sm:$0xff] %v11069_v12  ;;  %v7946_v53 = vpop.f32.mrf.mxu0  ;;  %v7883_v39 = vadd.f32 %v7882_v4, %v7881_v57  ;;  %8462 = vmatprep.subr.bf16.mxu1 %v9229_v32  ;;  %4379 = vmatmul.mubr.bf16.gmra.mxu1 %v10893_v40  ;;  %v3614_v24 = vsel %vm3471_vm3, %v3612_v16, %v3613_v37  ;;  %v9463_v32 = vld [vmem:[#allocation2 + $0x2f0] sm:$0x3] }
 0x24a   : > { %12915 = vst [vmem:[#allocation24_spill] sm:$0xff] %v11064_v17  ;;  %v7947_v49 = vadd.f32 %v7946_v53, %v7945_v18  ;;  %v7884_v61 = vpop.f32.mrf.mxu1  ;;  %v3619_v20 = vsel %vm3471_vm3, %v3613_v37, %v3618_v31  ;;  %4386 = vmatprep.mubr.bf16.mxu1 %v10899_v23  ;;  %v3627_v57 = vsel %vm3471_vm3, %v3625_v5, %v3626_v27  ;;  %v3628_v4 = vrot.slane %v9463_v32, 2  ;;  %v12919_v31 = vld [vmem:[#allocation13_spill] sm:$0xff]  ;;  %v9465_v5 = vld [vmem:[#allocation2 + $0x2e0] sm:$0xff] }
 0x24b   : > { %v7948_v26 = vpop.f32.mrf.mxu0  ;;  %4282 = vmatmul.mubr.bf16.gmra.mxu0 %v11061_v45  ;;  %v11086_v33 = vadd.f32 %v7883_v39, %v10881_v48  ;;  %8463 = vmatpush3.bf16.msra.mxu1 %v9230_v50  ;;  %v11091_v16 = vpack.c.bf16 %v3619_v20, %v3614_v24  ;;  %v3623_v12 = vrot.slane %v9465_v5, 2 }
 0x24c   : > { %v11079_v8 = vadd.f32 %v7947_v49, %v10888_v44  ;;  %4289 = vmatprep.mubr.bf16.mxu0 %v11066_v51  ;;  %v3631_v44 = vsel %vm3471_vm3, %v3626_v27, %v3630_v25  ;;  %v7885_v53 = vpop.f32.mrf.mxu1  ;;  %v12920_v27 = vld [vmem:[#allocation12_spill] sm:$0xff] }
 0x24d   : > { %12918 = vst [vmem:[#allocation27_spill] sm:$0xff] %v11086_v33  ;;  %v7949_v18 = vpop.f32.mrf.mxu0  ;;  %v7886_v49 = vadd.f32 %v7885_v53, %v7884_v61  ;;  %v11096_v39 = vpack.c.bf16 %v3631_v44, %v3627_v57  ;;  %v9464_v33 = vld [vmem:[#allocation2 + $0x2d0] sm:$0xff]  ;;  %v3629_v57 = vsel %vm3471_vm3, %v3623_v12, %v3628_v4  ;;  %v12921_v44 = vld [vmem:[#allocation20_spill] sm:$0xff] }
 0x24e   : > { %12917 = vst [vmem:[#allocation26_spill] sm:$0xff] %v11079_v8  ;;  %v7950_v28 = vadd.f32 %v7949_v18, %v7948_v26  ;;  %v7887_v48 = vpop.f32.mrf.mxu1  ;;  %v3622_v17 = vrot.slane %v9464_v33, 2  ;;  %v9231_v4 = vld [vmem:[%s12854_s5 + $0x130] sm:$0xff]  }
 0x24f   : > { %v7951_v8 = vpop.f32.mrf.mxu0  ;;  %v11099_v25 = vadd.f32 %v7886_v49, %v12920_v27  ;;  %8464 = vmatprep.subr.bf16.mxu1 %v9231_v4 }
 0x250   : > { %v11094_v37 = vadd.f32 %v7950_v28, %v12919_v31  ;;  %v7888_v26 = vpop.f32.mrf.mxu1  ;;  %v3624_v33 = vsel %vm3471_vm3, %v3622_v17, %v3623_v12 }
 0x251   : > { %v7952_v50 = vpop.f32.mrf.mxu0  ;;  %v7889_v61 = vadd.f32 %v7888_v26, %v7887_v48  ;;  %4387 = vmatmul.mubr.bf16.gmra.mxu1 %v10918_v11  ;;  %v11113_v48 = vpack.c.bf16 %v3629_v57, %v3624_v33 }
 0x252   : > { %v7953_v18 = vadd.f32 %v7952_v50, %v7951_v8  ;;  %v7890_v20 = vpop.f32.mrf.mxu1  ;;  %4394 = vmatprep.mubr.bf16.mxu1 %v10923_v43  ;;  %v9232_v50 = vld [vmem:[%s12854_s5 + $0xf0] sm:$0xff]  }
 0x253   : > { %v7954_v53 = vpop.f32.mrf.mxu0  ;;  %4290 = vmatmul.mubr.bf16.gmra.mxu0 %v11091_v16  ;;  %v11110_v28 = vadd.f32 %v7889_v61, %v12921_v44  ;;  %8465 = vmatpush3.bf16.msra.mxu1 %v9232_v50 }
 0x254   : > { %v11103_v24 = vadd.f32 %v7953_v18, %v10913_v60  ;;  %4297 = vmatprep.mubr.bf16.mxu0 %v11096_v39  ;;  %v7891_v32 = vpop.f32.mrf.mxu1 }
 0x255   : > { %v7955_v8 = vpop.f32.mrf.mxu0  ;;  %v7892_v31 = vadd.f32 %v7891_v32, %v7890_v20  ;;  %v12922_v20 = vld [vmem:[#allocation14_spill] sm:$0xff] }
 0x256   : > { %v7956_v49 = vadd.f32 %v7955_v8, %v7954_v53  ;;  %v7893_v27 = vpop.f32.mrf.mxu1 }
 0x257   : > { %v7957_v60 = vpop.f32.mrf.mxu0  ;;  %v11119_v17 = vadd.f32 %v7892_v31, %v10921_v38 }
 0x258   : > { %v11116_v5 = vadd.f32 %v7956_v49, %v10926_v47  ;;  %v7894_v26 = vpop.f32.mrf.mxu1 }
 0x259   : > { %v7958_v12 = vpop.f32.mrf.mxu0  ;;  %v7895_v61 = vadd.f32 %v7894_v26, %v7893_v27  ;;  %4395 = vmatmul.mubr.bf16.gmra.mxu1 %v10941_v13 }
 0x25a   : > { %v7959_v18 = vadd.f32 %v7958_v12, %v7957_v60  ;;  %v7896_v38 = vpop.f32.mrf.mxu1  ;;  %4402 = vmatprep.mubr.bf16.mxu1 %v10946_v62  ;;  %v12923_v60 = vld [vmem:[#allocation21_spill] sm:$0xff] }
 0x25b   : > { %v7960_v53 = vpop.f32.mrf.mxu0  ;;  %4298 = vmatmul.mubr.bf16.gmra.mxu0 %v11113_v48  ;;  %v11134_v33 = vadd.f32 %v7895_v61, %v12922_v20 }
 0x25c   : > { %v11129_v47 = vadd.f32 %v7959_v18, %v10936_v30  ;;  %4499 = vmatprep.mubr.bf16.mxu0 %v10778_v10  ;;  %v7897_v44 = vpop.f32.mrf.mxu1 }
 0x25d   : > { %v7961_v57 = vpop.f32.mrf.mxu0  ;;  %v7898_v32 = vadd.f32 %v7897_v44, %v7896_v38 }
 0x25e   : > { %v7962_v8 = vadd.f32 %v7961_v57, %v7960_v53  ;;  %v7899_v30 = vpop.f32.mrf.mxu1 }
 0x25f   : > { %v7963_v49 = vpop.f32.mrf.mxu0  ;;  %v11141_v27 = vadd.f32 %v7898_v32, %v12923_v60  ;;  %v12925_v32 = vld [vmem:[#allocation17_spill] sm:$0xff] }
 0x260   : > { %v11138_v31 = vadd.f32 %v7962_v8, %v10949_v15  ;;  %v7900_v10 = vpop.f32.mrf.mxu1  ;;  %v12924_v15 = vld [vmem:[#allocation16_spill] sm:$0xff]  ;;  %v9234_v60 = vld [vmem:[%s12854_s5 + $0xe8] sm:$0xff]  }
 0x261   : > { %v7964_v12 = vpop.f32.mrf.mxu0  ;;  %v7901_v26 = vadd.f32 %v7900_v10, %v7899_v30  ;;  %4403 = vmatmul.mubr.bf16.gmra.mxu1 %v10965_v3 }
 0x262   : > { %v7965_v4 = vadd.f32 %v7964_v12, %v7963_v49  ;;  %v8030_v61 = vpop.f32.mrf.mxu1  ;;  %4410 = vmatprep.mubr.bf16.mxu1 %v10970_v1 }
 0x263   : > { %v7966_v18 = vpop.f32.mrf.mxu0  ;;  %4500 = vmatmul.mubr.bf16.vlgmr.msra.gmra.mxu0 %v10797_v34  ;;  %v11150_v53 = vadd.f32 %v7901_v26, %v12924_v15 }
 0x264   : > { %v11145_v50 = vadd.f32 %v7965_v4, %v10960_v52  ;;  %4507 = vmatprep.mubr.bf16.mxu0 %v10802_v36  ;;  %v8031_v57 = vpop.f32.mrf.mxu1  ;;  %v9233_v36 = vld [vmem:[%s12854_s5 + $0x128] sm:$0xff]  }
 0x265   : > { %v7967_v38 = vpop.f32.mrf.mxu0  ;;  %v8032_v44 = vadd.f32 %v8031_v57, %v8030_v61  ;;  %8466 = vmatprep.subr.bf16.mxu1 %v9233_v36  ;;  %v12926_v61 = vld [vmem:[#allocation18_spill] sm:$0xff] }
 0x266   : > { %v7968_v20 = vadd.f32 %v7967_v38, %v7966_v18  ;;  %v8033_v52 = vpop.f32.mrf.mxu1  ;;  %8467 = vmatpush3.bf16.msra.mxu1 %v9234_v60 }
 0x267   : > { %v7969_v8 = vpop.f32.mrf.mxu0  ;;  %v11157_v49 = vadd.f32 %v8032_v44, %v12925_v32 }
 0x268   : > { %v11154_v34 = vadd.f32 %v7968_v20, %v10973_v58  ;;  %v8034_v10 = vpop.f32.mrf.mxu1 }
 0x269   : > { %v7970_v30 = vpop.f32.mrf.mxu0  ;;  %v8035_v4 = vadd.f32 %v8034_v10, %v8033_v52  ;;  %4411 = vmatmul.mubr.bf16.gmra.mxu1 %v10989_v42  ;;  %v12927_v52 = vld [vmem:[#allocation10_spill] sm:$0xff] }
 0x26a   : > { %v7971_v12 = vadd.f32 %v7970_v30, %v7969_v8  ;;  %v8036_v18 = vpop.f32.mrf.mxu1  ;;  %4418 = vmatprep.mubr.bf16.mxu1 %v10994_v9 }
 0x26b   : > { %v7972_v26 = vpop.f32.mrf.mxu0  ;;  %4508 = vmatmul.mubr.bf16.gmra.mxu0 %v10821_v2  ;;  %v11172_v15 = vadd.f32 %v8035_v4, %v12926_v61 }
 0x26c   : > { %v11167_v58 = vadd.f32 %v7971_v12, %v10984_v56  ;;  %4515 = vmatprep.mubr.bf16.mxu0 %v10826_v35  ;;  %v8037_v57 = vpop.f32.mrf.mxu1 }
 0x26d   : > { %v7973_v38 = vpop.f32.mrf.mxu0  ;;  %v8038_v44 = vadd.f32 %v8037_v57, %v8036_v18 }
 0x26e   : > { %v7974_v20 = vadd.f32 %v7973_v38, %v7972_v26  ;;  %v8039_v56 = vpop.f32.mrf.mxu1 }
 0x26f   : > { %v7975_v2 = vpop.f32.mrf.mxu0  ;;  %v11179_v32 = vadd.f32 %v8038_v44, %v12927_v52  ;;  %v12929_v44 = vld [vmem:[#allocation15_spill] sm:$0xff]  ;;  %v9236_v52 = vld [vmem:[%s12854_s5 + $0xe0] sm:$0xff]  }
 0x270   : > { %v11176_v8 = vadd.f32 %v7974_v20, %v10997_v41  ;;  %v8040_v36 = vpop.f32.mrf.mxu1  ;;  %v12928_v41 = vld [vmem:[#allocation11_spill] sm:$0xff] }
 0x271   : > { %v7976_v30 = vpop.f32.mrf.mxu0  ;;  %v8041_v12 = vadd.f32 %v8040_v36, %v8039_v56  ;;  %4419 = vmatmul.mubr.bf16.gmra.mxu1 %v11013_v19 }
 0x272   : > { %v7977_v35 = vadd.f32 %v7976_v30, %v7975_v2  ;;  %v8042_v4 = vpop.f32.mrf.mxu1  ;;  %4426 = vmatprep.mubr.bf16.mxu1 %v11018_v55 }
 0x273   : > { %v7978_v10 = vpop.f32.mrf.mxu0  ;;  %4516 = vmatmul.mubr.bf16.gmra.mxu0 %v10845_v54  ;;  %v11188_v26 = vadd.f32 %v8041_v12, %v12928_v41 }
 0x274   : > { %v11183_v60 = vadd.f32 %v7977_v35, %v11008_v22  ;;  %4523 = vmatprep.mubr.bf16.mxu0 %v10850_v14  ;;  %v8043_v38 = vpop.f32.mrf.mxu1  ;;  %v9235_v14 = vld [vmem:[%s12854_s5 + $0x120] sm:$0xff]  }
 0x275   : > { %v7979_v18 = vpop.f32.mrf.mxu0  ;;  %v8044_v20 = vadd.f32 %v8043_v38, %v8042_v4  ;;  %8468 = vmatprep.subr.bf16.mxu1 %v9235_v14  ;;  %v12930_v4 = vld [vmem:[#allocation19_spill] sm:$0xff] }
 0x276   : > { %v7980_v61 = vadd.f32 %v7979_v18, %v7978_v10  ;;  %v8045_v22 = vpop.f32.mrf.mxu1  ;;  %8469 = vmatpush3.bf16.msra.mxu1 %v9236_v52 }
 0x277   : > { %v7981_v57 = vpop.f32.mrf.mxu0  ;;  %v11195_v2 = vadd.f32 %v8044_v20, %v12929_v44 }
 0x278   : > { %v11192_v54 = vadd.f32 %v7980_v61, %v11021_v63  ;;  %v8046_v35 = vpop.f32.mrf.mxu1 }
 0x279   : > { %v7982_v56 = vpop.f32.mrf.mxu0  ;;  %v8047_v36 = vadd.f32 %v8046_v35, %v8045_v22  ;;  %4427 = vmatmul.mubr.bf16.gmra.mxu1 %v11037_v59  ;;  %v12931_v22 = vld [vmem:[#allocation22_spill] sm:$0xff] }
 0x27a   : > { %v7983_v30 = vadd.f32 %v7982_v56, %v7981_v57  ;;  %v8048_v10 = vpop.f32.mrf.mxu1  ;;  %4434 = vmatprep.mubr.bf16.mxu1 %v11042_v0 }
 0x27b   : > { %v7984_v12 = vpop.f32.mrf.mxu0  ;;  %4524 = vmatmul.mubr.bf16.gmra.mxu0 %v10869_v6  ;;  %v11210_v41 = vadd.f32 %v8047_v36, %v12930_v4  ;;  %v9237_v4 = vld [vmem:[%s12854_s5 + $0x178] sm:$0xff]  }
 0x27c   : > { %v11205_v63 = vadd.f32 %v7983_v30, %v11032_v29  ;;  %4531 = vmatprep.mubr.bf16.mxu0 %v10874_v7  ;;  %v8049_v38 = vpop.f32.mrf.mxu1  ;;  %8870 = vmatprep.subr.bf16.mxu0 %v9237_v4 }
 0x27d   : > { %v7985_v18 = vpop.f32.mrf.mxu0  ;;  %v8050_v20 = vadd.f32 %v8049_v38, %v8048_v10  ;;  %v12935_v38 = vld [vmem:[#allocation25_spill] sm:$0xff]  ;;  %8871 = vmatpush3.bf16.msra.mxu0 %v9237_v4 }
 0x27e   : > { %v7986_v61 = vadd.f32 %v7985_v18, %v7984_v12  ;;  %v8051_v29 = vpop.f32.mrf.mxu1 }
 0x27f   : > { %v7987_v6 = vpop.f32.mrf.mxu0  ;;  %v11217_v44 = vadd.f32 %v8050_v20, %v12931_v22 }
 0x280   : > { %v11214_v57 = vadd.f32 %v7986_v61, %v11045_v46  ;;  %v8052_v14 = vpop.f32.mrf.mxu1  ;;  %v12933_v46 = vld [vmem:[#allocation23_spill] sm:$0xff] }
 0x281   : > { %12932 = vst [vmem:[#allocation13_spill] sm:$0xff] %v11217_v44  ;;  %v7988_v56 = vpop.f32.mrf.mxu0  ;;  %v8053_v30 = vadd.f32 %v8052_v14, %v8051_v29  ;;  %4435 = vmatmul.mubr.bf16.gmra.mxu1 %v11061_v45 }
 0x282   : > { %v7989_v7 = vadd.f32 %v7988_v56, %v7987_v6  ;;  %v8054_v36 = vpop.f32.mrf.mxu1  ;;  %4442 = vmatprep.mubr.bf16.mxu1 %v11066_v51  ;;  %v9238_v56 = vld [vmem:[%s12854_s5 + $0x118] sm:$0xff]  }
 0x283   : > { %v7990_v35 = vpop.f32.mrf.mxu0  ;;  %4532 = vmatmul.mubr.bf16.gmra.mxu0 %v10893_v40  ;;  %v11226_v12 = vadd.f32 %v8053_v30, %v12933_v46  ;;  %v9467_v46 = vld [vmem:[#allocation2 + $0x318] sm:$0xff]  ;;  %8470 = vmatprep.subr.bf16.mxu1 %v9238_v56 }
 0x284   : > { %v11221_v52 = vadd.f32 %v7989_v7, %v11056_v21  ;;  %4539 = vmatprep.mubr.bf16.mxu0 %v10899_v23  ;;  %v8055_v40 = vpop.f32.mrf.mxu1  ;;  %v12936_v23 = vld [vmem:[#allocation24_spill] sm:$0xff]  ;;  %v9239_v7 = vld [vmem:[%s12854_s5 + $0xd8] sm:$0xff]  }
 0x285   : > { %12934 = vst [vmem:[#allocation12_spill] sm:$0xff] %v11226_v12  ;;  %v7991_v10 = vpop.f32.mrf.mxu0  ;;  %v8056_v61 = vadd.f32 %v8055_v40, %v8054_v36  ;;  %8471 = vmatpush3.bf16.msra.mxu1 %v9239_v7  ;;  %v9470_v7 = vld [vmem:[#allocation2 + $0x300] sm:$0xff] }
 0x286   : > { %v7992_v18 = vadd.f32 %v7991_v10, %v7990_v35  ;;  %v8057_v6 = vpop.f32.mrf.mxu1  ;;  %v9466_v35 = vld [vmem:[#allocation2 + $0x308] sm:$0xff]  ;;  %v3700_v10 = vrot.slane %v9467_v46, 2 }
 0x287   : > { %v7993_v21 = vpop.f32.mrf.mxu0  ;;  %v11236_v29 = vadd.f32 %v8056_v61, %v12936_v23  ;;  %v3699_v36 = vrot.slane %v9466_v35, 2 }
 0x288   : > { %v11233_v20 = vadd.f32 %v7992_v18, %v12935_v38  ;;  %v8058_v30 = vpop.f32.mrf.mxu1  ;;  %v9468_v18 = vld [vmem:[#allocation2 + $0x328] sm:$0x3]  ;;  %v12938_v38 = vld [vmem:[#allocation27_spill] sm:$0xff] }
 0x289   : > { %12937 = vst [vmem:[#allocation20_spill] sm:$0xff] %v11236_v29  ;;  %v7994_v22 = vpop.f32.mrf.mxu0  ;;  %v3704_v4 = vrot.slane %v9468_v18, 2  ;;  %v8059_v40 = vadd.f32 %v8058_v30, %v8057_v6  ;;  %4443 = vmatmul.mubr.bf16.gmra.mxu1 %v11091_v16  ;;  %v9469_v18 = vld [vmem:[#allocation2 + $0x320] sm:$0x3] }
 0x28a   : > { %v7995_v14 = vadd.f32 %v7994_v22, %v7993_v21  ;;  %v8060_v29 = vpop.f32.mrf.mxu1  ;;  %v12939_v21 = vld [vmem:[#allocation26_spill] sm:$0xff]  ;;  %4450 = vmatprep.mubr.bf16.mxu1 %v11096_v39 }
 0x28b   : > { %v7996_v61 = vpop.f32.mrf.mxu0  ;;  %4540 = vmatmul.mubr.bf16.gmra.mxu0 %v10918_v11  ;;  %v11251_v22 = vadd.f32 %v8059_v40, %v12939_v21  ;;  %v3701_v11 = vsel %vm3471_vm3, %v3699_v36, %v3700_v10  ;;  %v3705_v56 = vsel %vm3471_vm3, %v3700_v10, %v3704_v4 }
 0x28c   : > { %v11246_v23 = vadd.f32 %v7995_v14, %v12938_v38  ;;  %4547 = vmatprep.mubr.bf16.mxu0 %v10923_v43  ;;  %v8061_v30 = vpop.f32.mrf.mxu1  ;;  %v3702_v38 = vrot.slane %v9469_v18, 2 }
 0x28d   : > { %12940 = vst [vmem:[#allocation14_spill] sm:$0xff] %v11251_v22  ;;  %v7997_v35 = vpop.f32.mrf.mxu0  ;;  %v8062_v14 = vadd.f32 %v8061_v30, %v8060_v29  ;;  %v11262_v22 = vpack.c.bf16 %v3705_v56, %v3701_v11 }
 0x28e   : > { %v7998_v6 = vadd.f32 %v7997_v35, %v7996_v61  ;;  %v8063_v43 = vpop.f32.mrf.mxu1  ;;  %v3696_v61 = vrot.slane %v9470_v7, 2  ;;  %v9471_v35 = vld [vmem:[#allocation2 + $0x310] sm:$0xff] }
 0x28f   : > { %v7999_v46 = vpop.f32.mrf.mxu0  ;;  %v11260_v40 = vadd.f32 %v8062_v14, %v11094_v37  ;;  %v3697_v36 = vrot.slane %v9471_v35, 2  ;;  %v9242_v7 = vld [vmem:[%s12854_s5 + $0xd0] sm:$0xff]  }
 0x290   : > { %v11257_v12 = vadd.f32 %v7998_v6, %v11099_v25  ;;  %v8064_v10 = vpop.f32.mrf.mxu1 }
 0x291   : > { %v8000_v21 = vpop.f32.mrf.mxu0  ;;  %v8065_v29 = vadd.f32 %v8064_v10, %v8063_v43  ;;  %4451 = vmatmul.mubr.bf16.gmra.mxu1 %v11113_v48  ;;  %v3698_v11 = vsel %vm3471_vm3, %v3696_v61, %v3697_v36  ;;  %v3703_v56 = vsel %vm3471_vm3, %v3697_v36, %v3702_v38 }
 0x292   : > { %v8001_v44 = vadd.f32 %v8000_v21, %v7999_v46  ;;  %v8066_v6 = vpop.f32.mrf.mxu1  ;;  %4458 = vmatprep.mubr.bf16.mxu1 %v11262_v22  ;;  %v11282_v18 = vpack.c.bf16 %v3703_v56, %v3698_v11  ;;  %v9241_v21 = vld [vmem:[%s12854_s5 + $0x110] sm:$0xff]  }
 0x293   : > { %v8002_v4 = vpop.f32.mrf.mxu0  ;;  %4548 = vmatmul.mubr.bf16.gmra.mxu0 %v10941_v13  ;;  %v11271_v37 = vadd.f32 %v8065_v29, %v11103_v24  ;;  %v9240_v13 = vld [vmem:[%s12854_s5 + $0x170] sm:$0xff]   ;;  %8472 = vmatprep.subr.bf16.mxu1 %v9241_v21 }
 0x294   : > { %v11266_v25 = vadd.f32 %v8001_v44, %v11110_v28  ;;  %4555 = vmatprep.mubr.bf16.mxu0 %v10946_v62  ;;  %v8067_v44 = vpop.f32.mrf.mxu1  ;;  %8872 = vmatprep.subr.bf16.mxu0 %v9240_v13 }
 0x295   : > { %12941 = vst [vmem:[#allocation21_spill] sm:$0xff] %v11271_v37  ;;  %v8003_v30 = vpop.f32.mrf.mxu0  ;;  %v8068_v14 = vadd.f32 %v8067_v44, %v8066_v6  ;;  %8873 = vmatpush3.bf16.msra.mxu0 %v9240_v13  ;;  %8473 = vmatpush3.bf16.msra.mxu1 %v9242_v7 }
 0x296   : > { %v8004_v28 = vadd.f32 %v8003_v30, %v8002_v4  ;;  %v8069_v24 = vpop.f32.mrf.mxu1 }
 0x297   : > { %v8005_v46 = vpop.f32.mrf.mxu0  ;;  %v11285_v43 = vadd.f32 %v8068_v14, %v11116_v5 }
 0x298   : > { %v11280_v62 = vadd.f32 %v8004_v28, %v11119_v17  ;;  %v8070_v35 = vpop.f32.mrf.mxu1 }
 0x299   : > { %12942 = vst [vmem:[#allocation16_spill] sm:$0xff] %v11285_v43  ;;  %v8006_v38 = vpop.f32.mrf.mxu0  ;;  %v8071_v17 = vadd.f32 %v8070_v35, %v8069_v24  ;;  %4459 = vmatmul.mubr.bf16.gmra.mxu1 %v11282_v18 }
 0x29a   : > { %v8007_v61 = vadd.f32 %v8006_v38, %v8005_v46  ;;  %v8072_v5 = vpop.f32.mrf.mxu1 }
 0x29b   : > { %v8008_v36 = vpop.f32.mrf.mxu0  ;;  %4556 = vmatmul.mubr.bf16.gmra.mxu0 %v10965_v3  ;;  %v11300_v29 = vadd.f32 %v8071_v17, %v11129_v47 }
 0x29c   : > { %v11295_v10 = vadd.f32 %v8007_v61, %v11134_v33  ;;  %4563 = vmatprep.mubr.bf16.mxu0 %v10970_v1  ;;  %v8073_v30 = vpop.f32.mrf.mxu1 }
 0x29d   : > { %12943 = vst [vmem:[#allocation17_spill] sm:$0xff] %v11300_v29  ;;  %v8009_v4 = vpop.f32.mrf.mxu0  ;;  %v8074_v11 = vadd.f32 %v8073_v30, %v8072_v5 }
 0x29e   : > { %v8010_v6 = vadd.f32 %v8009_v4, %v8008_v36  ;;  %v8075_v13 = vpop.f32.mrf.mxu1 }
 0x29f   : > { %v8011_v56 = vpop.f32.mrf.mxu0  ;;  %v11306_v33 = vadd.f32 %v8074_v11, %v11138_v31  ;;  %v9243_v31 = vld [vmem:[%s12854_s5 + $0x168] sm:$0xff]  }
 0x2a0   : > { %v11303_v3 = vadd.f32 %v8010_v6, %v11141_v27  ;;  %v8076_v14 = vpop.f32.mrf.mxu1  ;;  %8874 = vmatprep.subr.bf16.mxu0 %v9243_v31 }
 0x2a1   : > { %12944 = vst [vmem:[#allocation18_spill] sm:$0xff] %v11306_v33  ;;  %v8012_v28 = vpop.f32.mrf.mxu0  ;;  %v8077_v1 = vadd.f32 %v8076_v14, %v8075_v13  ;;  %8875 = vmatpush3.bf16.msra.mxu0 %v9243_v31 }
 0x2a2   : > { %v8013_v44 = vadd.f32 %v8012_v28, %v8011_v56  ;;  %v8078_v24 = vpop.f32.mrf.mxu1 }
 0x2a3   : > { %v8142_v46 = vpop.f32.mrf.mxu0  ;;  %4564 = vmatmul.mubr.bf16.gmra.mxu0 %v10989_v42  ;;  %v11314_v27 = vadd.f32 %v8077_v1, %v11145_v50 }
 0x2a4   : > { %v11310_v47 = vadd.f32 %v8013_v44, %v11150_v53  ;;  %4571 = vmatprep.mubr.bf16.mxu0 %v10994_v9  ;;  %v8079_v21 = vpop.f32.mrf.mxu1 }
 0x2a5   : > { %12945 = vst [vmem:[#allocation10_spill] sm:$0xff] %v11314_v27  ;;  %v8143_v38 = vpop.f32.mrf.mxu0  ;;  %v8080_v61 = vadd.f32 %v8079_v21, %v8078_v24 }
 0x2a6   : > { %v11319_v7 = vadd.f32 %v8143_v38, %v8142_v46  ;;  %v8081_v42 = vpop.f32.mrf.mxu1 }
 0x2a7   : > { %v8145_v35 = vpop.f32.mrf.mxu0  ;;  %v11322_v53 = vadd.f32 %v8080_v61, %v11154_v34 }
 0x2a8   : > { %v8082_v17 = vpop.f32.mrf.mxu1 }
 0x2a9   : > { %12946 = vst [vmem:[#allocation11_spill] sm:$0xff] %v11322_v53  ;;  %v8146_v9 = vpop.f32.mrf.mxu0  ;;  %v8083_v36 = vadd.f32 %v8082_v17, %v8081_v42 }
 0x2aa   : > { %v11324_v50 = vadd.f32 %v8146_v9, %v8145_v35  ;;  %v8084_v4 = vpop.f32.mrf.mxu1 }
 0x2ab   : > { %v8148_v5 = vpop.f32.mrf.mxu0  ;;  %4572 = vmatmul.mubr.bf16.gmra.mxu0 %v11013_v19  ;;  %v11329_v6 = vadd.f32 %v8083_v36, %v11167_v58  ;;  %v9244_v19 = vld [vmem:[%s12854_s5 + $0x108] sm:$0xff]  }
 0x2ac   : > { %4579 = vmatprep.mubr.bf16.mxu0 %v11018_v55  ;;  %v8085_v11 = vpop.f32.mrf.mxu1  ;;  %v9245_v55 = vld [vmem:[%s12854_s5 + $0xc8] sm:$0xff]   ;;  %8474 = vmatprep.subr.bf16.mxu1 %v9244_v19 }
 0x2ad   : > { %12947 = vst [vmem:[#allocation15_spill] sm:$0xff] %v11329_v6  ;;  %v8149_v30 = vpop.f32.mrf.mxu0  ;;  %v8086_v34 = vadd.f32 %v8085_v11, %v8084_v4  ;;  %8475 = vmatpush3.bf16.msra.mxu1 %v9245_v55 }
 0x2ae   : > { %v11331_v56 = vadd.f32 %v8149_v30, %v8148_v5  ;;  %v8087_v28 = vpop.f32.mrf.mxu1 }
 0x2af   : > { %v8151_v13 = vpop.f32.mrf.mxu0  ;;  %v11334_v44 = vadd.f32 %v8086_v34, %v11176_v8 }
 0x2b0   : > { %v8088_v1 = vpop.f32.mrf.mxu1 }
 0x2b1   : > { %12948 = vst [vmem:[#allocation19_spill] sm:$0xff] %v11334_v44  ;;  %v8152_v14 = vpop.f32.mrf.mxu0  ;;  %v8089_v58 = vadd.f32 %v8088_v1, %v8087_v28 }
 0x2b2   : > { %v11336_v46 = vadd.f32 %v8152_v14, %v8151_v13  ;;  %v8090_v38 = vpop.f32.mrf.mxu1 }
 0x2b3   : > { %v8154_v24 = vpop.f32.mrf.mxu0  ;;  %4580 = vmatmul.mubr.bf16.gmra.mxu0 %v11037_v59  ;;  %v11347_v8 = vadd.f32 %v8089_v58, %v11183_v60 }
 0x2b4   : > { %4587 = vmatprep.mubr.bf16.mxu0 %v11042_v0  ;;  %v8091_v21 = vpop.f32.mrf.mxu1 }
 0x2b5   : > { %12949 = vst [vmem:[#allocation22_spill] sm:$0xff] %v11347_v8  ;;  %v8155_v31 = vpop.f32.mrf.mxu0  ;;  %v8092_v35 = vadd.f32 %v8091_v21, %v8090_v38 }
 0x2b6   : > { %v11349_v61 = vadd.f32 %v8155_v31, %v8154_v24  ;;  %v8093_v9 = vpop.f32.mrf.mxu1  ;;  %v9249_v24 = vld [vmem:[%s12854_s5 + $0x158] sm:$0xff]  }
 0x2b7   : > { %v8157_v42 = vpop.f32.mrf.mxu0  ;;  %v11352_v17 = vadd.f32 %v8092_v35, %v11192_v54  ;;  %v9246_v54 = vld [vmem:[%s12854_s5 + $0x160] sm:$0xff]  }
 0x2b8   : > { %v8094_v59 = vpop.f32.mrf.mxu1  ;;  %8876 = vmatprep.subr.bf16.mxu0 %v9246_v54 }
 0x2b9   : > { %12950 = vst [vmem:[#allocation23_spill] sm:$0xff] %v11352_v17  ;;  %v8158_v36 = vpop.f32.mrf.mxu0  ;;  %v8095_v0 = vadd.f32 %v8094_v59, %v8093_v9  ;;  %8877 = vmatpush3.bf16.msra.mxu0 %v9246_v54  ;;  %v9474_v54 = vld [vmem:[#allocation2 + $0x358] sm:$0x3] }
 0x2ba   : > { %v11354_v5 = vadd.f32 %v8158_v36, %v8157_v42  ;;  %v8096_v60 = vpop.f32.mrf.mxu1  ;;  %8878 = vmatprep.subr.bf16.mxu0 %v9249_v24  ;;  %v9251_v36 = vld [vmem:[%s12854_s5 + $0x150] sm:$0xff]  }
 0x2bb   : > { %v8160_v4 = vpop.f32.mrf.mxu0  ;;  %4588 = vmatmul.mubr.bf16.gmra.mxu0 %v11061_v45  ;;  %v11359_v30 = vadd.f32 %v8095_v0, %v11205_v63  ;;  %v9247_v45 = vld [vmem:[%s12854_s5 + $0x100] sm:$0xff]  }
 0x2bc   : > { %4595 = vmatprep.mubr.bf16.mxu0 %v11066_v51  ;;  %v8097_v34 = vpop.f32.mrf.mxu1  ;;  %v9248_v51 = vld [vmem:[%s12854_s5 + $0xc0] sm:$0xff]   ;;  %8476 = vmatprep.subr.bf16.mxu1 %v9247_v45  ;;  %v9253_v45 = vld [vmem:[%s12854_s5 + $0x148] sm:$0xff]  }
 0x2bd   : > { %12951 = vst [vmem:[#allocation25_spill] sm:$0xff] %v11359_v30  ;;  %v8161_v11 = vpop.f32.mrf.mxu0  ;;  %v8098_v28 = vadd.f32 %v8097_v34, %v8096_v60  ;;  %8477 = vmatpush3.bf16.msra.mxu1 %v9248_v51  ;;  %8879 = vmatpush3.bf16.msra.mxu0 %v9249_v24 }
 0x2be   : > { %v11361_v13 = vadd.f32 %v8161_v11, %v8160_v4  ;;  %v8099_v1 = vpop.f32.mrf.mxu1  ;;  %8880 = vmatprep.subr.bf16.mxu0 %v9251_v36  ;;  %v11397_v11 = vld [vmem:[#allocation2 + $0x18] sm:$0xff] }
 0x2bf   : > { %v8163_v14 = vpop.f32.mrf.mxu0  ;;  %v11373_v63 = vadd.f32 %v8098_v28, %v11214_v57  ;;  %v3714_v34 = vrot.slane %v11397_v11, 2  ;;  %v3718_v28 = vrot.slane %v9474_v54, 2 }
 0x2c0   : > { %v8100_v55 = vpop.f32.mrf.mxu1 }
 0x2c1   : > { %12952 = vst [vmem:[#allocation24_spill] sm:$0xff] %v11373_v63  ;;  %v8164_v19 = vpop.f32.mrf.mxu0  ;;  %v8101_v38 = vadd.f32 %v8100_v55, %v8099_v1  ;;  %8881 = vmatpush3.bf16.msra.mxu0 %v9251_v36 }
 0x2c2   : > { %v11375_v58 = vadd.f32 %v8164_v19, %v8163_v14  ;;  %v8102_v21 = vpop.f32.mrf.mxu1  ;;  %8882 = vmatprep.subr.bf16.mxu0 %v9253_v45 }
 0x2c3   : > { %v8166_v31 = vpop.f32.mrf.mxu0  ;;  %4596 = vmatmul.mubr.bf16.gmra.mxu0 %v11091_v16  ;;  %v11383_v57 = vadd.f32 %v8101_v38, %v11221_v52  ;;  %v9472_v52 = vld [vmem:[#allocation2 + $0x338] sm:$0xff]  ;;  %v3719_v38 = vsel %vm3471_vm3, %v3714_v34, %v3718_v28 }
 0x2c4   : > { %4603 = vmatprep.mubr.bf16.mxu0 %v11096_v39  ;;  %v8103_v42 = vpop.f32.mrf.mxu1  ;;  %v3713_v60 = vrot.slane %v9472_v52, 2 }
 0x2c5   : > { %12953 = vst [vmem:[#allocation27_spill] sm:$0xff] %v11383_v57  ;;  %v8167_v35 = vpop.f32.mrf.mxu0  ;;  %v8104_v59 = vadd.f32 %v8103_v42, %v8102_v21  ;;  %8883 = vmatpush3.bf16.msra.mxu0 %v9253_v45 }
 0x2c6   : > { %v11385_v9 = vadd.f32 %v8167_v35, %v8166_v31  ;;  %v8105_v16 = vpop.f32.mrf.mxu1  ;;  %v3715_v24 = vsel %vm3471_vm3, %v3713_v60, %v3714_v34 }
 0x2c7   : > { %v11390_v0 = vpop.f32.mrf.mxu0  ;;  %v11393_v39 = vadd.f32 %v8104_v59, %v11233_v20  ;;  %v3759_v59 = vpack.c.bf16 %v3719_v38, %v3715_v24 }
 0x2c8   : > { %v8106_v14 = vpop.f32.mrf.mxu1 }
 0x2c9   : > { %12954 = vst [vmem:[#allocation26_spill] sm:$0xff] %v11393_v39  ;;  %v11395_v4 = vpop.f32.mrf.mxu0  ;;  %v8107_v1 = vadd.f32 %v8106_v14, %v8105_v16  ;;  %v9476_v16 = vld [vmem:[#allocation2 + $0x330] sm:$0xff]  ;;  %v9250_v14 = vld [vmem:[%s12854_s5 + $0x78] sm:$0xff]  }
 0x2ca   : > { %v8108_v20 = vpop.f32.mrf.mxu1  ;;  %v3710_v52 = vrot.slane %v9476_v16, 2  ;;  %8598 = vmatprep.subr.bf16.mxu1 %v9250_v14 }
 0x2cb   : > { %v8172_v51 = vpop.f32.mrf.mxu0  ;;  %4604 = vmatmul.mubr.bf16.gmra.mxu0 %v11113_v48  ;;  %v11406_v19 = vadd.f32 %v8107_v1, %v11246_v23  ;;  %v9254_v48 = vld [vmem:[%s12854_s5 + $0x140] sm:$0xff]  }
 0x2cc   : > { %4611 = vmatprep.mubr.bf16.mxu0 %v11262_v22  ;;  %v8109_v31 = vpop.f32.mrf.mxu1  ;;  %v9475_v22 = vld [vmem:[#allocation2 + $0x350] sm:$0x3]  ;;  %8884 = vmatprep.subr.bf16.mxu0 %v9254_v48 }
 0x2cd   : > { %12955 = vst [vmem:[#allocation28_spill] sm:$0xff] %v11406_v19  ;;  %v8173_v55 = vpop.f32.mrf.mxu0  ;;  %v8110_v35 = vadd.f32 %v8109_v31, %v8108_v20  ;;  %v3716_v36 = vrot.slane %v9475_v22, 2  ;;  %8885 = vmatpush3.bf16.msra.mxu0 %v9254_v48  ;;  %v3712_v20 = vsel %vm3471_vm3, %v3710_v52, %v3714_v34 }
 0x2ce   : > { %v11410_v21 = vadd.f32 %v8173_v55, %v8172_v51  ;;  %v8111_v23 = vpop.f32.mrf.mxu1 }
 0x2cf   : > { %v11415_v42 = vpop.f32.mrf.mxu0  ;;  %v11418_v60 = vadd.f32 %v8110_v35, %v11257_v12  ;;  %v3717_v55 = vsel %vm3471_vm3, %v3714_v34, %v3716_v36 }
 0x2d0   : > { %v8112_v28 = vpop.f32.mrf.mxu1  ;;  %v3758_v22 = vpack.c.bf16 %v3717_v55, %v3712_v20 }
 0x2d1   : > { %12956 = vst [vmem:[#allocation29_spill] sm:$0xff] %v11418_v60  ;;  %v11420_v54 = vpop.f32.mrf.mxu0  ;;  %v8113_v45 = vadd.f32 %v8112_v28, %v8111_v23 }
 0x2d2   : > { %v8114_v51 = vpop.f32.mrf.mxu1 }
 0x2d3   : > { %v8178_v1 = vpop.f32.mrf.mxu0  ;;  %4612 = vmatmul.mubr.bf16.gmra.mxu0 %v11282_v18  ;;  %v11429_v12 = vadd.f32 %v8113_v45, %v11266_v25 }
 0x2d4   : > { %4619 = vmatprep.mubr.bf16.mxu0 %v3759_v59  ;;  %v8115_v38 = vpop.f32.mrf.mxu1 }
 0x2d5   : > { %12957 = vst [vmem:[#allocation30_spill] sm:$0xff] %v11429_v12  ;;  %v8179_v24 = vpop.f32.mrf.mxu0  ;;  %v8116_v48 = vadd.f32 %v8115_v38, %v8114_v51 }
 0x2d6   : > { %v11431_v31 = vadd.f32 %v8179_v24, %v8178_v1  ;;  %v8117_v23 = vpop.f32.mrf.mxu1 }
 0x2d7   : > { %v11433_v35 = vpop.f32.mrf.mxu0  ;;  %v11436_v18 = vadd.f32 %v8116_v48, %v11280_v62 }
 0x2d8   : > { %12958 = vst [vmem:[#allocation31_spill] sm:$0xff] %v11431_v31  ;;  %v8118_v16 = vpop.f32.mrf.mxu1 }
 0x2d9   : > { %12959 = vst [vmem:[#allocation32_spill] sm:$0xff] %v11436_v18  ;;  %v11438_v59 = vpop.f32.mrf.mxu0  ;;  %v8119_v34 = vadd.f32 %v8118_v16, %v8117_v23 }
 0x2da   : > { %v8120_v25 = vpop.f32.mrf.mxu1 }
 0x2db   : > { %v8184_v36 = vpop.f32.mrf.mxu0  ;;  %4620 = vmatmul.mubr.bf16.gmra.mxu0 %v3758_v22  ;;  %v11441_v52 = vadd.f32 %v8119_v34, %v11295_v10 }
 0x2dc   : > { %v8121_v14 = vpop.f32.mrf.mxu1 }
 0x2dd   : > { %12960 = vst [vmem:[#allocation33_spill] sm:$0xff] %v11441_v52  ;;  %v8185_v28 = vpop.f32.mrf.mxu0  ;;  %v8122_v1 = vadd.f32 %v8121_v14, %v8120_v25 }
 0x2de   : > { %v11443_v45 = vadd.f32 %v8185_v28, %v8184_v36  ;;  %v8123_v20 = vpop.f32.mrf.mxu1 }
 0x2df   : > { %v11445_v51 = vpop.f32.mrf.mxu0  ;;  %v11448_v62 = vadd.f32 %v8122_v1, %v11303_v3 }
 0x2e0   : > { %12961 = vst [vmem:[#allocation34_spill] sm:$0xff] %v11443_v45  ;;  %12962 = vst [vmem:[#allocation35_spill] sm:$0xff] %v11445_v51  ;;  %v8124_v24 = vpop.f32.mrf.mxu1 }
 0x2e1   : > { %12963 = vst [vmem:[#allocation36_spill] sm:$0xff] %v11448_v62  ;;  %v11450_v55 = vpop.f32.mrf.mxu0  ;;  %v8125_v38 = vadd.f32 %v8124_v24, %v8123_v20 }
 0x2e2   : > { %12964 = vst [vmem:[#allocation37_spill] sm:$0xff] %v11450_v55  ;;  %v11452_v22 = vpop.f32.mrf.mxu1 }
 0x2e3   : > { %v8190_v48 = vpop.f32.mrf.mxu0  ;;  %v11455_v10 = vadd.f32 %v8125_v38, %v11310_v47 }
 0x2e4   : > { %v11459_v34 = vpop.f32.mrf.mxu1 }
 0x2e5   : > { %12965 = vst [vmem:[#allocation38_spill] sm:$0xff] %v11455_v10  ;;  %v8191_v23 = vpop.f32.mrf.mxu0 }
 0x2e6   : > { %v11457_v16 = vadd.f32 %v8191_v23, %v8190_v48  ;;  %v11463_v25 = vpop.f32.mrf.mxu1 }
 0x2e7   : > { %v11461_v36 = vpop.f32.mrf.mxu0 }
 0x2e8   : > { %12966 = vst [vmem:[#allocation39_spill] sm:$0xff] %v11457_v16  ;;  %12967 = vst [vmem:[#allocation40_spill] sm:$0xff] %v11461_v36  ;;  %v11467_v28 = vpop.f32.mrf.mxu1 }
 0x2e9   : > { %v11465_v3 = vpop.f32.mrf.mxu0 }
 0x2ea   : > { %12968 = vst [vmem:[#allocation41_spill] sm:$0xff] %v11465_v3  ;;  %v11469_v1 = vpop.f32.mrf.mxu1 }
 0x2eb   : > { %v8196_v14 = vpop.f32.mrf.mxu0 }
 0x2ec   : > { %v11473_v47 = vpop.f32.mrf.mxu1 }
 0x2ed   : > { %v8197_v20 = vpop.f32.mrf.mxu0 }
 0x2ee   : > { %v11471_v24 = vadd.f32 %v8197_v20, %v8196_v14  ;;  %v11477_v48 = vpop.f32.mrf.mxu1 }
 0x2ef   : > { %v11475_v38 = vpop.f32.mrf.mxu0 }
 0x2f0   : > { %12969 = vst [vmem:[#allocation42_spill] sm:$0xff] %v11471_v24  ;;  %12970 = vst [vmem:[#allocation43_spill] sm:$0xff] %v11475_v38  ;;  %v11481_v10 = vpop.f32.mrf.mxu1 }
 0x2f1   : > { %v11479_v23 = vpop.f32.mrf.mxu0 }
 0x2f2   : > { %12971 = vst [vmem:[#allocation44_spill] sm:$0xff] %v11479_v23  ;;  %v11483_v52 = vpop.f32.mrf.mxu1 }
 0x2f3   : > { %v8202_v62 = vpop.f32.mrf.mxu0 }
 0x2f4   : > { %v11487_v60 = vpop.f32.mrf.mxu1 }
 0x2f5   : > { %v8203_v18 = vpop.f32.mrf.mxu0 }
 0x2f6   : > { %v11485_v12 = vadd.f32 %v8203_v18, %v8202_v62  ;;  %v11491_v20 = vpop.f32.mrf.mxu1 }
 0x2f7   : > { %v11489_v14 = vpop.f32.mrf.mxu0 }
 0x2f8   : > { %12972 = vst [vmem:[#allocation45_spill] sm:$0xff] %v11485_v12  ;;  %12973 = vst [vmem:[#allocation46_spill] sm:$0xff] %v11489_v14  ;;  %v11495_v39 = vpop.f32.mrf.mxu1 }
 0x2f9   : > { %v11493_v19 = vpop.f32.mrf.mxu0 }
 0x2fa   : > { %12974 = vst [vmem:[#allocation47_spill] sm:$0xff] %v11493_v19  ;;  %v11497_v63 = vpop.f32.mrf.mxu1 }
 0x2fb   : > { %v8208_v57 = vpop.f32.mrf.mxu0 }
 0x2fc   : > { %v11501_v8 = vpop.f32.mrf.mxu1 }
 0x2fd   : > { %v8209_v30 = vpop.f32.mrf.mxu0 }
 0x2fe   : > { %v11499_v17 = vadd.f32 %v8209_v30, %v8208_v57  ;;  %v11505_v62 = vpop.f32.mrf.mxu1 }
 0x2ff   : > { %v11503_v18 = vpop.f32.mrf.mxu0 }
 0x300   : > { %12975 = vst [vmem:[#allocation48_spill] sm:$0xff] %v11499_v17  ;;  %12976 = vst [vmem:[#allocation49_spill] sm:$0xff] %v11503_v18  ;;  %v11509_v14 = vpop.f32.mrf.mxu1 }
 0x301   : > { %v11507_v12 = vpop.f32.mrf.mxu0 }
 0x302   : > { %12977 = vst [vmem:[#allocation50_spill] sm:$0xff] %v11507_v12  ;;  %v11511_v19 = vpop.f32.mrf.mxu1 }
 0x303   : > { %v8214_v44 = vpop.f32.mrf.mxu0 }
 0x304   : > { %v11515_v23 = vpop.f32.mrf.mxu1 }
 0x305   : > { %v8215_v6 = vpop.f32.mrf.mxu0 }
 0x306   : > { %v11513_v24 = vadd.f32 %v8215_v6, %v8214_v44  ;;  %v11519_v57 = vpop.f32.mrf.mxu1  ;;  %v11534_v6 = vld [vmem:[%s12854_s5 + $0xb8] sm:$0xff]  }
 0x307   : > { %v11517_v30 = vpop.f32.mrf.mxu0  ;;  %12982 = vst [vmem:[#allocation55_spill] sm:$0xff] %v11534_v6  ;;  %8918 = vmatprep.subr.bf16.mxu0 %v11534_v6 }
 0x308   : > { %12978 = vst [vmem:[#allocation51_spill] sm:$0xff] %v11513_v24  ;;  %12979 = vst [vmem:[#allocation52_spill] sm:$0xff] %v11517_v30  ;;  %v11523_v18 = vpop.f32.mrf.mxu1 }
 0x309   : > { %v11521_v17 = vpop.f32.mrf.mxu0 }
 0x30a   : > { %12980 = vst [vmem:[#allocation53_spill] sm:$0xff] %v11521_v17  ;;  %v11525_v12 = vpop.f32.mrf.mxu1 }
 0x30b   : > { %v8220_v38 = vpop.f32.mrf.mxu0 }
 0x30c   : > { %v11529_v16 = vpop.f32.mrf.mxu1 }
 0x30d   : > { %v8221_v53 = vpop.f32.mrf.mxu0 }
 0x30e   : > { %v11527_v27 = vadd.f32 %v8221_v53, %v8220_v38  ;;  %v11538_v24 = vpop.f32.mrf.mxu1 }
 0x30f   : > { %v11536_v44 = vpop.f32.mrf.mxu0 }
 0x310   : > { %12981 = vst [vmem:[#allocation54_spill] sm:$0xff] %v11527_v27  ;;  %12983 = vst [vmem:[#allocation56_spill] sm:$0xff] %v11536_v44  ;;  %v11543_v30 = vpop.f32.mrf.mxu1 }
 0x311   : > { %v11541_v17 = vpop.f32.mrf.mxu0 }
 0x312   : > { %12984 = vst [vmem:[#allocation57_spill] sm:$0xff] %v11541_v17  ;;  %v11545_v53 = vpop.f32.mrf.mxu1 }
 0x313   : > { %v8226_v3 = vpop.f32.mrf.mxu0 }
 0x314   : > { %v11549_v36 = vpop.f32.mrf.mxu1 }
 0x315   : > { %v8227_v38 = vpop.f32.mrf.mxu0 }
 0x316   : > { %v11547_v27 = vadd.f32 %v8227_v38, %v8226_v3  ;;  %v11553_v29 = vpop.f32.mrf.mxu1 }
 0x317   : > { %v11551_v33 = vpop.f32.mrf.mxu0 }
 0x318   : > { %12985 = vst [vmem:[#allocation58_spill] sm:$0xff] %v11547_v27  ;;  %12986 = vst [vmem:[#allocation59_spill] sm:$0xff] %v11551_v33  ;;  %v11557_v45 = vpop.f32.mrf.mxu1  ;;  %v8256_v33 = vadd.f32 %v11459_v34, %v11452_v22  ;;  %v8262_v22 = vadd.f32 %v11473_v47, %v11469_v1  ;;  %v11589_v34 = vld [vmem:[%s12852_s3] ss:$0 sm:$0xff] }
 0x319   : > { %v11555_v44 = vpop.f32.mrf.mxu0 }
 0x31a   : > { %12987 = vst [vmem:[#allocation60_spill] sm:$0xff] %v11555_v44  ;;  %v11559_v17 = vpop.f32.mrf.mxu1 }
 0x31b   : > { %v8232_v55 = vpop.f32.mrf.mxu0  ;;  %12988 = vst [vmem:[#allocation61_spill] sm:$0xff] %v11559_v17 }
 0x31c   : > { %v11563_v37 = vpop.f32.mrf.mxu1 }
 0x31d   : > { %v8233_v51 = vpop.f32.mrf.mxu0  ;;  %12990 = vst [vmem:[#allocation63_spill] sm:$0xff] %v11563_v37 }
 0x31e   : > { %v11561_v43 = vadd.f32 %v8233_v51, %v8232_v55  ;;  %v11567_v38 = vpop.f32.mrf.mxu1  ;;  %v4341_v51 = vadd.f32 %v8256_v33, %v11319_v7  ;;  %v8259_v55 = vadd.f32 %v11467_v28, %v11463_v25  ;;  %v11598_v28 = vld [vmem:[%s12853_s4] ss:$0 sm:$0xff] }
 0x31f   : > { %v11565_v3 = vpop.f32.mrf.mxu0  ;;  %12992 = vst [vmem:[#allocation65_spill] sm:$0xff] %v11567_v38 }
 0x320   : > { %12989 = vst [vmem:[#allocation62_spill] sm:$0xff] %v11561_v43  ;;  %12991 = vst [vmem:[#allocation64_spill] sm:$0xff] %v11565_v3  ;;  %v11573_v44 = vpop.f32.mrf.mxu1  ;;  %v4344_v33 = vadd.f32 %v8259_v55, %v11324_v50  ;;  %v8265_v50 = vadd.f32 %v11481_v10, %v11477_v48 }
 0x321   : > { %v11569_v27 = vpop.f32.mrf.mxu0 }
 0x322   : > { %12993 = vst [vmem:[#allocation66_spill] sm:$0xff] %v11569_v27  ;;  %v11575_v31 = vpop.f32.mrf.mxu1 }
 0x323   : > { %v8366_v6 = vpop.f32.mrf.mxu0  ;;  %12994 = vst [vmem:[#allocation67_spill] sm:$0xff] %v11575_v31 }
 0x324   : > { %v11580_v43 = vpop.f32.mrf.mxu1 }
 0x325   : > { %v8367_v17 = vpop.f32.mrf.mxu0  ;;  %12995 = vst [vmem:[#allocation68_spill] sm:$0xff] %v11580_v43 }
 0x326   : > { %v8368_v3 = vadd.f32 %v8367_v17, %v8366_v6  ;;  %v11582_v27 = vpop.f32.mrf.mxu1 }
 0x327   : > { %v8369_v38 = vpop.f32.mrf.mxu0  ;;  %12996 = vst [vmem:[#allocation69_spill] sm:$0xff] %v11582_v27 }
 0x328   : > { %v4502_v37 = vadd.f32 %v8368_v3, %v4341_v51  ;;  %v11593_v25 = vpop.f32.mrf.mxu1  ;;  %v4349_v3 = vadd.f32 %v8262_v22, %v11331_v56  ;;  %v4352_v22 = vadd.f32 %v8265_v50, %v11336_v46  ;;  %v4972_v46 = vrot.slane %v11397_v11, 1 }
 0x329   : > { %v8370_v31 = vpop.f32.mrf.mxu0  ;;  %12997 = vst [vmem:[#allocation70_spill] sm:$0xff] %v11593_v25  ;;  %v8274_v11 = vadd.f32 %v11501_v8, %v11497_v63 }
 0x32a   : > { %v4628_v7 = vadd.f32 %v4502_v37, %v11157_v49  ;;  %v8371_v17 = vadd.f32 %v8370_v31, %v8369_v38  ;;  %v11606_v31 = vpop.f32.mrf.mxu1 }
 0x32b   : > { %v8372_v6 = vpop.f32.mrf.mxu0 }
 0x32c   : > { %v4660_v1 = vmul.f32 %v11589_v34, %v4628_v7  ;;  %v4505_v47 = vadd.f32 %v8371_v17, %v4344_v33  ;;  %v8268_v33 = vadd.f32 %v11487_v60, %v11483_v52  ;;  %v11613_v48 = vpop.f32.mrf.mxu1  ;;  %v4803_v17 = vld [vmem:[#allocation3] sm:$0xff] }
 0x32d   : > { %v8373_v51 = vpop.f32.mrf.mxu0 }
 0x32e   : > { %v4692_v49 = vadd.f32 %v11598_v28, %v4660_v1  ;;  %v4629_v37 = vadd.f32 %v4505_v47, %v11172_v15  ;;  %v8374_v38 = vadd.f32 %v8373_v51, %v8372_v6  ;;  %v4805_v6 = vld [vmem:[#allocation3 + $0x10] sm:$0x3]  ;;  %v4357_v60 = vadd.f32 %v8268_v33, %v11349_v61 }
 0x32f   : > { %v8375_v55 = vpop.f32.mrf.mxu0 }
 0x330   : > { %v4724_v25 = vmax.f32 %v4692_v49, 0.0  ;;  %v4661_v27 = vmul.f32 %v11589_v34, %v4629_v37  ;;  %v4510_v43 = vadd.f32 %v8374_v38, %v4349_v3  ;;  %v4971_v49 = vrot.slane %v4803_v17, 1 }
 0x331   : > { %v8376_v56 = vpop.f32.mrf.mxu0 }
 0x332   : > { %4757 = vst [vmem:[#allocation3 + $0x19] sm:$0xff] %v4724_v25  ;;  %v4693_v10 = vadd.f32 %v11598_v28, %v4661_v27  ;;  %v4630_v15 = vadd.f32 %v4510_v43, %v11179_v32  ;;  %v8377_v7 = vadd.f32 %v8376_v56, %v8375_v55  ;;  %v4974_v25 = vrot.slane %v4805_v6, 1  ;;  %v11622_v43 = vpop.f32.mrf.mxu1 }
 0x333   : > { %v8378_v1 = vpop.f32.mrf.mxu0  ;;  %v8271_v27 = vadd.f32 %v11495_v39, %v11491_v20  ;;  %v8277_v56 = vadd.f32 %v11509_v14, %v11505_v62  ;;  %v4973_v20 = vsel %vm1531_vm1, %v4971_v49, %v4972_v46 }
 0x334   : > { %v4725_v47 = vmax.f32 %v4693_v10, 0.0  ;;  %v4662_v3 = vmul.f32 %v11589_v34, %v4630_v15  ;;  %v4513_v51 = vadd.f32 %v8377_v7, %v4352_v22  ;;  %v4975_v22 = vsel %vm1531_vm1, %v4972_v46, %v4974_v25 }
 0x335   : > { %v8379_v52 = vpop.f32.mrf.mxu0  ;;  %v4360_v10 = vadd.f32 %v8271_v27, %v11354_v5 }
 0x336   : > { %4758 = vst [vmem:[#allocation3 + $0x21] sm:$0xff] %v4725_v47  ;;  %v4694_v32 = vadd.f32 %v11598_v28, %v4662_v3  ;;  %v4631_v50 = vadd.f32 %v4513_v51, %v11188_v26  ;;  %v8380_v37 = vadd.f32 %v8379_v52, %v8378_v1  ;;  %v11633_v26 = vpop.f32.mrf.mxu1  ;;  %v4365_v1 = vadd.f32 %v8274_v11, %v11361_v13 }
 0x337   : > { %v8381_v38 = vpop.f32.mrf.mxu0  ;;  %v4368_v47 = vadd.f32 %v8277_v56, %v11375_v58  ;;  %v5103_v52 = vpack.c.bf16 %v4975_v22, %v4973_v20  ;;  %v8283_v13 = vadd.f32 %v11523_v18, %v11519_v57  ;;  %v12998_v18 = vld [vmem:[#allocation13_spill] sm:$0xff] }
 0x338   : > { %v4726_v55 = vmax.f32 %v4694_v32, 0.0  ;;  %v4663_v61 = vmul.f32 %v11589_v34, %v4631_v50  ;;  %v4518_v33 = vadd.f32 %v8380_v37, %v4357_v60  ;;  %v11640_v49 = vpop.f32.mrf.mxu1  ;;  %v8280_v32 = vadd.f32 %v11515_v23, %v11511_v19 }
 0x339   : > { %v8382_v39 = vpop.f32.mrf.mxu0  ;;  %v4806_v6 = vld [vmem:[#allocation3 + $0x18] sm:$0xff] }
 0x33a   : > { %4759 = vst [vmem:[#allocation3 + $0x31] sm:$0xff] %v4726_v55  ;;  %v4695_v15 = vadd.f32 %v11598_v28, %v4663_v61  ;;  %v4632_v7 = vadd.f32 %v4518_v33, %v11195_v2  ;;  %v8383_v17 = vadd.f32 %v8382_v39, %v8381_v38  ;;  %v4976_v60 = vrot.slane %v4806_v6, 1  ;;  %v11653_v19 = vpop.f32.mrf.mxu1 }
 0x33b   : > { %v8384_v8 = vpop.f32.mrf.mxu0  ;;  %v6107_v56 = vrot.slane %v4806_v6, 2 }
 0x33c   : > { %v4727_v63 = vmax.f32 %v4695_v15, 0.0  ;;  %v4664_v14 = vmul.f32 %v11589_v34, %v4632_v7  ;;  %v4521_v62 = vadd.f32 %v8383_v17, %v4360_v10  ;;  %v9252_v15 = vld [vmem:[%s12854_s5 + $0x38] sm:$0xff]   ;;  %v8171_v17 = vadd.f32 %v11395_v4, %v11390_v0 }
 0x33d   : > { %v8385_v3 = vpop.f32.mrf.mxu0  ;;  %v4807_v5 = vld [vmem:[#allocation3 + $0x20] sm:$0xff]  ;;  %v4808_v51 = vld [vmem:[#allocation3 + $0x28] sm:$0x3]  ;;  %v8286_v4 = vadd.f32 %v11529_v16, %v11525_v12 }
 0x33e   : > { %4760 = vst [vmem:[#allocation3 + $0x39] sm:$0xff] %v4727_v63  ;;  %v4696_v2 = vadd.f32 %v11598_v28, %v4664_v14  ;;  %v4633_v46 = vadd.f32 %v4521_v62, %v11210_v41  ;;  %v8386_v25 = vadd.f32 %v8385_v3, %v8384_v8  ;;  %v4977_v27 = vrot.slane %v4807_v5, 1  ;;  %v9255_v8 = vld [vmem:[%s12854_s5 + $0x70] sm:$0xff]  }
 0x33f   : > { %v8387_v58 = vpop.f32.mrf.mxu0  ;;  %v4979_v50 = vrot.slane %v4808_v51, 1  ;;  %v11648_v37 = vpack.c.bf16 %v4807_v5, %v4806_v6  ;;  %v6108_v39 = vrot.slane %v4807_v5, 2  ;;  %v6110_v20 = vrot.slane %v4808_v51, 2 }
 0x340   : > { %v4728_v38 = vmax.f32 %v4696_v2, 0.0  ;;  %v4665_v55 = vmul.f32 %v11589_v34, %v4633_v46  ;;  %v4526_v61 = vadd.f32 %v8386_v25, %v4365_v1  ;;  %v4978_v33 = vsel %vm1531_vm1, %v4976_v60, %v4977_v27 }
 0x341   : > { %v8388_v11 = vpop.f32.mrf.mxu0  ;;  %v4980_v41 = vsel %vm1531_vm1, %v4977_v27, %v4979_v50  ;;  %v4809_v7 = vld [vmem:[#allocation3 + $0x30] sm:$0xff]  ;;  %v6109_v63 = vsel %vm3471_vm3, %v6107_v56, %v6108_v39  ;;  %v6111_v14 = vsel %vm3471_vm3, %v6108_v39, %v6110_v20  ;;  %v4373_v51 = vadd.f32 %v8280_v32, %v11385_v9  ;;  %v11676_v27 = vpop.f32.mrf.mxu1 }
 0x342   : > { %4761 = vst [vmem:[#allocation3 + $0x49] sm:$0xff] %v4728_v38  ;;  %v4697_v23 = vadd.f32 %v11598_v28, %v4665_v55  ;;  %v4634_v57 = vadd.f32 %v4526_v61, %v12998_v18  ;;  %v8389_v22 = vadd.f32 %v8388_v11, %v8387_v58  ;;  %v11657_v10 = vpack.c.bf16 %v4980_v41, %v4978_v33  ;;  %v12999_v58 = vld [vmem:[#allocation12_spill] sm:$0xff]  ;;  %v9256_v9 = vld [vmem:[%s12854_s5 + $0x30] sm:$0xff]  }
 0x343   : > { %v8390_v6 = vpop.f32.mrf.mxu0  ;;  %v11671_v5 = vpack.c.bf16 %v6111_v14, %v6109_v63  ;;  %v4376_v0 = vadd.f32 %v8283_v13, %v8171_v17  ;;  %v4981_v25 = vrot.slane %v4809_v7, 1  ;;  %v6112_v13 = vrot.slane %v4809_v7, 2 }
 0x344   : > { %v4729_v62 = vmax.f32 %v4697_v23, 0.0  ;;  %v4666_v1 = vmul.f32 %v11589_v34, %v4634_v57  ;;  %v4529_v3 = vadd.f32 %v8389_v22, %v4368_v47  ;;  %5346 = vmatprep.mubr.bf16.mxu1 %v11657_v10  ;;  %v8289_v39 = vadd.f32 %v11543_v30, %v11538_v24  ;;  %v11694_v22 = vpop.f32.mrf.mxu1  ;;  %v9258_v24 = vld [vmem:[%s12854_s5 + $0x28] sm:$0xff]  }
 0x345   : > { %5347 = vmatmul.mubr.bf16.vlgmr.msra.gmra.mxu1 %v5103_v52  ;;  %v8391_v60 = vpop.f32.mrf.mxu0  ;;  %v4810_v2 = vld [vmem:[#allocation3 + $0x38] sm:$0xff]  ;;  %v4811_v46 = vld [vmem:[#allocation3 + $0x40] sm:$0x3]  ;;  %v9257_v52 = vld [vmem:[%s12854_s5 + $0x68] sm:$0xff]   ;;  %v8177_v30 = vadd.f32 %v11420_v54, %v11415_v42  ;;  %v4381_v42 = vadd.f32 %v8286_v4, %v11410_v21 }
 0x346   : > { %4762 = vst [vmem:[#allocation3 + $0x51] sm:$0xff] %v4729_v62  ;;  %v4698_v47 = vadd.f32 %v11598_v28, %v4666_v1  ;;  %v4635_v50 = vadd.f32 %v4529_v3, %v12999_v58  ;;  %v8392_v38 = vadd.f32 %v8391_v60, %v8390_v6  ;;  %8599 = vmatpush3.bf16.msra.mxu1 %v9252_v15  ;;  %v4982_v55 = vrot.slane %v4810_v2, 1  ;;  %v9259_v62 = vld [vmem:[%s12854_s5 + $0x60] sm:$0xff]   ;;  %v9262_v4 = vld [vmem:[%s12854_s5 + $0x58] sm:$0xff]  }
 0x347   : > { %v8393_v12 = vpop.f32.mrf.mxu0  ;;  %v4984_v16 = vrot.slane %v4811_v46, 1  ;;  %8600 = vmatprep.subr.bf16.mxu1 %v9255_v8  ;;  %v11686_v32 = vpack.c.bf16 %v4810_v2, %v4809_v7  ;;  %v6113_v61 = vrot.slane %v4810_v2, 2  ;;  %v6115_v57 = vrot.slane %v4811_v46, 2  ;;  %v13000_v7 = vld [vmem:[#allocation20_spill] sm:$0xff] }
 0x348   : > { %v4730_v33 = vmax.f32 %v4698_v47, 0.0  ;;  %v4667_v11 = vmul.f32 %v11589_v34, %v4635_v50  ;;  %v4534_v41 = vadd.f32 %v8392_v38, %v4373_v51  ;;  %v4983_v56 = vsel %vm1531_vm1, %v4981_v25, %v4982_v55  ;;  %v11718_v38 = vpop.f32.mrf.mxu1  ;;  %v9260_v21 = vld [vmem:[%s12854_s5 + $0x20] sm:$0xff]  }
 0x349   : > { %v8394_v20 = vpop.f32.mrf.mxu0  ;;  %v4985_v23 = vsel %vm1531_vm1, %v4982_v55, %v4984_v16  ;;  %v6114_v18 = vsel %vm3471_vm3, %v6112_v13, %v6113_v61  ;;  %v4812_v63 = vld [vmem:[#allocation3 + $0x48] sm:$0xff]  ;;  %v6116_v1 = vsel %vm3471_vm3, %v6113_v61, %v6115_v57  ;;  %v4384_v54 = vadd.f32 %v8289_v39, %v8177_v30  ;;  %v13001_v55 = vld [vmem:[#allocation14_spill] sm:$0xff] }
 0x34a   : > { %4763 = vst [vmem:[#allocation3 + $0x61] sm:$0xff] %v4730_v33  ;;  %v4699_v15 = vadd.f32 %v11598_v28, %v4667_v11  ;;  %v4636_v17 = vadd.f32 %v4534_v41, %v13000_v7  ;;  %v8395_v6 = vadd.f32 %v8394_v20, %v8393_v12  ;;  %v11698_v8 = vpack.c.bf16 %v4985_v23, %v4983_v56  ;;  %v11736_v57 = vpop.f32.mrf.mxu1 }
 0x34b   : > { %8601 = vmatpush3.bf16.msra.mxu1 %v9256_v9  ;;  %v8396_v14 = vpop.f32.mrf.mxu0  ;;  %v11712_v2 = vpack.c.bf16 %v6116_v1, %v6114_v18  ;;  %v8292_v46 = vadd.f32 %v11549_v36, %v11545_v53  ;;  %v4986_v50 = vrot.slane %v4812_v63, 1  ;;  %v8295_v56 = vadd.f32 %v11557_v45, %v11553_v29  ;;  %v9263_v29 = vld [vmem:[%s12854_s5 + $0x18] sm:$0xff]   ;;  %v9264_v45 = vld [vmem:[%s12854_s5 + $0xb0] sm:$0xff]  }
 0x34c   : > { %8602 = vmatprep.subr.bf16.mxu1 %v9257_v52  ;;  %v4731_v3 = vmax.f32 %v4699_v15, 0.0  ;;  %v4668_v51 = vmul.f32 %v11589_v34, %v4636_v17  ;;  %v4537_v60 = vadd.f32 %v8395_v6, %v4376_v0  ;;  %5354 = vmatprep.mubr.bf16.mxu1 %v11698_v8  ;;  %v6117_v52 = vrot.slane %v4812_v63, 2 }
 0x34d   : > { %8886 = vmatprep.mubr.bf16.mxu0 %v11698_v8  ;;  %5355 = vmatmul.mubr.bf16.gmra.mxu1 %v11657_v10  ;;  %v8397_v25 = vpop.f32.mrf.mxu0  ;;  %v4813_v47 = vld [vmem:[#allocation3 + $0x50] sm:$0xff]  ;;  %v4814_v58 = vld [vmem:[#allocation3 + $0x58] sm:$0x3] }
 0x34e   : > { %4764 = vst [vmem:[#allocation3 + $0x69] sm:$0xff] %v4731_v3  ;;  %v4700_v0 = vadd.f32 %v11598_v28, %v4668_v51  ;;  %v4637_v9 = vadd.f32 %v4537_v60, %v13001_v55  ;;  %v8398_v12 = vadd.f32 %v8397_v25, %v8396_v14  ;;  %v11722_v16 = vpack.c.bf16 %v4813_v47, %v4812_v63  ;;  %v13002_v60 = vld [vmem:[#allocation31_spill] sm:$0xff] }
 0x34f   : > { %8603 = vmatpush3.bf16.msra.mxu1 %v9258_v24  ;;  %v8399_v36 = vpop.f32.mrf.mxu0  ;;  %v4987_v53 = vrot.slane %v4813_v47, 1  ;;  %v4989_v10 = vrot.slane %v4814_v58, 1  ;;  %v6118_v13 = vrot.slane %v4813_v47, 2  ;;  %v6120_v41 = vrot.slane %v4814_v58, 2  ;;  %v13004_v25 = vld [vmem:[#allocation63_spill] sm:$0xff] }
 0x350   : > { %8604 = vmatprep.subr.bf16.mxu1 %v9259_v62  ;;  %v4732_v61 = vmax.f32 %v4700_v0, 0.0  ;;  %v4669_v33 = vmul.f32 %v11589_v34, %v4637_v9  ;;  %v4542_v11 = vadd.f32 %v8398_v12, %v4381_v42  ;;  %v8183_v24 = vadd.f32 %v11438_v59, %v11433_v35  ;;  %v13003_v42 = vld [vmem:[#allocation61_spill] sm:$0xff]  ;;  %v13005_v9 = vld [vmem:[#allocation55_spill] sm:$0xff] }
 0x351   : > { %v8400_v39 = vpop.f32.mrf.mxu0  ;;  %v4988_v20 = vsel %vm1531_vm1, %v4986_v50, %v4987_v53  ;;  %v4990_v23 = vsel %vm1531_vm1, %v4987_v53, %v4989_v10  ;;  %v6119_v18 = vsel %vm3471_vm3, %v6117_v52, %v6118_v13  ;;  %v4815_v63 = vld [vmem:[#allocation3 + $0x60] sm:$0xff]  ;;  %v6121_v14 = vsel %vm3471_vm3, %v6118_v13, %v6120_v41  ;;  %v9267_v52 = vld [vmem:[%s12854_s5 + $0x10] sm:$0xff]  }
 0x352   : > { %4765 = vst [vmem:[#allocation3 + $0x79] sm:$0xff] %v4732_v61  ;;  %v4701_v15 = vadd.f32 %v11598_v28, %v4669_v33  ;;  %v4638_v7 = vadd.f32 %v4542_v11, %v11260_v40  ;;  %v8401_v17 = vadd.f32 %v8400_v39, %v8399_v36  ;;  %v11740_v6 = vpack.c.bf16 %v4990_v23, %v4988_v20  ;;  %v9266_v40 = vld [vmem:[%s12854_s5 + $0x50] sm:$0xff]   ;;  %v13007_v20 = vld [vmem:[#allocation65_spill] sm:$0xff] }
 0x353   : > { %8605 = vmatpush3.bf16.msra.mxu1 %v9260_v21  ;;  %v8402_v30 = vpop.f32.mrf.mxu0  ;;  %v11757_v51 = vpack.c.bf16 %v6121_v14, %v6119_v18  ;;  %v4389_v35 = vadd.f32 %v8292_v46, %v13002_v60  ;;  %v4392_v59 = vadd.f32 %v8295_v56, %v8183_v24  ;;  %v8298_v47 = vadd.f32 %v13004_v25, %v13003_v42  ;;  %v13006_v21 = vld [vmem:[#allocation21_spill] sm:$0xff]  ;;  %v13008_v24 = vld [vmem:[#allocation16_spill] sm:$0xff] }
 0x354   : > { %8606 = vmatprep.subr.bf16.mxu1 %v9262_v4  ;;  %v4733_v62 = vmax.f32 %v4701_v15, 0.0  ;;  %v4670_v1 = vmul.f32 %v11589_v34, %v4638_v7  ;;  %v4545_v3 = vadd.f32 %v8401_v17, %v4384_v54  ;;  %5362 = vmatprep.mubr.bf16.mxu1 %v11740_v6  ;;  %v4991_v55 = vrot.slane %v4815_v63, 1  ;;  %v11764_v54 = vpop.f32.mrf.mxu1  ;;  %v9271_v42 = vld [vmem:[%s12854_s5 + $0x8] sm:$0xff]  }
 0x355   : > { %8887 = vmatmul.mubr.bf16.vlgmr.msra.gmra.mxu0 %v11740_v6  ;;  %5363 = vmatmul.mubr.bf16.gmra.mxu1 %v11698_v8  ;;  %v8403_v58 = vpop.f32.mrf.mxu0  ;;  %v4816_v50 = vld [vmem:[#allocation3 + $0x68] sm:$0xff]  ;;  %v4817_v0 = vld [vmem:[#allocation3 + $0x70] sm:$0x3]  ;;  %v6122_v61 = vrot.slane %v4815_v63, 2  ;;  %v8301_v23 = vadd.f32 %v11573_v44, %v13007_v20  ;;  %v9268_v44 = vld [vmem:[%s12854_s5 + $0xa0] sm:$0xff]  }
 0x356   : > { %8919 = vmatpush3.bf16.msra.mxu0 %v13005_v9  ;;  %4766 = vst [vmem:[#allocation3 + $0x81] sm:$0xff] %v4733_v62  ;;  %v4702_v12 = vadd.f32 %v11598_v28, %v4670_v1  ;;  %v4639_v36 = vadd.f32 %v4545_v3, %v13006_v21  ;;  %v8404_v46 = vadd.f32 %v8403_v58, %v8402_v30  ;;  %v4992_v53 = vrot.slane %v4816_v50, 1  ;;  %v9265_v8 = vld [vmem:[%s12854_s5 + $0xa8] sm:$0xff]   ;;  %v13009_v1 = vld [vmem:[#allocation35_spill] sm:$0xff] }
 0x357   : > { %8607 = vmatpush3.bf16.msra.mxu1 %v9263_v29  ;;  %8920 = vmatprep.subr.bf16.mxu0 %v9264_v45  ;;  %v8405_v10 = vpop.f32.mrf.mxu0  ;;  %v4994_v4 = vrot.slane %v4817_v0, 1  ;;  %v11774_v13 = vpack.c.bf16 %v4816_v50, %v4815_v63  ;;  %v6123_v33 = vrot.slane %v4816_v50, 2  ;;  %v6125_v17 = vrot.slane %v4817_v0, 2  ;;  %v11782_v29 = vpop.f32.mrf.mxu1  ;;  %v13010_v3 = vld [vmem:[#allocation37_spill] sm:$0xff]  ;;  %v9269_v20 = vld [vmem:[%s12854_s5 + $0x98] sm:$0xff]  }
 0x358   : > { %8608 = vmatprep.subr.bf16.mxu1 %v9266_v40  ;;  %v4734_v11 = vmax.f32 %v4702_v12, 0.0  ;;  %v4671_v41 = vmul.f32 %v11589_v34, %v4639_v36  ;;  %v4550_v56 = vadd.f32 %v8404_v46, %v4389_v35  ;;  %v4993_v39 = vsel %vm1531_vm1, %v4991_v55, %v4992_v53  ;;  %v9274_v55 = vld [vmem:[%s12854_s5 + $0x40] sm:$0xff]   ;;  %v13011_v12 = vld [vmem:[#allocation34_spill] sm:$0xff]  ;;  %v13012_v46 = vld [vmem:[#allocation67_spill] sm:$0xff] }
 0x359   : > { %v8406_v18 = vpop.f32.mrf.mxu0  ;;  %v4995_v15 = vsel %vm1531_vm1, %v4992_v53, %v4994_v4  ;;  %v6124_v7 = vsel %vm3471_vm3, %v6122_v61, %v6123_v33  ;;  %v4818_v62 = vld [vmem:[#allocation3 + $0x78] sm:$0xff]  ;;  %v8189_v60 = vadd.f32 %v13010_v3, %v13009_v1  ;;  %v6126_v25 = vsel %vm3471_vm3, %v6123_v33, %v6125_v17  ;;  %v13013_v53 = vld [vmem:[#allocation68_spill] sm:$0xff]  ;;  %v11812_v33 = vpop.f32.mrf.mxu1 }
 0x35a   : > { %8921 = vmatpush3.bf16.msra.mxu0 %v9264_v45  ;;  %4767 = vst [vmem:[#allocation3 + $0x91] sm:$0xff] %v4734_v11  ;;  %v4703_v63 = vadd.f32 %v11598_v28, %v4671_v41  ;;  %v4640_v30 = vadd.f32 %v4550_v56, %v13008_v24  ;;  %v8407_v40 = vadd.f32 %v8406_v18, %v8405_v10  ;;  %v9270_v45 = vld [vmem:[%s12854_s5 + $0x48] sm:$0xff]   ;;  %v4996_v61 = vrot.slane %v4818_v62, 1 }
 0x35b   : > { %v11786_v14 = vpack.c.bf16 %v4995_v15, %v4993_v39  ;;  %8922 = vmatprep.subr.bf16.mxu0 %v9265_v8  ;;  %v8408_v35 = vpop.f32.mrf.mxu0  ;;  %8609 = vmatpush3.bf16.msra.mxu1 %v9267_v52  ;;  %v11806_v9 = vpack.c.bf16 %v6126_v25, %v6124_v7  ;;  %v4397_v21 = vadd.f32 %v8298_v47, %v13011_v12  ;;  %v13014_v41 = vld [vmem:[#allocation17_spill] sm:$0xff]  ;;  %v6127_v15 = vrot.slane %v4818_v62, 2  ;;  %v11830_v25 = vpop.f32.mrf.mxu1 }
 0x35c   : > { %v4735_v58 = vmax.f32 %v4703_v63, 0.0  ;;  %v4672_v50 = vmul.f32 %v11589_v34, %v4640_v30  ;;  %v4553_v0 = vadd.f32 %v8407_v40, %v4392_v59  ;;  %v4400_v36 = vadd.f32 %v8301_v23, %v8189_v60  ;;  %8610 = vmatprep.subr.bf16.mxu1 %v9270_v45  ;;  %v13015_v40 = vld [vmem:[#allocation69_spill] sm:$0xff]  ;;  %v13016_v45 = vld [vmem:[#allocation70_spill] sm:$0xff] }
 0x35d   : > { %5370 = vmatprep.mubr.bf16.mxu1 %v11786_v14  ;;  %8890 = vmatprep.mubr.bf16.mxu0 %v11786_v14  ;;  %v8304_v10 = vadd.f32 %v13013_v53, %v13012_v46  ;;  %v8409_v4 = vpop.f32.mrf.mxu0  ;;  %v4819_v59 = vld [vmem:[#allocation3 + $0x80] sm:$0xff]  ;;  %v4820_v52 = vld [vmem:[#allocation3 + $0x88] sm:$0x3]  ;;  %v8307_v1 = vadd.f32 %v13016_v45, %v13015_v40 }
 0x35e   : > { %5371 = vmatmul.mubr.bf16.gmra.mxu1 %v11740_v6  ;;  %8923 = vmatpush3.bf16.msra.mxu0 %v9265_v8  ;;  %4768 = vst [vmem:[#allocation3 + $0x99] sm:$0xff] %v4735_v58  ;;  %v4704_v11 = vadd.f32 %v11598_v28, %v4672_v50  ;;  %v4641_v56 = vadd.f32 %v4553_v0, %v13014_v41  ;;  %v4997_v47 = vrot.slane %v4819_v59, 1  ;;  %v4999_v23 = vrot.slane %v4820_v52, 1  ;;  %v9275_v8 = vld [vmem:[%s12854_s5] sm:$0xff]   ;;  %v13017_v58 = vld [vmem:[#allocation18_spill] sm:$0xff]  ;;  %v13019_v53 = vld [vmem:[#allocation41_spill] sm:$0xff] }
 0x35f   : > { %v8410_v39 = vadd.f32 %v8409_v4, %v8408_v35  ;;  %8924 = vmatprep.subr.bf16.mxu0 %v9268_v44  ;;  %v8411_v6 = vpop.f32.mrf.mxu0  ;;  %8611 = vmatpush3.bf16.msra.mxu1 %v9271_v42  ;;  %v11822_v18 = vpack.c.bf16 %v4819_v59, %v4818_v62  ;;  %v6128_v7 = vrot.slane %v4819_v59, 2  ;;  %v6130_v42 = vrot.slane %v4820_v52, 2  ;;  %v13018_v46 = vld [vmem:[#allocation40_spill] sm:$0xff]  ;;  %v13020_v59 = vld [vmem:[#allocation39_spill] sm:$0xff] }
 0x360   : > { %v4736_v17 = vmax.f32 %v4704_v11, 0.0  ;;  %v4673_v63 = vmul.f32 %v11589_v34, %v4641_v56  ;;  %v4998_v30 = vsel %vm1531_vm1, %v4996_v61, %v4997_v47  ;;  %8612 = vmatprep.subr.bf16.mxu1 %v9274_v55  ;;  %v5000_v60 = vsel %vm1531_vm1, %v4997_v47, %v4999_v23 }
 0x361   : > { %v4558_v24 = vadd.f32 %v8410_v39, %v4397_v21  ;;  %v8412_v3 = vpop.f32.mrf.mxu0  ;;  %v6129_v35 = vsel %vm3471_vm3, %v6127_v15, %v6128_v7  ;;  %v11834_v12 = vpack.c.bf16 %v5000_v60, %v4998_v30  ;;  %v4821_v55 = vld [vmem:[#allocation3 + $0x90] sm:$0xff]  ;;  %v8195_v4 = vadd.f32 %v13019_v53, %v13018_v46 }
 0x362   : > { %8925 = vmatpush3.bf16.msra.mxu0 %v9268_v44  ;;  %4769 = vst [vmem:[#allocation3 + $0xa9] sm:$0xff] %v4736_v17  ;;  %v4705_v62 = vadd.f32 %v11598_v28, %v4673_v63  ;;  %v8413_v0 = vadd.f32 %v8412_v3, %v8411_v6  ;;  %v9272_v21 = vld [vmem:[%s12854_s5 + $0x90] sm:$0xff]   ;;  %v11842_v44 = vld [vmem:[%s12854_s5 + $0x238] sm:$0xff]   ;;  %v4405_v52 = vadd.f32 %v8304_v10, %v13020_v59  ;;  %v6132_v17 = vrot.slane %v4821_v55, 2  ;;  %v11856_v63 = vpop.f32.mrf.mxu1 }
 0x363   : > { %v4642_v50 = vadd.f32 %v4558_v24, %v13017_v58  ;;  %8926 = vmatprep.subr.bf16.mxu0 %v9269_v20  ;;  %v8414_v61 = vpop.f32.mrf.mxu0  ;;  %8613 = vmatpush3.bf16.msra.mxu1 %v9275_v8  ;;  %v6131_v11 = vsel %vm3471_vm3, %v6128_v7, %v6130_v42  ;;  %v4408_v6 = vadd.f32 %v8307_v1, %v8195_v4  ;;  %v5001_v7 = vrot.slane %v4821_v55, 1  ;;  %v13021_v24 = vld [vmem:[#allocation10_spill] sm:$0xff]  ;;  %v13022_v59 = vld [vmem:[#allocation11_spill] sm:$0xff] }
 0x364   : > { %v4737_v41 = vmax.f32 %v4705_v62, 0.0  ;;  %v4561_v39 = vadd.f32 %v8413_v0, %v4400_v36  ;;  %5378 = vmatprep.mubr.bf16.mxu1 %v11834_v12  ;;  %8891 = vmatmul.mubr.bf16.gmra.mxu0 %v11834_v12  ;;  %v11851_v47 = vpack.c.bf16 %v6131_v11, %v6129_v35  ;;  %v8310_v23 = vadd.f32 %v11613_v48, %v11606_v31  ;;  %v9273_v31 = vld [vmem:[%s12854_s5 + $0x88] sm:$0xff]   ;;  %v11873_v53 = vpop.f32.mrf.mxu1 }
 0x365   : > { %v4674_v56 = vmul.f32 %v11589_v34, %v4642_v50  ;;  %v8415_v10 = vpop.f32.mrf.mxu0  ;;  %v4822_v8 = vld [vmem:[#allocation3 + $0x98] sm:$0xff]  ;;  %v4823_v15 = vld [vmem:[#allocation3 + $0xa0] sm:$0x3]  ;;  %8966 = vmatprep.subr.bf16.mxu1 %v11842_v44  ;;  %v8313_v58 = vadd.f32 %v11633_v26, %v11622_v43 }
 0x366   : > { %5379 = vmatmul.mubr.bf16.gmra.mxu1 %v11786_v14  ;;  %8927 = vmatpush3.bf16.msra.mxu0 %v9269_v20  ;;  %4770 = vst [vmem:[#allocation3 + $0xb1] sm:$0xff] %v4737_v41  ;;  %v4643_v30 = vadd.f32 %v4561_v39, %v13021_v24  ;;  %v8416_v40 = vadd.f32 %v8415_v10, %v8414_v61  ;;  %v5002_v45 = vrot.slane %v4822_v8, 1  ;;  %v5004_v14 = vrot.slane %v4823_v15, 1  ;;  %v9276_v43 = vld [vmem:[%s12854_s5 + $0x80] sm:$0xff]   ;;  %v13023_v26 = vld [vmem:[#allocation43_spill] sm:$0xff] }
 0x367   : > { %v4706_v36 = vadd.f32 %v11598_v28, %v4674_v56  ;;  %8928 = vmatprep.subr.bf16.mxu0 %v9272_v21  ;;  %v8417_v48 = vpop.f32.mrf.mxu0  ;;  %v11864_v20 = vpack.c.bf16 %v4822_v8, %v4821_v55  ;;  %v6133_v1 = vrot.slane %v4822_v8, 2  ;;  %v6135_v3 = vrot.slane %v4823_v15, 2  ;;  %v13025_v8 = vld [vmem:[#allocation42_spill] sm:$0xff] }
 0x368   : > { %v4675_v35 = vmul.f32 %v11589_v34, %v4643_v30  ;;  %v4566_v42 = vadd.f32 %v8416_v40, %v4405_v52  ;;  %v5003_v62 = vsel %vm1531_vm1, %v5001_v7, %v5002_v45  ;;  %v5005_v0 = vsel %vm1531_vm1, %v5002_v45, %v5004_v14 }
 0x369   : > { %v4738_v60 = vmax.f32 %v4706_v36, 0.0  ;;  %v8418_v50 = vpop.f32.mrf.mxu0  ;;  %v6134_v46 = vsel %vm3471_vm3, %v6132_v17, %v6133_v1  ;;  %v6136_v55 = vsel %vm3471_vm3, %v6133_v1, %v6135_v3  ;;  %v11877_v11 = vpack.c.bf16 %v5005_v0, %v5003_v62  ;;  %v4824_v41 = vld [vmem:[#allocation3 + $0xa8] sm:$0xff]  ;;  %v11893_v1 = vpop.f32.mrf.mxu1  ;;  %v13026_v3 = vld [vmem:[#allocation15_spill] sm:$0xff] }
 0x36a   : > { %8929 = vmatpush3.bf16.msra.mxu0 %v9272_v21  ;;  %v4707_v4 = vadd.f32 %v11598_v28, %v4675_v35  ;;  %v4644_v52 = vadd.f32 %v4566_v42, %v13022_v59  ;;  %v8419_v61 = vadd.f32 %v8418_v50, %v8417_v48  ;;  %v13024_v21 = vld [vmem:[#allocation44_spill] sm:$0xff]  ;;  %v11884_v10 = vpack.c.bf16 %v6136_v55, %v6134_v46 }
 0x36b   : > { %4771 = vst [vmem:[#allocation3 + $0xc1] sm:$0xff] %v4738_v60  ;;  %8930 = vmatprep.subr.bf16.mxu0 %v9273_v31  ;;  %v8201_v56 = vadd.f32 %v13024_v21, %v13023_v26  ;;  %v8420_v39 = vpop.f32.mrf.mxu0  ;;  %v4413_v15 = vadd.f32 %v8310_v23, %v13025_v8  ;;  %5386 = vmatprep.mubr.bf16.mxu1 %v11877_v11  ;;  %v5006_v14 = vrot.slane %v4824_v41, 1  ;;  %v6137_v23 = vrot.slane %v4824_v41, 2  ;;  %v11909_v26 = vpop.f32.mrf.mxu1 }
 0x36c   : > { %v4739_v7 = vmax.f32 %v4707_v4, 0.0  ;;  %v4676_v17 = vmul.f32 %v11589_v34, %v4644_v52  ;;  %v4569_v36 = vadd.f32 %v8419_v61, %v4408_v6  ;;  %8894 = vmatprep.mubr.bf16.mxu0 %v11877_v11  ;;  %v8316_v30 = vadd.f32 %v11653_v19, %v11640_v49  ;;  %v9277_v49 = vld [vmem:[%s12854_s5 + $0x1f8] sm:$0xff]  }
 0x36d   : > { %v4416_v24 = vadd.f32 %v8313_v58, %v8201_v56  ;;  %v8421_v40 = vpop.f32.mrf.mxu0  ;;  %v4825_v45 = vld [vmem:[#allocation3 + $0xb0] sm:$0xff]  ;;  %v4826_v48 = vld [vmem:[#allocation3 + $0xb8] sm:$0x3]  ;;  %v8319_v4 = vadd.f32 %v11694_v22, %v11676_v27 }
 0x36e   : > { %5387 = vmatmul.mubr.bf16.gmra.mxu1 %v11834_v12  ;;  %8931 = vmatpush3.bf16.msra.mxu0 %v9273_v31  ;;  %4772 = vst [vmem:[#allocation3 + $0xc9] sm:$0xff] %v4739_v7  ;;  %v4708_v6 = vadd.f32 %v11598_v28, %v4676_v17  ;;  %v4645_v60 = vadd.f32 %v4569_v36, %v13026_v3  ;;  %v5007_v42 = vrot.slane %v4825_v45, 1  ;;  %v5009_v12 = vrot.slane %v4826_v48, 1  ;;  %v13027_v56 = vld [vmem:[#allocation19_spill] sm:$0xff]  ;;  %v13028_v27 = vld [vmem:[#allocation46_spill] sm:$0xff] }
 0x36f   : > { %v8422_v35 = vadd.f32 %v8421_v40, %v8420_v39  ;;  %8932 = vmatprep.subr.bf16.mxu0 %v9276_v43  ;;  %v8423_v19 = vpop.f32.mrf.mxu0  ;;  %v11900_v62 = vpack.c.bf16 %v4825_v45, %v4824_v41  ;;  %v6138_v31 = vrot.slane %v4825_v45, 2  ;;  %v6140_v58 = vrot.slane %v4826_v48, 2  ;;  %v13029_v22 = vld [vmem:[#allocation47_spill] sm:$0xff]  ;;  %v13030_v40 = vld [vmem:[#allocation45_spill] sm:$0xff] }
 0x370   : > { %v4740_v50 = vmax.f32 %v4708_v6, 0.0  ;;  %v4677_v0 = vmul.f32 %v11589_v34, %v4645_v60  ;;  %v5008_v55 = vsel %vm1531_vm1, %v5006_v14, %v5007_v42  ;;  %v5010_v52 = vsel %vm1531_vm1, %v5007_v42, %v5009_v12  ;;  %v11922_v12 = vpop.f32.mrf.mxu1 }
 0x371   : > { %v4574_v46 = vadd.f32 %v8422_v35, %v4413_v15  ;;  %v8424_v59 = vpop.f32.mrf.mxu0  ;;  %v6139_v61 = vsel %vm3471_vm3, %v6137_v23, %v6138_v31  ;;  %v6141_v41 = vsel %vm3471_vm3, %v6138_v31, %v6140_v58  ;;  %v5110_v15 = vpack.c.bf16 %v5010_v52, %v5008_v55  ;;  %v13031_v31 = vld [vmem:[#allocation22_spill] sm:$0xff] }
 0x372   : > { %8933 = vmatpush3.bf16.msra.mxu0 %v9276_v43  ;;  %4773 = vst [vmem:[#allocation3 + $0xd9] sm:$0xff] %v4740_v50  ;;  %v4709_v21 = vadd.f32 %v11598_v28, %v4677_v0  ;;  %v8425_v8 = vadd.f32 %v8424_v59, %v8423_v19  ;;  %v4827_v7 = vld [vmem:[#allocation3 + $0xc0] sm:$0xff]  ;;  %v8207_v17 = vadd.f32 %v13029_v22, %v13028_v27  ;;  %v13032_v27 = vld [vmem:[#allocation23_spill] sm:$0xff] }
 0x373   : > { %v4646_v39 = vadd.f32 %v4574_v46, %v13027_v56  ;;  %8734 = vmatprep.subr.bf16.mxu0 %v9277_v49  ;;  %v8426_v36 = vpop.f32.mrf.mxu0  ;;  %v11915_v43 = vpack.c.bf16 %v6141_v41, %v6139_v61  ;;  %v4421_v45 = vadd.f32 %v8316_v30, %v13030_v40  ;;  %5394 = vmatprep.mubr.bf16.mxu1 %v5110_v15  ;;  %v5011_v49 = vrot.slane %v4827_v7, 1 }
 0x374   : > { %v4741_v48 = vmax.f32 %v4709_v21, 0.0  ;;  %v4577_v23 = vadd.f32 %v8425_v8, %v4416_v24  ;;  %8895 = vmatmul.mubr.bf16.gmra.mxu0 %v5110_v15  ;;  %v4424_v6 = vadd.f32 %v8319_v4, %v8207_v17  ;;  %v8322_v3 = vadd.f32 %v11736_v57, %v11718_v38  ;;  %v11935_v8 = vpop.f32.mrf.mxu1 }
 0x375   : > { %v4678_v14 = vmul.f32 %v11589_v34, %v4646_v39  ;;  %v8427_v60 = vpop.f32.mrf.mxu0  ;;  %v4828_v35 = vld [vmem:[#allocation3 + $0xc8] sm:$0xff]  ;;  %v4829_v42 = vld [vmem:[#allocation3 + $0xd0] sm:$0x3]  ;;  %v6142_v19 = vrot.slane %v4827_v7, 2  ;;  %v8325_v61 = vadd.f32 %v11782_v29, %v11764_v54 }
 0x376   : > { %5395 = vmatmul.mubr.bf16.gmra.mxu1 %v11877_v11  ;;  %4774 = vst [vmem:[#allocation3 + $0xe1] sm:$0xff] %v4741_v48  ;;  %v4647_v24 = vadd.f32 %v4577_v23, %v13031_v31  ;;  %v8428_v58 = vadd.f32 %v8427_v60, %v8426_v36  ;;  %v5012_v50 = vrot.slane %v4828_v35, 1  ;;  %v5014_v46 = vrot.slane %v4829_v42, 1  ;;  %v13034_v48 = vld [vmem:[#allocation50_spill] sm:$0xff]  ;;  %v13035_v23 = vld [vmem:[#allocation48_spill] sm:$0xff] }
 0x377   : > { %v4710_v30 = vadd.f32 %v11598_v28, %v4678_v14  ;;  %v8429_v0 = vpop.f32.mrf.mxu0  ;;  %v11926_v55 = vpack.c.bf16 %v4828_v35, %v4827_v7  ;;  %v6143_v38 = vrot.slane %v4828_v35, 2  ;;  %v6145_v57 = vrot.slane %v4829_v42, 2 }
 0x378   : > { %v4679_v4 = vmul.f32 %v11589_v34, %v4647_v24  ;;  %v4582_v59 = vadd.f32 %v8428_v58, %v4421_v45  ;;  %v5013_v52 = vsel %vm1531_vm1, %v5011_v49, %v5012_v50  ;;  %v5015_v21 = vsel %vm1531_vm1, %v5012_v50, %v5014_v46  ;;  %v13033_v45 = vld [vmem:[#allocation49_spill] sm:$0xff]  ;;  %v11947_v46 = vpop.f32.mrf.mxu1 }
 0x379   : > { %v4742_v11 = vmax.f32 %v4710_v30, 0.0  ;;  %v8430_v41 = vpop.f32.mrf.mxu0  ;;  %v6144_v56 = vsel %vm3471_vm3, %v6142_v19, %v6143_v38  ;;  %v6146_v39 = vsel %vm3471_vm3, %v6143_v38, %v6145_v57  ;;  %v5111_v36 = vpack.c.bf16 %v5015_v21, %v5013_v52  ;;  %v4830_v40 = vld [vmem:[#allocation3 + $0xd8] sm:$0xff]  ;;  %v13036_v38 = vld [vmem:[#allocation25_spill] sm:$0xff] }
 0x37a   : > { %v4711_v7 = vadd.f32 %v11598_v28, %v4679_v4  ;;  %v4648_v22 = vadd.f32 %v4582_v59, %v13032_v27  ;;  %v8431_v17 = vadd.f32 %v8430_v41, %v8429_v0  ;;  %v8213_v54 = vadd.f32 %v13034_v48, %v13033_v45  ;;  %v13037_v45 = vld [vmem:[#allocation24_spill] sm:$0xff] }
 0x37b   : > { %4775 = vst [vmem:[#allocation3 + $0xf1] sm:$0xff] %v4742_v11  ;;  %v8432_v29 = vpop.f32.mrf.mxu0  ;;  %v11941_v14 = vpack.c.bf16 %v6146_v39, %v6144_v56  ;;  %v4429_v60 = vadd.f32 %v8322_v3, %v13035_v23  ;;  %5402 = vmatprep.mubr.bf16.mxu1 %v5111_v36  ;;  %8898 = vmatprep.mubr.bf16.mxu0 %v5111_v36  ;;  %v5016_v50 = vrot.slane %v4830_v40, 1  ;;  %v6147_v0 = vrot.slane %v4830_v40, 2  ;;  %v13038_v23 = vld [vmem:[#allocation52_spill] sm:$0xff] }
 0x37c   : > { %v4743_v35 = vmax.f32 %v4711_v7, 0.0  ;;  %v4680_v42 = vmul.f32 %v11589_v34, %v4648_v22  ;;  %v4585_v49 = vadd.f32 %v8431_v17, %v4424_v6  ;;  %v4432_v19 = vadd.f32 %v8325_v61, %v8213_v54  ;;  %v11960_v17 = vpop.f32.mrf.mxu1 }
 0x37d   : > { %v8328_v30 = vadd.f32 %v11830_v25, %v11812_v33  ;;  %v8433_v31 = vpop.f32.mrf.mxu0  ;;  %v4831_v24 = vld [vmem:[#allocation3 + $0xe0] sm:$0xff]  ;;  %v4832_v58 = vld [vmem:[#allocation3 + $0xe8] sm:$0x3]  ;;  %v8331_v56 = vadd.f32 %v11873_v53, %v11856_v63 }
 0x37e   : > { %5403 = vmatmul.mubr.bf16.gmra.mxu1 %v5110_v15  ;;  %4776 = vst [vmem:[#allocation3 + $0xf9] sm:$0xff] %v4743_v35  ;;  %v4712_v3 = vadd.f32 %v11598_v28, %v4680_v42  ;;  %v4649_v57 = vadd.f32 %v4585_v49, %v13036_v38  ;;  %v8434_v6 = vadd.f32 %v8433_v31, %v8432_v29  ;;  %v5017_v11 = vrot.slane %v4831_v24, 1  ;;  %v11969_v42 = vld [vmem:[%s12852_s3] ss:$0 sm:$0xff] }
 0x37f   : > { %v8435_v4 = vpop.f32.mrf.mxu0  ;;  %v5019_v59 = vrot.slane %v4832_v58, 1  ;;  %v11951_v52 = vpack.c.bf16 %v4831_v24, %v4830_v40  ;;  %v6148_v33 = vrot.slane %v4831_v24, 2  ;;  %v6150_v25 = vrot.slane %v4832_v58, 2  ;;  %v13040_v24 = vld [vmem:[#allocation51_spill] sm:$0xff] }
 0x380   : > { %v4744_v15 = vmax.f32 %v4712_v3, 0.0  ;;  %v4681_v61 = vmul.f32 %v11589_v34, %v4649_v57  ;;  %v4590_v41 = vadd.f32 %v8434_v6, %v4429_v60  ;;  %v5018_v21 = vsel %vm1531_vm1, %v5016_v50, %v5017_v11  ;;  %v13039_v60 = vld [vmem:[#allocation53_spill] sm:$0xff] }
 0x381   : > { %v8436_v39 = vpop.f32.mrf.mxu0  ;;  %v5020_v7 = vsel %vm1531_vm1, %v5017_v11, %v5019_v59  ;;  %v6149_v27 = vsel %vm3471_vm3, %v6147_v0, %v6148_v33  ;;  %v6151_v22 = vsel %vm3471_vm3, %v6148_v33, %v6150_v25  ;;  %v8219_v63 = vadd.f32 %v13039_v60, %v13038_v23  ;;  %v8341_v11 = vpop.f32.mrf.mxu1  ;;  %v13041_v59 = vld [vmem:[#allocation27_spill] sm:$0xff] }
 0x382   : > { %4777 = vst [vmem:[#allocation3 + $0x109] sm:$0xff] %v4744_v15  ;;  %v4713_v40 = vadd.f32 %v11598_v28, %v4681_v61  ;;  %v4650_v34 = vadd.f32 %v4590_v41, %v13037_v45  ;;  %v8437_v48 = vadd.f32 %v8436_v39, %v8435_v4  ;;  %v5112_v54 = vpack.c.bf16 %v5020_v7, %v5018_v21  ;;  %v4833_v29 = vld [vmem:[#allocation3 + $0xf0] sm:$0xff] }
 0x383   : > { %v8438_v53 = vpop.f32.mrf.mxu0  ;;  %v11972_v28 = vpack.c.bf16 %v6151_v22, %v6149_v27  ;;  %v4437_v58 = vadd.f32 %v8328_v30, %v13040_v24  ;;  %v4440_v50 = vadd.f32 %v8331_v56, %v8219_v63  ;;  %v8334_v0 = vadd.f32 %v11909_v26, %v11893_v1  ;;  %v13045_v24 = vld [vmem:[#allocation54_spill] sm:$0xff] }
 0x384   : > { %v4745_v35 = vmax.f32 %v4713_v40, 0.0  ;;  %v4682_v49 = vmul.f32 %v11969_v42, %v4650_v34  ;;  %v4593_v31 = vadd.f32 %v8437_v48, %v4432_v19  ;;  %5410 = vmatprep.mubr.bf16.mxu1 %v5112_v54  ;;  %8899 = vmatmul.mubr.bf16.gmra.mxu0 %v5112_v54  ;;  %v5021_v6 = vrot.slane %v4833_v29, 1  ;;  %v11980_v19 = vld [vmem:[%s12853_s4] ss:$0 sm:$0xff]  ;;  %v8342_v34 = vpop.f32.mrf.mxu1 }
 0x385   : > { %v8439_v3 = vpop.f32.mrf.mxu0  ;;  %v4834_v38 = vld [vmem:[#allocation3 + $0xf8] sm:$0xff]  ;;  %v4835_v57 = vld [vmem:[#allocation3 + $0x100] sm:$0x3]  ;;  %v8337_v7 = vadd.f32 %v11935_v8, %v11922_v12  ;;  %v4445_v12 = vadd.f32 %v8334_v0, %v13045_v24 }
 0x386   : > { %5411 = vmatmul.mubr.bf16.gmra.mxu1 %v5111_v36  ;;  %4778 = vst [vmem:[#allocation3 + $0x111] sm:$0xff] %v4745_v35  ;;  %v4714_v4 = vadd.f32 %v11980_v19, %v4682_v49  ;;  %v4651_v30 = vadd.f32 %v4593_v31, %v13041_v59  ;;  %v8440_v33 = vadd.f32 %v8439_v3, %v8438_v53  ;;  %v5022_v25 = vrot.slane %v4834_v38, 1  ;;  %v13043_v35 = vld [vmem:[#allocation56_spill] sm:$0xff]  ;;  %v13044_v49 = vld [vmem:[#allocation57_spill] sm:$0xff] }
 0x387   : > { %v8441_v15 = vpop.f32.mrf.mxu0  ;;  %v5024_v1 = vrot.slane %v4835_v57, 1  ;;  %v11984_v26 = vpack.c.bf16 %v4834_v38, %v4833_v29  ;;  %v6152_v36 = vrot.slane %v4833_v29, 2  ;;  %v6153_v61 = vrot.slane %v4834_v38, 2  ;;  %v13042_v29 = vld [vmem:[#allocation26_spill] sm:$0xff] }
 0x388   : > { %v4746_v41 = vmax.f32 %v4714_v4, 0.0  ;;  %v4683_v21 = vmul.f32 %v11969_v42, %v4651_v30  ;;  %v4598_v56 = vadd.f32 %v8440_v33, %v4437_v58  ;;  %v5023_v39 = vsel %vm1531_vm1, %v5021_v6, %v5022_v25 }
 0x389   : > { %v8442_v27 = vpop.f32.mrf.mxu0  ;;  %v5025_v22 = vsel %vm1531_vm1, %v5022_v25, %v5024_v1  ;;  %v6154_v40 = vsel %vm3471_vm3, %v6152_v36, %v6153_v61  ;;  %v6155_v45 = vrot.slane %v4835_v57, 2  ;;  %v4836_v53 = vld [vmem:[#allocation3 + $0x108] sm:$0xff]  ;;  %v8225_v31 = vadd.f32 %v13044_v49, %v13043_v35  ;;  %v8344_v1 = vpop.f32.mrf.mxu1 }
 0x38a   : > { %4779 = vst [vmem:[#allocation3 + $0x121] sm:$0xff] %v4746_v41  ;;  %v4715_v48 = vadd.f32 %v11980_v19, %v4683_v21  ;;  %v4652_v23 = vadd.f32 %v4598_v56, %v13042_v29  ;;  %v8443_v60 = vadd.f32 %v8442_v27, %v8441_v15  ;;  %v5113_v63 = vpack.c.bf16 %v5025_v22, %v5023_v39  ;;  %v13047_v49 = vld [vmem:[#allocation29_spill] sm:$0xff] }
 0x38b   : > { %v8444_v8 = vpop.f32.mrf.mxu0  ;;  %v6156_v58 = vsel %vm3471_vm3, %v6153_v61, %v6155_v45  ;;  %v4448_v4 = vadd.f32 %v8337_v7, %v8225_v31  ;;  %v8340_v59 = vadd.f32 %v11960_v17, %v11947_v46  ;;  %v5026_v0 = vrot.slane %v4836_v53, 1  ;;  %v13046_v61 = vld [vmem:[#allocation28_spill] sm:$0xff]  ;;  %v8345_v35 = vpop.f32.mrf.mxu1 }
 0x38c   : > { %v4747_v3 = vmax.f32 %v4715_v48, 0.0  ;;  %v4684_v38 = vmul.f32 %v11969_v42, %v4652_v23  ;;  %v4601_v57 = vadd.f32 %v8443_v60, %v4440_v50  ;;  %5418 = vmatprep.mubr.bf16.mxu1 %v5113_v63  ;;  %8902 = vmatprep.mubr.bf16.mxu0 %v5113_v63  ;;  %v11999_v6 = vpack.c.bf16 %v6156_v58, %v6154_v40 }
 0x38d   : > { %v8445_v30 = vpop.f32.mrf.mxu0  ;;  %v4837_v33 = vld [vmem:[#allocation3 + $0x110] sm:$0xff]  ;;  %v4838_v25 = vld [vmem:[#allocation3 + $0x118] sm:$0x3]  ;;  %v6157_v15 = vrot.slane %v4836_v53, 2  ;;  %v8343_v45 = vadd.f32 %v8342_v34, %v8341_v11 }
 0x38e   : > { %5419 = vmatmul.mubr.bf16.gmra.mxu1 %v5112_v54  ;;  %4780 = vst [vmem:[#allocation3 + $0x129] sm:$0xff] %v4747_v3  ;;  %v4716_v36 = vadd.f32 %v11980_v19, %v4684_v38  ;;  %v4653_v50 = vadd.f32 %v4601_v57, %v13046_v61  ;;  %v8446_v41 = vadd.f32 %v8445_v30, %v8444_v8  ;;  %v5027_v21 = vrot.slane %v4837_v33, 1  ;;  %v13049_v3 = vld [vmem:[#allocation60_spill] sm:$0xff] }
 0x38f   : > { %v8447_v56 = vpop.f32.mrf.mxu0  ;;  %v5029_v39 = vrot.slane %v4838_v25, 1  ;;  %v12005_v7 = vpack.c.bf16 %v4837_v33, %v4836_v53  ;;  %v6158_v27 = vrot.slane %v4837_v33, 2  ;;  %v6160_v46 = vrot.slane %v4838_v25, 2  ;;  %v13050_v25 = vld [vmem:[#allocation58_spill] sm:$0xff] }
 0x390   : > { %v4748_v17 = vmax.f32 %v4716_v36, 0.0  ;;  %v4685_v54 = vmul.f32 %v11969_v42, %v4653_v50  ;;  %v4606_v22 = vadd.f32 %v8446_v41, %v4445_v12  ;;  %v5028_v40 = vsel %vm1531_vm1, %v5026_v0, %v5027_v21  ;;  %v13048_v12 = vld [vmem:[#allocation59_spill] sm:$0xff] }
 0x391   : > { %v8448_v48 = vpop.f32.mrf.mxu0  ;;  %v5030_v29 = vsel %vm1531_vm1, %v5027_v21, %v5029_v39  ;;  %v6159_v23 = vsel %vm3471_vm3, %v6157_v15, %v6158_v27  ;;  %v6161_v60 = vsel %vm3471_vm3, %v6158_v27, %v6160_v46  ;;  %v4839_v58 = vld [vmem:[#allocation3 + $0x120] sm:$0xff]  ;;  %v8231_v38 = vadd.f32 %v13049_v3, %v13048_v12  ;;  %v13051_v27 = vld [vmem:[#allocation30_spill] sm:$0xff] }
 0x392   : > { %4781 = vst [vmem:[#allocation3 + $0x139] sm:$0xff] %v4748_v17  ;;  %v4717_v53 = vadd.f32 %v11980_v19, %v4685_v54  ;;  %v4654_v31 = vadd.f32 %v4606_v22, %v13047_v49  ;;  %v8449_v24 = vadd.f32 %v8448_v48, %v8447_v56  ;;  %v5114_v8 = vpack.c.bf16 %v5030_v29, %v5028_v40  ;;  %v8347_v56 = vpop.f32.mrf.mxu1  ;;  %v13052_v3 = vld [vmem:[#allocation32_spill] sm:$0xff] }
 0x393   : > { %v8450_v11 = vpop.f32.mrf.mxu0  ;;  %v12016_v34 = vpack.c.bf16 %v6161_v60, %v6159_v23  ;;  %v4453_v0 = vadd.f32 %v8340_v59, %v13050_v25  ;;  %v4456_v15 = vadd.f32 %v8343_v45, %v8231_v38  ;;  %v5031_v41 = vrot.slane %v4839_v58, 1 }
 0x394   : > { %v4749_v57 = vmax.f32 %v4717_v53, 0.0  ;;  %v4686_v30 = vmul.f32 %v11969_v42, %v4654_v31  ;;  %v4609_v33 = vadd.f32 %v8449_v24, %v4448_v4  ;;  %5426 = vmatprep.mubr.bf16.mxu1 %v5114_v8  ;;  %8903 = vmatmul.mubr.bf16.gmra.mxu0 %v5114_v8  ;;  %v6162_v21 = vrot.slane %v4839_v58, 2  ;;  %v8348_v12 = vpop.f32.mrf.mxu1 }
 0x395   : > { %v8451_v36 = vpop.f32.mrf.mxu0  ;;  %v4840_v61 = vld [vmem:[#allocation3 + $0x128] sm:$0xff]  ;;  %v4841_v50 = vld [vmem:[#allocation3 + $0x130] sm:$0x3]  ;;  %v8346_v60 = vadd.f32 %v8345_v35, %v8344_v1  ;;  %v13053_v1 = vld [vmem:[#allocation64_spill] sm:$0xff] }
 0x396   : > { %5427 = vmatmul.mubr.bf16.gmra.mxu1 %v5113_v63  ;;  %4782 = vst [vmem:[#allocation3 + $0x141] sm:$0xff] %v4749_v57  ;;  %v4718_v39 = vadd.f32 %v11980_v19, %v4686_v30  ;;  %v4655_v46 = vadd.f32 %v4609_v33, %v13051_v27  ;;  %v8452_v17 = vadd.f32 %v8451_v36, %v8450_v11  ;;  %v5032_v54 = vrot.slane %v4840_v61, 1  ;;  %v13054_v35 = vld [vmem:[#allocation66_spill] sm:$0xff] }
 0x397   : > { %v8453_v4 = vpop.f32.mrf.mxu0  ;;  %v5034_v22 = vrot.slane %v4841_v50, 1  ;;  %v12022_v40 = vpack.c.bf16 %v4840_v61, %v4839_v58  ;;  %v6163_v59 = vrot.slane %v4840_v61, 2  ;;  %v6165_v45 = vrot.slane %v4841_v50, 2 }
 0x398   : > { %v4750_v63 = vmax.f32 %v4718_v39, 0.0  ;;  %v4687_v48 = vmul.f32 %v11969_v42, %v4655_v46  ;;  %v4614_v29 = vadd.f32 %v8452_v17, %v4453_v0  ;;  %v5033_v23 = vsel %vm1531_vm1, %v5031_v41, %v5032_v54  ;;  %v13055_v41 = vld [vmem:[#allocation62_spill] sm:$0xff] }
 0x399   : > { %v8454_v53 = vpop.f32.mrf.mxu0  ;;  %v5035_v49 = vsel %vm1531_vm1, %v5032_v54, %v5034_v22  ;;  %v6164_v31 = vsel %vm3471_vm3, %v6162_v21, %v6163_v59  ;;  %v6166_v24 = vsel %vm3471_vm3, %v6163_v59, %v6165_v45  ;;  %v4842_v30 = vld [vmem:[#allocation3 + $0x138] sm:$0xff]  ;;  %v8237_v0 = vadd.f32 %v13054_v35, %v13053_v1  ;;  %v13056_v59 = vld [vmem:[#allocation33_spill] sm:$0xff] }
 0x39a   : > { %4783 = vst [vmem:[#allocation3 + $0x151] sm:$0xff] %v4750_v63  ;;  %v4719_v58 = vadd.f32 %v11980_v19, %v4687_v48  ;;  %v4656_v38 = vadd.f32 %v4614_v29, %v13052_v3  ;;  %v8455_v11 = vadd.f32 %v8454_v53, %v8453_v4  ;;  %v5115_v57 = vpack.c.bf16 %v5035_v49, %v5033_v23 }
 0x39b   : > { %v8456_v33 = vpop.f32.mrf.mxu0  ;;  %v12031_v25 = vpack.c.bf16 %v6166_v24, %v6164_v31  ;;  %v4461_v21 = vadd.f32 %v8346_v60, %v13055_v41  ;;  %v8349_v39 = vadd.f32 %v8348_v12, %v8347_v56  ;;  %v5036_v54 = vrot.slane %v4842_v30, 1 }
 0x39c   : > { %v4751_v36 = vmax.f32 %v4719_v58, 0.0  ;;  %v4688_v61 = vmul.f32 %v11969_v42, %v4656_v38  ;;  %v4617_v50 = vadd.f32 %v8455_v11, %v4456_v15  ;;  %5434 = vmatprep.mubr.bf16.mxu1 %v5115_v57  ;;  %8906 = vmatprep.mubr.bf16.mxu0 %v5115_v57  ;;  %v6167_v4 = vrot.slane %v4842_v30, 2 }
 0x39d   : > { %v8457_v27 = vpop.f32.mrf.mxu0  ;;  %v4843_v46 = vld [vmem:[#allocation3 + $0x140] sm:$0xff]  ;;  %v4844_v17 = vld [vmem:[#allocation3 + $0x148] sm:$0x3]  ;;  %v4464_v24 = vadd.f32 %v8349_v39, %v8237_v0 }
 0x39e   : > { %5435 = vmatmul.mubr.bf16.gmra.mxu1 %v5114_v8  ;;  %4784 = vst [vmem:[#allocation3 + $0x159] sm:$0xff] %v4751_v36  ;;  %v4720_v22 = vadd.f32 %v11980_v19, %v4688_v61  ;;  %v4657_v45 = vadd.f32 %v4617_v50, %v13056_v59  ;;  %v8458_v63 = vadd.f32 %v8457_v27, %v8456_v33  ;;  %v5037_v48 = vrot.slane %v4843_v46, 1 }
 0x39f   : > { %v8459_v29 = vpop.f32.mrf.mxu0  ;;  %v5039_v15 = vrot.slane %v4844_v17, 1  ;;  %v12039_v23 = vpack.c.bf16 %v4843_v46, %v4842_v30  ;;  %v6168_v53 = vrot.slane %v4843_v46, 2  ;;  %v6170_v60 = vrot.slane %v4844_v17, 2  ;;  %v13057_v30 = vld [vmem:[#allocation36_spill] sm:$0xff]  ;;  %v13058_v17 = vld [vmem:[#allocation38_spill] sm:$0xff] }
 0x3a0   : > { %v4752_v56 = vmax.f32 %v4720_v22, 0.0  ;;  %v4689_v8 = vmul.f32 %v11969_v42, %v4657_v45  ;;  %v4622_v49 = vadd.f32 %v8458_v63, %v4461_v21  ;;  %v5038_v31 = vsel %vm1531_vm1, %v5036_v54, %v5037_v48 }
 0x3a1   : > { %v8460_v12 = vpop.f32.mrf.mxu0  ;;  %v5040_v58 = vsel %vm1531_vm1, %v5037_v48, %v5039_v15  ;;  %v6169_v3 = vsel %vm3471_vm3, %v6167_v4, %v6168_v53  ;;  %v6171_v38 = vsel %vm3471_vm3, %v6168_v53, %v6170_v60  ;;  %v4845_v36 = vld [vmem:[#allocation3 + $0x150] sm:$0xff] }
 0x3a2   : > { %4785 = vst [vmem:[#allocation3 + $0x169] sm:$0xff] %v4752_v56  ;;  %v4721_v11 = vadd.f32 %v11980_v19, %v4689_v8  ;;  %v4658_v33 = vadd.f32 %v4622_v49, %v13057_v30  ;;  %v8461_v1 = vadd.f32 %v8460_v12, %v8459_v29  ;;  %v5116_v35 = vpack.c.bf16 %v5040_v58, %v5038_v31 }
 0x3a3   : > { %v12048_v61 = vpack.c.bf16 %v6171_v38, %v6169_v3  ;;  %v5041_v27 = vrot.slane %v4845_v36, 1  ;;  %v6172_v45 = vrot.slane %v4845_v36, 2  ;;  %v12063_v38 = vld [vmem:[#allocation3 + $0x198] sm:$0xff] }
 0x3a4   : > { %v4753_v50 = vmax.f32 %v4721_v11, 0.0  ;;  %v4690_v0 = vmul.f32 %v11969_v42, %v4658_v33  ;;  %v4625_v41 = vadd.f32 %v8461_v1, %v4464_v24  ;;  %5442 = vmatprep.mubr.bf16.mxu1 %v5116_v35  ;;  %8907 = vmatmul.mubr.bf16.gmra.mxu0 %v5116_v35  ;;  %v12065_v1 = vld [vmem:[#allocation3 + $0x1a8] sm:$0x3] }
 0x3a5   : > { %v4846_v21 = vld [vmem:[#allocation3 + $0x158] sm:$0xff]  ;;  %v4847_v39 = vld [vmem:[#allocation3 + $0x160] sm:$0x3] }
 0x3a6   : > { %5443 = vmatmul.mubr.bf16.gmra.mxu1 %v5115_v57  ;;  %4786 = vst [vmem:[#allocation3 + $0x171] sm:$0xff] %v4753_v50  ;;  %v4722_v46 = vadd.f32 %v11980_v19, %v4690_v0  ;;  %v4659_v54 = vadd.f32 %v4625_v41, %v13058_v17  ;;  %v5042_v4 = vrot.slane %v4846_v21, 1  ;;  %v5044_v22 = vrot.slane %v4847_v39, 1 }
 0x3a7   : > { %v12053_v59 = vpack.c.bf16 %v4846_v21, %v4845_v36  ;;  %v6173_v63 = vrot.slane %v4846_v21, 2  ;;  %v6175_v48 = vrot.slane %v4847_v39, 2  ;;  %v5099_v17 = vrot.slane %v12065_v1, 1 }
 0x3a8   : > { %v4754_v29 = vmax.f32 %v4722_v46, 0.0  ;;  %v4691_v15 = vmul.f32 %v11969_v42, %v4659_v54  ;;  %v5043_v57 = vsel %vm1531_vm1, %v5041_v27, %v5042_v4  ;;  %v5045_v53 = vsel %vm1531_vm1, %v5042_v4, %v5044_v22  ;;  %v12073_v27 = vld [vmem:[#allocation2 + $0x18] sm:$0xff] }
 0x3a9   : > { %v5117_v60 = vpack.c.bf16 %v5045_v53, %v5043_v57  ;;  %v6174_v56 = vsel %vm3471_vm3, %v6172_v45, %v6173_v63  ;;  %v6176_v8 = vsel %vm3471_vm3, %v6173_v63, %v6175_v48  ;;  %v4848_v31 = vld [vmem:[#allocation3 + $0x168] sm:$0xff]  ;;  %v5097_v46 = vrot.slane %v12073_v27, 1 }
 0x3aa   : > { %4787 = vst [vmem:[#allocation3 + $0x181] sm:$0xff] %v4754_v29  ;;  %v4723_v49 = vadd.f32 %v11980_v19, %v4691_v15  ;;  %v12061_v24 = vpack.c.bf16 %v6176_v8, %v6174_v56  ;;  %v5046_v3 = vrot.slane %v4848_v31, 1  ;;  %v6177_v11 = vrot.slane %v4848_v31, 2 }
 0x3ab   : > { %5450 = vmatprep.mubr.bf16.mxu1 %v5117_v60  ;;  %8910 = vmatprep.mubr.bf16.mxu0 %v5117_v60  ;;  %v5100_v15 = vsel %vm1531_vm1, %v5097_v46, %v5099_v17  ;;  %v9286_v17 = vld [vmem:[%s12854_s5 + $0x1a0] sm:$0xff]  }
 0x3ac   : > { %v4755_v12 = vmax.f32 %v4723_v49, 0.0 }
 0x3ad   : > { %v4849_v42 = vld [vmem:[#allocation3 + $0x170] sm:$0xff]  ;;  %v4850_v58 = vld [vmem:[#allocation3 + $0x178] sm:$0x3] }
 0x3ae   : > { %5451 = vmatmul.mubr.bf16.gmra.mxu1 %v5116_v35  ;;  %4788 = vst [vmem:[#allocation3 + $0x189] sm:$0xff] %v4755_v12  ;;  %v5047_v30 = vrot.slane %v4849_v42, 1  ;;  %v5049_v33 = vrot.slane %v4850_v58, 1  ;;  %v12067_v36 = vpack.c.bf16 %v4849_v42, %v4848_v31  ;;  %v6178_v19 = vrot.slane %v4849_v42, 2 }
 0x3af   : > { %v6180_v50 = vrot.slane %v4850_v58, 2  ;;  %v5096_v35 = vrot.slane %v12063_v38, 1 }
 0x3b0   : > { %v5048_v0 = vsel %vm1531_vm1, %v5046_v3, %v5047_v30  ;;  %v5050_v41 = vsel %vm1531_vm1, %v5047_v30, %v5049_v33  ;;  %v6179_v21 = vsel %vm3471_vm3, %v6177_v11, %v6178_v19  ;;  %v12098_v30 = vld [vmem:[#allocation3] sm:$0xff] }
 0x3b1   : > { %v5118_v39 = vpack.c.bf16 %v5050_v41, %v5048_v0  ;;  %v6181_v54 = vsel %vm3471_vm3, %v6178_v19, %v6180_v50  ;;  %v12078_v4 = vld [vmem:[#allocation3 + $0x180] sm:$0xff]  ;;  %v5098_v29 = vsel %vm1531_vm1, %v5096_v35, %v5097_v46  ;;  %v4857_v33 = vpack.c.bf16 %v12073_v27, %v12098_v30  ;;  %v9278_v19 = vld [vmem:[%s12854_s5 + $0x1b8] sm:$0xff]   ;;  %v9280_v50 = vld [vmem:[%s12854_s5 + $0x1f0] sm:$0xff]  }
 0x3b2   : > { %v12080_v22 = vpack.c.bf16 %v6181_v54, %v6179_v21  ;;  %v5086_v48 = vrot.slane %v12078_v4, 1  ;;  %v6214_v56 = vrot.slane %v12078_v4, 2  ;;  %v5120_v12 = vpack.c.bf16 %v5100_v15, %v5098_v29  ;;  %v9284_v0 = vld [vmem:[%s12854_s5 + $0x230] sm:$0xff]   ;;  %v9282_v35 = vld [vmem:[%s12854_s5 + $0x1e8] sm:$0xff]   ;;  %v9294_v46 = vld [vmem:[%s12854_s5 + $0x220] sm:$0xff]  }
 0x3b3   : > { %5458 = vmatprep.mubr.bf16.mxu1 %v5118_v39  ;;  %8911 = vmatmul.mubr.bf16.gmra.mxu0 %v5118_v39  ;;  %v9281_v41 = vld [vmem:[%s12854_s5 + $0x1b0] sm:$0xff]   ;;  %v9289_v21 = vld [vmem:[%s12854_s5 + $0x228] sm:$0xff]   ;;  %v9287_v54 = vld [vmem:[%s12854_s5 + $0x1d8] sm:$0xff]  }
 0x3b4   : > { %v9298_v29 = vld [vmem:[%s12854_s5 + $0x210] sm:$0xff]  }
 0x3b5   : > { %v12082_v45 = vld [vmem:[#allocation3 + $0x188] sm:$0xff]  ;;  %v4853_v63 = vld [vmem:[#allocation3 + $0x190] sm:$0x3] }
 0x3b6   : > { %5459 = vmatmul.mubr.bf16.gmra.mxu1 %v5117_v60  ;;  %v5087_v57 = vrot.slane %v12082_v45, 1  ;;  %v5089_v53 = vrot.slane %v4853_v63, 1  ;;  %v6215_v8 = vrot.slane %v12082_v45, 2  ;;  %v6217_v49 = vrot.slane %v4853_v63, 2  ;;  %v9288_v63 = vld [vmem:[%s12854_s5 + $0x198] sm:$0xff]   ;;  %v9291_v15 = vld [vmem:[%s12854_s5 + $0x190] sm:$0xff]  }
 0x3b8   : > { %v5088_v31 = vsel %vm1531_vm1, %v5086_v48, %v5087_v57  ;;  %v5090_v60 = vsel %vm1531_vm1, %v5087_v57, %v5089_v53  ;;  %v6216_v42 = vsel %vm3471_vm3, %v6214_v56, %v6215_v8  ;;  %v6218_v3 = vsel %vm3471_vm3, %v6215_v8, %v6217_v49  ;;  %v9290_v48 = vld [vmem:[%s12854_s5 + $0x1d0] sm:$0xff]   ;;  %v9292_v57 = vld [vmem:[%s12854_s5 + $0x1c8] sm:$0xff]   ;;  %v9295_v56 = vld [vmem:[%s12854_s5 + $0x1c0] sm:$0xff]  }
 0x3b9   : > { %v5119_v58 = vpack.c.bf16 %v5090_v60, %v5088_v31  ;;  %v12094_v11 = vpack.c.bf16 %v6218_v3, %v6216_v42  ;;  %v9293_v53 = vld [vmem:[%s12854_s5 + $0x188] sm:$0xff]   ;;  %v9300_v8 = vld [vmem:[%s12854_s5 + $0x200] sm:$0xff]   ;;  %v12204_v31 = vrot.slane %v12073_v27, 2  ;;  %v9481_v60 = vld [vmem:[#allocation3 + $0x10] sm:$0x3] }
 0x3ba   : > { %v9296_v49 = vld [vmem:[%s12854_s5 + $0x180] sm:$0xff]  }
 0x3bb   : > { %5466 = vmatprep.mubr.bf16.mxu1 %v5119_v58  ;;  %8914 = vmatprep.mubr.bf16.mxu0 %v5119_v58 }
 0x3bc   : > { %8915 = vmatmul.mubr.bf16.gmra.mxu0 %v5120_v12  ;;  %v6105_v12 = vrot.slane %v9481_v60, 2 }
 0x3bd   : > { %8934 = vmatprep.mubr.bf16.mxu0 %v11686_v32 }
 0x3be   : > { %5467 = vmatmul.mubr.bf16.gmra.mxu1 %v5118_v39  ;;  %v9283_v39 = vld [vmem:[%s12854_s5 + $0x1a8] sm:$0xff]  }
 0x3bf   : > { %5812 = vmatprep.mubr.bf16.mxu1 %v11648_v37 }
 0x3c4   : > { %8935 = vmatmul.mubr.bf16.vlgmr.msra.gmra.mxu0 %v11722_v16 }
 0x3c5   : > { %8938 = vmatprep.mubr.bf16.mxu0 %v11774_v13  ;;  %8735 = vmatpush3.bf16.msra.mxu0 %v9278_v19 }
 0x3c6   : > { %5813 = vmatmul.mubr.bf16.vlgmr.msra.gmra.mxu1 %v4857_v33  ;;  %8736 = vmatprep.subr.bf16.mxu0 %v9280_v50 }
 0x3c7   : > { %5820 = vmatprep.mubr.bf16.mxu1 %v11686_v32  ;;  %8967 = vmatpush3.bf16.msra.mxu1 %v11842_v44  ;;  %v9285_v44 = vld [vmem:[%s12854_s5 + $0x1e0] sm:$0xff]  }
 0x3c8   : > { %8968 = vmatprep.subr.bf16.mxu1 %v9284_v0 }
 0x3c9   : > { %8737 = vmatpush3.bf16.msra.mxu0 %v9281_v41 }
 0x3ca   : > { %8738 = vmatprep.subr.bf16.mxu0 %v9282_v35 }
 0x3cb   : > { %8969 = vmatpush3.bf16.msra.mxu1 %v9284_v0 }
 0x3cc   : > { %8939 = vmatmul.mubr.bf16.gmra.mxu0 %v11822_v18  ;;  %8970 = vmatprep.subr.bf16.mxu1 %v9289_v21 }
 0x3cd   : > { %8942 = vmatprep.mubr.bf16.mxu0 %v11864_v20  ;;  %8739 = vmatpush3.bf16.msra.mxu0 %v9283_v39 }
 0x3ce   : > { %5821 = vmatmul.mubr.bf16.gmra.mxu1 %v11648_v37  ;;  %8740 = vmatprep.subr.bf16.mxu0 %v9285_v44  ;;  %v9297_v37 = vld [vmem:[%s12854_s5 + $0x218] sm:$0xff]  }
 0x3cf   : > { %5828 = vmatprep.mubr.bf16.mxu1 %v11722_v16  ;;  %8971 = vmatpush3.bf16.msra.mxu1 %v9289_v21 }
 0x3d0   : > { %8972 = vmatprep.subr.bf16.mxu1 %v9294_v46 }
 0x3d1   : > { %8741 = vmatpush3.bf16.msra.mxu0 %v9286_v17 }
 0x3d2   : > { %8742 = vmatprep.subr.bf16.mxu0 %v9287_v54 }
 0x3d3   : > { %8973 = vmatpush3.bf16.msra.mxu1 %v9294_v46 }
 0x3d4   : > { %8943 = vmatmul.mubr.bf16.gmra.mxu0 %v11900_v62  ;;  %8974 = vmatprep.subr.bf16.mxu1 %v9297_v37 }
 0x3d5   : > { %8946 = vmatprep.mubr.bf16.mxu0 %v11926_v55  ;;  %8743 = vmatpush3.bf16.msra.mxu0 %v9288_v63 }
 0x3d6   : > { %5829 = vmatmul.mubr.bf16.gmra.mxu1 %v11686_v32  ;;  %8744 = vmatprep.subr.bf16.mxu0 %v9290_v48  ;;  %v9299_v32 = vld [vmem:[%s12854_s5 + $0x208] sm:$0xff]  }
 0x3d7   : > { %5836 = vmatprep.mubr.bf16.mxu1 %v11774_v13  ;;  %8975 = vmatpush3.bf16.msra.mxu1 %v9297_v37 }
 0x3d8   : > { %8976 = vmatprep.subr.bf16.mxu1 %v9298_v29 }
 0x3d9   : > { %8745 = vmatpush3.bf16.msra.mxu0 %v9291_v15 }
 0x3da   : > { %8746 = vmatprep.subr.bf16.mxu0 %v9292_v57 }
 0x3db   : > { %8977 = vmatpush3.bf16.msra.mxu1 %v9298_v29 }
 0x3dc   : > { %8947 = vmatmul.mubr.bf16.gmra.mxu0 %v11951_v52  ;;  %8978 = vmatprep.subr.bf16.mxu1 %v9299_v32 }
 0x3dd   : > { %8950 = vmatprep.mubr.bf16.mxu0 %v11984_v26  ;;  %8747 = vmatpush3.bf16.msra.mxu0 %v9293_v53 }
 0x3de   : > { %5837 = vmatmul.mubr.bf16.gmra.mxu1 %v11722_v16  ;;  %8748 = vmatprep.subr.bf16.mxu0 %v9295_v56  ;;  %v12194_v16 = vpack.c.bf16 %v12082_v45, %v12078_v4  ;;  %v6106_v4 = vsel %vm3471_vm3, %v12204_v31, %v6105_v12 }
 0x3df   : > { %5844 = vmatprep.mubr.bf16.mxu1 %v11822_v18  ;;  %8979 = vmatpush3.bf16.msra.mxu1 %v9299_v32 }
 0x3e0   : > { %8980 = vmatprep.subr.bf16.mxu1 %v9300_v8 }
 0x3e1   : > { %8749 = vmatpush3.bf16.msra.mxu0 %v9296_v49 }
 0x3e3   : > { %8981 = vmatpush3.bf16.msra.mxu1 %v9300_v8 }
 0x3e4   : > { %8951 = vmatmul.mubr.bf16.gmra.mxu0 %v12005_v7 }
 0x3e5   : > { %8954 = vmatprep.mubr.bf16.mxu0 %v12022_v40 }
 0x3e6   : > { %5845 = vmatmul.mubr.bf16.gmra.mxu1 %v11774_v13  ;;  %v4874_v13 = vpack.c.bf16 %v12073_v27, %v12063_v38 }
 0x3e7   : > { %5852 = vmatprep.mubr.bf16.mxu1 %v11864_v20 }
 0x3ec   : > { %8955 = vmatmul.mubr.bf16.gmra.mxu0 %v12039_v23 }
 0x3ed   : > { %8958 = vmatprep.mubr.bf16.mxu0 %v12053_v59 }
 0x3ee   : > { %5853 = vmatmul.mubr.bf16.gmra.mxu1 %v11822_v18  ;;  %v6102_v18 = vrot.slane %v12098_v30, 2 }
 0x3ef   : > { %5860 = vmatprep.mubr.bf16.mxu1 %v11900_v62 }
 0x3f4   : > { %8959 = vmatmul.mubr.bf16.gmra.mxu0 %v12067_v36 }
 0x3f5   : > { %8962 = vmatprep.mubr.bf16.mxu0 %v12194_v16 }
 0x3f6   : > { %5861 = vmatmul.mubr.bf16.gmra.mxu1 %v11864_v20  ;;  %v6104_v20 = vsel %vm3471_vm3, %v6102_v18, %v12204_v31 }
 0x3f7   : > { %5868 = vmatprep.mubr.bf16.mxu1 %v11926_v55  ;;  %v6228_v45 = vpack.c.bf16 %v6106_v4, %v6104_v20 }
 0x3fc   : > { %8963 = vmatmul.mubr.bf16.gmra.mxu0 %v4874_v13 }
 0x3fd   : > { %6471 = vmatprep.mubr.bf16.mxu0 %v11671_v5 }
 0x3fe   : > { %5869 = vmatmul.mubr.bf16.gmra.mxu1 %v11900_v62 }
 0x3ff   : > { %5876 = vmatprep.mubr.bf16.mxu1 %v11951_v52 }
 0x404   : > { %6472 = vmatmul.mubr.bf16.vlgmr.msra.gmra.mxu0 %v6228_v45 }
 0x405   : > { %v8478_v42 = vpop.f32.mrf.mxu1  ;;  %6479 = vmatprep.mubr.bf16.mxu0 %v11712_v2 }
 0x406   : > { %5877 = vmatmul.mubr.bf16.gmra.mxu1 %v11926_v55 }
 0x407   : > { %5884 = vmatprep.mubr.bf16.mxu1 %v11984_v26  ;;  %v8479_v62 = vpop.f32.mrf.mxu1 }
 0x408   : > { %v8480_v27 = vadd.f32 %v8479_v62, %v8478_v42 }
 0x409   : > { %v8481_v58 = vpop.f32.mrf.mxu1 }
 0x40b   : > { %v8482_v3 = vpop.f32.mrf.mxu1 }
 0x40c   : > { %v12216_v30 = vadd.f32 %v8482_v3, %v8481_v58  ;;  %6480 = vmatmul.mubr.bf16.gmra.mxu0 %v11671_v5 }
 0x40d   : > { %v8484_v33 = vpop.f32.mrf.mxu1  ;;  %6487 = vmatprep.mubr.bf16.mxu0 %v11757_v51 }
 0x40e   : > { %5885 = vmatmul.mubr.bf16.gmra.mxu1 %v11951_v52 }
 0x40f   : > { %5892 = vmatprep.mubr.bf16.mxu1 %v12005_v7  ;;  %v8485_v55 = vpop.f32.mrf.mxu1 }
 0x410   : > { %v8486_v19 = vadd.f32 %v8485_v55, %v8484_v33 }
 0x411   : > { %v8487_v50 = vpop.f32.mrf.mxu1 }
 0x413   : > { %v8488_v0 = vpop.f32.mrf.mxu1 }
 0x414   : > { %v8489_v41 = vadd.f32 %v8488_v0, %v8487_v50  ;;  %6488 = vmatmul.mubr.bf16.gmra.mxu0 %v11712_v2 }
 0x415   : > { %v8888_v35 = vpop.f32.mrf.mxu0  ;;  %v8490_v39 = vpop.f32.mrf.mxu1  ;;  %6495 = vmatprep.mubr.bf16.mxu0 %v11806_v9 }
 0x416   : > { %v12223_v21 = vadd.f32 %v8888_v35, %v8486_v19  ;;  %5893 = vmatmul.mubr.bf16.gmra.mxu1 %v11984_v26 }
 0x417   : > { %v5509_v5 = vpop.f32.mrf.mxu0  ;;  %5900 = vmatprep.mubr.bf16.mxu1 %v12022_v40  ;;  %v8491_v44 = vpop.f32.mrf.mxu1 }
 0x418   : > { %v12228_v52 = vadd.f32 %v8480_v27, %v5509_v5  ;;  %v8492_v46 = vadd.f32 %v8491_v44, %v8490_v39 }
 0x419   : > { %v8889_v17 = vpop.f32.mrf.mxu0  ;;  %v8493_v37 = vpop.f32.mrf.mxu1 }
 0x41a   : > { %v12230_v54 = vadd.f32 %v8889_v17, %v8489_v41 }
 0x41b   : > { %v8494_v63 = vpop.f32.mrf.mxu1  ;;  %v12238_v32 = vpop.f32.mrf.mxu0 }
 0x41c   : > { %v12232_v48 = vadd.f32 %v8494_v63, %v8493_v37  ;;  %6496 = vmatmul.mubr.bf16.gmra.mxu0 %v11757_v51 }
 0x41d   : > { %6503 = vmatprep.mubr.bf16.mxu0 %v11851_v47 }
 0x41e   : > { %v8496_v29 = vpop.f32.mrf.mxu1  ;;  %5901 = vmatmul.mubr.bf16.gmra.mxu1 %v12005_v7 }
 0x41f   : > { %5908 = vmatprep.mubr.bf16.mxu1 %v12039_v23 }
 0x420   : > { %v8497_v26 = vpop.f32.mrf.mxu1 }
 0x421   : > { %v8498_v15 = vadd.f32 %v8497_v26, %v8496_v29 }
 0x422   : > { %v8499_v57 = vpop.f32.mrf.mxu1 }
 0x424   : > { %v8500_v53 = vpop.f32.mrf.mxu1  ;;  %v8892_v8 = vpop.f32.mrf.mxu0  ;;  %6504 = vmatmul.mubr.bf16.gmra.mxu0 %v11806_v9 }
 0x425   : > { %v8501_v56 = vadd.f32 %v8500_v53, %v8499_v57  ;;  %v12241_v49 = vadd.f32 %v8892_v8, %v8498_v15  ;;  %6511 = vmatprep.mubr.bf16.mxu0 %v11884_v10 }
 0x426   : > { %v8502_v13 = vpop.f32.mrf.mxu1  ;;  %5909 = vmatmul.mubr.bf16.gmra.mxu1 %v12022_v40  ;;  %v5525_v7 = vpop.f32.mrf.mxu0 }
 0x427   : > { %5916 = vmatprep.mubr.bf16.mxu1 %v12053_v59  ;;  %v12246_v18 = vadd.f32 %v8492_v46, %v5525_v7 }
 0x428   : > { %v8503_v60 = vpop.f32.mrf.mxu1  ;;  %v8893_v20 = vpop.f32.mrf.mxu0 }
 0x429   : > { %v8504_v12 = vadd.f32 %v8503_v60, %v8502_v13  ;;  %v12248_v4 = vadd.f32 %v8893_v20, %v8501_v56 }
 0x42a   : > { %v8505_v45 = vpop.f32.mrf.mxu1  ;;  %v12254_v33 = vpop.f32.mrf.mxu0 }
 0x42c   : > { %v8506_v42 = vpop.f32.mrf.mxu1  ;;  %6512 = vmatmul.mubr.bf16.gmra.mxu0 %v11851_v47 }
 0x42d   : > { %v8507_v62 = vadd.f32 %v8506_v42, %v8505_v45  ;;  %6519 = vmatprep.mubr.bf16.mxu0 %v11915_v43 }
 0x42e   : > { %v8508_v27 = vpop.f32.mrf.mxu1  ;;  %5917 = vmatmul.mubr.bf16.gmra.mxu1 %v12039_v23 }
 0x42f   : > { %5924 = vmatprep.mubr.bf16.mxu1 %v12067_v36 }
 0x430   : > { %v8509_v40 = vpop.f32.mrf.mxu1 }
 0x431   : > { %v8510_v58 = vadd.f32 %v8509_v40, %v8508_v27 }
 0x432   : > { %v8511_v3 = vpop.f32.mrf.mxu1 }
 0x434   : > { %v8512_v55 = vpop.f32.mrf.mxu1  ;;  %v8896_v50 = vpop.f32.mrf.mxu0  ;;  %6520 = vmatmul.mubr.bf16.gmra.mxu0 %v11884_v10 }
 0x435   : > { %v8513_v19 = vadd.f32 %v8512_v55, %v8511_v3  ;;  %v12257_v0 = vadd.f32 %v8896_v50, %v8510_v58  ;;  %6527 = vmatprep.mubr.bf16.mxu0 %v11941_v14 }
 0x436   : > { %v8514_v41 = vpop.f32.mrf.mxu1  ;;  %5925 = vmatmul.mubr.bf16.gmra.mxu1 %v12053_v59  ;;  %v5541_v23 = vpop.f32.mrf.mxu0 }
 0x437   : > { %5932 = vmatprep.mubr.bf16.mxu1 %v12194_v16  ;;  %v12262_v35 = vadd.f32 %v8504_v12, %v5541_v23 }
 0x438   : > { %v8515_v39 = vpop.f32.mrf.mxu1  ;;  %v8897_v44 = vpop.f32.mrf.mxu0 }
 0x439   : > { %v8516_v5 = vadd.f32 %v8515_v39, %v8514_v41  ;;  %v12264_v46 = vadd.f32 %v8897_v44, %v8513_v19 }
 0x43a   : > { %v8517_v17 = vpop.f32.mrf.mxu1  ;;  %v5544_v37 = vpop.f32.mrf.mxu0 }
 0x43b   : > { %v12266_v63 = vadd.f32 %v8507_v62, %v5544_v37 }
 0x43c   : > { %v8518_v29 = vpop.f32.mrf.mxu1  ;;  %6528 = vmatmul.mubr.bf16.gmra.mxu0 %v11915_v43 }
 0x43d   : > { %v8519_v26 = vadd.f32 %v8518_v29, %v8517_v17  ;;  %6535 = vmatprep.mubr.bf16.mxu0 %v11972_v28 }
 0x43e   : > { %v8520_v59 = vpop.f32.mrf.mxu1  ;;  %5933 = vmatmul.mubr.bf16.gmra.mxu1 %v12067_v36 }
 0x43f   : > { %8982 = vmatprep.mubr.bf16.mxu1 %v11712_v2 }
 0x440   : > { %v8521_v16 = vpop.f32.mrf.mxu1 }
 0x441   : > { %v8522_v15 = vadd.f32 %v8521_v16, %v8520_v59 }
 0x442   : > { %v8523_v57 = vpop.f32.mrf.mxu1 }
 0x444   : > { %v8524_v53 = vpop.f32.mrf.mxu1  ;;  %v8900_v8 = vpop.f32.mrf.mxu0  ;;  %6536 = vmatmul.mubr.bf16.gmra.mxu0 %v11941_v14 }
 0x445   : > { %v8525_v56 = vadd.f32 %v8524_v53, %v8523_v57  ;;  %v12273_v13 = vadd.f32 %v8900_v8, %v8522_v15  ;;  %6543 = vmatprep.mubr.bf16.mxu0 %v11999_v6 }
 0x446   : > { %v8526_v7 = vpop.f32.mrf.mxu1  ;;  %8983 = vmatmul.mubr.bf16.vlgmr.msra.gmra.mxu1 %v11757_v51  ;;  %v5557_v36 = vpop.f32.mrf.mxu0 }
 0x447   : > { %8986 = vmatprep.mubr.bf16.mxu1 %v11806_v9  ;;  %v12278_v60 = vadd.f32 %v8516_v5, %v5557_v36 }
 0x448   : > { %v8527_v2 = vpop.f32.mrf.mxu1  ;;  %v8901_v20 = vpop.f32.mrf.mxu0 }
 0x449   : > { %v8528_v12 = vadd.f32 %v8527_v2, %v8526_v7  ;;  %v12280_v45 = vadd.f32 %v8901_v20, %v8525_v56 }
 0x44a   : > { %v8529_v42 = vpop.f32.mrf.mxu1  ;;  %v5560_v62 = vpop.f32.mrf.mxu0 }
 0x44b   : > { %v12282_v27 = vadd.f32 %v8519_v26, %v5560_v62 }
 0x44c   : > { %v8530_v40 = vpop.f32.mrf.mxu1  ;;  %6544 = vmatmul.mubr.bf16.gmra.mxu0 %v11972_v28 }
 0x44d   : > { %v8531_v58 = vadd.f32 %v8530_v40, %v8529_v42  ;;  %6551 = vmatprep.mubr.bf16.mxu0 %v12016_v34 }
 0x44e   : > { %v8532_v51 = vpop.f32.mrf.mxu1  ;;  %8987 = vmatmul.mubr.bf16.gmra.mxu1 %v11851_v47 }
 0x44f   : > { %8990 = vmatprep.mubr.bf16.mxu1 %v11884_v10 }
 0x450   : > { %v8533_v9 = vpop.f32.mrf.mxu1 }
 0x451   : > { %v8534_v3 = vadd.f32 %v8533_v9, %v8532_v51 }
 0x452   : > { %v8535_v55 = vpop.f32.mrf.mxu1 }
 0x454   : > { %v8536_v19 = vpop.f32.mrf.mxu1  ;;  %v8904_v41 = vpop.f32.mrf.mxu0  ;;  %6552 = vmatmul.mubr.bf16.gmra.mxu0 %v11999_v6 }
 0x455   : > { %v8537_v50 = vadd.f32 %v8536_v19, %v8535_v55  ;;  %v12289_v23 = vadd.f32 %v8904_v41, %v8534_v3  ;;  %6559 = vmatprep.mubr.bf16.mxu0 %v12031_v25  ;;  %v6224_v41 = vrot.slane %v12065_v1, 2 }
 0x456   : > { %v8538_v39 = vpop.f32.mrf.mxu1  ;;  %8991 = vmatmul.mubr.bf16.gmra.mxu1 %v11915_v43  ;;  %v5573_v47 = vpop.f32.mrf.mxu0 }
 0x457   : > { %8994 = vmatprep.mubr.bf16.mxu1 %v11941_v14  ;;  %v12294_v5 = vadd.f32 %v8528_v12, %v5573_v47  ;;  %v6225_v1 = vsel %vm3471_vm3, %v12204_v31, %v6224_v41 }
 0x458   : > { %v8539_v10 = vpop.f32.mrf.mxu1  ;;  %v8905_v17 = vpop.f32.mrf.mxu0 }
 0x459   : > { %v8540_v44 = vadd.f32 %v8539_v10, %v8538_v39  ;;  %v12296_v37 = vadd.f32 %v8905_v17, %v8537_v50  ;;  %v6221_v50 = vrot.slane %v12063_v38, 2 }
 0x45a   : > { %v8541_v29 = vpop.f32.mrf.mxu1  ;;  %v5576_v26 = vpop.f32.mrf.mxu0 }
 0x45b   : > { %v12298_v59 = vadd.f32 %v8531_v58, %v5576_v26  ;;  %v6223_v38 = vsel %vm3471_vm3, %v6221_v50, %v12204_v31 }
 0x45c   : > { %v8542_v16 = vpop.f32.mrf.mxu1  ;;  %6560 = vmatmul.mubr.bf16.gmra.mxu0 %v12016_v34 }
 0x45d   : > { %v8543_v15 = vadd.f32 %v8542_v16, %v8541_v29  ;;  %6567 = vmatprep.mubr.bf16.mxu0 %v12048_v61 }
 0x45e   : > { %v8544_v43 = vpop.f32.mrf.mxu1  ;;  %8995 = vmatmul.mubr.bf16.gmra.mxu1 %v11972_v28 }
 0x45f   : > { %8998 = vmatprep.mubr.bf16.mxu1 %v11999_v6 }
 0x460   : > { %v8545_v14 = vpop.f32.mrf.mxu1 }
 0x461   : > { %v8546_v57 = vadd.f32 %v8545_v14, %v8544_v43 }
 0x462   : > { %v8547_v53 = vpop.f32.mrf.mxu1 }
 0x464   : > { %v8548_v56 = vpop.f32.mrf.mxu1  ;;  %v8908_v7 = vpop.f32.mrf.mxu0  ;;  %6568 = vmatmul.mubr.bf16.gmra.mxu0 %v12031_v25 }
 0x465   : > { %v8549_v8 = vadd.f32 %v8548_v56, %v8547_v53  ;;  %v12305_v36 = vadd.f32 %v8908_v7, %v8546_v57  ;;  %6575 = vmatprep.mubr.bf16.mxu0 %v12061_v24  ;;  %v6245_v57 = vpack.c.bf16 %v6225_v1, %v6223_v38  ;;  %v5513_v38 = vadd.f32 %v12216_v30, %v12238_v32 }
 0x466   : > { %v8550_v2 = vpop.f32.mrf.mxu1  ;;  %8999 = vmatmul.mubr.bf16.gmra.mxu1 %v12016_v34  ;;  %v5589_v28 = vpop.f32.mrf.mxu0 }
 0x467   : > { %9002 = vmatprep.mubr.bf16.mxu1 %v12031_v25  ;;  %v12310_v12 = vadd.f32 %v8540_v44, %v5589_v28 }
 0x468   : > { %v8551_v6 = vpop.f32.mrf.mxu1  ;;  %v8909_v42 = vpop.f32.mrf.mxu0 }
 0x469   : > { %v8552_v20 = vadd.f32 %v8551_v6, %v8550_v2  ;;  %v12312_v62 = vadd.f32 %v8909_v42, %v8549_v8 }
 0x46a   : > { %v8553_v40 = vpop.f32.mrf.mxu1  ;;  %v5592_v58 = vpop.f32.mrf.mxu0 }
 0x46b   : > { %v12314_v51 = vadd.f32 %v8543_v15, %v5592_v58 }
 0x46c   : > { %v8554_v9 = vpop.f32.mrf.mxu1  ;;  %6576 = vmatmul.mubr.bf16.gmra.mxu0 %v12048_v61 }
 0x46d   : > { %v8555_v3 = vadd.f32 %v8554_v9, %v8553_v40  ;;  %6583 = vmatprep.mubr.bf16.mxu0 %v12080_v22 }
 0x46e   : > { %v8556_v34 = vpop.f32.mrf.mxu1  ;;  %9003 = vmatmul.mubr.bf16.gmra.mxu1 %v12048_v61 }
 0x46f   : > { %9006 = vmatprep.mubr.bf16.mxu1 %v12061_v24 }
 0x470   : > { %v8557_v25 = vpop.f32.mrf.mxu1 }
 0x471   : > { %v8558_v55 = vadd.f32 %v8557_v25, %v8556_v34 }
 0x472   : > { %v8559_v19 = vpop.f32.mrf.mxu1 }
 0x473   : > { %v8912_v47 = vpop.f32.mrf.mxu0 }
 0x474   : > { %v8560_v39 = vpop.f32.mrf.mxu1  ;;  %v12322_v44 = vadd.f32 %v8912_v47, %v8558_v55  ;;  %6584 = vmatmul.mubr.bf16.gmra.mxu0 %v12061_v24 }
 0x475   : > { %v8561_v10 = vadd.f32 %v8560_v39, %v8559_v19  ;;  %v5605_v61 = vpop.f32.mrf.mxu0  ;;  %6591 = vmatprep.mubr.bf16.mxu0 %v12094_v11 }
 0x476   : > { %v8562_v17 = vpop.f32.mrf.mxu1  ;;  %9007 = vmatmul.mubr.bf16.gmra.mxu1 %v12080_v22  ;;  %v12327_v29 = vadd.f32 %v8552_v20, %v5605_v61 }
 0x477   : > { %9010 = vmatprep.mubr.bf16.mxu1 %v12094_v11  ;;  %v8913_v16 = vpop.f32.mrf.mxu0 }
 0x478   : > { %v8563_v26 = vpop.f32.mrf.mxu1  ;;  %v12334_v24 = vadd.f32 %v8913_v16, %v8561_v10 }
 0x479   : > { %v8564_v15 = vadd.f32 %v8563_v26, %v8562_v17  ;;  %v5608_v14 = vpop.f32.mrf.mxu0 }
 0x47a   : > { %v8565_v43 = vpop.f32.mrf.mxu1  ;;  %v12336_v53 = vadd.f32 %v8555_v3, %v5608_v14 }
 0x47c   : > { %v8566_v56 = vpop.f32.mrf.mxu1  ;;  %v8916_v7 = vpop.f32.mrf.mxu0  ;;  %6592 = vmatmul.mubr.bf16.gmra.mxu0 %v12080_v22 }
 0x47d   : > { %v8567_v8 = vadd.f32 %v8566_v56, %v8565_v43 }
 0x47e   : > { %v8568_v11 = vpop.f32.mrf.mxu1  ;;  %9011 = vmatmul.mubr.bf16.gmra.mxu1 %v6245_v57  ;;  %v5621_v2 = vpop.f32.mrf.mxu0 }
 0x47f   : > { %v12339_v31 = vadd.f32 %v8564_v15, %v5621_v2 }
 0x480   : > { %v8569_v28 = vpop.f32.mrf.mxu1  ;;  %v8917_v20 = vpop.f32.mrf.mxu0 }
 0x481   : > { %v8570_v6 = vadd.f32 %v8569_v28, %v8568_v11 }
 0x482   : > { %v8571_v42 = vpop.f32.mrf.mxu1  ;;  %v5624_v58 = vpop.f32.mrf.mxu0 }
 0x483   : > { %v12341_v40 = vadd.f32 %v8916_v7, %v8570_v6  ;;  %v12343_v3 = vadd.f32 %v8567_v8, %v5624_v58 }
 0x484   : > { %v8572_v9 = vpop.f32.mrf.mxu1  ;;  %v8936_v25 = vpop.f32.mrf.mxu0 }
 0x485   : > { %13059 = vst [vmem:[#allocation13_spill] sm:$0xff] %v12341_v40  ;;  %v8573_v34 = vadd.f32 %v8572_v9, %v8571_v42 }
 0x486   : > { %v8614_v55 = vpop.f32.mrf.mxu1  ;;  %v5975_v22 = vpop.f32.mrf.mxu0 }
 0x487   : > { %v12345_v19 = vadd.f32 %v8917_v20, %v8573_v34 }
 0x488   : > { %v8615_v50 = vpop.f32.mrf.mxu1  ;;  %v8937_v39 = vpop.f32.mrf.mxu0 }
 0x489   : > { %13060 = vst [vmem:[#allocation12_spill] sm:$0xff] %v12345_v19  ;;  %v8616_v41 = vadd.f32 %v8615_v50, %v8614_v55 }
 0x48a   : > { %v8617_v47 = vpop.f32.mrf.mxu1  ;;  %v5978_v17 = vpop.f32.mrf.mxu0 }
 0x48b   : > { %v5815_v10 = vadd.f32 %v8616_v41, %v12228_v52 }
 0x48c   : > { %v8618_v61 = vpop.f32.mrf.mxu1  ;;  %v8940_v16 = vpop.f32.mrf.mxu0 }
 0x48d   : > { %v12350_v1 = vadd.f32 %v5975_v22, %v5815_v10  ;;  %v8619_v26 = vadd.f32 %v8618_v61, %v8617_v47  ;;  %v5529_v10 = vadd.f32 %v12232_v48, %v12254_v33 }
 0x48e   : > { %v8620_v15 = vpop.f32.mrf.mxu1  ;;  %v5991_v14 = vpop.f32.mrf.mxu0 }
 0x48f   : > { %v5818_v43 = vadd.f32 %v8619_v26, %v5513_v38 }
 0x490   : > { %v8621_v57 = vpop.f32.mrf.mxu1  ;;  %v8941_v7 = vpop.f32.mrf.mxu0 }
 0x491   : > { %v12352_v56 = vadd.f32 %v5978_v17, %v5818_v43  ;;  %v8622_v8 = vadd.f32 %v8621_v57, %v8620_v15 }
 0x492   : > { %v8623_v11 = vpop.f32.mrf.mxu1  ;;  %v5994_v2 = vpop.f32.mrf.mxu0 }
 0x493   : > { %v5823_v52 = vadd.f32 %v8622_v8, %v12223_v21 }
 0x494   : > { %v8624_v28 = vpop.f32.mrf.mxu1  ;;  %v8944_v20 = vpop.f32.mrf.mxu0 }
 0x495   : > { %v8625_v6 = vadd.f32 %v8624_v28, %v8623_v11  ;;  %v12355_v30 = vadd.f32 %v8936_v25, %v5823_v52 }
 0x496   : > { %v8626_v32 = vpop.f32.mrf.mxu1  ;;  %v6007_v58 = vpop.f32.mrf.mxu0 }
 0x497   : > { %v5826_v42 = vadd.f32 %v8625_v6, %v12230_v54 }
 0x498   : > { %v8627_v9 = vpop.f32.mrf.mxu1  ;;  %v8945_v55 = vpop.f32.mrf.mxu0 }
 0x499   : > { %v8628_v34 = vadd.f32 %v8627_v9, %v8626_v32  ;;  %v12358_v22 = vadd.f32 %v8937_v39, %v5826_v42 }
 0x49a   : > { %v8629_v50 = vpop.f32.mrf.mxu1  ;;  %v6010_v47 = vpop.f32.mrf.mxu0 }
 0x49b   : > { %v5831_v41 = vadd.f32 %v8628_v34, %v12246_v18 }
 0x49c   : > { %v8630_v21 = vpop.f32.mrf.mxu1  ;;  %v12363_v25 = vpop.f32.mrf.mxu0 }
 0x49d   : > { %v8631_v17 = vadd.f32 %v8630_v21, %v8629_v50  ;;  %v12365_v61 = vadd.f32 %v5991_v14, %v5831_v41 }
 0x49e   : > { %v8632_v54 = vpop.f32.mrf.mxu1  ;;  %v6023_v26 = vpop.f32.mrf.mxu0 }
 0x49f   : > { %v5834_v38 = vadd.f32 %v8631_v17, %v5529_v10 }
 0x4a0   : > { %v8633_v15 = vpop.f32.mrf.mxu1  ;;  %v12367_v39 = vpop.f32.mrf.mxu0 }
 0x4a1   : > { %v8634_v43 = vadd.f32 %v8633_v15, %v8632_v54  ;;  %v12369_v57 = vadd.f32 %v5994_v2, %v5834_v38 }
 0x4a2   : > { %v8635_v18 = vpop.f32.mrf.mxu1  ;;  %v6026_v11 = vpop.f32.mrf.mxu0 }
 0x4a3   : > { %v5839_v8 = vadd.f32 %v8634_v43, %v12241_v49 }
 0x4a4   : > { %v8636_v52 = vpop.f32.mrf.mxu1  ;;  %v12372_v33 = vpop.f32.mrf.mxu0 }
 0x4a5   : > { %v8637_v48 = vadd.f32 %v8636_v52, %v8635_v18  ;;  %v12374_v28 = vadd.f32 %v8940_v16, %v5839_v8 }
 0x4a6   : > { %v8638_v14 = vpop.f32.mrf.mxu1  ;;  %v12377_v32 = vpop.f32.mrf.mxu0 }
 0x4a7   : > { %v5842_v6 = vadd.f32 %v8637_v48, %v12248_v4 }
 0x4a8   : > { %v8639_v42 = vpop.f32.mrf.mxu1  ;;  %v12379_v34 = vpop.f32.mrf.mxu0 }
 0x4a9   : > { %v8640_v9 = vadd.f32 %v8639_v42, %v8638_v14  ;;  %v12381_v2 = vadd.f32 %v8941_v7, %v5842_v6 }
 0x4aa   : > { %v8641_v50 = vpop.f32.mrf.mxu1  ;;  %v12384_v41 = vpop.f32.mrf.mxu0 }
 0x4ab   : > { %v5847_v49 = vadd.f32 %v8640_v9, %v12262_v35 }
 0x4ac   : > { %v8642_v21 = vpop.f32.mrf.mxu1  ;;  %v12386_v16 = vpop.f32.mrf.mxu0 }
 0x4ad   : > { %v8643_v10 = vadd.f32 %v8642_v21, %v8641_v50  ;;  %v12388_v17 = vadd.f32 %v6007_v58, %v5847_v49 }
 0x4ae   : > { %v8644_v4 = vpop.f32.mrf.mxu1  ;;  %v12391_v38 = vpop.f32.mrf.mxu0 }
 0x4af   : > { %v5850_v54 = vadd.f32 %v8643_v10, %v12266_v63 }
 0x4b0   : > { %v8645_v15 = vpop.f32.mrf.mxu1  ;;  %v12393_v7 = vpop.f32.mrf.mxu0 }
 0x4b1   : > { %v8646_v43 = vadd.f32 %v8645_v15, %v8644_v4  ;;  %v12395_v18 = vadd.f32 %v6010_v47, %v5850_v54 }
 0x4b2   : > { %v8647_v35 = vpop.f32.mrf.mxu1  ;;  %v12398_v52 = vpop.f32.mrf.mxu0 }
 0x4b3   : > { %v5855_v8 = vadd.f32 %v8646_v43, %v12257_v0 }
 0x4b4   : > { %v8648_v48 = vpop.f32.mrf.mxu1  ;;  %v12400_v58 = vpop.f32.mrf.mxu0 }
 0x4b5   : > { %v8649_v14 = vadd.f32 %v8648_v48, %v8647_v35  ;;  %v12402_v6 = vadd.f32 %v8944_v20, %v5855_v8 }
 0x4b6   : > { %v8650_v63 = vpop.f32.mrf.mxu1  ;;  %v12405_v9 = vpop.f32.mrf.mxu0 }
 0x4b7   : > { %v5858_v42 = vadd.f32 %v8649_v14, %v12264_v46 }
 0x4b8   : > { %v8651_v50 = vpop.f32.mrf.mxu1  ;;  %v12407_v47 = vpop.f32.mrf.mxu0 }
 0x4b9   : > { %v8652_v49 = vadd.f32 %v8651_v50, %v8650_v63  ;;  %v12409_v21 = vadd.f32 %v8945_v55, %v5858_v42 }
 0x4ba   : > { %v8653_v0 = vpop.f32.mrf.mxu1  ;;  %v12412_v4 = vpop.f32.mrf.mxu0 }
 0x4bb   : > { %v5863_v10 = vadd.f32 %v8652_v49, %v12278_v60 }
 0x4bc   : > { %v8654_v54 = vpop.f32.mrf.mxu1  ;;  %v12414_v20 = vpop.f32.mrf.mxu0 }
 0x4bd   : > { %v8655_v15 = vadd.f32 %v8654_v54, %v8653_v0  ;;  %13061 = vst [vmem:[#allocation20_spill] sm:$0xff] %v12414_v20  ;;  %v12416_v43 = vadd.f32 %v6023_v26, %v5863_v10 }
 0x4be   : > { %v8656_v46 = vpop.f32.mrf.mxu1  ;;  %v12419_v8 = vpop.f32.mrf.mxu0 }
 0x4bf   : > { %v5866_v35 = vadd.f32 %v8655_v15, %v12282_v27 }
 0x4c0   : > { %v8657_v48 = vpop.f32.mrf.mxu1  ;;  %v12421_v55 = vpop.f32.mrf.mxu0 }
 0x4c1   : > { %v8658_v14 = vadd.f32 %v8657_v48, %v8656_v46  ;;  %13062 = vst [vmem:[#allocation14_spill] sm:$0xff] %v12421_v55  ;;  %v12423_v63 = vadd.f32 %v6026_v11, %v5866_v35 }
 0x4c2   : > { %v8659_v60 = vpop.f32.mrf.mxu1  ;;  %v12426_v50 = vpop.f32.mrf.mxu0 }
 0x4c3   : > { %v5871_v42 = vadd.f32 %v8658_v14, %v12273_v13 }
 0x4c4   : > { %v8660_v49 = vpop.f32.mrf.mxu1  ;;  %v12428_v26 = vpop.f32.mrf.mxu0 }
 0x4c5   : > { %v8661_v0 = vadd.f32 %v8660_v49, %v8659_v60  ;;  %v12431_v10 = vadd.f32 %v12363_v25, %v5871_v42 }
 0x4c6   : > { %v8662_v27 = vpop.f32.mrf.mxu1  ;;  %v12434_v15 = vpop.f32.mrf.mxu0 }
 0x4c7   : > { %v5874_v54 = vadd.f32 %v8661_v0, %v12280_v45 }
 0x4c8   : > { %v8663_v46 = vpop.f32.mrf.mxu1  ;;  %v12436_v35 = vpop.f32.mrf.mxu0 }
 0x4c9   : > { %v8664_v11 = vadd.f32 %v8663_v46, %v8662_v27  ;;  %v12439_v13 = vadd.f32 %v12367_v39, %v5874_v54 }
 0x4ca   : > { %v8665_v48 = vpop.f32.mrf.mxu1  ;;  %v12442_v60 = vpop.f32.mrf.mxu0 }
 0x4cb   : > { %v5879_v14 = vadd.f32 %v8664_v11, %v12294_v5 }
 0x4cc   : > { %v8666_v49 = vpop.f32.mrf.mxu1  ;;  %v12444_v42 = vpop.f32.mrf.mxu0 }
 0x4cd   : > { %v8667_v25 = vadd.f32 %v8666_v49, %v8665_v48  ;;  %v12447_v45 = vadd.f32 %v12377_v32, %v5879_v14 }
 0x4ce   : > { %v8668_v0 = vpop.f32.mrf.mxu1  ;;  %v12450_v46 = vpop.f32.mrf.mxu0 }
 0x4cf   : > { %v5882_v27 = vadd.f32 %v8667_v25, %v12298_v59 }
 0x4d0   : > { %v8669_v55 = vpop.f32.mrf.mxu1  ;;  %v12452_v54 = vpop.f32.mrf.mxu0 }
 0x4d1   : > { %v8670_v39 = vadd.f32 %v8669_v55, %v8668_v0  ;;  %v12455_v5 = vadd.f32 %v12384_v41, %v5882_v27 }
 0x4d2   : > { %v8671_v11 = vpop.f32.mrf.mxu1  ;;  %v12458_v49 = vpop.f32.mrf.mxu0 }
 0x4d3   : > { %13063 = vst [vmem:[#allocation31_spill] sm:$0xff] %v12455_v5  ;;  %v5887_v48 = vadd.f32 %v8670_v39, %v12289_v23 }
 0x4d4   : > { %v8672_v19 = vpop.f32.mrf.mxu1  ;;  %v12460_v14 = vpop.f32.mrf.mxu0 }
 0x4d5   : > { %v8673_v32 = vadd.f32 %v8672_v19, %v8671_v11  ;;  %v12463_v59 = vadd.f32 %v12372_v33, %v5887_v48 }
 0x4d6   : > { %v8674_v25 = vpop.f32.mrf.mxu1  ;;  %v12466_v0 = vpop.f32.mrf.mxu0 }
 0x4d7   : > { %v5890_v55 = vadd.f32 %v8673_v32, %v12296_v37 }
 0x4d8   : > { %v8675_v20 = vpop.f32.mrf.mxu1  ;;  %v12468_v27 = vpop.f32.mrf.mxu0 }
 0x4d9   : > { %v8676_v41 = vadd.f32 %v8675_v20, %v8674_v25  ;;  %v12471_v23 = vadd.f32 %v12379_v34, %v5890_v55 }
 0x4da   : > { %v8677_v39 = vpop.f32.mrf.mxu1  ;;  %v12474_v11 = vpop.f32.mrf.mxu0 }
 0x4db   : > { %13064 = vst [vmem:[#allocation61_spill] sm:$0xff] %v12471_v23  ;;  %v5895_v19 = vadd.f32 %v8676_v41, %v12310_v12 }
 0x4dc   : > { %v8678_v40 = vpop.f32.mrf.mxu1  ;;  %v12476_v48 = vpop.f32.mrf.mxu0 }
 0x4dd   : > { %v8679_v33 = vadd.f32 %v8678_v40, %v8677_v39  ;;  %v12479_v37 = vadd.f32 %v12391_v38, %v5895_v19 }
 0x4de   : > { %v8680_v32 = vpop.f32.mrf.mxu1  ;;  %v12482_v25 = vpop.f32.mrf.mxu0 }
 0x4df   : > { %13065 = vst [vmem:[#allocation63_spill] sm:$0xff] %v12479_v37  ;;  %v5898_v20 = vadd.f32 %v8679_v33, %v12314_v51 }
 0x4e0   : > { %v8681_v5 = vpop.f32.mrf.mxu1  ;;  %v12484_v55 = vpop.f32.mrf.mxu0 }
 0x4e1   : > { %v8682_v34 = vadd.f32 %v8681_v5, %v8680_v32  ;;  %v12487_v12 = vadd.f32 %v12398_v52, %v5898_v20 }
 0x4e2   : > { %v8683_v41 = vpop.f32.mrf.mxu1  ;;  %v12490_v39 = vpop.f32.mrf.mxu0 }
 0x4e3   : > { %13066 = vst [vmem:[#allocation55_spill] sm:$0xff] %v12487_v12  ;;  %v5903_v40 = vadd.f32 %v8682_v34, %v12305_v36 }
 0x4e4   : > { %v8684_v23 = vpop.f32.mrf.mxu1  ;;  %v12492_v19 = vpop.f32.mrf.mxu0 }
 0x4e5   : > { %v8685_v38 = vadd.f32 %v8684_v23, %v8683_v41  ;;  %v12495_v51 = vadd.f32 %v12386_v16, %v5903_v40 }
 0x4e6   : > { %v8686_v33 = vpop.f32.mrf.mxu1  ;;  %v12498_v32 = vpop.f32.mrf.mxu0 }
 0x4e7   : > { %13067 = vst [vmem:[#allocation21_spill] sm:$0xff] %v12495_v51  ;;  %v5906_v5 = vadd.f32 %v8685_v38, %v12312_v62 }
 0x4e8   : > { %v8687_v37 = vpop.f32.mrf.mxu1  ;;  %v12500_v20 = vpop.f32.mrf.mxu0 }
 0x4e9   : > { %v8688_v52 = vadd.f32 %v8687_v37, %v8686_v33  ;;  %v12503_v36 = vadd.f32 %v12393_v7, %v5906_v5 }
 0x4ea   : > { %v8689_v34 = vpop.f32.mrf.mxu1  ;;  %v12506_v41 = vpop.f32.mrf.mxu0 }
 0x4eb   : > { %13068 = vst [vmem:[#allocation65_spill] sm:$0xff] %v12503_v36  ;;  %v5911_v23 = vadd.f32 %v8688_v52, %v12327_v29 }
 0x4ec   : > { %v8690_v12 = vpop.f32.mrf.mxu1  ;;  %v12508_v40 = vpop.f32.mrf.mxu0 }
 0x4ed   : > { %v8691_v16 = vadd.f32 %v8690_v12, %v8689_v34  ;;  %v12511_v62 = vadd.f32 %v12405_v9, %v5911_v23 }
 0x4ee   : > { %v8692_v38 = vpop.f32.mrf.mxu1  ;;  %v12514_v33 = vpop.f32.mrf.mxu0 }
 0x4ef   : > { %13069 = vst [vmem:[#allocation16_spill] sm:$0xff] %v12511_v62  ;;  %v5914_v37 = vadd.f32 %v8691_v16, %v12336_v53 }
 0x4f0   : > { %v8693_v51 = vpop.f32.mrf.mxu1  ;;  %v12516_v5 = vpop.f32.mrf.mxu0 }
 0x4f1   : > { %v8694_v7 = vadd.f32 %v8693_v51, %v8692_v38  ;;  %v12519_v29 = vadd.f32 %v12412_v4, %v5914_v37 }
 0x4f2   : > { %v8695_v52 = vpop.f32.mrf.mxu1  ;;  %v12522_v34 = vpop.f32.mrf.mxu0 }
 0x4f3   : > { %13070 = vst [vmem:[#allocation35_spill] sm:$0xff] %v12519_v29  ;;  %v5919_v12 = vadd.f32 %v8694_v7, %v12322_v44 }
 0x4f4   : > { %v8696_v36 = vpop.f32.mrf.mxu1  ;;  %v12524_v23 = vpop.f32.mrf.mxu0 }
 0x4f5   : > { %v8697_v9 = vadd.f32 %v8696_v36, %v8695_v52  ;;  %v12527_v53 = vadd.f32 %v12400_v58, %v5919_v12 }
 0x4f6   : > { %v8698_v16 = vpop.f32.mrf.mxu1  ;;  %v12530_v38 = vpop.f32.mrf.mxu0 }
 0x4f7   : > { %13071 = vst [vmem:[#allocation37_spill] sm:$0xff] %v12527_v53  ;;  %v5922_v51 = vadd.f32 %v8697_v9, %v12334_v24 }
 0x4f8   : > { %v8699_v62 = vpop.f32.mrf.mxu1  ;;  %v12532_v37 = vpop.f32.mrf.mxu0 }
 0x4f9   : > { %v8700_v4 = vadd.f32 %v8699_v62, %v8698_v16  ;;  %v12535_v44 = vadd.f32 %v12407_v47, %v5922_v51 }
 0x4fa   : > { %v8701_v7 = vpop.f32.mrf.mxu1  ;;  %v12538_v52 = vpop.f32.mrf.mxu0 }
 0x4fb   : > { %13072 = vst [vmem:[#allocation34_spill] sm:$0xff] %v12535_v44  ;;  %v5927_v36 = vadd.f32 %v8700_v4, %v12339_v31 }
 0x4fc   : > { %v8702_v29 = vpop.f32.mrf.mxu1  ;;  %v12540_v12 = vpop.f32.mrf.mxu0 }
 0x4fd   : > { %v8703_v58 = vadd.f32 %v8702_v29, %v8701_v7  ;;  %v12543_v24 = vadd.f32 %v12419_v8, %v5927_v36  ;;  %v8758_v7 = vadd.f32 %v12450_v46, %v12444_v42  ;;  %v8761_v42 = vadd.f32 %v12458_v49, %v12452_v54 }
 0x4fe   : > { %v12545_v9 = vpop.f32.mrf.mxu1  ;;  %v12548_v16 = vpop.f32.mrf.mxu0 }
 0x4ff   : > { %13073 = vst [vmem:[#allocation67_spill] sm:$0xff] %v12543_v24  ;;  %v5930_v62 = vadd.f32 %v8703_v58, %v12343_v3  ;;  %v8752_v58 = vadd.f32 %v12434_v15, %v12428_v26  ;;  %v12585_v26 = vld [vmem:[%s12856_s7] ss:$0 sm:$0xff] }
 0x500   : > { %v12550_v47 = vpop.f32.mrf.mxu1  ;;  %v12552_v51 = vpop.f32.mrf.mxu0 }
 0x501   : > { %13074 = vst [vmem:[#allocation68_spill] sm:$0xff] %v12550_v47  ;;  %v12555_v31 = vadd.f32 %v12426_v50, %v5930_v62  ;;  %v12575_v50 = vld [vmem:[%s12855_s6] ss:$0 sm:$0xff] }
 0x502   : > { %v12557_v29 = vpop.f32.mrf.mxu1  ;;  %v12559_v4 = vpop.f32.mrf.mxu0 }
 0x503   : > { %13075 = vst [vmem:[#allocation17_spill] sm:$0xff] %v12555_v31  ;;  %13076 = vst [vmem:[#allocation69_spill] sm:$0xff] %v12557_v29 }
 0x504   : > { %v12561_v8 = vpop.f32.mrf.mxu1  ;;  %v12565_v3 = vpop.f32.mrf.mxu0 }
 0x505   : > { %13077 = vst [vmem:[#allocation70_spill] sm:$0xff] %v12561_v8 }
 0x506   : > { %v8984_v36 = vpop.f32.mrf.mxu1  ;;  %v12569_v44 = vpop.f32.mrf.mxu0 }
 0x507   : > { %v6643_v24 = vadd.f32 %v8984_v36, %v8758_v7  ;;  %v8755_v7 = vadd.f32 %v12442_v60, %v12436_v35  ;;  %v8764_v35 = vadd.f32 %v12466_v0, %v12460_v14  ;;  %v8770_v60 = vadd.f32 %v12482_v25, %v12476_v48 }
 0x508   : > { %v6634_v62 = vpop.f32.mrf.mxu1  ;;  %v12580_v8 = vpop.f32.mrf.mxu0 }
 0x509   : > { %v6763_v46 = vadd.f32 %v6643_v24, %v12355_v30  ;;  %v6635_v31 = vadd.f32 %v8752_v58, %v6634_v62 }
 0x50a   : > { %v8985_v15 = vpop.f32.mrf.mxu1  ;;  %v12593_v30 = vpop.f32.mrf.mxu0 }
 0x50b   : > { %v6795_v36 = vmul.f32 %v12575_v50, %v6763_v46  ;;  %v6761_v54 = vadd.f32 %v6635_v31, %v12350_v1  ;;  %v6646_v49 = vadd.f32 %v8985_v15, %v8761_v42 }
 0x50c   : > { %v6637_v24 = vpop.f32.mrf.mxu1  ;;  %v12598_v47 = vpop.f32.mrf.mxu0 }
 0x50d   : > { %v6827_v58 = vadd.f32 %v12585_v26, %v6795_v36  ;;  %v6793_v62 = vmul.f32 %v12575_v50, %v6761_v54  ;;  %v6764_v29 = vadd.f32 %v6646_v49, %v12358_v22  ;;  %v6638_v53 = vadd.f32 %v8755_v7, %v6637_v24 }
 0x50e   : > { %v8988_v1 = vpop.f32.mrf.mxu1  ;;  %v12607_v36 = vpop.f32.mrf.mxu0  ;;  %v8773_v22 = vadd.f32 %v12490_v39, %v12484_v55 }
 0x50f   : > { %v6859_v31 = vmax.f32 %v6827_v58, 0.0  ;;  %v6825_v42 = vadd.f32 %v12585_v26, %v6793_v62  ;;  %v6796_v46 = vmul.f32 %v12575_v50, %v6764_v29  ;;  %v6762_v15 = vadd.f32 %v6638_v53, %v12352_v56 }
 0x510   : > { %v6659_v7 = vadd.f32 %v8988_v1, %v8770_v60  ;;  %v6650_v54 = vpop.f32.mrf.mxu1  ;;  %v12616_v56 = vpop.f32.mrf.mxu0  ;;  %v8767_v53 = vadd.f32 %v12474_v11, %v12468_v27 }
 0x511   : > { %6891 = vst [vmem:[%s12611_s23 + $0x10] sm:$0xff] %v6859_v31  ;;  %v6857_v14 = vmax.f32 %v6825_v42, 0.0  ;;  %v6828_v0 = vadd.f32 %v12585_v26, %v6796_v46  ;;  %v6794_v48 = vmul.f32 %v12575_v50, %v6762_v15  ;;  %v6651_v25 = vadd.f32 %v8764_v35, %v6650_v54 }
 0x512   : > { %v6767_v55 = vadd.f32 %v6659_v7, %v12374_v28  ;;  %v8989_v39 = vpop.f32.mrf.mxu1  ;;  %v12624_v62 = vpop.f32.mrf.mxu0  ;;  %v8782_v35 = vadd.f32 %v12514_v33, %v12508_v40  ;;  %v8785_v54 = vadd.f32 %v12522_v34, %v12516_v5 }
 0x513   : > { %6889 = vst [vmem:[%s12611_s23] sm:$0xff] %v6857_v14  ;;  %v6860_v29 = vmax.f32 %v6828_v0, 0.0  ;;  %v6826_v49 = vadd.f32 %v12585_v26, %v6794_v48  ;;  %v6765_v24 = vadd.f32 %v6651_v25, %v12365_v61  ;;  %v6662_v58 = vadd.f32 %v8989_v39, %v8773_v22 }
 0x514   : > { %v6799_v60 = vmul.f32 %v12575_v50, %v6767_v55  ;;  %v6653_v1 = vpop.f32.mrf.mxu1  ;;  %v12632_v42 = vpop.f32.mrf.mxu0  ;;  %v8779_v39 = vadd.f32 %v12506_v41, %v12500_v20 }
 0x515   : > { %6892 = vst [vmem:[%s12611_s23 + $0x18] sm:$0xff] %v6860_v29  ;;  %v6858_v27 = vmax.f32 %v6826_v49, 0.0  ;;  %v6797_v28 = vmul.f32 %v12575_v50, %v6765_v24  ;;  %v6768_v11 = vadd.f32 %v6662_v58, %v12381_v2  ;;  %v6654_v31 = vadd.f32 %v8767_v53, %v6653_v1 }
 0x516   : > { %v6831_v61 = vadd.f32 %v12585_v26, %v6799_v60  ;;  %v8992_v46 = vpop.f32.mrf.mxu1  ;;  %v12639_v7 = vpop.f32.mrf.mxu0  ;;  %v8776_v2 = vadd.f32 %v12498_v32, %v12492_v19 }
 0x517   : > { %6890 = vst [vmem:[%s12611_s23 + $0x8] sm:$0xff] %v6858_v27  ;;  %v6829_v15 = vadd.f32 %v12585_v26, %v6797_v28  ;;  %v6800_v40 = vmul.f32 %v12575_v50, %v6768_v11  ;;  %v6766_v33 = vadd.f32 %v6654_v31, %v12369_v57  ;;  %v6675_v22 = vadd.f32 %v8992_v46, %v8782_v35 }
 0x518   : > { %v6863_v14 = vmax.f32 %v6831_v61, 0.0  ;;  %v6666_v0 = vpop.f32.mrf.mxu1  ;;  %v12648_v55 = vpop.f32.mrf.mxu0  ;;  %v8788_v28 = vadd.f32 %v12530_v38, %v12524_v23 }
 0x519   : > { %v6861_v48 = vmax.f32 %v6829_v15, 0.0  ;;  %v6832_v25 = vadd.f32 %v12585_v26, %v6800_v40  ;;  %v6798_v53 = vmul.f32 %v12575_v50, %v6766_v33  ;;  %v6771_v57 = vadd.f32 %v6675_v22, %v12402_v6 }
 0x51a   : > { %6895 = vst [vmem:[%s12611_s23 + $0x30] sm:$0xff] %v6863_v14  ;;  %v6667_v19 = vadd.f32 %v8776_v2, %v6666_v0  ;;  %v8993_v32 = vpop.f32.mrf.mxu1  ;;  %v12656_v24 = vpop.f32.mrf.mxu0  ;;  %v8794_v6 = vadd.f32 %v12548_v16, %v12540_v12  ;;  %v8797_v2 = vadd.f32 %v12559_v4, %v12552_v51 }
 0x51b   : > { %6893 = vst [vmem:[%s12611_s23 + $0x20] sm:$0xff] %v6861_v48  ;;  %v6864_v5 = vmax.f32 %v6832_v25, 0.0  ;;  %v6830_v34 = vadd.f32 %v12585_v26, %v6798_v53  ;;  %v6803_v29 = vmul.f32 %v12575_v50, %v6771_v57  ;;  %v6678_v49 = vadd.f32 %v8993_v32, %v8785_v54 }
 0x51c   : > { %v6769_v58 = vadd.f32 %v6667_v19, %v12388_v17  ;;  %v6669_v35 = vpop.f32.mrf.mxu1  ;;  %v12664_v27 = vpop.f32.mrf.mxu0  ;;  %v8806_v57 = vadd.f32 %v12607_v36, %v12598_v47 }
 0x51d   : > { %6896 = vst [vmem:[%s12611_s23 + $0x38] sm:$0xff] %v6864_v5  ;;  %v6862_v20 = vmax.f32 %v6830_v34, 0.0  ;;  %v6835_v41 = vadd.f32 %v12585_v26, %v6803_v29  ;;  %v6772_v60 = vadd.f32 %v6678_v49, %v12409_v21  ;;  %v6670_v1 = vadd.f32 %v8779_v39, %v6669_v35 }
 0x51e   : > { %v6801_v11 = vmul.f32 %v12575_v50, %v6769_v58  ;;  %v8996_v31 = vpop.f32.mrf.mxu1  ;;  %v8817_v46 = vpop.f32.mrf.mxu0  ;;  %v8809_v58 = vadd.f32 %v12624_v62, %v12616_v56 }
 0x51f   : > { %6894 = vst [vmem:[%s12611_s23 + $0x28] sm:$0xff] %v6862_v20  ;;  %v6867_v12 = vmax.f32 %v6835_v41, 0.0  ;;  %v6804_v17 = vmul.f32 %v12575_v50, %v6772_v60  ;;  %v6770_v16 = vadd.f32 %v6670_v1, %v12395_v18  ;;  %v6691_v61 = vadd.f32 %v8996_v31, %v8794_v6 }
 0x520   : > { %v6833_v15 = vadd.f32 %v12585_v26, %v6801_v11  ;;  %v6682_v21 = vpop.f32.mrf.mxu1  ;;  %v12677_v22 = vpop.f32.mrf.mxu0  ;;  %v8791_v18 = vadd.f32 %v12538_v52, %v12532_v37 }
 0x521   : > { %6899 = vst [vmem:[%s12611_s23 + $0x50] sm:$0xff] %v6867_v12  ;;  %v6836_v40 = vadd.f32 %v12585_v26, %v6804_v17  ;;  %v6802_v23 = vmul.f32 %v12575_v50, %v6770_v16  ;;  %v6775_v38 = vadd.f32 %v6691_v61, %v12431_v10  ;;  %v6683_v33 = vadd.f32 %v8788_v28, %v6682_v21 }
 0x522   : > { %v6865_v54 = vmax.f32 %v6833_v15, 0.0  ;;  %v8997_v14 = vpop.f32.mrf.mxu1  ;;  %v8820_v53 = vpop.f32.mrf.mxu0  ;;  %v8818_v12 = vadd.f32 %v8817_v46, %v12664_v27 }
 0x523   : > { %v6868_v0 = vmax.f32 %v6836_v40, 0.0  ;;  %v6834_v48 = vadd.f32 %v12585_v26, %v6802_v23  ;;  %v6807_v25 = vmul.f32 %v12575_v50, %v6775_v38  ;;  %v6773_v10 = vadd.f32 %v6683_v33, %v12416_v43  ;;  %v13078_v40 = vld [vmem:[#allocation61_spill] sm:$0xff] }
 0x524   : > { %6897 = vst [vmem:[%s12611_s23 + $0x40] sm:$0xff] %v6865_v54  ;;  %v6694_v39 = vadd.f32 %v8997_v14, %v8797_v2  ;;  %v6685_v37 = vpop.f32.mrf.mxu1  ;;  %v12692_v32 = vpop.f32.mrf.mxu0  ;;  %v8800_v43 = vadd.f32 %v12569_v44, %v12565_v3  ;;  %v8812_v38 = vadd.f32 %v12639_v7, %v12632_v42  ;;  %v8821_v54 = vadd.f32 %v8820_v53, %v12677_v22  ;;  %v13079_v14 = vld [vmem:[#allocation31_spill] sm:$0xff]  ;;  %v13080_v7 = vld [vmem:[#allocation21_spill] sm:$0xff] }
 0x525   : > { %6900 = vst [vmem:[%s12611_s23 + $0x58] sm:$0xff] %v6868_v0  ;;  %v6866_v52 = vmax.f32 %v6834_v48, 0.0  ;;  %v6839_v51 = vadd.f32 %v12585_v26, %v6807_v25  ;;  %v6805_v4 = vmul.f32 %v12575_v50, %v6773_v10  ;;  %v6686_v19 = vadd.f32 %v8791_v18, %v6685_v37 }
 0x526   : > { %v6776_v5 = vadd.f32 %v6694_v39, %v12439_v13  ;;  %v9000_v34 = vpop.f32.mrf.mxu1  ;;  %v12700_v6 = vpop.f32.mrf.mxu0  ;;  %v8815_v37 = vadd.f32 %v12656_v24, %v12648_v55  ;;  %v13082_v24 = vld [vmem:[#allocation65_spill] sm:$0xff] }
 0x527   : > { %6898 = vst [vmem:[%s12611_s23 + $0x48] sm:$0xff] %v6866_v52  ;;  %v6871_v47 = vmax.f32 %v6839_v51, 0.0  ;;  %v6837_v36 = vadd.f32 %v12585_v26, %v6805_v4  ;;  %v6774_v29 = vadd.f32 %v6686_v19, %v12423_v63  ;;  %v6707_v49 = vadd.f32 %v9000_v34, %v8806_v57  ;;  %v13081_v4 = vld [vmem:[#allocation63_spill] sm:$0xff] }
 0x528   : > { %v6808_v35 = vmul.f32 %v12575_v50, %v6776_v5  ;;  %v6698_v20 = vpop.f32.mrf.mxu1  ;;  %v12708_v60 = vpop.f32.mrf.mxu0 }
 0x529   : > { %6903 = vst [vmem:[%s12611_s23 + $0x70] sm:$0xff] %v6871_v47  ;;  %v6869_v44 = vmax.f32 %v6837_v36, 0.0  ;;  %v6806_v13 = vmul.f32 %v12575_v50, %v6774_v29  ;;  %v6779_v3 = vadd.f32 %v6707_v49, %v12463_v59  ;;  %v6699_v41 = vadd.f32 %v8800_v43, %v6698_v20 }
 0x52a   : > { %v6840_v63 = vadd.f32 %v12585_v26, %v6808_v35  ;;  %v9001_v1 = vpop.f32.mrf.mxu1  ;;  %v12715_v31 = vpop.f32.mrf.mxu0  ;;  %v8803_v59 = vadd.f32 %v12593_v30, %v12580_v8  ;;  %v8824_v35 = vadd.f32 %v12700_v6, %v12692_v32 }
 0x52b   : > { %6901 = vst [vmem:[%s12611_s23 + $0x60] sm:$0xff] %v6869_v44  ;;  %v6838_v28 = vadd.f32 %v12585_v26, %v6806_v13  ;;  %v6811_v56 = vmul.f32 %v12575_v50, %v6779_v3  ;;  %v6777_v62 = vadd.f32 %v6699_v41, %v12447_v45  ;;  %v6710_v11 = vadd.f32 %v9001_v1, %v8809_v58  ;;  %v13083_v1 = vld [vmem:[#allocation55_spill] sm:$0xff] }
 0x52c   : > { %v6872_v17 = vmax.f32 %v6840_v63, 0.0  ;;  %v6701_v16 = vpop.f32.mrf.mxu1  ;;  %v8828_v45 = vpop.f32.mrf.mxu0 }
 0x52d   : > { %v6870_v61 = vmax.f32 %v6838_v28, 0.0  ;;  %v6843_v15 = vadd.f32 %v12585_v26, %v6811_v56  ;;  %v6809_v21 = vmul.f32 %v12575_v50, %v6777_v62  ;;  %v6780_v23 = vadd.f32 %v6710_v11, %v13078_v40  ;;  %v13085_v40 = vld [vmem:[#allocation37_spill] sm:$0xff] }
 0x52e   : > { %6904 = vst [vmem:[%s12611_s23 + $0x78] sm:$0xff] %v6872_v17  ;;  %v6702_v33 = vadd.f32 %v8803_v59, %v6701_v16  ;;  %v9004_v18 = vpop.f32.mrf.mxu1  ;;  %v8829_v2 = vpop.f32.mrf.mxu0 }
 0x52f   : > { %6902 = vst [vmem:[%s12611_s23 + $0x68] sm:$0xff] %v6870_v61  ;;  %v6875_v8 = vmax.f32 %v6843_v15, 0.0  ;;  %v6841_v30 = vadd.f32 %v12585_v26, %v6809_v21  ;;  %v6812_v27 = vmul.f32 %v12575_v50, %v6780_v23  ;;  %v6723_v46 = vadd.f32 %v9004_v18, %v8818_v12  ;;  %v13084_v61 = vld [vmem:[#allocation68_spill] sm:$0xff] }
 0x530   : > { %v6778_v0 = vadd.f32 %v6702_v33, %v13079_v14  ;;  %v6714_v48 = vpop.f32.mrf.mxu1  ;;  %v8831_v39 = vpop.f32.mrf.mxu0  ;;  %v8830_v44 = vadd.f32 %v8829_v2, %v8828_v45  ;;  %v8706_v15 = vadd.f32 %v13084_v61, %v12545_v9  ;;  %v8827_v21 = vadd.f32 %v12715_v31, %v12708_v60  ;;  %v13086_v18 = vld [vmem:[#allocation16_spill] sm:$0xff]  ;;  %v13087_v60 = vld [vmem:[#allocation34_spill] sm:$0xff] }
 0x531   : > { %6907 = vst [vmem:[%s12611_s23 + $0x90] sm:$0xff] %v6875_v8  ;;  %v6873_v25 = vmax.f32 %v6841_v30, 0.0  ;;  %v6844_v42 = vadd.f32 %v12585_v26, %v6812_v27  ;;  %v6783_v10 = vadd.f32 %v6723_v46, %v13080_v7  ;;  %v6715_v57 = vadd.f32 %v8812_v38, %v6714_v48  ;;  %v13088_v48 = vld [vmem:[#allocation13_spill] sm:$0xff]  ;;  %v13090_v7 = vld [vmem:[#allocation70_spill] sm:$0xff] }
 0x532   : > { %v6810_v52 = vmul.f32 %v12575_v50, %v6778_v0  ;;  %v9005_v51 = vpop.f32.mrf.mxu1  ;;  %v8832_v5 = vpop.f32.mrf.mxu0 }
 0x533   : > { %6905 = vst [vmem:[%s12611_s23 + $0x80] sm:$0xff] %v6873_v25  ;;  %v6876_v22 = vmax.f32 %v6844_v42, 0.0  ;;  %v6815_v53 = vmul.f32 %v12575_v50, %v6783_v10  ;;  %v6781_v19 = vadd.f32 %v6715_v57, %v13081_v4  ;;  %v6726_v43 = vadd.f32 %v9005_v51, %v8821_v54  ;;  %v13089_v42 = vld [vmem:[#allocation69_spill] sm:$0xff] }
 0x534   : > { %v6842_v34 = vadd.f32 %v12585_v26, %v6810_v52  ;;  %v6717_v47 = vpop.f32.mrf.mxu1  ;;  %v8834_v58 = vpop.f32.mrf.mxu0  ;;  %v8833_v62 = vadd.f32 %v8832_v5, %v8831_v39  ;;  %v5935_v25 = vadd.f32 %v8706_v15, %v13088_v48  ;;  %v8709_v10 = vadd.f32 %v13090_v7, %v13089_v42 }
 0x535   : > { %6908 = vst [vmem:[%s12611_s23 + $0x98] sm:$0xff] %v6876_v22  ;;  %v6847_v36 = vadd.f32 %v12585_v26, %v6815_v53  ;;  %v6813_v55 = vmul.f32 %v12575_v50, %v6781_v19  ;;  %v6784_v29 = vadd.f32 %v6726_v43, %v13082_v24  ;;  %v6718_v49 = vadd.f32 %v8815_v37, %v6717_v47  ;;  %v13091_v22 = vld [vmem:[#allocation35_spill] sm:$0xff] }
 0x536   : > { %v6874_v20 = vmax.f32 %v6842_v34, 0.0  ;;  %v9008_v13 = vpop.f32.mrf.mxu1  ;;  %v8835_v56 = vpop.f32.mrf.mxu0 }
 0x537   : > { %v6879_v3 = vmax.f32 %v6847_v36, 0.0  ;;  %v6845_v41 = vadd.f32 %v12585_v26, %v6813_v55  ;;  %v6816_v63 = vmul.f32 %v12575_v50, %v6784_v29  ;;  %v6782_v28 = vadd.f32 %v6718_v49, %v13083_v1  ;;  %v13092_v29 = vld [vmem:[#allocation20_spill] sm:$0xff] }
 0x538   : > { %6906 = vst [vmem:[%s12611_s23 + $0x88] sm:$0xff] %v6874_v20  ;;  %v6739_v11 = vadd.f32 %v9008_v13, %v8830_v44  ;;  %v6730_v59 = vpop.f32.mrf.mxu1  ;;  %v8837_v16 = vpop.f32.mrf.mxu0  ;;  %v8836_v37 = vadd.f32 %v8835_v56, %v8834_v58  ;;  %v6096_v49 = vadd.f32 %v13092_v29, %v5935_v25  ;;  %v13093_v58 = vld [vmem:[#allocation12_spill] sm:$0xff] }
 0x539   : > { %6911 = vst [vmem:[%s12611_s23 + $0xb0] sm:$0xff] %v6879_v3  ;;  %v6877_v12 = vmax.f32 %v6845_v41, 0.0  ;;  %v6848_v32 = vadd.f32 %v12585_v26, %v6816_v63  ;;  %v6814_v6 = vmul.f32 %v12575_v50, %v6782_v28  ;;  %v6731_v17 = vadd.f32 %v8824_v35, %v6730_v59  ;;  %v13094_v63 = vld [vmem:[#allocation67_spill] sm:$0xff] }
 0x53a   : > { %v6787_v23 = vadd.f32 %v6739_v11, %v13085_v40  ;;  %v9009_v45 = vpop.f32.mrf.mxu1  ;;  %v8838_v27 = vpop.f32.mrf.mxu0  ;;  %v5938_v35 = vadd.f32 %v8709_v10, %v13093_v58 }
 0x53b   : > { %6909 = vst [vmem:[%s12611_s23 + $0xa0] sm:$0xff] %v6877_v12  ;;  %v6880_v38 = vmax.f32 %v6848_v32, 0.0  ;;  %v6846_v33 = vadd.f32 %v12585_v26, %v6814_v6  ;;  %v6785_v8 = vadd.f32 %v6731_v17, %v13086_v18  ;;  %v6742_v30 = vadd.f32 %v9009_v45, %v8833_v62  ;;  %v13095_v6 = vld [vmem:[#allocation14_spill] sm:$0xff] }
 0x53c   : > { %v6819_v46 = vmul.f32 %v12575_v50, %v6787_v23  ;;  %v6733_v2 = vpop.f32.mrf.mxu1  ;;  %v8840_v0 = vpop.f32.mrf.mxu0  ;;  %v8839_v3 = vadd.f32 %v8838_v27, %v8837_v16  ;;  %v6099_v17 = vadd.f32 %v13095_v6, %v5938_v35 }
 0x53d   : > { %6912 = vst [vmem:[%s12611_s23 + $0xb8] sm:$0xff] %v6880_v38  ;;  %v6878_v9 = vmax.f32 %v6846_v33, 0.0  ;;  %v6817_v54 = vmul.f32 %v12575_v50, %v6785_v8  ;;  %v6788_v31 = vadd.f32 %v6742_v30, %v13087_v60  ;;  %v6734_v14 = vadd.f32 %v8827_v21, %v6733_v2  ;;  %v13096_v21 = vld [vmem:[#allocation17_spill] sm:$0xff] }
 0x53e   : > { %v6851_v57 = vadd.f32 %v12585_v26, %v6819_v46  ;;  %v9012_v39 = vpop.f32.mrf.mxu1  ;;  %v8841_v4 = vpop.f32.mrf.mxu0 }
 0x53f   : > { %6910 = vst [vmem:[%s12611_s23 + $0xa8] sm:$0xff] %v6878_v9  ;;  %v6849_v52 = vadd.f32 %v12585_v26, %v6817_v54  ;;  %v6820_v51 = vmul.f32 %v12575_v50, %v6788_v31  ;;  %v6786_v53 = vadd.f32 %v6734_v14, %v13091_v22  ;;  %v8842_v43 = vadd.f32 %v8841_v4, %v8840_v0 }
 0x540   : > { %v6883_v19 = vmax.f32 %v6851_v57, 0.0  ;;  %v6746_v5 = vpop.f32.mrf.mxu1  ;;  %v8843_v24 = vpop.f32.mrf.mxu0 }
 0x541   : > { %v6881_v34 = vmax.f32 %v6849_v52, 0.0  ;;  %v6852_v47 = vadd.f32 %v12585_v26, %v6820_v51  ;;  %v6818_v36 = vmul.f32 %v12575_v50, %v6786_v53  ;;  %v6747_v55 = vadd.f32 %v8836_v37, %v6746_v5 }
 0x542   : > { %6915 = vst [vmem:[%s12611_s23 + $0xd0] sm:$0xff] %v6883_v19  ;;  %v6755_v20 = vadd.f32 %v9012_v39, %v8842_v43  ;;  %v9013_v44 = vpop.f32.mrf.mxu1  ;;  %v8844_v28 = vpop.f32.mrf.mxu0 }
 0x543   : > { %6913 = vst [vmem:[%s12611_s23 + $0xc0] sm:$0xff] %v6881_v34  ;;  %v6884_v13 = vmax.f32 %v6852_v47, 0.0  ;;  %v6850_v41 = vadd.f32 %v12585_v26, %v6818_v36  ;;  %v6789_v1 = vadd.f32 %v6747_v55, %v13094_v63  ;;  %v8845_v62 = vadd.f32 %v8844_v28, %v8843_v24 }
 0x544   : > { %v6791_v56 = vadd.f32 %v6755_v20, %v6096_v49  ;;  %v6749_v11 = vpop.f32.mrf.mxu1 }
 0x545   : > { %6916 = vst [vmem:[%s12611_s23 + $0xd8] sm:$0xff] %v6884_v13  ;;  %v6882_v59 = vmax.f32 %v6850_v41, 0.0  ;;  %v6821_v12 = vmul.f32 %v12575_v50, %v6789_v1  ;;  %v6750_v32 = vadd.f32 %v8839_v3, %v6749_v11  ;;  %v6758_v61 = vadd.f32 %v9013_v44, %v8845_v62 }
 0x546   : > { %v6823_v16 = vmul.f32 %v12575_v50, %v6791_v56 }
 0x547   : > { %6914 = vst [vmem:[%s12611_s23 + $0xc8] sm:$0xff] %v6882_v59  ;;  %v6853_v15 = vadd.f32 %v12585_v26, %v6821_v12  ;;  %v6790_v40 = vadd.f32 %v6750_v32, %v13096_v21  ;;  %v6792_v45 = vadd.f32 %v6758_v61, %v6099_v17 }
 0x548   : > { %v6855_v23 = vadd.f32 %v12585_v26, %v6823_v16 }
 0x549   : > { %v6885_v38 = vmax.f32 %v6853_v15, 0.0  ;;  %v6822_v33 = vmul.f32 %v12575_v50, %v6790_v40  ;;  %v6824_v8 = vmul.f32 %v12575_v50, %v6792_v45 }
 0x54a   : > { %v6887_v18 = vmax.f32 %v6855_v23, 0.0 }
 0x54b   : > { %6917 = vst [vmem:[%s12611_s23 + $0xe0] sm:$0xff] %v6885_v38  ;;  %v6854_v30 = vadd.f32 %v12585_v26, %v6822_v33  ;;  %v6856_v27 = vadd.f32 %v12585_v26, %v6824_v8 }
 0x54c   : > { %6919 = vst [vmem:[%s12611_s23 + $0xf0] sm:$0xff] %v6887_v18 }
 0x54d   : > { %v6886_v46 = vmax.f32 %v6854_v30, 0.0  ;;  %v6888_v50 = vmax.f32 %v6856_v27, 0.0 }
 0x54f   : > { %6918 = vst [vmem:[%s12611_s23 + $0xe8] sm:$0xff] %v6886_v46  ;;  %6920 = vst [vmem:[%s12611_s23 + $0xf8] sm:$0xff] %v6888_v50 }
 0x550   : > { %9521 = shalt.err (!%p9518_p0)
}
 0x551   : > { %s9522_s17 = scalar_lea.hbm %s12801_s12, 4096  ;;  %s9526_s23 = scalar_lea.hbm %s12857_s8, 8192 }
 0x552   : > { %p9523_p1 = scmp.ne.s32.totalorder %s12801_s12, %s9522_s17  ;;  %p9527_p4 = scmp.lt.s32.totalorder %s12801_s12, %s12857_s8 }
 0x553   : > { %p9528_p7 = scmp.lt.s32.totalorder %s9526_s23, %s9522_s17 }
 0x554   : > { %p9524_p2 = pnand %p9523_p1, %p9664_p5 }
 0x555   : > { %p9529_p6 = por %p9528_p7, %p9527_p4 }
 0x556   : > { %p9525_p3 = pneg %p9524_p2 }
 0x558   : > { %p9530_p8 = pnand %p9529_p6, %p9525_p3 }
 0x55a   : > { %9533 = shalt.err (!%p9530_p8)
}
 0x55b   : > { %s9579_s10 = smov 128   ;;  %s9580_s13 = smov 8  }
 0x55c   : > { %9034 = dma.vmem_to_hbm [thread:$0]  (%p9664_p5), %s12803_s25, 4096, %s12801_s12, %s12809_s9, %s9579_s10, %s9579_s10, %s9580_s13  }
 0x55d PF: > { %p9046_p9 = scmp.ge.s32.totalorder %s9572_s30, 2  ;;  %s6950_s18 = sand.u32 1, %s9560_s27  }
 0x55e   : > { %p13097_p10 = scmp.ne.s32.totalorder %s12861_s16, 0  ;;  %s6951_s19 = scalar_lea.sflag [#allocation6], %s6950_s18 }
 0x560   : > { %p9041_p11 = pnand %p9046_p9, %p13097_p10 }
 0x562   : > { %p9042_p12 = pneg %p9041_p11 }
 0x564   : > { %9555 = dma.done.wait (%p9042_p12), %s6951_s19, 4096  }
 0x565   : > { %9557 = vsyncadd (%p9042_p12), %s6951_s19, 4294963200  ;;  %p19_p13 = scmp.ge.s32.totalorder %s9651_s11, 4   ;;  %s13098_s27 = smov %s9564_s28 }
 0x566   : > { %s13099_s28 = smov %s9568_s29  ;;  %s13100_s29 = smov %s9662_s14 }
 0x567   : > { %s13101_s30 = smov %s9651_s11  ;;  %21 = sbr.rel (!%p19_p13) target bundleno = 4 (0x4), region = 138 }
 0x56c   :  { %6956 = vsyncpa [#allocation5], 1 }
 0x56d   :  { %6958 = vsyncpa [#allocation5 + $0x1], 1 }
 0x56e   :  { %6959 = vsyncpa [#allocation6], 1 }
 0x56f   :  { %6961 = vsyncpa [#allocation6 + $0x1], 1 }

</bundles_post_ra>
